<compile_context>
chip_gen: v7x
topology: tpu7x:2x2x1
jax: 0.10.0
libtpu: 0.0.40
codegen_flags: <defaults>
</compile_context>

<pallas_src>
import functools

import jax
import jax.numpy as jnp
from jax import lax
from jax.experimental import pallas as pl
from jax.experimental.pallas import tpu as pltpu


def _round_up(x, m):
    return ((x + m - 1) // m) * m


def _conv3x3_relu_pool2(pad_ref, w_ref, b_ref, *, H, W, Cout):
    """3x3 'same' conv (halo already zeroed) + bias + ReLU + 2x2 max-pool.

    pad_ref : (H+3, Wp, Cin) compute-dtype scratch.  Image at [1:H+1, 1:W+1, :];
              zero halo at row 0, row H+1, col 0, col W+1.  Columns >= W+2 and
              row H+2 are don't-care (only ever read into junk outputs).
    w_ref   : (9, Cin, Cout) per-tap weights, tap index = 3*dh + dw.
    b_ref   : (1, Cout) f32 bias.
    returns : (H//2, W//2, Cout) f32.

    The conv is evaluated on a "wide" grid of Wp columns per row via 9
    accumulating MXU matmuls over shifted views of the row-flattened slab
    (no im2col buffer).  Junk columns (>= W) are discarded right after the
    width-pooling step and can never contaminate valid outputs (Wp is even,
    so pooled pairs never straddle a row, and valid taps never read the
    don't-care columns).
    """
    Wp, Cin = pad_ref.shape[1], pad_ref.shape[2]
    M = H * Wp

    acc = None
    for dh in range(3):
        # (H+1) padded rows starting at dh, flattened over (row, col).  Wp is a
        # multiple of the sublane packing, so this merge is tile-aligned.
        f = pad_ref[dh:dh + H + 1, :, :].reshape((H + 1) * Wp, Cin)
        for dw in range(3):
            lhs = f[dw:dw + M, :]                                # (M, Cin)
            part = jnp.dot(lhs, w_ref[dh * 3 + dw],
                           preferred_element_type=jnp.float32)   # (M, Cout) f32
            acc = part if acc is None else acc + part

    y = jnp.maximum(acc + b_ref[...], 0.0)                       # bias + ReLU (f32)

    # ---- 2x2 max pool, stride 2, via pairwise maxes ----
    y = jnp.max(y.reshape(M // 2, 2, Cout), axis=1)              # adjacent cols
    y = y.reshape(H, Wp // 2, Cout)[:, :W // 2, :]               # drop junk cols
    y = jnp.max(y.reshape(H // 2, 2, W // 2, Cout), axis=1)      # adjacent rows
    return y                                                     # (H//2, W//2, Cout)


def _feature_extractor_kernel(x_ref, w1_ref, b1_ref, w2_ref, b2_ref, o_ref,
                              p1_ref, p2_ref):
    # x_ref : (1, H, W, Cin)        o_ref : (1, H//4, W//4, C2)
    H, W = x_ref.shape[1], x_ref.shape[2]
    H2, W2 = H // 2, W // 2
    Wp1, Cin = p1_ref.shape[1], p1_ref.shape[2]
    Wp2, C1 = p2_ref.shape[1], p2_ref.shape[2]
    cdt = p1_ref.dtype

    # ----- layer 1: zero only the halo strips, then write the interior -----
    p1_ref[0:1, :, :] = jnp.zeros((1, Wp1, Cin), cdt)              # top halo row
    p1_ref[H + 1:H + 2, :, :] = jnp.zeros((1, Wp1, Cin), cdt)      # bottom halo row
    p1_ref[1:H + 1, 0:1, :] = jnp.zeros((H, 1, Cin), cdt)          # left halo col
    p1_ref[1:H + 1, W + 1:W + 2, :] = jnp.zeros((H, 1, Cin), cdt)  # right halo col
    p1_ref[1:H + 1, 1:W + 1, :] = x_ref[0].astype(cdt)             # image interior
    h1 = _conv3x3_relu_pool2(p1_ref, w1_ref, b1_ref,
                             H=H, W=W, Cout=w1_ref.shape[2])       # (H2, W2, C1) f32

    # ----- layer 2: intermediate stays on-chip (never touches HBM) -----
    p2_ref[0:1, :, :] = jnp.zeros((1, Wp2, C1), cdt)
    p2_ref[H2 + 1:H2 + 2, :, :] = jnp.zeros((1, Wp2, C1), cdt)
    p2_ref[1:H2 + 1, 0:1, :] = jnp.zeros((H2, 1, C1), cdt)
    p2_ref[1:H2 + 1, W2 + 1:W2 + 2, :] = jnp.zeros((H2, 1, C1), cdt)
    p2_ref[1:H2 + 1, 1:W2 + 1, :] = h1.astype(cdt)
    h2 = _conv3x3_relu_pool2(p2_ref, w2_ref, b2_ref,
                             H=H2, W=W2, Cout=w2_ref.shape[2])     # (H/4, W/4, C2) f32

    o_ref[...] = h2[None].astype(o_ref.dtype)


def _feature_extractor_pallas(x_nhwc, w1, b1, w2, b2, compute_dtype):
    """Fused forward, NHWC in / NHWC out.  w1/w2 are (9, Cin, Cout) compute_dtype."""
    N, H, W, Cin = x_nhwc.shape
    C1 = w1.shape[2]
    C2 = w2.shape[2]
    assert H % 4 == 0 and W % 4 == 0, "spatial dims must be divisible by 4"
    H2, W2 = H // 2, W // 2
    Hq, Wq = H // 4, W // 4

    cdt_bytes = jnp.dtype(compute_dtype).itemsize
    sub = max(8, 32 // cdt_bytes)          # sublane packing: 8 for f32, 16 for bf16
    Wp1 = _round_up(W + 2, sub)
    Wp2 = _round_up(W2 + 2, sub)

    # Right-size the VMEM budget from the actual footprint (feedback #8):
    # double-buffered I/O blocks + weights + padded slabs + live f32 accumulators.
    io_bytes = jnp.dtype(x_nhwc.dtype).itemsize
    est = (2 * (H * W * Cin + Hq * Wq * C2) * io_bytes
           + 2 * (9 * Cin * C1 + 9 * C1 * C2) * cdt_bytes + 2 * (C1 + C2) * 4
           + ((H + 3) * Wp1 * Cin + (H2 + 3) * Wp2 * C1) * cdt_bytes
           + 4 * (H * Wp1 * C1 + H2 * Wp2 * C2)
           + ((H + 1) * Wp1 * Cin + (H2 + 1) * Wp2 * C1) * cdt_bytes)
    vmem_limit = int(min(100 * 2 ** 20, max(16 * 2 ** 20, 2 * est)))

    return pl.pallas_call(
        _feature_extractor_kernel,
        out_shape=jax.ShapeDtypeStruct((N, Hq, Wq, C2), x_nhwc.dtype),
        grid=(N,),
        in_specs=[
            pl.BlockSpec((1, H, W, Cin), lambda n: (n, 0, 0, 0)),
            pl.BlockSpec((9, Cin, C1), lambda n: (0, 0, 0)),
            pl.BlockSpec((1, C1), lambda n: (0, 0)),
            pl.BlockSpec((9, C1, C2), lambda n: (0, 0, 0)),
            pl.BlockSpec((1, C2), lambda n: (0, 0)),
        ],
        out_specs=pl.BlockSpec((1, Hq, Wq, C2), lambda n: (n, 0, 0, 0)),
        scratch_shapes=[
            pltpu.VMEM((H + 3, Wp1, Cin), compute_dtype),    # padded layer-1 slab
            pltpu.VMEM((H2 + 3, Wp2, C1), compute_dtype),    # padded layer-2 slab
        ],
        compiler_params=pltpu.CompilerParams(
            dimension_semantics=("parallel",),
            vmem_limit_bytes=vmem_limit,
        ),
    )(x_nhwc, w1, b1.reshape(1, C1), w2, b2.reshape(1, C2))


@functools.partial(jax.jit, static_argnames=("compute_dtype",))
def conv_feature_extractor(x_nchw, params, compute_dtype=jnp.bfloat16):
    """Forward pass of ConvolutionalFeatureExtractor. NCHW in, NCHW out."""
    # NCHW -> NHWC so channels sit on the lane axis inside the kernel.
    x = jnp.transpose(x_nchw, (0, 2, 3, 1))
    Cin = x.shape[-1]
    C1 = params["w1"].shape[-1]
    C2 = params["w2"].shape[-1]
    # HWIO -> (tap, Cin, Cout) in the MXU compute dtype (f32 accumulation in-kernel).
    w1 = params["w1"].reshape(9, Cin, C1).astype(compute_dtype)
    w2 = params["w2"].reshape(9, C1, C2).astype(compute_dtype)
    b1 = params["b1"].astype(jnp.float32)
    b2 = params["b2"].astype(jnp.float32)
    y = _feature_extractor_pallas(x, w1, b1, w2, b2, compute_dtype)
    # TODO(synk): a transposed (Cout, M) GEMM with a direct NCHW write would make
    # the small-Cout output stores lane-dense and delete this transpose.
    return jnp.transpose(y, (0, 3, 1, 2))


def init_params(key, input_channels, output_channels):
    """Deterministic init mirroring nn.Conv2d default (uniform +/- 1/sqrt(fan_in))."""
    k1, k2, k3, k4 = jax.random.split(key, 4)
    fan1 = input_channels * 9
    fan2 = 64 * 9
    b1_bound = 1.0 / jnp.sqrt(jnp.float32(fan1))
    b2_bound = 1.0 / jnp.sqrt(jnp.float32(fan2))
    w1 = jax.random.uniform(k1, (3, 3, input_channels, 64), jnp.float32,
                            -b1_bound, b1_bound)
    b1 = jax.random.uniform(k2, (64,), jnp.float32, -b1_bound, b1_bound)
    w2 = jax.random.uniform(k3, (3, 3, 64, output_channels), jnp.float32,
                            -b2_bound, b2_bound)
    b2 = jax.random.uniform(k4, (output_channels,), jnp.float32,
                            -b2_bound, b2_bound)
    return {"w1": w1, "b1": b1, "w2": w2, "b2": b2}


def _reference(x_nchw, params):
    """Pure-JAX reference (lax conv + reduce_window) for correctness check."""
    x = jnp.transpose(x_nchw, (0, 2, 3, 1))
    for w, b in ((params["w1"], params["b1"]), (params["w2"], params["b2"])):
        y = lax.conv_general_dilated(
            x, w, window_strides=(1, 1), padding="SAME",
            dimension_numbers=("NHWC", "HWIO", "NHWC"),
            precision=lax.Precision.HIGHEST)
        y = jnp.maximum(y + b, 0.0)
        x = lax.reduce_window(y, -jnp.inf, lax.max,
                              (1, 2, 2, 1), (1, 2, 2, 1), "VALID")
    return jnp.transpose(x, (0, 3, 1, 2))


if __name__ == "__main__":
    key = jax.random.PRNGKey(0)
    k_x, k_p = jax.random.split(key)

    batch, in_ch, out_ch, spatial = 2, 4, 8, 16
    x = jax.random.normal(k_x, (batch, in_ch, spatial, spatial), jnp.float32)
    params = init_params(k_p, in_ch, out_ch)

    ref = _reference(x, params)

    # Strict check on the f32 compute path.
    out_f32 = conv_feature_extractor(x, params, compute_dtype=jnp.float32)
    out_f32 = jax.block_until_ready(out_f32)
    assert out_f32.shape == (batch, out_ch, spatial // 4, spatial // 4), out_f32.shape
    assert jnp.allclose(out_f32, ref, rtol=1e-4, atol=1e-4), (
        "f32 mismatch vs reference, max abs err = %g"
        % float(jnp.max(jnp.abs(out_f32 - ref))))

    # Default bf16 MXU path (f32 accumulation) with loosened tolerance.
    out_bf16 = jax.block_until_ready(conv_feature_extractor(x, params))
    assert out_bf16.shape == (batch, out_ch, spatial // 4, spatial // 4), out_bf16.shape
    assert jnp.allclose(out_bf16, ref, rtol=1e-1, atol=1e-1), (
        "bf16 mismatch vs reference, max abs err = %g"
        % float(jnp.max(jnp.abs(out_bf16 - ref))))

    print("KERNEL_OK")
</pallas_src>

<mosaic_0001>
module attributes {stable_mosaic.version = 11 : i64} {
  func.func @_feature_extractor_kernel(%arg0: i32, %arg1: memref<1x16x16x4xf32, #tpu.memory_space<vmem>>, %arg2: memref<9x4x64xf32, #tpu.memory_space<vmem>>, %arg3: memref<1x64xf32, #tpu.memory_space<vmem>>, %arg4: memref<9x64x8xf32, #tpu.memory_space<vmem>>, %arg5: memref<1x8xf32, #tpu.memory_space<vmem>>, %arg6: memref<1x4x4x8xf32, #tpu.memory_space<vmem>>, %arg7: memref<19x24x4xf32, #tpu.memory_space<vmem>>, %arg8: memref<11x16x64xf32, #tpu.memory_space<vmem>>) attributes {dimension_semantics = [#tpu.dimension_semantics<parallel>], iteration_bounds = array<i64: 2>, scalar_prefetch = 0 : i64, scratch_operands = 2 : i64, tpu.core_type = #tpu.core_type<tc>, window_params = [{transform_indices = @transform_0, window_bounds = array<i64: 1, 16, 16, 4>}, {pipeline_mode = #tpu.pipeline_mode<synchronous>, transform_indices = @transform_1, window_bounds = array<i64: 9, 4, 64>}, {pipeline_mode = #tpu.pipeline_mode<synchronous>, transform_indices = @transform_2, window_bounds = array<i64: 1, 64>}, {pipeline_mode = #tpu.pipeline_mode<synchronous>, transform_indices = @transform_3, window_bounds = array<i64: 9, 64, 8>}, {pipeline_mode = #tpu.pipeline_mode<synchronous>, transform_indices = @transform_4, window_bounds = array<i64: 1, 8>}, {transform_indices = @transform_5, window_bounds = array<i64: 1, 4, 4, 8>}]} {
    %cst = arith.constant 0.000000e+00 : f32
    %0 = vector.broadcast %cst : f32 to vector<1x24x4xf32>
    %c0 = arith.constant 0 : index
    %c0_0 = arith.constant 0 : index
    %c0_1 = arith.constant 0 : index
    %1 = vector.load %arg7[%c0, %c0_0, %c0_1] : memref<19x24x4xf32, #tpu.memory_space<vmem>>, vector<1x24x4xf32>
    tpu.vector_store %arg7[%c0, %c0_0, %c0_1], %0 {strides = array<i32>} : memref<19x24x4xf32, #tpu.memory_space<vmem>>, vector<1x24x4xf32>,
    %cst_2 = arith.constant 0.000000e+00 : f32
    %2 = vector.broadcast %cst_2 : f32 to vector<1x24x4xf32>
    %c17 = arith.constant 17 : index
    %c0_3 = arith.constant 0 : index
    %c0_4 = arith.constant 0 : index
    %3 = vector.load %arg7[%c17, %c0_3, %c0_4] : memref<19x24x4xf32, #tpu.memory_space<vmem>>, vector<1x24x4xf32>
    tpu.vector_store %arg7[%c17, %c0_3, %c0_4], %2 {strides = array<i32>} : memref<19x24x4xf32, #tpu.memory_space<vmem>>, vector<1x24x4xf32>,
    %cst_5 = arith.constant 0.000000e+00 : f32
    %4 = vector.broadcast %cst_5 : f32 to vector<16x1x4xf32>
    %c1 = arith.constant 1 : index
    %c0_6 = arith.constant 0 : index
    %c0_7 = arith.constant 0 : index
    %5 = vector.load %arg7[%c1, %c0_6, %c0_7] : memref<19x24x4xf32, #tpu.memory_space<vmem>>, vector<16x1x4xf32>
    tpu.vector_store %arg7[%c1, %c0_6, %c0_7], %4 {strides = array<i32>} : memref<19x24x4xf32, #tpu.memory_space<vmem>>, vector<16x1x4xf32>,
    %cst_8 = arith.constant 0.000000e+00 : f32
    %6 = vector.broadcast %cst_8 : f32 to vector<16x1x4xf32>
    %c1_9 = arith.constant 1 : index
    %c17_10 = arith.constant 17 : index
    %c0_11 = arith.constant 0 : index
    %7 = vector.load %arg7[%c1_9, %c17_10, %c0_11] : memref<19x24x4xf32, #tpu.memory_space<vmem>>, vector<16x1x4xf32>
    tpu.vector_store %arg7[%c1_9, %c17_10, %c0_11], %6 {strides = array<i32>} : memref<19x24x4xf32, #tpu.memory_space<vmem>>, vector<16x1x4xf32>,
    %c0_12 = arith.constant 0 : index
    %c0_13 = arith.constant 0 : index
    %c0_14 = arith.constant 0 : index
    %c0_15 = arith.constant 0 : index
    %8 = vector.load %arg1[%c0_12, %c0_13, %c0_14, %c0_15] : memref<1x16x16x4xf32, #tpu.memory_space<vmem>>, vector<1x16x16x4xf32>
    %9 = vector.shape_cast %8 : vector<1x16x16x4xf32> to vector<16x16x4xf32>
    %c1_16 = arith.constant 1 : index
    %c1_17 = arith.constant 1 : index
    %c0_18 = arith.constant 0 : index
    %10 = vector.load %arg7[%c1_16, %c1_17, %c0_18] : memref<19x24x4xf32, #tpu.memory_space<vmem>>, vector<16x16x4xf32>
    tpu.vector_store %arg7[%c1_16, %c1_17, %c0_18], %9 {strides = array<i32>} : memref<19x24x4xf32, #tpu.memory_space<vmem>>, vector<16x16x4xf32>,
    %c0_19 = arith.constant 0 : index
    %c0_20 = arith.constant 0 : index
    %c0_21 = arith.constant 0 : index
    %11 = vector.load %arg7[%c0_19, %c0_20, %c0_21] : memref<19x24x4xf32, #tpu.memory_space<vmem>>, vector<17x24x4xf32>
    %12 = vector.shape_cast %11 : vector<17x24x4xf32> to vector<408x4xf32>
    %13 = vector.extract_strided_slice %12 {offsets = [0, 0], sizes = [384, 4], strides = [1, 1]} : vector<408x4xf32> to vector<384x4xf32>
    %c0_22 = arith.constant 0 : index
    %c0_23 = arith.constant 0 : index
    %c0_24 = arith.constant 0 : index
    %14 = vector.load %arg2[%c0_22, %c0_23, %c0_24] : memref<9x4x64xf32, #tpu.memory_space<vmem>>, vector<1x4x64xf32>
    %15 = vector.shape_cast %14 : vector<1x4x64xf32> to vector<4x64xf32>
    %cst_25 = arith.constant dense<0.000000e+00> : vector<384x64xf32>
    %16 = tpu.matmul %13, %15, %cst_25 {dimension_numbers = #tpu.dot_dimension_numbers<[1], [0], [0], [1], [0, 0, 1, 1], [], []>} : vector<384x4xf32>, vector<4x64xf32>, vector<384x64xf32> -> vector<384x64xf32>
    %17 = vector.extract_strided_slice %12 {offsets = [1, 0], sizes = [384, 4], strides = [1, 1]} : vector<408x4xf32> to vector<384x4xf32>
    %c1_26 = arith.constant 1 : index
    %c0_27 = arith.constant 0 : index
    %c0_28 = arith.constant 0 : index
    %18 = vector.load %arg2[%c1_26, %c0_27, %c0_28] : memref<9x4x64xf32, #tpu.memory_space<vmem>>, vector<1x4x64xf32>
    %19 = vector.shape_cast %18 : vector<1x4x64xf32> to vector<4x64xf32>
    %cst_29 = arith.constant dense<0.000000e+00> : vector<384x64xf32>
    %20 = tpu.matmul %17, %19, %cst_29 {dimension_numbers = #tpu.dot_dimension_numbers<[1], [0], [0], [1], [0, 0, 1, 1], [], []>} : vector<384x4xf32>, vector<4x64xf32>, vector<384x64xf32> -> vector<384x64xf32>
    %21 = arith.addf %16, %20 : vector<384x64xf32>
    %22 = vector.extract_strided_slice %12 {offsets = [2, 0], sizes = [384, 4], strides = [1, 1]} : vector<408x4xf32> to vector<384x4xf32>
    %c2 = arith.constant 2 : index
    %c0_30 = arith.constant 0 : index
    %c0_31 = arith.constant 0 : index
    %23 = vector.load %arg2[%c2, %c0_30, %c0_31] : memref<9x4x64xf32, #tpu.memory_space<vmem>>, vector<1x4x64xf32>
    %24 = vector.shape_cast %23 : vector<1x4x64xf32> to vector<4x64xf32>
    %cst_32 = arith.constant dense<0.000000e+00> : vector<384x64xf32>
    %25 = tpu.matmul %22, %24, %cst_32 {dimension_numbers = #tpu.dot_dimension_numbers<[1], [0], [0], [1], [0, 0, 1, 1], [], []>} : vector<384x4xf32>, vector<4x64xf32>, vector<384x64xf32> -> vector<384x64xf32>
    %26 = arith.addf %21, %25 : vector<384x64xf32>
    %c1_33 = arith.constant 1 : index
    %c0_34 = arith.constant 0 : index
    %c0_35 = arith.constant 0 : index
    %27 = vector.load %arg7[%c1_33, %c0_34, %c0_35] : memref<19x24x4xf32, #tpu.memory_space<vmem>>, vector<17x24x4xf32>
    %28 = vector.shape_cast %27 : vector<17x24x4xf32> to vector<408x4xf32>
    %29 = vector.extract_strided_slice %28 {offsets = [0, 0], sizes = [384, 4], strides = [1, 1]} : vector<408x4xf32> to vector<384x4xf32>
    %c3 = arith.constant 3 : index
    %c0_36 = arith.constant 0 : index
    %c0_37 = arith.constant 0 : index
    %30 = vector.load %arg2[%c3, %c0_36, %c0_37] : memref<9x4x64xf32, #tpu.memory_space<vmem>>, vector<1x4x64xf32>
    %31 = vector.shape_cast %30 : vector<1x4x64xf32> to vector<4x64xf32>
    %cst_38 = arith.constant dense<0.000000e+00> : vector<384x64xf32>
    %32 = tpu.matmul %29, %31, %cst_38 {dimension_numbers = #tpu.dot_dimension_numbers<[1], [0], [0], [1], [0, 0, 1, 1], [], []>} : vector<384x4xf32>, vector<4x64xf32>, vector<384x64xf32> -> vector<384x64xf32>
    %33 = arith.addf %26, %32 : vector<384x64xf32>
    %34 = vector.extract_strided_slice %28 {offsets = [1, 0], sizes = [384, 4], strides = [1, 1]} : vector<408x4xf32> to vector<384x4xf32>
    %c4 = arith.constant 4 : index
    %c0_39 = arith.constant 0 : index
    %c0_40 = arith.constant 0 : index
    %35 = vector.load %arg2[%c4, %c0_39, %c0_40] : memref<9x4x64xf32, #tpu.memory_space<vmem>>, vector<1x4x64xf32>
    %36 = vector.shape_cast %35 : vector<1x4x64xf32> to vector<4x64xf32>
    %cst_41 = arith.constant dense<0.000000e+00> : vector<384x64xf32>
    %37 = tpu.matmul %34, %36, %cst_41 {dimension_numbers = #tpu.dot_dimension_numbers<[1], [0], [0], [1], [0, 0, 1, 1], [], []>} : vector<384x4xf32>, vector<4x64xf32>, vector<384x64xf32> -> vector<384x64xf32>
    %38 = arith.addf %33, %37 : vector<384x64xf32>
    %39 = vector.extract_strided_slice %28 {offsets = [2, 0], sizes = [384, 4], strides = [1, 1]} : vector<408x4xf32> to vector<384x4xf32>
    %c5 = arith.constant 5 : index
    %c0_42 = arith.constant 0 : index
    %c0_43 = arith.constant 0 : index
    %40 = vector.load %arg2[%c5, %c0_42, %c0_43] : memref<9x4x64xf32, #tpu.memory_space<vmem>>, vector<1x4x64xf32>
    %41 = vector.shape_cast %40 : vector<1x4x64xf32> to vector<4x64xf32>
    %cst_44 = arith.constant dense<0.000000e+00> : vector<384x64xf32>
    %42 = tpu.matmul %39, %41, %cst_44 {dimension_numbers = #tpu.dot_dimension_numbers<[1], [0], [0], [1], [0, 0, 1, 1], [], []>} : vector<384x4xf32>, vector<4x64xf32>, vector<384x64xf32> -> vector<384x64xf32>
    %43 = arith.addf %38, %42 : vector<384x64xf32>
    %c2_45 = arith.constant 2 : index
    %c0_46 = arith.constant 0 : index
    %c0_47 = arith.constant 0 : index
    %44 = vector.load %arg7[%c2_45, %c0_46, %c0_47] : memref<19x24x4xf32, #tpu.memory_space<vmem>>, vector<17x24x4xf32>
    %45 = vector.shape_cast %44 : vector<17x24x4xf32> to vector<408x4xf32>
    %46 = vector.extract_strided_slice %45 {offsets = [0, 0], sizes = [384, 4], strides = [1, 1]} : vector<408x4xf32> to vector<384x4xf32>
    %c6 = arith.constant 6 : index
    %c0_48 = arith.constant 0 : index
    %c0_49 = arith.constant 0 : index
    %47 = vector.load %arg2[%c6, %c0_48, %c0_49] : memref<9x4x64xf32, #tpu.memory_space<vmem>>, vector<1x4x64xf32>
    %48 = vector.shape_cast %47 : vector<1x4x64xf32> to vector<4x64xf32>
    %cst_50 = arith.constant dense<0.000000e+00> : vector<384x64xf32>
    %49 = tpu.matmul %46, %48, %cst_50 {dimension_numbers = #tpu.dot_dimension_numbers<[1], [0], [0], [1], [0, 0, 1, 1], [], []>} : vector<384x4xf32>, vector<4x64xf32>, vector<384x64xf32> -> vector<384x64xf32>
    %50 = arith.addf %43, %49 : vector<384x64xf32>
    %51 = vector.extract_strided_slice %45 {offsets = [1, 0], sizes = [384, 4], strides = [1, 1]} : vector<408x4xf32> to vector<384x4xf32>
    %c7 = arith.constant 7 : index
    %c0_51 = arith.constant 0 : index
    %c0_52 = arith.constant 0 : index
    %52 = vector.load %arg2[%c7, %c0_51, %c0_52] : memref<9x4x64xf32, #tpu.memory_space<vmem>>, vector<1x4x64xf32>
    %53 = vector.shape_cast %52 : vector<1x4x64xf32> to vector<4x64xf32>
    %cst_53 = arith.constant dense<0.000000e+00> : vector<384x64xf32>
    %54 = tpu.matmul %51, %53, %cst_53 {dimension_numbers = #tpu.dot_dimension_numbers<[1], [0], [0], [1], [0, 0, 1, 1], [], []>} : vector<384x4xf32>, vector<4x64xf32>, vector<384x64xf32> -> vector<384x64xf32>
    %55 = arith.addf %50, %54 : vector<384x64xf32>
    %56 = vector.extract_strided_slice %45 {offsets = [2, 0], sizes = [384, 4], strides = [1, 1]} : vector<408x4xf32> to vector<384x4xf32>
    %c8 = arith.constant 8 : index
    %c0_54 = arith.constant 0 : index
    %c0_55 = arith.constant 0 : index
    %57 = vector.load %arg2[%c8, %c0_54, %c0_55] : memref<9x4x64xf32, #tpu.memory_space<vmem>>, vector<1x4x64xf32>
    %58 = vector.shape_cast %57 : vector<1x4x64xf32> to vector<4x64xf32>
    %cst_56 = arith.constant dense<0.000000e+00> : vector<384x64xf32>
    %59 = tpu.matmul %56, %58, %cst_56 {dimension_numbers = #tpu.dot_dimension_numbers<[1], [0], [0], [1], [0, 0, 1, 1], [], []>} : vector<384x4xf32>, vector<4x64xf32>, vector<384x64xf32> -> vector<384x64xf32>
    %60 = arith.addf %55, %59 : vector<384x64xf32>
    %c0_57 = arith.constant 0 : index
    %c0_58 = arith.constant 0 : index
    %61 = vector.load %arg3[%c0_57, %c0_58] : memref<1x64xf32, #tpu.memory_space<vmem>>, vector<1x64xf32>
    %62 = vector.broadcast %61 : vector<1x64xf32> to vector<384x64xf32>
    %63 = arith.addf %60, %62 : vector<384x64xf32>
    %cst_59 = arith.constant 0.000000e+00 : f32
    %64 = vector.broadcast %cst_59 : f32 to vector<384x64xf32>
    %65 = arith.maximumf %63, %64 : vector<384x64xf32>
    %66 = vector.shape_cast %65 : vector<384x64xf32> to vector<192x2x64xf32>
    %cst_60 = arith.constant dense<0xFF800000> : vector<192x64xf32>
    %67 = vector.multi_reduction <maximumf>, %66, %cst_60 [1] : vector<192x2x64xf32> to vector<192x64xf32>
    %68 = vector.shape_cast %67 : vector<192x64xf32> to vector<16x12x64xf32>
    %69 = vector.extract_strided_slice %68 {offsets = [0, 0, 0], sizes = [16, 8, 64], strides = [1, 1, 1]} : vector<16x12x64xf32> to vector<16x8x64xf32>
    %70 = vector.shape_cast %69 : vector<16x8x64xf32> to vector<8x2x8x64xf32>
    %cst_61 = arith.constant dense<0xFF800000> : vector<8x8x64xf32>
    %71 = vector.multi_reduction <maximumf>, %70, %cst_61 [1] : vector<8x2x8x64xf32> to vector<8x8x64xf32>
    %cst_62 = arith.constant 0.000000e+00 : f32
    %72 = vector.broadcast %cst_62 : f32 to vector<1x16x64xf32>
    %c0_63 = arith.constant 0 : index
    %c0_64 = arith.constant 0 : index
    %c0_65 = arith.constant 0 : index
    %73 = vector.load %arg8[%c0_63, %c0_64, %c0_65] : memref<11x16x64xf32, #tpu.memory_space<vmem>>, vector<1x16x64xf32>
    tpu.vector_store %arg8[%c0_63, %c0_64, %c0_65], %72 {strides = array<i32>} : memref<11x16x64xf32, #tpu.memory_space<vmem>>, vector<1x16x64xf32>,
    %cst_66 = arith.constant 0.000000e+00 : f32
    %74 = vector.broadcast %cst_66 : f32 to vector<1x16x64xf32>
    %c9 = arith.constant 9 : index
    %c0_67 = arith.constant 0 : index
    %c0_68 = arith.constant 0 : index
    %75 = vector.load %arg8[%c9, %c0_67, %c0_68] : memref<11x16x64xf32, #tpu.memory_space<vmem>>, vector<1x16x64xf32>
    tpu.vector_store %arg8[%c9, %c0_67, %c0_68], %74 {strides = array<i32>} : memref<11x16x64xf32, #tpu.memory_space<vmem>>, vector<1x16x64xf32>,
    %cst_69 = arith.constant 0.000000e+00 : f32
    %76 = vector.broadcast %cst_69 : f32 to vector<8x1x64xf32>
    %c1_70 = arith.constant 1 : index
    %c0_71 = arith.constant 0 : index
    %c0_72 = arith.constant 0 : index
    %77 = vector.load %arg8[%c1_70, %c0_71, %c0_72] : memref<11x16x64xf32, #tpu.memory_space<vmem>>, vector<8x1x64xf32>
    tpu.vector_store %arg8[%c1_70, %c0_71, %c0_72], %76 {strides = array<i32>} : memref<11x16x64xf32, #tpu.memory_space<vmem>>, vector<8x1x64xf32>,
    %cst_73 = arith.constant 0.000000e+00 : f32
    %78 = vector.broadcast %cst_73 : f32 to vector<8x1x64xf32>
    %c1_74 = arith.constant 1 : index
    %c9_75 = arith.constant 9 : index
    %c0_76 = arith.constant 0 : index
    %79 = vector.load %arg8[%c1_74, %c9_75, %c0_76] : memref<11x16x64xf32, #tpu.memory_space<vmem>>, vector<8x1x64xf32>
    tpu.vector_store %arg8[%c1_74, %c9_75, %c0_76], %78 {strides = array<i32>} : memref<11x16x64xf32, #tpu.memory_space<vmem>>, vector<8x1x64xf32>,
    %c1_77 = arith.constant 1 : index
    %c1_78 = arith.constant 1 : index
    %c0_79 = arith.constant 0 : index
    %80 = vector.load %arg8[%c1_77, %c1_78, %c0_79] : memref<11x16x64xf32, #tpu.memory_space<vmem>>, vector<8x8x64xf32>
    tpu.vector_store %arg8[%c1_77, %c1_78, %c0_79], %71 {strides = array<i32>} : memref<11x16x64xf32, #tpu.memory_space<vmem>>, vector<8x8x64xf32>,
    %c0_80 = arith.constant 0 : index
    %c0_81 = arith.constant 0 : index
    %c0_82 = arith.constant 0 : index
    %81 = vector.load %arg8[%c0_80, %c0_81, %c0_82] : memref<11x16x64xf32, #tpu.memory_space<vmem>>, vector<9x16x64xf32>
    %82 = vector.shape_cast %81 : vector<9x16x64xf32> to vector<144x64xf32>
    %83 = vector.extract_strided_slice %82 {offsets = [0, 0], sizes = [128, 64], strides = [1, 1]} : vector<144x64xf32> to vector<128x64xf32>
    %c0_83 = arith.constant 0 : index
    %c0_84 = arith.constant 0 : index
    %c0_85 = arith.constant 0 : index
    %84 = vector.load %arg4[%c0_83, %c0_84, %c0_85] : memref<9x64x8xf32, #tpu.memory_space<vmem>>, vector<1x64x8xf32>
    %85 = vector.shape_cast %84 : vector<1x64x8xf32> to vector<64x8xf32>
    %cst_86 = arith.constant dense<0.000000e+00> : vector<128x8xf32>
    %86 = tpu.matmul %83, %85, %cst_86 {dimension_numbers = #tpu.dot_dimension_numbers<[1], [0], [0], [1], [0, 0, 1, 1], [], []>} : vector<128x64xf32>, vector<64x8xf32>, vector<128x8xf32> -> vector<128x8xf32>
    %87 = vector.extract_strided_slice %82 {offsets = [1, 0], sizes = [128, 64], strides = [1, 1]} : vector<144x64xf32> to vector<128x64xf32>
    %c1_87 = arith.constant 1 : index
    %c0_88 = arith.constant 0 : index
    %c0_89 = arith.constant 0 : index
    %88 = vector.load %arg4[%c1_87, %c0_88, %c0_89] : memref<9x64x8xf32, #tpu.memory_space<vmem>>, vector<1x64x8xf32>
    %89 = vector.shape_cast %88 : vector<1x64x8xf32> to vector<64x8xf32>
    %cst_90 = arith.constant dense<0.000000e+00> : vector<128x8xf32>
    %90 = tpu.matmul %87, %89, %cst_90 {dimension_numbers = #tpu.dot_dimension_numbers<[1], [0], [0], [1], [0, 0, 1, 1], [], []>} : vector<128x64xf32>, vector<64x8xf32>, vector<128x8xf32> -> vector<128x8xf32>
    %91 = arith.addf %86, %90 : vector<128x8xf32>
    %92 = vector.extract_strided_slice %82 {offsets = [2, 0], sizes = [128, 64], strides = [1, 1]} : vector<144x64xf32> to vector<128x64xf32>
    %c2_91 = arith.constant 2 : index
    %c0_92 = arith.constant 0 : index
    %c0_93 = arith.constant 0 : index
    %93 = vector.load %arg4[%c2_91, %c0_92, %c0_93] : memref<9x64x8xf32, #tpu.memory_space<vmem>>, vector<1x64x8xf32>
    %94 = vector.shape_cast %93 : vector<1x64x8xf32> to vector<64x8xf32>
    %cst_94 = arith.constant dense<0.000000e+00> : vector<128x8xf32>
    %95 = tpu.matmul %92, %94, %cst_94 {dimension_numbers = #tpu.dot_dimension_numbers<[1], [0], [0], [1], [0, 0, 1, 1], [], []>} : vector<128x64xf32>, vector<64x8xf32>, vector<128x8xf32> -> vector<128x8xf32>
    %96 = arith.addf %91, %95 : vector<128x8xf32>
    %c1_95 = arith.constant 1 : index
    %c0_96 = arith.constant 0 : index
    %c0_97 = arith.constant 0 : index
    %97 = vector.load %arg8[%c1_95, %c0_96, %c0_97] : memref<11x16x64xf32, #tpu.memory_space<vmem>>, vector<9x16x64xf32>
    %98 = vector.shape_cast %97 : vector<9x16x64xf32> to vector<144x64xf32>
    %99 = vector.extract_strided_slice %98 {offsets = [0, 0], sizes = [128, 64], strides = [1, 1]} : vector<144x64xf32> to vector<128x64xf32>
    %c3_98 = arith.constant 3 : index
    %c0_99 = arith.constant 0 : index
    %c0_100 = arith.constant 0 : index
    %100 = vector.load %arg4[%c3_98, %c0_99, %c0_100] : memref<9x64x8xf32, #tpu.memory_space<vmem>>, vector<1x64x8xf32>
    %101 = vector.shape_cast %100 : vector<1x64x8xf32> to vector<64x8xf32>
    %cst_101 = arith.constant dense<0.000000e+00> : vector<128x8xf32>
    %102 = tpu.matmul %99, %101, %cst_101 {dimension_numbers = #tpu.dot_dimension_numbers<[1], [0], [0], [1], [0, 0, 1, 1], [], []>} : vector<128x64xf32>, vector<64x8xf32>, vector<128x8xf32> -> vector<128x8xf32>
    %103 = arith.addf %96, %102 : vector<128x8xf32>
    %104 = vector.extract_strided_slice %98 {offsets = [1, 0], sizes = [128, 64], strides = [1, 1]} : vector<144x64xf32> to vector<128x64xf32>
    %c4_102 = arith.constant 4 : index
    %c0_103 = arith.constant 0 : index
    %c0_104 = arith.constant 0 : index
    %105 = vector.load %arg4[%c4_102, %c0_103, %c0_104] : memref<9x64x8xf32, #tpu.memory_space<vmem>>, vector<1x64x8xf32>
    %106 = vector.shape_cast %105 : vector<1x64x8xf32> to vector<64x8xf32>
    %cst_105 = arith.constant dense<0.000000e+00> : vector<128x8xf32>
    %107 = tpu.matmul %104, %106, %cst_105 {dimension_numbers = #tpu.dot_dimension_numbers<[1], [0], [0], [1], [0, 0, 1, 1], [], []>} : vector<128x64xf32>, vector<64x8xf32>, vector<128x8xf32> -> vector<128x8xf32>
    %108 = arith.addf %103, %107 : vector<128x8xf32>
    %109 = vector.extract_strided_slice %98 {offsets = [2, 0], sizes = [128, 64], strides = [1, 1]} : vector<144x64xf32> to vector<128x64xf32>
    %c5_106 = arith.constant 5 : index
    %c0_107 = arith.constant 0 : index
    %c0_108 = arith.constant 0 : index
    %110 = vector.load %arg4[%c5_106, %c0_107, %c0_108] : memref<9x64x8xf32, #tpu.memory_space<vmem>>, vector<1x64x8xf32>
    %111 = vector.shape_cast %110 : vector<1x64x8xf32> to vector<64x8xf32>
    %cst_109 = arith.constant dense<0.000000e+00> : vector<128x8xf32>
    %112 = tpu.matmul %109, %111, %cst_109 {dimension_numbers = #tpu.dot_dimension_numbers<[1], [0], [0], [1], [0, 0, 1, 1], [], []>} : vector<128x64xf32>, vector<64x8xf32>, vector<128x8xf32> -> vector<128x8xf32>
    %113 = arith.addf %108, %112 : vector<128x8xf32>
    %c2_110 = arith.constant 2 : index
    %c0_111 = arith.constant 0 : index
    %c0_112 = arith.constant 0 : index
    %114 = vector.load %arg8[%c2_110, %c0_111, %c0_112] : memref<11x16x64xf32, #tpu.memory_space<vmem>>, vector<9x16x64xf32>
    %115 = vector.shape_cast %114 : vector<9x16x64xf32> to vector<144x64xf32>
    %116 = vector.extract_strided_slice %115 {offsets = [0, 0], sizes = [128, 64], strides = [1, 1]} : vector<144x64xf32> to vector<128x64xf32>
    %c6_113 = arith.constant 6 : index
    %c0_114 = arith.constant 0 : index
    %c0_115 = arith.constant 0 : index
    %117 = vector.load %arg4[%c6_113, %c0_114, %c0_115] : memref<9x64x8xf32, #tpu.memory_space<vmem>>, vector<1x64x8xf32>
    %118 = vector.shape_cast %117 : vector<1x64x8xf32> to vector<64x8xf32>
    %cst_116 = arith.constant dense<0.000000e+00> : vector<128x8xf32>
    %119 = tpu.matmul %116, %118, %cst_116 {dimension_numbers = #tpu.dot_dimension_numbers<[1], [0], [0], [1], [0, 0, 1, 1], [], []>} : vector<128x64xf32>, vector<64x8xf32>, vector<128x8xf32> -> vector<128x8xf32>
    %120 = arith.addf %113, %119 : vector<128x8xf32>
    %121 = vector.extract_strided_slice %115 {offsets = [1, 0], sizes = [128, 64], strides = [1, 1]} : vector<144x64xf32> to vector<128x64xf32>
    %c7_117 = arith.constant 7 : index
    %c0_118 = arith.constant 0 : index
    %c0_119 = arith.constant 0 : index
    %122 = vector.load %arg4[%c7_117, %c0_118, %c0_119] : memref<9x64x8xf32, #tpu.memory_space<vmem>>, vector<1x64x8xf32>
    %123 = vector.shape_cast %122 : vector<1x64x8xf32> to vector<64x8xf32>
    %cst_120 = arith.constant dense<0.000000e+00> : vector<128x8xf32>
    %124 = tpu.matmul %121, %123, %cst_120 {dimension_numbers = #tpu.dot_dimension_numbers<[1], [0], [0], [1], [0, 0, 1, 1], [], []>} : vector<128x64xf32>, vector<64x8xf32>, vector<128x8xf32> -> vector<128x8xf32>
    %125 = arith.addf %120, %124 : vector<128x8xf32>
    %126 = vector.extract_strided_slice %115 {offsets = [2, 0], sizes = [128, 64], strides = [1, 1]} : vector<144x64xf32> to vector<128x64xf32>
    %c8_121 = arith.constant 8 : index
    %c0_122 = arith.constant 0 : index
    %c0_123 = arith.constant 0 : index
    %127 = vector.load %arg4[%c8_121, %c0_122, %c0_123] : memref<9x64x8xf32, #tpu.memory_space<vmem>>, vector<1x64x8xf32>
    %128 = vector.shape_cast %127 : vector<1x64x8xf32> to vector<64x8xf32>
    %cst_124 = arith.constant dense<0.000000e+00> : vector<128x8xf32>
    %129 = tpu.matmul %126, %128, %cst_124 {dimension_numbers = #tpu.dot_dimension_numbers<[1], [0], [0], [1], [0, 0, 1, 1], [], []>} : vector<128x64xf32>, vector<64x8xf32>, vector<128x8xf32> -> vector<128x8xf32>
    %130 = arith.addf %125, %129 : vector<128x8xf32>
    %c0_125 = arith.constant 0 : index
    %c0_126 = arith.constant 0 : index
    %131 = vector.load %arg5[%c0_125, %c0_126] : memref<1x8xf32, #tpu.memory_space<vmem>>, vector<1x8xf32>
    %132 = vector.broadcast %131 : vector<1x8xf32> to vector<128x8xf32>
    %133 = arith.addf %130, %132 : vector<128x8xf32>
    %cst_127 = arith.constant 0.000000e+00 : f32
    %134 = vector.broadcast %cst_127 : f32 to vector<128x8xf32>
    %135 = arith.maximumf %133, %134 : vector<128x8xf32>
    %136 = vector.shape_cast %135 : vector<128x8xf32> to vector<64x2x8xf32>
    %cst_128 = arith.constant dense<0xFF800000> : vector<64x8xf32>
    %137 = vector.multi_reduction <maximumf>, %136, %cst_128 [1] : vector<64x2x8xf32> to vector<64x8xf32>
    %138 = vector.shape_cast %137 : vector<64x8xf32> to vector<8x8x8xf32>
    %139 = vector.extract_strided_slice %138 {offsets = [0, 0, 0], sizes = [8, 4, 8], strides = [1, 1, 1]} : vector<8x8x8xf32> to vector<8x4x8xf32>
    %140 = vector.shape_cast %139 : vector<8x4x8xf32> to vector<4x2x4x8xf32>
    %cst_129 = arith.constant dense<0xFF800000> : vector<4x4x8xf32>
    %141 = vector.multi_reduction <maximumf>, %140, %cst_129 [1] : vector<4x2x4x8xf32> to vector<4x4x8xf32>
    %142 = vector.shape_cast %141 : vector<4x4x8xf32> to vector<1x4x4x8xf32>
    %c0_130 = arith.constant 0 : index
    %c0_131 = arith.constant 0 : index
    %c0_132 = arith.constant 0 : index
    %c0_133 = arith.constant 0 : index
    %143 = vector.load %arg6[%c0_130, %c0_131, %c0_132, %c0_133] : memref<1x4x4x8xf32, #tpu.memory_space<vmem>>, vector<1x4x4x8xf32>
    tpu.vector_store %arg6[%c0_130, %c0_131, %c0_132, %c0_133], %142 {strides = array<i32>} : memref<1x4x4x8xf32, #tpu.memory_space<vmem>>, vector<1x4x4x8xf32>,
    return
  }
  func.func @transform_0(%arg0: i32) -> (i32, i32, i32, i32) {
    %c0_i32 = arith.constant 0 : i32
    %c0_i32_0 = arith.constant 0 : i32
    %c0_i32_1 = arith.constant 0 : i32
    %c0_i32_2 = arith.constant 0 : i32
    return %arg0, %c0_i32, %c0_i32_0, %c0_i32_1 : i32, i32, i32, i32
  }
  func.func @transform_1(%arg0: i32) -> (i32, i32, i32) {
    %c0_i32 = arith.constant 0 : i32
    %c0_i32_0 = arith.constant 0 : i32
    %c0_i32_1 = arith.constant 0 : i32
    %c0_i32_2 = arith.constant 0 : i32
    return %c0_i32, %c0_i32_0, %c0_i32_1 : i32, i32, i32
  }
  func.func @transform_2(%arg0: i32) -> (i32, i32) {
    %c0_i32 = arith.constant 0 : i32
    %c0_i32_0 = arith.constant 0 : i32
    %c0_i32_1 = arith.constant 0 : i32
    return %c0_i32, %c0_i32_0 : i32, i32
  }
  func.func @transform_3(%arg0: i32) -> (i32, i32, i32) {
    %c0_i32 = arith.constant 0 : i32
    %c0_i32_0 = arith.constant 0 : i32
    %c0_i32_1 = arith.constant 0 : i32
    %c0_i32_2 = arith.constant 0 : i32
    return %c0_i32, %c0_i32_0, %c0_i32_1 : i32, i32, i32
  }
  func.func @transform_4(%arg0: i32) -> (i32, i32) {
    %c0_i32 = arith.constant 0 : i32
    %c0_i32_0 = arith.constant 0 : i32
    %c0_i32_1 = arith.constant 0 : i32
    return %c0_i32, %c0_i32_0 : i32, i32
  }
  func.func @transform_5(%arg0: i32) -> (i32, i32, i32, i32) {
    %c0_i32 = arith.constant 0 : i32
    %c0_i32_0 = arith.constant 0 : i32
    %c0_i32_1 = arith.constant 0 : i32
    %c0_i32_2 = arith.constant 0 : i32
    return %arg0, %c0_i32, %c0_i32_0, %c0_i32_1 : i32, i32, i32, i32
  }
}

</mosaic_0001>

<bundles_post_ra>
// kernel: conv_feature_extractor.1
= control target key start
LH: loop header
LB: loop body
LE: loop exit
PB: predicated region body
PF: predicated region fallthrough
CT: control target
= control target key end

     0   :  { %10 = vsyncpa [#allocation5], 0  ;;  %s16093_s0 = inlined_call_operand.vmem [shape: f32[2,16,16,4], index: 0, kind: input, shape index: {}]   ;;  %s16094_s1 = inlined_call_operand.vmem [shape: f32[9,4,64], index: 1, kind: input, shape index: {}]   ;;  %s16095_s2 = inlined_call_operand.vmem [shape: f32[1,64], index: 2, kind: input, shape index: {}]   ;;  %s16096_s3 = inlined_call_operand.vmem [shape: f32[9,64,8], index: 3, kind: input, shape index: {}]   ;;  %s16097_s4 = inlined_call_operand.vmem [shape: f32[1,8], index: 4, kind: input, shape index: {}]   ;;  %s16098_s5 = inlined_call_operand.hbm [shape: f32[2,4,4,8], index: 5, kind: output, shape index: {}]  }
   0x1   :  { %12 = vsyncpa [#allocation5 + $0x1], 0  ;;  %s12298_s18 = smov 0   ;;  %s12300_s19 = smov 0  }
   0x2   :  { %s12302_s20 = smov 0   ;;  %s12304_s21 = smov 0  }
   0x3 LB: > { %s12319_s22 = sadd.s32 4294967295, %s12261_s21   ;;  %s9517_s23 = sadd.s32 4294967294, %s12261_s21   ;;  %s12261_s21 = sphi %s12304_s21, %s16448_s21   ;;  %s12257_s20 = sphi %s12302_s20, %s16447_s20   ;;  %s12253_s19 = sphi %s12300_s19, %s16446_s19   ;;  %s12249_s18 = sphi %s12298_s18, %s16445_s18  }
   0x4   : > { %s12323_s24 = sadd.s32 1, %s12261_s21   ;;  %s135_s25 = sadd.s32 1, %s12257_s20 }
   0x5   : > { %s132_s26 = ssub.s32 %s12261_s21, %s12323_s24  ;;  %p145_p0 = scmp.ne.s32.totalorder %s12257_s20, %s12253_s19 }
   0x6   : > { %p133_p1 = scmp.eq.s32.totalorder %s132_s26, 0  ;;  %p146_p2 = scmp.eq.s32.totalorder %s12319_s22, 1 }
   0x7   : > { %p151_p3 = scmp.ne.s32.totalorder %s12253_s19, %s12249_s18  ;;  %p152_p4 = scmp.eq.s32.totalorder %s9517_s23, 1 }
   0x8   : > { %s12334_s27 = scalar_select %p133_p1, %s12257_s20, %s135_s25  }
   0x9   : > { %p12336_p5 = por %p146_p2, %p145_p0  ;;  %p12340_p6 = por %p152_p4, %p151_p3 }
   0xa   : > { %p9520_p7 = scmp.ge.s32.totalorder %s12261_s21, 1  ;;  %p190_p8 = scmp.lt.s32.totalorder %s12261_s21, 3 }
   0xc   : > { %p191_p9 = pnand %p9520_p7, %p190_p8 }
   0xe   : > { %194 = sbr.rel (%p191_p9) target bundleno = 1676 (0x68c), region = 40 }
  0x15   : > { %v9524_v0 = vld [vmem:[%s16094_s1 + $0x4] sm:$0xf]  ;;  %vm624_vm0 = vcmask 1043456   ;;  %v9673_v1 = vld [vmem:[%s16094_s1 + $0xc] sm:$0xf]  ;;  %vm223_vm1 = vcmask 31744  }
  0x16   : > { %10847 = vmatprep.subr.msk.mxu1 %vm624_vm0, %v9524_v0  ;;  %11069 = vmatprep.subr.msk.mxu0 %vm624_vm0, %v9673_v1  ;;  %p218_p10 = scmp.lt.s32.totalorder %s12319_s22, 1  ;;  %vm232_vm2 = vcmask 24576   ;;  %v12358_v2 = vld [vmem:[%s16094_s1 + $0x10] sm:$0xf]  ;;  %v16099_v3 = vmov 0.0   ;;  %vm430_vm3 = vcmask 1046528  }
  0x17   : > { %10848 = vmatpush3.msk.msra.mxu1 %vm624_vm0, %v9524_v0  ;;  %224 = vst.msk [vmem:[#allocation2] sm:$0xff] %vm223_vm1, %v16099_v3  ;;  %225 = vst.msk [vmem:[#allocation2 + $0x8] sm:$0xff] %vm223_vm1, %v16099_v3  ;;  %11070 = vmatpush3.msk.msra.mxu0 %vm624_vm0, %v9673_v1  ;;  %v378_v4 = vld [vmem:[%s16094_s1] sm:$0xf]  ;;  %v12523_v40 = vld [vmem:[%s16094_s1 + $0x14] sm:$0xf] }
  0x18   : > { %226 = vst.msk [vmem:[#allocation2 + $0x10] sm:$0xff] %vm223_vm1, %v16099_v3  ;;  %228 = vst.msk [vmem:[#allocation2 + $0x198] sm:$0xff] %vm223_vm1, %v16099_v3  ;;  %s219_s13 = scalar_select %p218_p10, %s12319_s22, 1  ;;  %11143 = vmatprep.subr.msk.mxu0 %vm624_vm0, %v12358_v2  ;;  %10921 = vmatprep.subr.msk.mxu1 %vm624_vm0, %v378_v4  ;;  %vm1307_vm4 = vcmask 1045504   ;;  %vm6614_vm5 = vcmask 523264   ;;  %vm5717_vm6 = vcmask 517120  }
  0x19   : > { %229 = vst.msk [vmem:[#allocation2 + $0x1a0] sm:$0xff] %vm223_vm1, %v16099_v3  ;;  %230 = vst.msk [vmem:[#allocation2 + $0x1a8] sm:$0xff] %vm223_vm1, %v16099_v3  ;;  %vm6894_vm7 = vcmask 1041409   ;;  %vm6896_vm8 = vcmask 1042434   ;;  %vm6898_vm9 = vcmask 1043459   ;;  %vm6900_vm10 = vcmask 1044484  }
  0x1a   : > { %233 = vst.msk [vmem:[#allocation2 + $0x18] sm:$0x1] %vm232_vm2, %v16099_v3  ;;  %234 = vst.msk [vmem:[#allocation2 + $0x30] sm:$0x1] %vm232_vm2, %v16099_v3  ;;  %s10188_s14 = sshll.u32 %s219_s13, 8  ;;  %vm6902_vm11 = vcmask 1045509  }
  0x1b   : > { %235 = vst.msk [vmem:[#allocation2 + $0x48] sm:$0x1] %vm232_vm2, %v16099_v3  ;;  %236 = vst.msk [vmem:[#allocation2 + $0x60] sm:$0x1] %vm232_vm2, %v16099_v3  ;;  %s12450_s17 = scalar_lea.vmem %s16093_s0, %s10188_s14  ;;  %vm6904_vm12 = vcmask 1046534   ;;  %vm6906_vm13 = vcmask 1047559  }
  0x1c   : > { %237 = vst.msk [vmem:[#allocation2 + $0x78] sm:$0x1] %vm232_vm2, %v16099_v3  ;;  %238 = vst.msk [vmem:[#allocation2 + $0x90] sm:$0x1] %vm232_vm2, %v16099_v3  ;;  %v265_v5 = vld [vmem:[%s12450_s17] sm:$0xff]  ;;  %v266_v6 = vld [vmem:[%s12450_s17 + $0x8] sm:$0xff] }
  0x1d   : > { %239 = vst.msk [vmem:[#allocation2 + $0xa8] sm:$0x1] %vm232_vm2, %v16099_v3  ;;  %240 = vst.msk [vmem:[#allocation2 + $0xc0] sm:$0x1] %vm232_vm2, %v16099_v3  ;;  %v267_v7 = vld [vmem:[%s12450_s17 + $0x10] sm:$0xff]  ;;  %v268_v8 = vld [vmem:[%s12450_s17 + $0x18] sm:$0xff] }
  0x1e   : > { %241 = vst.msk [vmem:[#allocation2 + $0xd8] sm:$0x1] %vm232_vm2, %v16099_v3  ;;  %242 = vst.msk [vmem:[#allocation2 + $0xf0] sm:$0x1] %vm232_vm2, %v16099_v3  ;;  %v269_v9 = vld [vmem:[%s12450_s17 + $0x20] sm:$0xff]  ;;  %v270_v10 = vld [vmem:[%s12450_s17 + $0x28] sm:$0xff] }
  0x1f   : > { %243 = vst.msk [vmem:[#allocation2 + $0x108] sm:$0x1] %vm232_vm2, %v16099_v3  ;;  %244 = vst.msk [vmem:[#allocation2 + $0x120] sm:$0x1] %vm232_vm2, %v16099_v3  ;;  %v12461_v11 = vld [vmem:[#allocation2] sm:$0xff]  ;;  %v12463_v12 = vld [vmem:[#allocation2 + $0x8] sm:$0xff] }
  0x20   : > { %245 = vst.msk [vmem:[#allocation2 + $0x138] sm:$0x1] %vm232_vm2, %v16099_v3  ;;  %246 = vst.msk [vmem:[#allocation2 + $0x150] sm:$0x1] %vm232_vm2, %v16099_v3  ;;  %v12465_v13 = vld [vmem:[#allocation2 + $0x10] sm:$0xff]  ;;  %v431_v14 = vrot.slane %v12461_v11, 1 }
  0x21   : > { %247 = vst.msk [vmem:[#allocation2 + $0x168] sm:$0x1] %vm232_vm2, %v16099_v3  ;;  %248 = vst.msk [vmem:[#allocation2 + $0x180] sm:$0x1] %vm232_vm2, %v16099_v3  ;;  %v432_v15 = vrot.slane %v12463_v12, 1  ;;  %v434_v16 = vrot.slane %v12465_v13, 1 }
  0x22   : > { %249 = vst.msk [vmem:[#allocation2 + $0x29] sm:$0x1] %vm232_vm2, %v16099_v3  ;;  %250 = vst.msk [vmem:[#allocation2 + $0x41] sm:$0x1] %vm232_vm2, %v16099_v3  ;;  %v271_v17 = vld [vmem:[%s12450_s17 + $0x30] sm:$0xff]  ;;  %v272_v18 = vld [vmem:[%s12450_s17 + $0x38] sm:$0xff] }
  0x23   : > { %251 = vst.msk [vmem:[#allocation2 + $0x59] sm:$0x1] %vm232_vm2, %v16099_v3  ;;  %252 = vst.msk [vmem:[#allocation2 + $0x71] sm:$0x1] %vm232_vm2, %v16099_v3  ;;  %v273_v19 = vld [vmem:[%s12450_s17 + $0x40] sm:$0xff]  ;;  %v274_v20 = vld [vmem:[%s12450_s17 + $0x48] sm:$0xff]  ;;  %v433_v22 = vsel %vm430_vm3, %v431_v14, %v432_v15  ;;  %v435_v23 = vsel %vm430_vm3, %v432_v15, %v434_v16 }
  0x24   : > { %253 = vst.msk [vmem:[#allocation2 + $0x89] sm:$0x1] %vm232_vm2, %v16099_v3  ;;  %254 = vst.msk [vmem:[#allocation2 + $0xa1] sm:$0x1] %vm232_vm2, %v16099_v3  ;;  %v275_v21 = vld [vmem:[%s12450_s17 + $0x50] sm:$0xff]  ;;  %v276_v24 = vld [vmem:[%s12450_s17 + $0x58] sm:$0xff]  ;;  %10849 = vmatprep.mubr.msk.f32.mxu1 %vm223_vm1, %v433_v22 }
  0x25   : > { %255 = vst.msk [vmem:[#allocation2 + $0xb9] sm:$0x1] %vm232_vm2, %v16099_v3  ;;  %256 = vst.msk [vmem:[#allocation2 + $0xd1] sm:$0x1] %vm232_vm2, %v16099_v3  ;;  %v277_v25 = vld [vmem:[%s12450_s17 + $0x60] sm:$0xff]  ;;  %v278_v26 = vld [vmem:[%s12450_s17 + $0x68] sm:$0xff]  ;;  %10850 = vmatmul.mubr.msk.f32.vlgmr.msra.gmra.mrb[0].mxu1 %vm223_vm1, %v435_v23 }
  0x26   : > { %257 = vst.msk [vmem:[#allocation2 + $0xe9] sm:$0x1] %vm232_vm2, %v16099_v3  ;;  %258 = vst.msk [vmem:[#allocation2 + $0x101] sm:$0x1] %vm232_vm2, %v16099_v3  ;;  %v279_v27 = vld [vmem:[%s12450_s17 + $0x70] sm:$0xff]  ;;  %v280_v28 = vld [vmem:[%s12450_s17 + $0x78] sm:$0xff]  ;;  %10922 = vmatpush3.msk.msra.mxu1 %vm624_vm0, %v378_v4 }
  0x27   : > { %259 = vst.msk [vmem:[#allocation2 + $0x119] sm:$0x1] %vm232_vm2, %v16099_v3  ;;  %260 = vst.msk [vmem:[#allocation2 + $0x131] sm:$0x1] %vm232_vm2, %v16099_v3  ;;  %v281_v29 = vld [vmem:[%s12450_s17 + $0x80] sm:$0xff]  ;;  %v282_v30 = vld [vmem:[%s12450_s17 + $0x88] sm:$0xff] }
  0x28   : > { %261 = vst.msk [vmem:[#allocation2 + $0x149] sm:$0x1] %vm232_vm2, %v16099_v3  ;;  %262 = vst.msk [vmem:[#allocation2 + $0x161] sm:$0x1] %vm232_vm2, %v16099_v3  ;;  %v283_v31 = vld [vmem:[%s12450_s17 + $0x90] sm:$0xff]  ;;  %v284_v32 = vld [vmem:[%s12450_s17 + $0x98] sm:$0xff] }
  0x29   : > { %263 = vst.msk [vmem:[#allocation2 + $0x179] sm:$0x1] %vm232_vm2, %v16099_v3  ;;  %264 = vst.msk [vmem:[#allocation2 + $0x191] sm:$0x1] %vm232_vm2, %v16099_v3  ;;  %v285_v59 = vld [vmem:[%s12450_s17 + $0xa0] sm:$0xff]  ;;  %v286_v62 = vld [vmem:[%s12450_s17 + $0xa8] sm:$0xff] }
  0x2a   : > { %297 = vst.msk [vmem:[#allocation2 + $0x19] sm:$0xff] %vm223_vm1, %v265_v5  ;;  %298 = vst.msk [vmem:[#allocation2 + $0x21] sm:$0xff] %vm223_vm1, %v266_v6  ;;  %v287_v63 = vld [vmem:[%s12450_s17 + $0xb0] sm:$0xff]  ;;  %v288_v0 = vld [vmem:[%s12450_s17 + $0xb8] sm:$0xff]  ;;  %vm6813_vm14 = vcmask 516096   ;;  %vm9130_vm15 = vcmask 58368  }
  0x2b   : > { %299 = vst.msk [vmem:[#allocation2 + $0x31] sm:$0xff] %vm223_vm1, %v267_v7  ;;  %300 = vst.msk [vmem:[#allocation2 + $0x39] sm:$0xff] %vm223_vm1, %v268_v8  ;;  %v289_v1 = vld [vmem:[%s12450_s17 + $0xc0] sm:$0xff]  ;;  %v291_v4 = vld [vmem:[%s12450_s17 + $0xd0] sm:$0xff]  ;;  %s215_s26 = sand.u32 1, %s12253_s19   ;;  %s10189_s7 = sshll.u32 %s12319_s22, 8 }
  0x2c   : > { %301 = vst.msk [vmem:[#allocation2 + $0x49] sm:$0xff] %vm223_vm1, %v269_v9  ;;  %302 = vst.msk [vmem:[#allocation2 + $0x51] sm:$0xff] %vm223_vm1, %v270_v10  ;;  %v292_v5 = vld [vmem:[%s12450_s17 + $0xd8] sm:$0xff]  ;;  %v293_v6 = vld [vmem:[%s12450_s17 + $0xe0] sm:$0xff]  ;;  %s9521_s30 = sshll.u32 %s215_s26, 4  ;;  %s16042_s11 = scalar_lea.hbm %s16098_s5, %s10189_s7 }
  0x2d   : > { %303 = vst.msk [vmem:[#allocation2 + $0x61] sm:$0xff] %vm223_vm1, %v271_v17  ;;  %304 = vst.msk [vmem:[#allocation2 + $0x69] sm:$0xff] %vm223_vm1, %v272_v18  ;;  %v294_v7 = vld [vmem:[%s12450_s17 + $0xe8] sm:$0xff]  ;;  %v295_v10 = vld [vmem:[%s12450_s17 + $0xf0] sm:$0xff]  ;;  %s16014_s6 = scalar_lea.vmem [#allocation4], %s9521_s30  ;;  %s16052_s22 = scalar_lea.sflag [#allocation5], %s215_s26 }
  0x2e   : > { %305 = vst.msk [vmem:[#allocation2 + $0x79] sm:$0xff] %vm223_vm1, %v273_v19  ;;  %306 = vst.msk [vmem:[#allocation2 + $0x81] sm:$0xff] %vm223_vm1, %v274_v20  ;;  %v296_v14 = vld [vmem:[%s12450_s17 + $0xf8] sm:$0xff]  ;;  %s9455_s8 = sshll.u32 %s16014_s6, 4  ;;  %s12265_s13 = smov [#allocation4]   ;;  %s16044_s8 = int_to_ptr.vmem [resolvable:$true] %s9455_s8 }
  0x2f   : > { %307 = vst.msk [vmem:[#allocation2 + $0x91] sm:$0xff] %vm223_vm1, %v275_v21  ;;  %308 = vst.msk [vmem:[#allocation2 + $0x99] sm:$0xff] %vm223_vm1, %v276_v24  ;;  %s12199_s12 = scalar_lea.vmem %s16044_s8, 256  ;;  %s12203_s14 = sshll.u32 %s12265_s13, 4  ;;  %s12204_s14 = int_to_ptr.vmem [resolvable:$false] %s12203_s14 }
  0x30   : > { %309 = vst.msk [vmem:[#allocation2 + $0xa9] sm:$0xff] %vm223_vm1, %v277_v25  ;;  %310 = vst.msk [vmem:[#allocation2 + $0xb1] sm:$0xff] %vm223_vm1, %v278_v26  ;;  %p12200_p11 = scmp.ne.s32.totalorder %s16044_s8, %s12199_s12  ;;  %s12205_s15 = scalar_lea.vmem %s12204_s14, 512 }
  0x31   : > { %311 = vst.msk [vmem:[#allocation2 + $0xc1] sm:$0xff] %vm223_vm1, %v279_v27  ;;  %312 = vst.msk [vmem:[#allocation2 + $0xc9] sm:$0xff] %vm223_vm1, %v280_v28  ;;  %v12502_v33 = vld [vmem:[#allocation2 + $0x18] sm:$0xff]  ;;  %v12504_v34 = vld [vmem:[#allocation2 + $0x20] sm:$0xff]  ;;  %p12206_p0 = scmp.lt.s32.totalorder %s16044_s8, %s12204_s14  ;;  %p12207_p1 = scmp.lt.s32.totalorder %s12205_s15, %s12199_s12 }
  0x32   : > { %313 = vst.msk [vmem:[#allocation2 + $0xd9] sm:$0xff] %vm223_vm1, %v281_v29  ;;  %v12506_v35 = vld [vmem:[#allocation2 + $0x28] sm:$0xff]  ;;  %314 = vst.msk [vmem:[#allocation2 + $0xe1] sm:$0xff] %vm223_vm1, %v282_v30  ;;  %11071 = vmatprep.mubr.msk.f32.mxu0 %vm223_vm1, %v12502_v33  ;;  %v2347_v36 = vrot.slane %v12502_v33, 1  ;;  %v2348_v37 = vrot.slane %v12504_v34, 1  ;;  %v12516_v38 = vld [vmem:[#allocation2 + $0x30] sm:$0xff]  ;;  %p12201_p12 = pnand %p12200_p11, %p12336_p5 }
  0x33   : > { %315 = vst.msk [vmem:[#allocation2 + $0xf1] sm:$0xff] %vm223_vm1, %v283_v31  ;;  %316 = vst.msk [vmem:[#allocation2 + $0xf9] sm:$0xff] %vm223_vm1, %v284_v32  ;;  %v12518_v39 = vld [vmem:[#allocation2 + $0x38] sm:$0xff]  ;;  %11072 = vmatmul.mubr.msk.f32.vlgmr.msra.gmra.mrb[0].mxu0 %vm223_vm1, %v12504_v34  ;;  %v2350_v41 = vrot.slane %v12506_v35, 1  ;;  %v2352_v42 = vrot.slane %v12516_v38, 1  ;;  %v12538_v46 = vld [vmem:[#allocation2 + $0x40] sm:$0xff]  ;;  %p12208_p2 = por %p12207_p1, %p12206_p0 }
  0x34   : > { %11144 = vmatpush3.msk.msra.mxu0 %vm624_vm0, %v12358_v2  ;;  %v437_v43 = vsel %vm430_vm3, %v434_v16, %v2347_v36  ;;  %v12533_v44 = vsel %vm430_vm3, %v2347_v36, %v2348_v37  ;;  %11074 = vmatprep.mubr.msk.f32.mxu0 %vm223_vm1, %v12506_v35  ;;  %v2354_v45 = vrot.slane %v12518_v39, 1  ;;  %16199 = vst [vmem:[#allocation7_spill] sm:$0xff] %v12538_v46  ;;  %v12544_v48 = vld [vmem:[#allocation2 + $0x48] sm:$0xff]  ;;  %v2356_v50 = vrot.slane %v12538_v46, 1  ;;  %v12564_v53 = vld [vmem:[#allocation2 + $0x50] sm:$0xff]  ;;  %v12566_v54 = vld [vmem:[#allocation2 + $0x58] sm:$0xff]  ;;  %p12202_p13 = pneg %p12201_p12 }
  0x35   : > { %10852 = vmatprep.mubr.msk.f32.mxu1 %vm223_vm1, %v437_v43  ;;  %v12542_v47 = vsel %vm430_vm3, %v2348_v37, %v2350_v41  ;;  %16200 = vst [vmem:[#allocation8_spill] sm:$0xff] %v12544_v48  ;;  %11217 = vmatprep.subr.msk.mxu0 %vm624_vm0, %v12523_v40  ;;  %v12555_v49 = vsel %vm430_vm3, %v2350_v41, %v2352_v42  ;;  %v2358_v52 = vrot.slane %v12544_v48, 1  ;;  %16201 = vst [vmem:[#allocation9_spill] sm:$0xff] %v12564_v53  ;;  %v12578_v57 = vld [vmem:[#allocation2 + $0x60] sm:$0xff]  ;;  %v12580_v58 = vld [vmem:[#allocation2 + $0x68] sm:$0xff] }
  0x36   : > { %10853 = vmatmul.mubr.msk.f32.gmra.mrb[2].mxu1 %vm223_vm1, %v12533_v44  ;;  %v12561_v51 = vsel %vm430_vm3, %v2352_v42, %v2354_v45  ;;  %16202 = vst [vmem:[#allocation10_spill] sm:$0xff] %v12566_v54  ;;  %v12575_v55 = vsel %vm430_vm3, %v2354_v45, %v2356_v50  ;;  %v2360_v56 = vrot.slane %v12564_v53, 1  ;;  %16203 = vst [vmem:[#allocation11_spill] sm:$0xff] %v12578_v57  ;;  %v2362_v61 = vrot.slane %v12566_v54, 1  ;;  %v290_v2 = vld [vmem:[%s12450_s17 + $0xc8] sm:$0xff]  ;;  %v12626_v17 = vld [vmem:[#allocation2 + $0x70] sm:$0xff]  ;;  %p12209_p3 = pnand %p12208_p2, %p12202_p13 }
  0x37   : > { %11075 = vmatmul.mubr.msk.f32.gmra.mrb[2].mxu0 %vm223_vm1, %v12516_v38  ;;  %10855 = vmatprep.mubr.msk.f32.mxu1 %vm223_vm1, %v12542_v47  ;;  %16204 = vst [vmem:[#allocation12_spill] sm:$0xff] %v12580_v58  ;;  %v12586_v60 = vsel %vm430_vm3, %v2356_v50, %v2358_v52  ;;  %317 = vst.msk [vmem:[#allocation2 + $0x109] sm:$0xff] %vm223_vm1, %v285_v59  ;;  %v2364_v9 = vrot.slane %v12578_v57, 1  ;;  %v2366_v16 = vrot.slane %v12580_v58, 1  ;;  %v12630_v18 = vld [vmem:[#allocation2 + $0x78] sm:$0xff]  ;;  %v2368_v20 = vrot.slane %v12626_v17, 1 }
  0x38   : > { %11077 = vmatprep.mubr.msk.f32.mxu0 %vm223_vm1, %v12518_v39  ;;  %318 = vst.msk [vmem:[#allocation2 + $0x111] sm:$0xff] %vm223_vm1, %v286_v62  ;;  %319 = vst.msk [vmem:[#allocation2 + $0x121] sm:$0xff] %vm223_vm1, %v287_v63  ;;  %v12612_v8 = vsel %vm430_vm3, %v2358_v52, %v2360_v56  ;;  %v12623_v15 = vsel %vm430_vm3, %v2360_v56, %v2362_v61  ;;  %v2370_v22 = vrot.slane %v12630_v18, 1  ;;  %v12648_v23 = vld [vmem:[#allocation2 + $0x80] sm:$0xff]  ;;  %v12650_v24 = vld [vmem:[#allocation2 + $0x88] sm:$0xff] }
  0x39   : > { %320 = vst.msk [vmem:[#allocation2 + $0x129] sm:$0xff] %vm223_vm1, %v288_v0  ;;  %321 = vst.msk [vmem:[#allocation2 + $0x139] sm:$0xff] %vm223_vm1, %v289_v1  ;;  %v12639_v19 = vsel %vm430_vm3, %v2362_v61, %v2364_v9  ;;  %v12645_v21 = vsel %vm430_vm3, %v2364_v9, %v2366_v16  ;;  %v12659_v25 = vsel %vm430_vm3, %v2366_v16, %v2368_v20  ;;  %v2372_v26 = vrot.slane %v12648_v23, 1  ;;  %v12668_v29 = vld [vmem:[#allocation2 + $0x90] sm:$0xff]  ;;  %v12670_v30 = vld [vmem:[#allocation2 + $0x98] sm:$0xff] }
  0x3a   : > { %10856 = vmatmul.mubr.msk.f32.gmra.mrb[4].mxu1 %vm223_vm1, %v12555_v49  ;;  %322 = vst.msk [vmem:[#allocation2 + $0x141] sm:$0xff] %vm223_vm1, %v290_v2  ;;  %323 = vst.msk [vmem:[#allocation2 + $0x151] sm:$0xff] %vm223_vm1, %v291_v4  ;;  %v2374_v27 = vrot.slane %v12650_v24, 1  ;;  %v12666_v28 = vsel %vm430_vm3, %v2368_v20, %v2370_v22  ;;  %v12672_v31 = vld [vmem:[#allocation2 + $0xa0] sm:$0xff]  ;;  %v12674_v32 = vld [vmem:[#allocation2 + $0xa8] sm:$0xff]  ;;  %v2376_v50 = vrot.slane %v12668_v29, 1 }
  0x3b   : > { %11078 = vmatmul.mubr.msk.f32.gmra.mrb[4].mxu0 %vm223_vm1, %v12538_v46  ;;  %10858 = vmatprep.mubr.msk.f32.mxu1 %vm223_vm1, %v12561_v51  ;;  %324 = vst.msk [vmem:[#allocation2 + $0x159] sm:$0xff] %vm223_vm1, %v292_v5  ;;  %325 = vst.msk [vmem:[#allocation2 + $0x169] sm:$0xff] %vm223_vm1, %v293_v6  ;;  %v12676_v36 = vld [vmem:[#allocation2 + $0xb0] sm:$0xff]  ;;  %v12678_v37 = vld [vmem:[#allocation2 + $0xb8] sm:$0xff]  ;;  %v12693_v45 = vsel %vm430_vm3, %v2370_v22, %v2372_v26  ;;  %v2378_v56 = vrot.slane %v12670_v30, 1  ;;  %v2380_v59 = vrot.slane %v12672_v31, 1 }
  0x3c   : > { %11080 = vmatprep.mubr.msk.f32.mxu0 %vm223_vm1, %v12544_v48  ;;  %326 = vst.msk [vmem:[#allocation2 + $0x171] sm:$0xff] %vm223_vm1, %v294_v7  ;;  %16205 = vst [vmem:[#allocation13_spill] sm:$0xff] %v12626_v17  ;;  %v12682_v41 = vld [vmem:[#allocation2 + $0xc0] sm:$0xff]  ;;  %v12684_v42 = vld [vmem:[#allocation2 + $0xc8] sm:$0xff]  ;;  %v12697_v52 = vsel %vm430_vm3, %v2372_v26, %v2374_v27  ;;  %v2382_v61 = vrot.slane %v12674_v32, 1  ;;  %v2384_v62 = vrot.slane %v12676_v36, 1  ;;  %v12724_v9 = vsel %vm430_vm3, %v2374_v27, %v2376_v50 }
  0x3d   : > { %327 = vst.msk [vmem:[#allocation2 + $0x181] sm:$0xff] %vm223_vm1, %v295_v10  ;;  %328 = vst.msk [vmem:[#allocation2 + $0x189] sm:$0xff] %vm223_vm1, %v296_v14  ;;  %v12686_v43 = vld [vmem:[#allocation2 + $0xd0] sm:$0xff]  ;;  %v2386_v63 = vrot.slane %v12678_v37, 1  ;;  %v2388_v0 = vrot.slane %v12682_v41, 1  ;;  %v2390_v1 = vrot.slane %v12684_v42, 1  ;;  %v12727_v10 = vsel %vm430_vm3, %v2376_v50, %v2378_v56 }
  0x3e   : > { %10859 = vmatmul.mubr.msk.f32.gmra.mrb[6].mxu1 %vm223_vm1, %v12575_v55  ;;  %16206 = vst [vmem:[#allocation14_spill] sm:$0xff] %v12630_v18  ;;  %16207 = vst [vmem:[#allocation15_spill] sm:$0xff] %v12639_v19  ;;  %v2392_v2 = vrot.slane %v12686_v43, 1  ;;  %v12709_v4 = vld [vmem:[#allocation2 + $0xd8] sm:$0xff]  ;;  %v12713_v5 = vld [vmem:[#allocation2 + $0xe0] sm:$0xff]  ;;  %v12738_v22 = vsel %vm430_vm3, %v2378_v56, %v2380_v59  ;;  %v12741_v26 = vsel %vm430_vm3, %v2380_v59, %v2382_v61 }
  0x3f   : > { %11081 = vmatmul.mubr.msk.f32.gmra.mrb[6].mxu0 %vm223_vm1, %v12564_v53  ;;  %10861 = vmatprep.mubr.msk.f32.mxu1 %vm223_vm1, %v12586_v60  ;;  %16208 = vst [vmem:[#allocation16_spill] sm:$0xff] %v12645_v21  ;;  %16209 = vst [vmem:[#allocation17_spill] sm:$0xff] %v12648_v23  ;;  %v12715_v6 = vld [vmem:[#allocation2 + $0xe8] sm:$0xff]  ;;  %v12717_v7 = vld [vmem:[#allocation2 + $0xf0] sm:$0xff]  ;;  %v12744_v27 = vsel %vm430_vm3, %v2382_v61, %v2384_v62  ;;  %v12747_v50 = vsel %vm430_vm3, %v2384_v62, %v2386_v63  ;;  %v2394_v61 = vrot.slane %v12709_v4, 1 }
  0x40   : > { %11083 = vmatprep.mubr.msk.f32.mxu0 %vm223_vm1, %v12566_v54  ;;  %16210 = vst [vmem:[#allocation18_spill] sm:$0xff] %v12650_v24  ;;  %16211 = vst [vmem:[#allocation19_spill] sm:$0xff] %v12659_v25  ;;  %v12729_v14 = vld [vmem:[#allocation2 + $0xf8] sm:$0xff]  ;;  %v12731_v16 = vld [vmem:[#allocation2 + $0x100] sm:$0xff]  ;;  %v12759_v56 = vsel %vm430_vm3, %v2388_v0, %v2390_v1  ;;  %v12762_v59 = vsel %vm430_vm3, %v2390_v1, %v2392_v2 }
  0x41   : > { %16212 = vst [vmem:[#allocation20_spill] sm:$0xff] %v12666_v28  ;;  %16213 = vst [vmem:[#allocation21_spill] sm:$0xff] %v12668_v29  ;;  %v12733_v20 = vld [vmem:[#allocation2 + $0x108] sm:$0xff]  ;;  %v12749_v3 = vld [vmem:[#allocation2 + $0x110] sm:$0xff]  ;;  %v2402_v1 = vrot.slane %v12729_v14, 1 }
  0x42   : > { %10862 = vmatmul.mubr.msk.f32.gmra.mrb[8].mxu1 %vm223_vm1, %v12612_v8  ;;  %16214 = vst [vmem:[#allocation22_spill] sm:$0xff] %v12670_v30  ;;  %16215 = vst [vmem:[#allocation23_spill] sm:$0xff] %v12672_v31  ;;  %v12767_v62 = vld [vmem:[#allocation2 + $0x130] sm:$0xff]  ;;  %v12836_v46 = vld [vmem:[#allocation2 + $0x168] sm:$0xff] }
  0x43   : > { %11084 = vmatmul.mubr.msk.f32.gmra.mrb[8].mxu0 %vm223_vm1, %v12578_v57  ;;  %10864 = vmatprep.mubr.msk.f32.mxu1 %vm223_vm1, %v12623_v15  ;;  %16216 = vst [vmem:[#allocation24_spill] sm:$0xff] %v12674_v32  ;;  %16217 = vst [vmem:[#allocation25_spill] sm:$0xff] %v12676_v36  ;;  %v2408_v57 = vrot.slane %v12749_v3, 1 }
  0x44   : > { %11086 = vmatprep.mubr.msk.f32.mxu0 %vm223_vm1, %v12580_v58  ;;  %16218 = vst [vmem:[#allocation26_spill] sm:$0xff] %v12678_v37  ;;  %16219 = vst [vmem:[#allocation27_spill] sm:$0xff] %v12682_v41  ;;  %v12779_v58 = vld [vmem:[#allocation2 + $0x148] sm:$0xff] }
  0x45   : > { %16220 = vst [vmem:[#allocation28_spill] sm:$0xff] %v12684_v42  ;;  %16221 = vst [vmem:[#allocation29_spill] sm:$0xff] %v12686_v43  ;;  %v2422_v48 = vrot.slane %v12779_v58, 1 }
  0x46   : > { %10865 = vmatmul.mubr.msk.f32.gmra.mrb[10].mxu1 %vm223_vm1, %v12639_v19  ;;  %16222 = vst [vmem:[#allocation30_spill] sm:$0xff] %v12693_v45  ;;  %16223 = vst [vmem:[#allocation31_spill] sm:$0xff] %v12697_v52  ;;  %v12808_v19 = vld [vmem:[#allocation2 + $0x158] sm:$0xff] }
  0x47   : > { %11087 = vmatmul.mubr.msk.f32.gmra.mrb[10].mxu0 %vm223_vm1, %v12626_v17  ;;  %10867 = vmatprep.mubr.msk.f32.mxu1 %vm223_vm1, %v12645_v21  ;;  %16224 = vst [vmem:[#allocation32_spill] sm:$0xff] %v12709_v4  ;;  %16225 = vst [vmem:[#allocation33_spill] sm:$0xff] %v12713_v5  ;;  %v2398_v17 = vrot.slane %v12715_v6, 1 }
  0x48   : > { %11089 = vmatprep.mubr.msk.f32.mxu0 %vm223_vm1, %v12630_v18  ;;  %16226 = vst [vmem:[#allocation34_spill] sm:$0xff] %v12715_v6  ;;  %16227 = vst [vmem:[#allocation35_spill] sm:$0xff] %v12724_v9  ;;  %v12769_v18 = vld [vmem:[#allocation2 + $0x138] sm:$0xff] }
  0x49   : > { %16228 = vst [vmem:[#allocation36_spill] sm:$0xff] %v12727_v10  ;;  %16229 = vst [vmem:[#allocation37_spill] sm:$0xff] %v12738_v22  ;;  %v2418_v53 = vrot.slane %v12769_v18, 1 }
  0x4a   : > { %10868 = vmatmul.mubr.msk.f32.gmra.mrb[12].mxu1 %vm223_vm1, %v12659_v25  ;;  %16230 = vst [vmem:[#allocation38_spill] sm:$0xff] %v12741_v26  ;;  %16231 = vst [vmem:[#allocation39_spill] sm:$0xff] %v12744_v27 }
  0x4b   : > { %11090 = vmatmul.mubr.msk.f32.gmra.mrb[12].mxu0 %vm223_vm1, %v12648_v23  ;;  %10870 = vmatprep.mubr.msk.f32.mxu1 %vm223_vm1, %v12666_v28  ;;  %16232 = vst [vmem:[#allocation40_spill] sm:$0xff] %v12747_v50  ;;  %16233 = vst [vmem:[#allocation41_spill] sm:$0xff] %v12759_v56  ;;  %v12765_v23 = vld [vmem:[#allocation2 + $0x128] sm:$0xff] }
  0x4c   : > { %11092 = vmatprep.mubr.msk.f32.mxu0 %vm223_vm1, %v12650_v24  ;;  %v12753_v24 = vld [vmem:[#allocation2 + $0x120] sm:$0xff]  ;;  %16234 = vst [vmem:[#allocation42_spill] sm:$0xff] %v12762_v59  ;;  %v2414_v25 = vrot.slane %v12765_v23, 1 }
  0x4d   : > { %v2412_v54 = vrot.slane %v12753_v24, 1 }
  0x4e   : > { %10871 = vmatmul.mubr.msk.f32.gmra.mrb[14].mxu1 %vm223_vm1, %v12693_v45  ;;  %v2406_v45 = vrot.slane %v12733_v20, 1 }
  0x4f   : > { %11093 = vmatmul.mubr.msk.f32.gmra.mrb[14].mxu0 %vm223_vm1, %v12668_v29  ;;  %10873 = vmatprep.mubr.msk.f32.mxu1 %vm223_vm1, %v12697_v52  ;;  %v12751_v29 = vld [vmem:[#allocation2 + $0x118] sm:$0xff]  ;;  %v12777_v52 = vld [vmem:[#allocation2 + $0x140] sm:$0xff] }
  0x50   : > { %11095 = vmatprep.mubr.msk.f32.mxu0 %vm223_vm1, %v12670_v30  ;;  %v12756_v30 = vsel %vm430_vm3, %v2386_v63, %v2388_v0  ;;  %v2396_v63 = vrot.slane %v12713_v5, 1  ;;  %v2400_v0 = vrot.slane %v12717_v7, 1  ;;  %v2410_v28 = vrot.slane %v12751_v29, 1 }
  0x51   : > { %v2420_v21 = vrot.slane %v12777_v52, 1 }
  0x52   : > { %10874 = vmatmul.mubr.msk.f32.gmra.mrb[16].mxu1 %vm223_vm1, %v12724_v9  ;;  %v2404_v9 = vrot.slane %v12731_v16, 1 }
  0x53   : > { %11096 = vmatmul.mubr.msk.f32.gmra.mrb[16].mxu0 %vm223_vm1, %v12672_v31  ;;  %10876 = vmatprep.mubr.msk.f32.mxu1 %vm223_vm1, %v12727_v10  ;;  %v2416_v31 = vrot.slane %v12767_v62, 1  ;;  %v12795_v10 = vld [vmem:[#allocation2 + $0x150] sm:$0xff] }
  0x54   : > { %11098 = vmatprep.mubr.msk.f32.mxu0 %vm223_vm1, %v12674_v32  ;;  %v2424_v32 = vrot.slane %v12795_v10, 1 }
  0x56   : > { %10877 = vmatmul.mubr.msk.f32.gmra.mrb[18].mxu1 %vm223_vm1, %v12738_v22  ;;  %v12825_v22 = vsel %vm430_vm3, %v2394_v61, %v2396_v63 }
  0x57   : > { %11099 = vmatmul.mubr.msk.f32.gmra.mrb[18].mxu0 %vm223_vm1, %v12676_v36  ;;  %10879 = vmatprep.mubr.msk.f32.mxu1 %vm223_vm1, %v12741_v26  ;;  %v2426_v36 = vrot.slane %v12808_v19, 1  ;;  %v12818_v26 = vsel %vm430_vm3, %v2392_v2, %v2394_v61  ;;  %16236 = vst [vmem:[#allocation44_spill] sm:$0xff] %v12825_v22  ;;  %v12839_v2 = vsel %vm430_vm3, %v2402_v1, %v2404_v9 }
  0x58   : > { %11101 = vmatprep.mubr.msk.f32.mxu0 %vm223_vm1, %v12678_v37  ;;  %16235 = vst [vmem:[#allocation43_spill] sm:$0xff] %v12818_v26  ;;  %v12822_v37 = vld [vmem:[#allocation2 + $0x160] sm:$0xff]  ;;  %v12845_v61 = vsel %vm430_vm3, %v2406_v45, %v2408_v57 }
  0x5a   : > { %10880 = vmatmul.mubr.msk.f32.gmra.mrb[20].mxu1 %vm223_vm1, %v12744_v27  ;;  %v12828_v27 = vsel %vm430_vm3, %v2396_v63, %v2398_v17  ;;  %v12848_v63 = vsel %vm430_vm3, %v2408_v57, %v2410_v28  ;;  %v2428_v57 = vrot.slane %v12822_v37, 1 }
  0x5b   : > { %11102 = vmatmul.mubr.msk.f32.gmra.mrb[20].mxu0 %vm223_vm1, %v12682_v41  ;;  %10882 = vmatprep.mubr.msk.f32.mxu1 %vm223_vm1, %v12747_v50  ;;  %v12831_v41 = vsel %vm430_vm3, %v2398_v17, %v2400_v0  ;;  %v12834_v50 = vsel %vm430_vm3, %v2400_v0, %v2402_v1  ;;  %v12853_v17 = vsel %vm430_vm3, %v2410_v28, %v2412_v54 }
  0x5c   : > { %11104 = vmatprep.mubr.msk.f32.mxu0 %vm223_vm1, %v12684_v42  ;;  %v12842_v42 = vsel %vm430_vm3, %v2404_v9, %v2406_v45  ;;  %v12856_v0 = vsel %vm430_vm3, %v2412_v54, %v2414_v25  ;;  %v12859_v1 = vsel %vm430_vm3, %v2414_v25, %v2416_v31  ;;  %v12862_v9 = vsel %vm430_vm3, %v2416_v31, %v2418_v53  ;;  %v12881_v45 = vld [vmem:[#allocation2 + $0x170] sm:$0xff] }
  0x5d   : > { %v12870_v28 = vsel %vm430_vm3, %v2418_v53, %v2420_v21  ;;  %v12873_v54 = vsel %vm430_vm3, %v2420_v21, %v2422_v48  ;;  %v12876_v25 = vsel %vm430_vm3, %v2422_v48, %v2424_v32  ;;  %v2430_v31 = vrot.slane %v12836_v46, 1 }
  0x5e   : > { %10883 = vmatmul.mubr.msk.f32.gmra.mrb[22].mxu1 %vm223_vm1, %v12756_v30  ;;  %v12889_v53 = vsel %vm430_vm3, %v2426_v36, %v2428_v57  ;;  %v2432_v21 = vrot.slane %v12881_v45, 1 }
  0x5f   : > { %11105 = vmatmul.mubr.msk.f32.gmra.mrb[22].mxu0 %vm223_vm1, %v12686_v43  ;;  %10885 = vmatprep.mubr.msk.f32.mxu1 %vm223_vm1, %v12759_v56  ;;  %v12884_v43 = vsel %vm430_vm3, %v2424_v32, %v2426_v36  ;;  %v12886_v56 = vld [vmem:[#allocation2 + $0x178] sm:$0xff]  ;;  %v12894_v48 = vsel %vm430_vm3, %v2428_v57, %v2430_v31  ;;  %v12904_v36 = vld [vmem:[#allocation2 + $0x180] sm:$0xff] }
  0x60   : > { %11107 = vmatprep.mubr.msk.f32.mxu0 %vm223_vm1, %v12709_v4  ;;  %v2434_v32 = vrot.slane %v12886_v56, 1  ;;  %v12906_v4 = vld [vmem:[#allocation2 + $0x188] sm:$0xff]  ;;  %v12909_v57 = vsel %vm430_vm3, %v2430_v31, %v2432_v21  ;;  %v12924_v31 = vld [vmem:[#allocation2 + $0x190] sm:$0xff] }
  0x62   : > { %10886 = vmatmul.mubr.msk.f32.gmra.mrb[24].mxu1 %vm223_vm1, %v12762_v59 }
  0x63   : > { %11108 = vmatmul.mubr.msk.f32.gmra.mrb[24].mxu0 %vm223_vm1, %v12713_v5  ;;  %10888 = vmatprep.mubr.msk.f32.mxu1 %vm223_vm1, %v12818_v26  ;;  %v2438_v5 = vrot.slane %v12906_v4, 1  ;;  %v12915_v26 = vsel %vm430_vm3, %v2432_v21, %v2434_v32 }
  0x64   : > { %11110 = vmatprep.mubr.msk.f32.mxu0 %vm223_vm1, %v12715_v6  ;;  %v2436_v6 = vrot.slane %v12904_v36, 1 }
  0x66   : > { %10889 = vmatmul.mubr.msk.f32.gmra.mrb[26].mxu1 %vm223_vm1, %v12825_v22  ;;  %v16161_v22 = vrot.slane %v12924_v31, 1  ;;  %v12928_v59 = vsel %vm430_vm3, %v2434_v32, %v2436_v6  ;;  %v12933_v21 = vsel %vm430_vm3, %v2436_v6, %v2438_v5  ;;  %v9623_v6 = vld [vmem:[%s16094_s1 + $0x8] sm:$0xf] }
  0x67   : > { %11111 = vmatmul.mubr.msk.f32.gmra.mrb[26].mxu0 %vm223_vm1, %v12717_v7  ;;  %10891 = vmatprep.mubr.msk.f32.mxu1 %vm223_vm1, %v12828_v27 }
  0x68   : > { %11113 = vmatprep.mubr.msk.f32.mxu0 %vm223_vm1, %v12729_v14  ;;  %v12944_v32 = vsel %vm430_vm3, %v2438_v5, %v16161_v22  ;;  %10995 = vmatprep.subr.msk.mxu1 %vm624_vm0, %v9623_v6  ;;  %v13027_v5 = vld [vmem:[%s16094_s1 + $0x18] sm:$0xf]  ;;  %v16249_v22 = vld [vmem:[#allocation13_spill] sm:$0xff] }
  0x6a   : > { %10892 = vmatmul.mubr.msk.f32.gmra.mrb[28].mxu1 %vm223_vm1, %v12831_v41 }
  0x6b   : > { %11114 = vmatmul.mubr.msk.f32.gmra.mrb[28].mxu0 %vm223_vm1, %v12731_v16  ;;  %10894 = vmatprep.mubr.msk.f32.mxu1 %vm223_vm1, %v12834_v50 }
  0x6c   : > { %11116 = vmatprep.mubr.msk.f32.mxu0 %vm223_vm1, %v12733_v20 }
  0x6e   : > { %10895 = vmatmul.mubr.msk.f32.gmra.mrb[30].mxu1 %vm223_vm1, %v12839_v2 }
  0x6f   : > { %11117 = vmatmul.mubr.msk.f32.gmra.mrb[30].mxu0 %vm223_vm1, %v12749_v3  ;;  %10897 = vmatprep.mubr.msk.f32.mxu1 %vm223_vm1, %v12842_v42 }
  0x70   : > { %11119 = vmatprep.mubr.msk.f32.mxu0 %vm223_vm1, %v12751_v29 }
  0x72   : > { %10898 = vmatmul.mubr.msk.f32.gmra.mrb[32].mxu1 %vm223_vm1, %v12845_v61 }
  0x73   : > { %11120 = vmatmul.mubr.msk.f32.gmra.mrb[32].mxu0 %vm223_vm1, %v12753_v24  ;;  %10900 = vmatprep.mubr.msk.f32.mxu1 %vm223_vm1, %v12848_v63 }
  0x74   : > { %11122 = vmatprep.mubr.msk.f32.mxu0 %vm223_vm1, %v12765_v23 }
  0x76   : > { %10901 = vmatmul.mubr.msk.f32.gmra.mrb[34].mxu1 %vm223_vm1, %v12853_v17 }
  0x77   : > { %11123 = vmatmul.mubr.msk.f32.gmra.mrb[34].mxu0 %vm223_vm1, %v12767_v62  ;;  %10903 = vmatprep.mubr.msk.f32.mxu1 %vm223_vm1, %v12856_v0 }
  0x78   : > { %11125 = vmatprep.mubr.msk.f32.mxu0 %vm223_vm1, %v12769_v18 }
  0x7a   : > { %10904 = vmatmul.mubr.msk.f32.gmra.mrb[36].mxu1 %vm223_vm1, %v12859_v1 }
  0x7b   : > { %11126 = vmatmul.mubr.msk.f32.gmra.mrb[36].mxu0 %vm223_vm1, %v12777_v52  ;;  %10906 = vmatprep.mubr.msk.f32.mxu1 %vm223_vm1, %v12862_v9 }
  0x7c   : > { %11128 = vmatprep.mubr.msk.f32.mxu0 %vm223_vm1, %v12779_v58 }
  0x7e   : > { %10907 = vmatmul.mubr.msk.f32.gmra.mrb[38].mxu1 %vm223_vm1, %v12870_v28 }
  0x7f   : > { %11129 = vmatmul.mubr.msk.f32.gmra.mrb[38].mxu0 %vm223_vm1, %v12795_v10  ;;  %10909 = vmatprep.mubr.msk.f32.mxu1 %vm223_vm1, %v12873_v54 }
  0x80   : > { %11131 = vmatprep.mubr.msk.f32.mxu0 %vm223_vm1, %v12808_v19 }
  0x82   : > { %10910 = vmatmul.mubr.msk.f32.gmra.mrb[40].mxu1 %vm223_vm1, %v12876_v25 }
  0x83   : > { %11132 = vmatmul.mubr.msk.f32.gmra.mrb[40].mxu0 %vm223_vm1, %v12822_v37  ;;  %10912 = vmatprep.mubr.msk.f32.mxu1 %vm223_vm1, %v12884_v43 }
  0x84   : > { %11134 = vmatprep.mubr.msk.f32.mxu0 %vm223_vm1, %v12836_v46 }
  0x86   : > { %10913 = vmatmul.mubr.msk.f32.gmra.mrb[42].mxu1 %vm223_vm1, %v12889_v53 }
  0x87   : > { %11135 = vmatmul.mubr.msk.f32.gmra.mrb[42].mxu0 %vm223_vm1, %v12881_v45  ;;  %10915 = vmatprep.mubr.msk.f32.mxu1 %vm223_vm1, %v12894_v48 }
  0x88   : > { %11137 = vmatprep.mubr.msk.f32.mxu0 %vm223_vm1, %v12886_v56 }
  0x8a   : > { %10916 = vmatmul.mubr.msk.f32.gmra.mrb[44].mxu1 %vm223_vm1, %v12909_v57 }
  0x8b   : > { %11138 = vmatmul.mubr.msk.f32.gmra.mrb[44].mxu0 %vm223_vm1, %v12904_v36  ;;  %10918 = vmatprep.mubr.msk.f32.mxu1 %vm223_vm1, %v12915_v26 }
  0x8c   : > { %11140 = vmatprep.mubr.msk.f32.mxu0 %vm223_vm1, %v12906_v4 }
  0x8e   : > { %10919 = vmatmul.mubr.msk.f32.gmra.mrb[46].mxu1 %vm223_vm1, %v12928_v59 }
  0x8f   : > { %11141 = vmatmul.mubr.msk.f32.gmra.mrb[46].mxu0 %vm223_vm1, %v12924_v31  ;;  %10923 = vmatprep.mubr.msk.f32.mxu1 %vm223_vm1, %v12461_v11 }
  0x90   : > { %11145 = vmatprep.mubr.msk.f32.mxu0 %vm223_vm1, %v12533_v44  ;;  %v16238_v44 = vld [vmem:[#allocation15_spill] sm:$0xff] }
  0x92   : > { %10924 = vmatmul.mubr.msk.f32.vlgmr.msra.gmra.mrb[0].mxu1 %vm223_vm1, %v12463_v12 }
  0x93   : > { %11146 = vmatmul.mubr.msk.f32.vlgmr.msra.gmra.mrb[0].mxu0 %vm223_vm1, %v12542_v47  ;;  %10926 = vmatprep.mubr.msk.f32.mxu1 %vm223_vm1, %v12465_v13  ;;  %v16239_v47 = vld [vmem:[#allocation8_spill] sm:$0xff] }
  0x94   : > { %11218 = vmatpush3.msk.msra.mxu0 %vm624_vm0, %v12523_v40  ;;  %11148 = vmatprep.mubr.msk.f32.mxu0 %vm223_vm1, %v12555_v49  ;;  %v16237_v40 = vld [vmem:[#allocation7_spill] sm:$0xff]  ;;  %v16240_v49 = vld [vmem:[#allocation16_spill] sm:$0xff] }
  0x95   : > { %10996 = vmatpush3.msk.msra.mxu1 %vm624_vm0, %v9623_v6  ;;  %11291 = vmatprep.subr.msk.mxu0 %vm624_vm0, %v13027_v5  ;;  %v16246_v6 = vld [vmem:[#allocation30_spill] sm:$0xff] }
  0x96   : > { %10927 = vmatmul.mubr.msk.f32.gmra.mrb[48].mxu1 %vm223_vm1, %v12502_v33 }
  0x97   : > { %11149 = vmatmul.mubr.msk.f32.gmra.mrb[48].mxu0 %vm223_vm1, %v12561_v51  ;;  %10929 = vmatprep.mubr.msk.f32.mxu1 %vm223_vm1, %v12504_v34  ;;  %v16241_v51 = vld [vmem:[#allocation9_spill] sm:$0xff] }
  0x98   : > { %11151 = vmatprep.mubr.msk.f32.mxu0 %vm223_vm1, %v12575_v55  ;;  %v16242_v55 = vld [vmem:[#allocation19_spill] sm:$0xff] }
  0x9a   : > { %10930 = vmatmul.mubr.msk.f32.gmra.mrb[50].mxu1 %vm223_vm1, %v12506_v35 }
  0x9b   : > { %11152 = vmatmul.mubr.msk.f32.gmra.mrb[50].mxu0 %vm223_vm1, %v12586_v60  ;;  %10932 = vmatprep.mubr.msk.f32.mxu1 %vm223_vm1, %v12516_v38  ;;  %v16243_v60 = vld [vmem:[#allocation10_spill] sm:$0xff] }
  0x9c   : > { %11154 = vmatprep.mubr.msk.f32.mxu0 %vm223_vm1, %v12612_v8  ;;  %v16244_v8 = vld [vmem:[#allocation20_spill] sm:$0xff] }
  0x9e   : > { %10933 = vmatmul.mubr.msk.f32.gmra.mrb[6].mxu1 %vm223_vm1, %v12518_v39 }
  0x9f   : > { %11155 = vmatmul.mubr.msk.f32.gmra.mrb[6].mxu0 %vm223_vm1, %v12623_v15  ;;  %10935 = vmatprep.mubr.msk.f32.mxu1 %vm223_vm1, %v16237_v40  ;;  %v16245_v15 = vld [vmem:[#allocation11_spill] sm:$0xff] }
  0xa0   : > { %11157 = vmatprep.mubr.msk.f32.mxu0 %vm223_vm1, %v16238_v44  ;;  %v16247_v44 = vld [vmem:[#allocation12_spill] sm:$0xff] }
  0xa2   : > { %10936 = vmatmul.mubr.msk.f32.gmra.mrb[52].mxu1 %vm223_vm1, %v16239_v47 }
  0xa3   : > { %11158 = vmatmul.mubr.msk.f32.gmra.mrb[52].mxu0 %vm223_vm1, %v16240_v49  ;;  %10938 = vmatprep.mubr.msk.f32.mxu1 %vm223_vm1, %v16241_v51  ;;  %v16248_v49 = vld [vmem:[#allocation31_spill] sm:$0xff] }
  0xa4   : > { %11160 = vmatprep.mubr.msk.f32.mxu0 %vm223_vm1, %v16242_v55  ;;  %v16250_v55 = vld [vmem:[#allocation35_spill] sm:$0xff] }
  0xa6   : > { %10939 = vmatmul.mubr.msk.f32.gmra.mrb[54].mxu1 %vm223_vm1, %v16243_v60  ;;  %v16251_v60 = vld [vmem:[#allocation14_spill] sm:$0xff] }
  0xa7   : > { %11161 = vmatmul.mubr.msk.f32.gmra.mrb[54].mxu0 %vm223_vm1, %v16244_v8  ;;  %10941 = vmatprep.mubr.msk.f32.mxu1 %vm223_vm1, %v16245_v15  ;;  %v16252_v8 = vld [vmem:[#allocation36_spill] sm:$0xff]  ;;  %v16253_v15 = vld [vmem:[#allocation17_spill] sm:$0xff] }
  0xa8   : > { %11163 = vmatprep.mubr.msk.f32.mxu0 %vm223_vm1, %v16246_v6  ;;  %v16254_v6 = vld [vmem:[#allocation37_spill] sm:$0xff] }
  0xaa   : > { %10942 = vmatmul.mubr.msk.f32.gmra.mrb[12].mxu1 %vm223_vm1, %v16247_v44  ;;  %v16255_v44 = vld [vmem:[#allocation18_spill] sm:$0xff] }
  0xab   : > { %11164 = vmatmul.mubr.msk.f32.gmra.mrb[12].mxu0 %vm223_vm1, %v16248_v49  ;;  %10944 = vmatprep.mubr.msk.f32.mxu1 %vm223_vm1, %v16249_v22  ;;  %v16256_v49 = vld [vmem:[#allocation38_spill] sm:$0xff]  ;;  %v16257_v22 = vld [vmem:[#allocation21_spill] sm:$0xff] }
  0xac   : > { %11166 = vmatprep.mubr.msk.f32.mxu0 %vm223_vm1, %v16250_v55  ;;  %v16258_v55 = vld [vmem:[#allocation39_spill] sm:$0xff] }
  0xae   : > { %10945 = vmatmul.mubr.msk.f32.gmra.mrb[56].mxu1 %vm223_vm1, %v16251_v60  ;;  %v16259_v60 = vld [vmem:[#allocation22_spill] sm:$0xff] }
  0xaf   : > { %11167 = vmatmul.mubr.msk.f32.gmra.mrb[56].mxu0 %vm223_vm1, %v16252_v8  ;;  %10947 = vmatprep.mubr.msk.f32.mxu1 %vm223_vm1, %v16253_v15  ;;  %v16260_v8 = vld [vmem:[#allocation40_spill] sm:$0xff]  ;;  %v16261_v15 = vld [vmem:[#allocation23_spill] sm:$0xff] }
  0xb0   : > { %11169 = vmatprep.mubr.msk.f32.mxu0 %vm223_vm1, %v16254_v6  ;;  %v16262_v6 = vld [vmem:[#allocation24_spill] sm:$0xff] }
  0xb2   : > { %10948 = vmatmul.mubr.msk.f32.gmra.mrb[58].mxu1 %vm223_vm1, %v16255_v44 }
  0xb3   : > { %11170 = vmatmul.mubr.msk.f32.gmra.mrb[58].mxu0 %vm223_vm1, %v16256_v49  ;;  %10950 = vmatprep.mubr.msk.f32.mxu1 %vm223_vm1, %v16257_v22  ;;  %v16263_v49 = vld [vmem:[#allocation41_spill] sm:$0xff] }
  0xb4   : > { %11172 = vmatprep.mubr.msk.f32.mxu0 %vm223_vm1, %v16258_v55  ;;  %v16264_v22 = vld [vmem:[#allocation25_spill] sm:$0xff]  ;;  %v16265_v55 = vld [vmem:[#allocation42_spill] sm:$0xff] }
  0xb6   : > { %10951 = vmatmul.mubr.msk.f32.gmra.mrb[18].mxu1 %vm223_vm1, %v16259_v60  ;;  %v16266_v60 = vld [vmem:[#allocation26_spill] sm:$0xff] }
  0xb7   : > { %11173 = vmatmul.mubr.msk.f32.gmra.mrb[18].mxu0 %vm223_vm1, %v16260_v8  ;;  %10953 = vmatprep.mubr.msk.f32.mxu1 %vm223_vm1, %v16261_v15  ;;  %v16267_v8 = vld [vmem:[#allocation43_spill] sm:$0xff] }
  0xb8   : > { %11175 = vmatprep.mubr.msk.f32.mxu0 %vm223_vm1, %v12756_v30  ;;  %v16268_v15 = vld [vmem:[#allocation27_spill] sm:$0xff]  ;;  %v16269_v30 = vld [vmem:[#allocation44_spill] sm:$0xff] }
  0xba   : > { %10954 = vmatmul.mubr.msk.f32.gmra.mrb[60].mxu1 %vm223_vm1, %v16262_v6  ;;  %v16270_v6 = vld [vmem:[#allocation28_spill] sm:$0xff] }
  0xbb   : > { %11176 = vmatmul.mubr.msk.f32.gmra.mrb[60].mxu0 %vm223_vm1, %v16263_v49  ;;  %10956 = vmatprep.mubr.msk.f32.mxu1 %vm223_vm1, %v16264_v22  ;;  %v16271_v49 = vld [vmem:[#allocation29_spill] sm:$0xff] }
  0xbc   : > { %11178 = vmatprep.mubr.msk.f32.mxu0 %vm223_vm1, %v16265_v55  ;;  %v2955_v55 = vrot.slane %v12904_v36, 2 }
  0xbe   : > { %10957 = vmatmul.mubr.msk.f32.gmra.mrb[62].mxu1 %vm223_vm1, %v16266_v60 }
  0xbf   : > { %11179 = vmatmul.mubr.msk.f32.gmra.mrb[62].mxu0 %vm223_vm1, %v16267_v8  ;;  %10959 = vmatprep.mubr.msk.f32.mxu1 %vm223_vm1, %v16268_v15  ;;  %v2957_v8 = vrot.slane %v12906_v4, 2  ;;  %v16272_v15 = vld [vmem:[#allocation32_spill] sm:$0xff] }
  0xc0   : > { %11181 = vmatprep.mubr.msk.f32.mxu0 %vm223_vm1, %v16269_v30  ;;  %v16273_v30 = vld [vmem:[#allocation33_spill] sm:$0xff] }
  0xc1   : > { %v13152_v4 = vsel %vm1307_vm4, %v2955_v55, %v2957_v8 }
  0xc2   : > { %10960 = vmatmul.mubr.msk.f32.gmra.mrb[24].mxu1 %vm223_vm1, %v16270_v6 }
  0xc3   : > { %11182 = vmatmul.mubr.msk.f32.gmra.mrb[24].mxu0 %vm223_vm1, %v12828_v27  ;;  %10962 = vmatprep.mubr.msk.f32.mxu1 %vm223_vm1, %v16271_v49  ;;  %v2959_v27 = vrot.slane %v12924_v31, 2 }
  0xc4   : > { %11184 = vmatprep.mubr.msk.f32.mxu0 %vm223_vm1, %v12831_v41  ;;  %v16274_v41 = vld [vmem:[#allocation34_spill] sm:$0xff] }
  0xc6   : > { %10963 = vmatmul.mubr.msk.f32.gmra.mrb[64].mxu1 %vm223_vm1, %v16272_v15 }
  0xc7   : > { %11185 = vmatmul.mubr.msk.f32.gmra.mrb[64].mxu0 %vm223_vm1, %v12834_v50  ;;  %10965 = vmatprep.mubr.msk.f32.mxu1 %vm223_vm1, %v16273_v30  ;;  %v13163_v50 = vsel %vm1307_vm4, %v2957_v8, %v2959_v27 }
  0xc8   : > { %11187 = vmatprep.mubr.msk.f32.mxu0 %vm223_vm1, %v12839_v2  ;;  %v1308_v2 = vrot.slane %v12461_v11, 2  ;;  %v16275_v11 = vrot.slane %v12924_v31, 1 }
  0xca   : > { %10966 = vmatmul.mubr.msk.f32.gmra.mrb[66].mxu1 %vm223_vm1, %v16274_v41 }
  0xcb   : > { %11188 = vmatmul.mubr.msk.f32.gmra.mrb[66].mxu0 %vm223_vm1, %v12842_v42  ;;  %10968 = vmatprep.mubr.msk.f32.mxu1 %vm223_vm1, %v12717_v7  ;;  %v13213_v42 = vld [vmem:[#allocation2 + $0x198] sm:$0xff] }
  0xcc   : > { %11190 = vmatprep.mubr.msk.f32.mxu0 %vm223_vm1, %v12845_v61  ;;  %v1309_v61 = vrot.slane %v12463_v12, 2 }
  0xce   : > { %10969 = vmatmul.mubr.msk.f32.gmra.mrb[30].mxu1 %vm223_vm1, %v12729_v14 }
  0xcf   : > { %11191 = vmatmul.mubr.msk.f32.gmra.mrb[30].mxu0 %vm223_vm1, %v12848_v63  ;;  %10971 = vmatprep.mubr.msk.f32.mxu1 %vm223_vm1, %v12731_v16  ;;  %v2866_v63 = vrot.slane %v12502_v33, 2  ;;  %v1310_v33 = vsel %vm1307_vm4, %v1308_v2, %v1309_v61  ;;  %v16279_v2 = vld [vmem:[#allocation13_spill] sm:$0xff] }
  0xd0   : > { %11193 = vmatprep.mubr.msk.f32.mxu0 %vm223_vm1, %v12853_v17  ;;  %v2867_v17 = vrot.slane %v12504_v34, 2  ;;  %v2871_v34 = vrot.slane %v12516_v38, 2  ;;  %v2875_v38 = vrot.slane %v16237_v40, 2 }
  0xd2   : > { %10972 = vmatmul.mubr.msk.f32.gmra.mrb[68].mxu1 %vm223_vm1, %v12733_v20 }
  0xd3   : > { %11194 = vmatmul.mubr.msk.f32.gmra.mrb[68].mxu0 %vm223_vm1, %v12856_v0  ;;  %10974 = vmatprep.mubr.msk.f32.mxu1 %vm223_vm1, %v12749_v3  ;;  %v2873_v0 = vrot.slane %v12518_v39, 2  ;;  %v2877_v39 = vrot.slane %v16239_v47, 2 }
  0xd4   : > { %11196 = vmatprep.mubr.msk.f32.mxu0 %vm223_vm1, %v12859_v1 }
  0xd6   : > { %10975 = vmatmul.mubr.msk.f32.gmra.mrb[70].mxu1 %vm223_vm1, %v12751_v29 }
  0xd7   : > { %11197 = vmatmul.mubr.msk.f32.gmra.mrb[70].mxu0 %vm223_vm1, %v12862_v9  ;;  %10977 = vmatprep.mubr.msk.f32.mxu1 %vm223_vm1, %v12753_v24 }
  0xd8   : > { %11199 = vmatprep.mubr.msk.f32.mxu0 %vm223_vm1, %v12870_v28 }
  0xda   : > { %10978 = vmatmul.mubr.msk.f32.gmra.mrb[36].mxu1 %vm223_vm1, %v12765_v23 }
  0xdb   : > { %11200 = vmatmul.mubr.msk.f32.gmra.mrb[36].mxu0 %vm223_vm1, %v12873_v54  ;;  %10980 = vmatprep.mubr.msk.f32.mxu1 %vm223_vm1, %v12767_v62  ;;  %v13259_v54 = vld [vmem:[%s16094_s1 + $0x1c] sm:$0xf] }
  0xdc   : > { %11202 = vmatprep.mubr.msk.f32.mxu0 %vm223_vm1, %v12876_v25  ;;  %v2874_v25 = vsel %vm1307_vm4, %v2871_v34, %v2873_v0 }
  0xde   : > { %10981 = vmatmul.mubr.msk.f32.gmra.mrb[72].mxu1 %vm223_vm1, %v12769_v18 }
  0xdf   : > { %11203 = vmatmul.mubr.msk.f32.gmra.mrb[72].mxu0 %vm223_vm1, %v12884_v43  ;;  %10983 = vmatprep.mubr.msk.f32.mxu1 %vm223_vm1, %v12777_v52  ;;  %v2442_v43 = vrot.slane %v13213_v42, 1 }
  0xe0   : > { %11205 = vmatprep.mubr.msk.f32.mxu0 %vm223_vm1, %v12889_v53  ;;  %v2879_v53 = vrot.slane %v16241_v51, 2  ;;  %v16278_v51 = vld [vmem:[#allocation12_spill] sm:$0xff] }
  0xe1   : > { %v2443_v12 = vsel %vm430_vm3, %v16275_v11, %v2442_v43  ;;  %v2885_v8 = vrot.slane %v16278_v51, 2  ;;  %v16281_v11 = vld [vmem:[#allocation17_spill] sm:$0xff] }
  0xe2   : > { %10984 = vmatmul.mubr.msk.f32.gmra.mrb[74].mxu1 %vm223_vm1, %v12779_v58  ;;  %v2880_v47 = vsel %vm1307_vm4, %v2877_v39, %v2879_v53 }
  0xe3   : > { %11206 = vmatmul.mubr.msk.f32.gmra.mrb[74].mxu0 %vm223_vm1, %v12894_v48  ;;  %10986 = vmatprep.mubr.msk.f32.mxu1 %vm223_vm1, %v12795_v10  ;;  %v2876_v48 = vsel %vm1307_vm4, %v2873_v0, %v2875_v38 }
  0xe4   : > { %11208 = vmatprep.mubr.msk.f32.mxu0 %vm223_vm1, %v12909_v57  ;;  %v16276_v57 = vld [vmem:[#allocation10_spill] sm:$0xff] }
  0xe6   : > { %10987 = vmatmul.mubr.msk.f32.gmra.mrb[42].mxu1 %vm223_vm1, %v12808_v19 }
  0xe7   : > { %11209 = vmatmul.mubr.msk.f32.gmra.mrb[42].mxu0 %vm223_vm1, %v12915_v26  ;;  %10989 = vmatprep.mubr.msk.f32.mxu1 %vm223_vm1, %v12822_v37  ;;  %v1311_v26 = vrot.slane %v12465_v13, 2  ;;  %v2868_v13 = vsel %vm1307_vm4, %v2866_v63, %v2867_v17 }
  0xe8   : > { %11211 = vmatprep.mubr.msk.f32.mxu0 %vm223_vm1, %v12928_v59  ;;  %v2869_v59 = vrot.slane %v12506_v35, 2 }
  0xe9   : > { %v1312_v35 = vsel %vm1307_vm4, %v1309_v61, %v1311_v26  ;;  %v1314_v9 = vsel %vm1307_vm4, %v1311_v26, %v2866_v63  ;;  %v2887_v61 = vrot.slane %v16279_v2, 2 }
  0xea   : > { %10990 = vmatmul.mubr.msk.f32.gmra.mrb[76].mxu1 %vm223_vm1, %v12836_v46  ;;  %v2870_v1 = vsel %vm1307_vm4, %v2867_v17, %v2869_v59  ;;  %v2872_v28 = vsel %vm1307_vm4, %v2869_v59, %v2871_v34  ;;  %v16280_v17 = vld [vmem:[#allocation14_spill] sm:$0xff]  ;;  %v2893_v34 = vrot.slane %v16255_v44, 2 }
  0xeb   : > { %11212 = vmatmul.mubr.msk.f32.gmra.mrb[76].mxu0 %vm223_vm1, %v12933_v21  ;;  %10992 = vmatprep.mubr.msk.f32.mxu1 %vm223_vm1, %v12881_v45  ;;  %v2881_v21 = vrot.slane %v16276_v57, 2  ;;  %v2889_v26 = vrot.slane %v16280_v17, 2  ;;  %v16286_v17 = vld [vmem:[#allocation27_spill] sm:$0xff] }
  0xec   : > { %11214 = vmatprep.mubr.msk.f32.mxu0 %vm223_vm1, %v12944_v32  ;;  %v2878_v32 = vsel %vm1307_vm4, %v2875_v38, %v2877_v39 }
  0xed   : > { %v2882_v43 = vsel %vm1307_vm4, %v2879_v53, %v2881_v21 }
  0xee   : > { %10993 = vmatmul.mubr.msk.f32.gmra.mrb[78].mxu1 %vm223_vm1, %v12886_v56 }
  0xef   : > { %11215 = vmatmul.mubr.msk.f32.gmra.mrb[78].mxu0 %vm223_vm1, %v2443_v12  ;;  %10997 = vmatprep.mubr.msk.f32.mxu1 %vm223_vm1, %v1310_v33  ;;  %v2891_v12 = vrot.slane %v16281_v11, 2  ;;  %v2888_v33 = vsel %vm1307_vm4, %v2885_v8, %v2887_v61  ;;  %v2909_v11 = vrot.slane %v16270_v6, 2  ;;  %v2913_v6 = vrot.slane %v16272_v15, 2 }
  0xf0   : > { %11219 = vmatprep.mubr.msk.f32.mxu0 %vm223_vm1, %v2868_v13  ;;  %v2917_v15 = vrot.slane %v16274_v41, 2 }
  0xf1   : > { %v2894_v44 = vsel %vm1307_vm4, %v2891_v12, %v2893_v34 }
  0xf2   : > { %10998 = vmatmul.mubr.msk.f32.vlgmr.msra.gmra.mrb[0].mxu1 %vm223_vm1, %v1312_v35  ;;  %v16282_v35 = vld [vmem:[#allocation21_spill] sm:$0xff] }
  0xf3   : > { %11220 = vmatmul.mubr.msk.f32.vlgmr.msra.gmra.mrb[0].mxu0 %vm223_vm1, %v2870_v1  ;;  %11000 = vmatprep.mubr.msk.f32.mxu1 %vm223_vm1, %v1314_v9  ;;  %v2895_v0 = vrot.slane %v16282_v35, 2  ;;  %v16283_v9 = vld [vmem:[#allocation22_spill] sm:$0xff] }
  0xf4   : > { %11292 = vmatpush3.msk.msra.mxu0 %vm624_vm0, %v13027_v5  ;;  %11222 = vmatprep.mubr.msk.f32.mxu0 %vm223_vm1, %v2872_v28  ;;  %v16277_v5 = vld [vmem:[#allocation11_spill] sm:$0xff]  ;;  %v2897_v38 = vrot.slane %v16283_v9, 2 }
  0xf5   : > { %11365 = vmatprep.subr.msk.mxu0 %vm624_vm0, %v13259_v54  ;;  %v2883_v40 = vrot.slane %v16277_v5, 2 }
  0xf6   : > { %11001 = vmatmul.mubr.msk.f32.gmra.mrb[80].mxu1 %vm223_vm1, %v2868_v13  ;;  %v2890_v13 = vsel %vm1307_vm4, %v2887_v61, %v2889_v26 }
  0xf7   : > { %11223 = vmatmul.mubr.msk.f32.gmra.mrb[80].mxu0 %vm223_vm1, %v2874_v25  ;;  %11003 = vmatprep.mubr.msk.f32.mxu1 %vm223_vm1, %v2870_v1  ;;  %v2884_v63 = vsel %vm1307_vm4, %v2881_v21, %v2883_v40  ;;  %v2886_v59 = vsel %vm1307_vm4, %v2883_v40, %v2885_v8  ;;  %v2892_v1 = vsel %vm1307_vm4, %v2889_v26, %v2891_v12  ;;  %v2907_v26 = vrot.slane %v16286_v17, 2 }
  0xf8   : > { %11225 = vmatprep.mubr.msk.f32.mxu0 %vm223_vm1, %v2876_v48  ;;  %v2898_v40 = vsel %vm1307_vm4, %v2895_v0, %v2897_v38  ;;  %v2911_v12 = vrot.slane %v16271_v49, 2 }
  0xf9   : > { %v2910_v49 = vsel %vm1307_vm4, %v2907_v26, %v2909_v11 }
  0xfa   : > { %11004 = vmatmul.mubr.msk.f32.gmra.mrb[82].mxu1 %vm223_vm1, %v2872_v28  ;;  %v16284_v28 = vld [vmem:[#allocation23_spill] sm:$0xff]  ;;  %v2912_v9 = vsel %vm1307_vm4, %v2909_v11, %v2911_v12 }
  0xfb   : > { %11226 = vmatmul.mubr.msk.f32.gmra.mrb[82].mxu0 %vm223_vm1, %v2878_v32  ;;  %11006 = vmatprep.mubr.msk.f32.mxu1 %vm223_vm1, %v2874_v25  ;;  %v2899_v39 = vrot.slane %v16284_v28, 2  ;;  %v2896_v25 = vsel %vm1307_vm4, %v2893_v34, %v2895_v0 }
  0xfc   : > { %11228 = vmatprep.mubr.msk.f32.mxu0 %vm223_vm1, %v2880_v47 }
  0xfd   : > { %v2900_v51 = vsel %vm1307_vm4, %v2897_v38, %v2899_v39 }
  0xfe   : > { %11007 = vmatmul.mubr.msk.f32.gmra.mrb[6].mxu1 %vm223_vm1, %v2876_v48 }
  0xff   : > { %11229 = vmatmul.mubr.msk.f32.gmra.mrb[6].mxu0 %vm223_vm1, %v2882_v43  ;;  %11009 = vmatprep.mubr.msk.f32.mxu1 %vm223_vm1, %v2878_v32  ;;  %v16285_v32 = vld [vmem:[#allocation24_spill] sm:$0xff] }
 0x100   : > { %11231 = vmatprep.mubr.msk.f32.mxu0 %vm223_vm1, %v2884_v63  ;;  %v2901_v5 = vrot.slane %v16285_v32, 2  ;;  %v2923_v32 = vrot.slane %v12731_v16, 2 }
 0x102   : > { %11010 = vmatmul.mubr.msk.f32.gmra.mrb[84].mxu1 %vm223_vm1, %v2880_v47  ;;  %v2903_v47 = vrot.slane %v16264_v22, 2  ;;  %v2902_v22 = vsel %vm1307_vm4, %v2899_v39, %v2901_v5 }
 0x103   : > { %11232 = vmatmul.mubr.msk.f32.gmra.mrb[84].mxu0 %vm223_vm1, %v2886_v59  ;;  %11012 = vmatprep.mubr.msk.f32.mxu1 %vm223_vm1, %v2882_v43 }
 0x104   : > { %11234 = vmatprep.mubr.msk.f32.mxu0 %vm223_vm1, %v2888_v33 }
 0x106   : > { %11013 = vmatmul.mubr.msk.f32.gmra.mrb[86].mxu1 %vm223_vm1, %v2884_v63  ;;  %v2905_v63 = vrot.slane %v16266_v60, 2 }
 0x107   : > { %11235 = vmatmul.mubr.msk.f32.gmra.mrb[86].mxu0 %vm223_vm1, %v2890_v13  ;;  %11015 = vmatprep.mubr.msk.f32.mxu1 %vm223_vm1, %v2886_v59  ;;  %v2904_v59 = vsel %vm1307_vm4, %v2901_v5, %v2903_v47 }
 0x108   : > { %11237 = vmatprep.mubr.msk.f32.mxu0 %vm223_vm1, %v2892_v1  ;;  %v2906_v60 = vsel %vm1307_vm4, %v2903_v47, %v2905_v63 }
 0x109   : > { %v13312_v53 = vpop.f32.mrb[2].mxu1 }
 0x10a   : > { %11016 = vmatmul.mubr.msk.f32.gmra.mrb[12].mxu1 %vm223_vm1, %v2888_v33  ;;  %v13315_v48 = vpop.f32.mrb[2].mxu0  ;;  %v704_v57 = vpop.f32.mrb[3].mxu1  ;;  %v2908_v33 = vsel %vm1307_vm4, %v2905_v63, %v2907_v26 }
 0x10b   : > { %v2099_v21 = vpop.f32.mrb[3].mxu0  ;;  %11238 = vmatmul.mubr.msk.f32.gmra.mrb[12].mxu0 %vm223_vm1, %v2894_v44  ;;  %11018 = vmatprep.mubr.msk.f32.mxu1 %vm223_vm1, %v2890_v13 }
 0x10c   : > { %11240 = vmatprep.mubr.msk.f32.mxu0 %vm223_vm1, %v2896_v25  ;;  %v2921_v21 = vrot.slane %v12729_v14, 2  ;;  %v2925_v14 = vrot.slane %v12733_v20, 2  ;;  %v2929_v20 = vrot.slane %v12751_v29, 2 }
 0x10d   : > { %v10857_v8 = vpop.f32.mrb[4].mxu1 }
 0x10e   : > { %11019 = vmatmul.mubr.msk.f32.gmra.mrb[88].mxu1 %vm223_vm1, %v2892_v1  ;;  %v11079_v43 = vpop.f32.mrb[4].mxu0  ;;  %v13325_v2 = vpop.f32.mrb[5].mxu1  ;;  %v2915_v1 = vrot.slane %v16273_v30, 2  ;;  %v2914_v30 = vsel %vm1307_vm4, %v2911_v12, %v2913_v6  ;;  %v2927_v8 = vrot.slane %v12749_v3, 2  ;;  %v2926_v3 = vsel %vm1307_vm4, %v2923_v32, %v2925_v14 }
 0x10f   : > { %v13327_v61 = vpop.f32.mrb[5].mxu0  ;;  %11241 = vmatmul.mubr.msk.f32.gmra.mrb[88].mxu0 %vm223_vm1, %v2898_v40  ;;  %11021 = vmatprep.mubr.msk.f32.mxu1 %vm223_vm1, %v2894_v44  ;;  %v2924_v43 = vsel %vm1307_vm4, %v2921_v21, %v2923_v32  ;;  %v2935_v12 = vrot.slane %v12767_v62, 2 }
 0x110   : > { %11243 = vmatprep.mubr.msk.f32.mxu0 %vm223_vm1, %v2900_v51  ;;  %v2916_v57 = vsel %vm1307_vm4, %v2913_v6, %v2915_v1  ;;  %v2918_v41 = vsel %vm1307_vm4, %v2915_v1, %v2917_v15  ;;  %v2928_v11 = vsel %vm1307_vm4, %v2925_v14, %v2927_v8  ;;  %v2930_v29 = vsel %vm1307_vm4, %v2927_v8, %v2929_v20 }
 0x112   : > { %11022 = vmatmul.mubr.msk.f32.gmra.mrb[90].mxu1 %vm223_vm1, %v2896_v25  ;;  %v2919_v25 = vrot.slane %v12717_v7, 2 }
 0x113   : > { %11244 = vmatmul.mubr.msk.f32.gmra.mrb[90].mxu0 %vm223_vm1, %v2902_v22  ;;  %11024 = vmatprep.mubr.msk.f32.mxu1 %vm223_vm1, %v2898_v40 }
 0x114   : > { %11246 = vmatprep.mubr.msk.f32.mxu0 %vm223_vm1, %v2904_v59  ;;  %v2920_v5 = vsel %vm1307_vm4, %v2917_v15, %v2919_v25  ;;  %v2922_v16 = vsel %vm1307_vm4, %v2919_v25, %v2921_v21  ;;  %v2947_v21 = vrot.slane %v12822_v37, 2 }
 0x115   : > { %v13344_v34 = vpop.f32.mrb[8].mxu1 }
 0x116   : > { %11025 = vmatmul.mubr.msk.f32.gmra.mrb[18].mxu1 %vm223_vm1, %v2900_v51  ;;  %v13347_v13 = vpop.f32.mrb[8].mxu0  ;;  %v732_v35 = vpop.f32.mrb[9].mxu1 }
 0x117   : > { %v2127_v0 = vpop.f32.mrb[9].mxu0  ;;  %11247 = vmatmul.mubr.msk.f32.gmra.mrb[18].mxu0 %vm223_vm1, %v2906_v60  ;;  %11027 = vmatprep.mubr.msk.f32.mxu1 %vm223_vm1, %v2902_v22 }
 0x118   : > { %11249 = vmatprep.mubr.msk.f32.mxu0 %vm223_vm1, %v2908_v33 }
 0x119   : > { %v10866_v38 = vpop.f32.mrb[10].mxu1 }
 0x11a   : > { %11028 = vmatmul.mubr.msk.f32.gmra.mrb[92].mxu1 %vm223_vm1, %v2904_v59  ;;  %v11088_v44 = vpop.f32.mrb[10].mxu0  ;;  %v13357_v28 = vpop.f32.mrb[11].mxu1  ;;  %v2931_v59 = vrot.slane %v12753_v24, 2 }
 0x11b   : > { %v13359_v39 = vpop.f32.mrb[11].mxu0  ;;  %11250 = vmatmul.mubr.msk.f32.gmra.mrb[92].mxu0 %vm223_vm1, %v2910_v49  ;;  %11030 = vmatprep.mubr.msk.f32.mxu1 %vm223_vm1, %v2906_v60  ;;  %v2933_v60 = vrot.slane %v12765_v23, 2  ;;  %v2937_v23 = vrot.slane %v12769_v18, 2  ;;  %v2941_v18 = vrot.slane %v12779_v58, 2 }
 0x11c   : > { %11252 = vmatprep.mubr.msk.f32.mxu0 %vm223_vm1, %v2912_v9 }
 0x11d   : > { %v2934_v62 = vsel %vm1307_vm4, %v2931_v59, %v2933_v60  ;;  %v2936_v1 = vsel %vm1307_vm4, %v2933_v60, %v2935_v12 }
 0x11e   : > { %11031 = vmatmul.mubr.msk.f32.gmra.mrb[94].mxu1 %vm223_vm1, %v2908_v33  ;;  %v2932_v33 = vsel %vm1307_vm4, %v2929_v20, %v2931_v59 }
 0x11f   : > { %11253 = vmatmul.mubr.msk.f32.gmra.mrb[94].mxu0 %vm223_vm1, %v2914_v30  ;;  %11033 = vmatprep.mubr.msk.f32.mxu1 %vm223_vm1, %v2910_v49  ;;  %v2939_v49 = vrot.slane %v12777_v52, 2  ;;  %v2938_v52 = vsel %vm1307_vm4, %v2935_v12, %v2937_v23 }
 0x120   : > { %11255 = vmatprep.mubr.msk.f32.mxu0 %vm223_vm1, %v2916_v57 }
 0x121   : > { %v13376_v40 = vpop.f32.mrb[14].mxu1  ;;  %v2940_v25 = vsel %vm1307_vm4, %v2937_v23, %v2939_v49  ;;  %v2942_v58 = vsel %vm1307_vm4, %v2939_v49, %v2941_v18  ;;  %v13518_v49 = vld [vmem:[#allocation2 + $0x48] sm:$0xff] }
 0x122   : > { %11034 = vmatmul.mubr.msk.f32.gmra.mrb[24].mxu1 %vm223_vm1, %v2912_v9  ;;  %v13379_v7 = vpop.f32.mrb[14].mxu0  ;;  %v760_v47 = vpop.f32.mrb[15].mxu1  ;;  %16299 = vst [vmem:[#allocation18_spill] sm:$0xff] %v13518_v49 }
 0x123   : > { %16287 = vst [vmem:[#allocation7_spill] sm:$0xff] %v13379_v7  ;;  %v2155_v51 = vpop.f32.mrb[15].mxu0  ;;  %11256 = vmatmul.mubr.msk.f32.gmra.mrb[24].mxu0 %vm223_vm1, %v2918_v41  ;;  %11036 = vmatprep.mubr.msk.f32.mxu1 %vm223_vm1, %v2914_v30  ;;  %v2943_v30 = vrot.slane %v12795_v10, 2  ;;  %v13689_v7 = vld [vmem:[#allocation2 + $0x140] sm:$0xff] }
 0x124   : > { %11258 = vmatprep.mubr.msk.f32.mxu0 %vm223_vm1, %v2920_v5  ;;  %v2951_v51 = vrot.slane %v12881_v45, 2  ;;  %16317 = vst [vmem:[#allocation13_spill] sm:$0xff] %v13689_v7 }
 0x125   : > { %v10875_v63 = vpop.f32.mrb[16].mxu1 }
 0x126   : > { %11037 = vmatmul.mubr.msk.f32.gmra.mrb[96].mxu1 %vm223_vm1, %v2916_v57  ;;  %v11097_v22 = vpop.f32.mrb[16].mxu0  ;;  %v13389_v17 = vpop.f32.mrb[17].mxu1  ;;  %v2945_v57 = vrot.slane %v12808_v19, 2  ;;  %v2949_v19 = vrot.slane %v12836_v46, 2  ;;  %v2953_v46 = vrot.slane %v12886_v56, 2 }
 0x127   : > { %v13391_v26 = vpop.f32.mrb[17].mxu0  ;;  %11259 = vmatmul.mubr.msk.f32.gmra.mrb[96].mxu0 %vm223_vm1, %v2922_v16  ;;  %11039 = vmatprep.mubr.msk.f32.mxu1 %vm223_vm1, %v2918_v41  ;;  %v2944_v41 = vsel %vm1307_vm4, %v2941_v18, %v2943_v30 }
 0x128   : > { %16288 = vst [vmem:[#allocation15_spill] sm:$0xff] %v13391_v26  ;;  %11261 = vmatprep.mubr.msk.f32.mxu0 %vm223_vm1, %v2924_v43  ;;  %v2946_v37 = vsel %vm1307_vm4, %v2943_v30, %v2945_v57  ;;  %v2948_v14 = vsel %vm1307_vm4, %v2945_v57, %v2947_v21  ;;  %v2950_v45 = vsel %vm1307_vm4, %v2947_v21, %v2949_v19  ;;  %v13534_v30 = vld [vmem:[#allocation2 + $0x60] sm:$0xff]  ;;  %v13542_v57 = vld [vmem:[#allocation2 + $0x70] sm:$0xff] }
 0x129   : > { %v2952_v22 = vsel %vm1307_vm4, %v2949_v19, %v2951_v51  ;;  %v2954_v20 = vsel %vm1307_vm4, %v2951_v51, %v2953_v46  ;;  %v2956_v56 = vsel %vm1307_vm4, %v2953_v46, %v2955_v55  ;;  %v13554_v19 = vld [vmem:[#allocation2 + $0x80] sm:$0xff]  ;;  %v13566_v46 = vld [vmem:[#allocation2 + $0x90] sm:$0xff] }
 0x12a   : > { %11040 = vmatmul.mubr.msk.f32.gmra.mrb[98].mxu1 %vm223_vm1, %v2920_v5  ;;  %16303 = vst [vmem:[#allocation41_spill] sm:$0xff] %v13554_v19 }
 0x12b   : > { %11262 = vmatmul.mubr.msk.f32.gmra.mrb[98].mxu0 %vm223_vm1, %v2926_v3  ;;  %11042 = vmatprep.mubr.msk.f32.mxu1 %vm223_vm1, %v2922_v16 }
 0x12c   : > { %11264 = vmatprep.mubr.msk.f32.mxu0 %vm223_vm1, %v2928_v11 }
 0x12d   : > { %v13408_v35 = vpop.f32.mrb[20].mxu1 }
 0x12e   : > { %11043 = vmatmul.mubr.msk.f32.gmra.mrb[30].mxu1 %vm223_vm1, %v2924_v43  ;;  %v13411_v24 = vpop.f32.mrb[20].mxu0  ;;  %v788_v0 = vpop.f32.mrb[21].mxu1 }
 0x12f   : > { %16289 = vst [vmem:[#allocation8_spill] sm:$0xff] %v13411_v24  ;;  %v2183_v6 = vpop.f32.mrb[21].mxu0  ;;  %11265 = vmatmul.mubr.msk.f32.gmra.mrb[30].mxu0 %vm223_vm1, %v2930_v29  ;;  %11045 = vmatprep.mubr.msk.f32.mxu1 %vm223_vm1, %v2926_v3  ;;  %v13493_v0 = vld [vmem:[#allocation2 + $0x30] sm:$0xff] }
 0x130   : > { %11267 = vmatprep.mubr.msk.f32.mxu0 %vm223_vm1, %v2932_v33  ;;  %16295 = vst [vmem:[#allocation31_spill] sm:$0xff] %v13493_v0  ;;  %v13499_v6 = vld [vmem:[#allocation2 + $0x38] sm:$0xff] }
 0x131   : > { %v10884_v9 = vpop.f32.mrb[22].mxu1  ;;  %16296 = vst [vmem:[#allocation35_spill] sm:$0xff] %v13499_v6 }
 0x132   : > { %11046 = vmatmul.mubr.msk.f32.gmra.mrb[100].mxu1 %vm223_vm1, %v2928_v11  ;;  %v11106_v38 = vpop.f32.mrb[22].mxu0  ;;  %v13421_v44 = vpop.f32.mrb[23].mxu1 }
 0x133   : > { %v13423_v15 = vpop.f32.mrb[23].mxu0  ;;  %11268 = vmatmul.mubr.msk.f32.gmra.mrb[100].mxu0 %vm223_vm1, %v2934_v62  ;;  %11048 = vmatprep.mubr.msk.f32.mxu1 %vm223_vm1, %v2930_v29  ;;  %v2961_v29 = vrot.slane %v13213_v42, 2 }
 0x134   : > { %16290 = vst [vmem:[#allocation16_spill] sm:$0xff] %v13423_v15  ;;  %11270 = vmatprep.mubr.msk.f32.mxu0 %vm223_vm1, %v2936_v1 }
 0x135   : > { %v2962_v42 = vsel %vm1307_vm4, %v2959_v27, %v2961_v29  ;;  %v13510_v27 = vld [vmem:[%s16094_s1 + $0x20] sm:$0xf] }
 0x136   : > { %11049 = vmatmul.mubr.msk.f32.gmra.mrb[102].mxu1 %vm223_vm1, %v2932_v33 }
 0x137   : > { %11271 = vmatmul.mubr.msk.f32.gmra.mrb[102].mxu0 %vm223_vm1, %v2938_v52  ;;  %11051 = vmatprep.mubr.msk.f32.mxu1 %vm223_vm1, %v2934_v62 }
 0x138   : > { %11273 = vmatprep.mubr.msk.f32.mxu0 %vm223_vm1, %v2940_v25 }
 0x139   : > { %v13440_v32 = vpop.f32.mrb[26].mxu1 }
 0x13a   : > { %11052 = vmatmul.mubr.msk.f32.gmra.mrb[36].mxu1 %vm223_vm1, %v2936_v1  ;;  %v13443_v10 = vpop.f32.mrb[26].mxu0  ;;  %v816_v5 = vpop.f32.mrb[27].mxu1  ;;  %v13520_v1 = vld [vmem:[#allocation2 + $0x50] sm:$0xff] }
 0x13b   : > { %16291 = vst [vmem:[#allocation9_spill] sm:$0xff] %v13443_v10  ;;  %v2211_v47 = vpop.f32.mrb[27].mxu0  ;;  %11274 = vmatmul.mubr.msk.f32.gmra.mrb[36].mxu0 %vm223_vm1, %v2942_v58  ;;  %11054 = vmatprep.mubr.msk.f32.mxu1 %vm223_vm1, %v2938_v52  ;;  %16300 = vst [vmem:[#allocation38_spill] sm:$0xff] %v13520_v1 }
 0x13c   : > { %11276 = vmatprep.mubr.msk.f32.mxu0 %vm223_vm1, %v2944_v41  ;;  %v13552_v47 = vld [vmem:[#allocation2 + $0x78] sm:$0xff] }
 0x13d   : > { %v10893_v16 = vpop.f32.mrb[28].mxu1 }
 0x13e   : > { %11055 = vmatmul.mubr.msk.f32.gmra.mrb[104].mxu1 %vm223_vm1, %v2940_v25  ;;  %v11115_v8 = vpop.f32.mrb[28].mxu0  ;;  %v13453_v43 = vpop.f32.mrb[29].mxu1  ;;  %v13540_v25 = vld [vmem:[#allocation2 + $0x68] sm:$0xff] }
 0x13f   : > { %v13455_v63 = vpop.f32.mrb[29].mxu0  ;;  %11277 = vmatmul.mubr.msk.f32.gmra.mrb[104].mxu0 %vm223_vm1, %v2946_v37  ;;  %11057 = vmatprep.mubr.msk.f32.mxu1 %vm223_vm1, %v2942_v58  ;;  %v13564_v8 = vld [vmem:[#allocation2 + $0x88] sm:$0xff] }
 0x140   : > { %16292 = vst [vmem:[#allocation19_spill] sm:$0xff] %v13455_v63  ;;  %11279 = vmatprep.mubr.msk.f32.mxu0 %vm223_vm1, %v2948_v14  ;;  %16305 = vst [vmem:[#allocation42_spill] sm:$0xff] %v13564_v8  ;;  %v13655_v63 = vld [vmem:[#allocation2 + $0x110] sm:$0xff] }
 0x141   : > { %16308 = vst [vmem:[#allocation44_spill] sm:$0xff] %v13655_v63 }
 0x142   : > { %11058 = vmatmul.mubr.msk.f32.gmra.mrb[106].mxu1 %vm223_vm1, %v2944_v41 }
 0x143   : > { %11280 = vmatmul.mubr.msk.f32.gmra.mrb[106].mxu0 %vm223_vm1, %v2950_v45  ;;  %11060 = vmatprep.mubr.msk.f32.mxu1 %vm223_vm1, %v2946_v37 }
 0x144   : > { %11282 = vmatprep.mubr.msk.f32.mxu0 %vm223_vm1, %v2952_v22 }
 0x145   : > { %v13471_v3 = vpop.f32.mrb[32].mxu1 }
 0x146   : > { %11061 = vmatmul.mubr.msk.f32.gmra.mrb[42].mxu1 %vm223_vm1, %v2948_v14  ;;  %v13474_v59 = vpop.f32.mrb[32].mxu0  ;;  %v844_v11 = vpop.f32.mrb[33].mxu1 }
 0x147   : > { %16293 = vst [vmem:[#allocation20_spill] sm:$0xff] %v13474_v59  ;;  %v2239_v60 = vpop.f32.mrb[33].mxu0  ;;  %11283 = vmatmul.mubr.msk.f32.gmra.mrb[42].mxu0 %vm223_vm1, %v2954_v20  ;;  %11063 = vmatprep.mubr.msk.f32.mxu1 %vm223_vm1, %v2950_v45  ;;  %v13572_v45 = vld [vmem:[#allocation2 + $0x98] sm:$0xff]  ;;  %v13653_v59 = vld [vmem:[#allocation2 + $0x108] sm:$0xff] }
 0x148   : > { %11285 = vmatprep.mubr.msk.f32.mxu0 %vm223_vm1, %v2956_v56 }
 0x149   : > { %v10902_v12 = vpop.f32.mrb[34].mxu1 }
 0x14a   : > { %11064 = vmatmul.mubr.msk.f32.gmra.mrb[108].mxu1 %vm223_vm1, %v2952_v22  ;;  %v11124_v36 = vpop.f32.mrb[34].mxu0  ;;  %v13481_v55 = vpop.f32.mrb[35].mxu1  ;;  %v13574_v22 = vld [vmem:[#allocation2 + $0xa0] sm:$0xff]  ;;  %v13585_v12 = vld [vmem:[#allocation2 + $0xa8] sm:$0xff] }
 0x14b   : > { %v13483_v33 = vpop.f32.mrb[35].mxu0  ;;  %11286 = vmatmul.mubr.msk.f32.gmra.mrb[108].mxu0 %vm223_vm1, %v13152_v4  ;;  %11066 = vmatprep.mubr.msk.f32.mxu1 %vm223_vm1, %v2954_v20  ;;  %v13501_v4 = vld [vmem:[#allocation2 + $0x40] sm:$0xff]  ;;  %v13587_v36 = vld [vmem:[#allocation2 + $0xb0] sm:$0xff] }
 0x14c   : > { %16294 = vst [vmem:[#allocation30_spill] sm:$0xff] %v13483_v33  ;;  %11288 = vmatprep.mubr.msk.f32.mxu0 %vm223_vm1, %v13163_v50  ;;  %16297 = vst [vmem:[#allocation36_spill] sm:$0xff] %v13501_v4 }
 0x14e   : > { %11067 = vmatmul.mubr.msk.f32.gmra.mrb[110].mxu1 %vm223_vm1, %v2956_v56 }
 0x14f   : > { %11289 = vmatmul.mubr.msk.f32.gmra.mrb[110].mxu0 %vm223_vm1, %v2962_v42 }
 0x150   : > { %11293 = vmatprep.mubr.msk.f32.mxu0 %vm223_vm1, %v13493_v0 }
 0x151   : > { %v13503_v23 = vpop.f32.mrb[38].mxu1 }
 0x152   : > { %v13505_v50 = vpop.f32.mrb[38].mxu0  ;;  %v872_v31 = vpop.f32.mrb[39].mxu1 }
 0x153   : > { %16298 = vst [vmem:[#allocation37_spill] sm:$0xff] %v13505_v50  ;;  %v2267_v62 = vpop.f32.mrb[39].mxu0  ;;  %11294 = vmatmul.mubr.msk.f32.vlgmr.msra.gmra.mrb[0].mxu0 %vm223_vm1, %v13499_v6 }
 0x154   : > { %11366 = vmatpush3.msk.msra.mxu0 %vm624_vm0, %v13259_v54  ;;  %11296 = vmatprep.mubr.msk.f32.mxu0 %vm223_vm1, %v13501_v4  ;;  %v13532_v54 = vld [vmem:[#allocation2 + $0x58] sm:$0xff] }
 0x155   : > { %v10911_v9 = vpop.f32.mrb[40].mxu1  ;;  %11439 = vmatprep.subr.msk.mxu0 %vm624_vm0, %v13510_v27 }
 0x156   : > { %v11133_v38 = vpop.f32.mrb[40].mxu0  ;;  %v13524_v18 = vpop.f32.mrb[41].mxu1 }
 0x157   : > { %v13526_v52 = vpop.f32.mrb[41].mxu0  ;;  %11297 = vmatmul.mubr.msk.f32.gmra.mrb[112].mxu0 %vm223_vm1, %v13518_v49  ;;  %v13598_v38 = vld [vmem:[#allocation2 + $0xb8] sm:$0xff] }
 0x158   : > { %16301 = vst [vmem:[#allocation39_spill] sm:$0xff] %v13526_v52  ;;  %11299 = vmatprep.mubr.msk.f32.mxu0 %vm223_vm1, %v13520_v1 }
 0x15b   : > { %11300 = vmatmul.mubr.msk.f32.gmra.mrb[114].mxu0 %vm223_vm1, %v13532_v54 }
 0x15c   : > { %11302 = vmatprep.mubr.msk.f32.mxu0 %vm223_vm1, %v13534_v30 }
 0x15d   : > { %v13544_v58 = vpop.f32.mrb[44].mxu1 }
 0x15e   : > { %v13546_v21 = vpop.f32.mrb[44].mxu0  ;;  %v900_v41 = vpop.f32.mrb[45].mxu1 }
 0x15f   : > { %16302 = vst [vmem:[#allocation40_spill] sm:$0xff] %v13546_v21  ;;  %v2295_v5 = vpop.f32.mrb[45].mxu0  ;;  %11303 = vmatmul.mubr.msk.f32.gmra.mrb[6].mxu0 %vm223_vm1, %v13540_v25  ;;  %v13600_v41 = vld [vmem:[#allocation2 + $0xc0] sm:$0xff] }
 0x160   : > { %11305 = vmatprep.mubr.msk.f32.mxu0 %vm223_vm1, %v13542_v57  ;;  %v13606_v5 = vld [vmem:[#allocation2 + $0xc8] sm:$0xff] }
 0x161   : > { %v10920_v37 = vpop.f32.mrb[46].mxu1 }
 0x162   : > { %v11142_v51 = vpop.f32.mrb[46].mxu0  ;;  %v13556_v14 = vpop.f32.mrb[47].mxu1  ;;  %v13608_v37 = vld [vmem:[#allocation2 + $0xd0] sm:$0xff] }
 0x163   : > { %v13558_v16 = vpop.f32.mrb[47].mxu0  ;;  %11306 = vmatmul.mubr.msk.f32.gmra.mrb[116].mxu0 %vm223_vm1, %v13552_v47 }
 0x164   : > { %16304 = vst [vmem:[#allocation25_spill] sm:$0xff] %v13558_v16  ;;  %11308 = vmatprep.mubr.msk.f32.mxu0 %vm223_vm1, %v13554_v19 }
 0x167   : > { %11309 = vmatmul.mubr.msk.f32.gmra.mrb[118].mxu0 %vm223_vm1, %v13564_v8 }
 0x168   : > { %11311 = vmatprep.mubr.msk.f32.mxu0 %vm223_vm1, %v13566_v46 }
 0x169   : > { %v10928_v20 = vpop.f32.mrb[48].mxu1 }
 0x16a   : > { %v13576_v56 = vpop.f32.mrb[48].mxu0  ;;  %v13579_v11 = vadd.f32 %v10928_v20, %v13312_v53  ;;  %v1092_v60 = vpop.f32.mrb[49].mxu1 }
 0x16b   : > { %v2619_v29 = vpop.f32.mrb[49].mxu0  ;;  %11312 = vmatmul.mubr.msk.f32.gmra.mrb[12].mxu0 %vm223_vm1, %v13572_v45 }
 0x16c   : > { %11314 = vmatprep.mubr.msk.f32.mxu0 %vm223_vm1, %v13574_v22 }
 0x16d   : > { %v10931_v42 = vpop.f32.mrb[50].mxu1 }
 0x16e   : > { %v11153_v31 = vpop.f32.mrb[50].mxu0  ;;  %v1101_v62 = vpop.f32.mrb[51].mxu1  ;;  %v13619_v42 = vld [vmem:[#allocation2 + $0xd8] sm:$0xff] }
 0x16f   : > { %v13589_v9 = vpop.f32.mrb[51].mxu0  ;;  %11315 = vmatmul.mubr.msk.f32.gmra.mrb[120].mxu0 %vm223_vm1, %v13585_v12  ;;  %v13594_v53 = vadd.f32 %v1101_v62, %v13325_v2  ;;  %v13621_v31 = vld [vmem:[#allocation2 + $0xe0] sm:$0xff] }
 0x170   : > { %11317 = vmatprep.mubr.msk.f32.mxu0 %vm223_vm1, %v13587_v36 }
 0x173   : > { %11318 = vmatmul.mubr.msk.f32.gmra.mrb[122].mxu0 %vm223_vm1, %v13598_v38 }
 0x174   : > { %11320 = vmatprep.mubr.msk.f32.mxu0 %vm223_vm1, %v13600_v41 }
 0x175   : > { %v10937_v51 = vpop.f32.mrb[52].mxu1 }
 0x176   : > { %v13610_v2 = vpop.f32.mrb[52].mxu0  ;;  %v13613_v20 = vadd.f32 %v10937_v51, %v13344_v34  ;;  %v1120_v60 = vpop.f32.mrb[53].mxu1  ;;  %v13632_v51 = vld [vmem:[#allocation2 + $0xe8] sm:$0xff] }
 0x177   : > { %v2647_v29 = vpop.f32.mrb[53].mxu0  ;;  %11321 = vmatmul.mubr.msk.f32.gmra.mrb[18].mxu0 %vm223_vm1, %v13606_v5  ;;  %v13634_v60 = vld [vmem:[#allocation2 + $0xf0] sm:$0xff] }
 0x178   : > { %11323 = vmatprep.mubr.msk.f32.mxu0 %vm223_vm1, %v13608_v37  ;;  %v13642_v29 = vld [vmem:[#allocation2 + $0x100] sm:$0xff] }
 0x179   : > { %v10940_v62 = vpop.f32.mrb[54].mxu1 }
 0x17a   : > { %v11162_v16 = vpop.f32.mrb[54].mxu0  ;;  %v1129_v21 = vpop.f32.mrb[55].mxu1 }
 0x17b   : > { %v13623_v52 = vpop.f32.mrb[55].mxu0  ;;  %11324 = vmatmul.mubr.msk.f32.gmra.mrb[124].mxu0 %vm223_vm1, %v13619_v42  ;;  %v13628_v34 = vadd.f32 %v1129_v21, %v13357_v28  ;;  %v13640_v16 = vld [vmem:[#allocation2 + $0xf8] sm:$0xff] }
 0x17c   : > { %11326 = vmatprep.mubr.msk.f32.mxu0 %vm223_vm1, %v13621_v31 }
 0x17f   : > { %11327 = vmatmul.mubr.msk.f32.gmra.mrb[126].mxu0 %vm223_vm1, %v13632_v51 }
 0x180   : > { %11329 = vmatprep.mubr.msk.f32.mxu0 %vm223_vm1, %v13634_v60 }
 0x181   : > { %v10946_v62 = vpop.f32.mrb[56].mxu1 }
 0x182   : > { %v13644_v28 = vpop.f32.mrb[56].mxu0  ;;  %v13647_v21 = vadd.f32 %v10946_v62, %v13376_v40  ;;  %v1148_v50 = vpop.f32.mrb[57].mxu1 }
 0x183   : > { %16306 = vst [vmem:[#allocation26_spill] sm:$0xff] %v13644_v28  ;;  %v2675_v33 = vpop.f32.mrb[57].mxu0  ;;  %11330 = vmatmul.mubr.msk.f32.gmra.mrb[24].mxu0 %vm223_vm1, %v13640_v16  ;;  %v13668_v50 = vld [vmem:[#allocation2 + $0x120] sm:$0xff]  ;;  %v13687_v28 = vld [vmem:[#allocation2 + $0x138] sm:$0xff] }
 0x184   : > { %16307 = vst [vmem:[#allocation43_spill] sm:$0xff] %v13647_v21  ;;  %11332 = vmatprep.mubr.msk.f32.mxu0 %vm223_vm1, %v13642_v29  ;;  %v13666_v33 = vld [vmem:[#allocation2 + $0x118] sm:$0xff]  ;;  %16312 = vst [vmem:[#allocation33_spill] sm:$0xff] %v13668_v50 }
 0x185   : > { %v10949_v10 = vpop.f32.mrb[58].mxu1  ;;  %16311 = vst [vmem:[#allocation32_spill] sm:$0xff] %v13666_v33  ;;  %16316 = vst [vmem:[#allocation12_spill] sm:$0xff] %v13687_v28 }
 0x186   : > { %v11171_v15 = vpop.f32.mrb[58].mxu0  ;;  %v1157_v24 = vpop.f32.mrb[59].mxu1  ;;  %v13676_v10 = vld [vmem:[#allocation2 + $0x130] sm:$0xff] }
 0x187   : > { %v13657_v26 = vpop.f32.mrb[59].mxu0  ;;  %11333 = vmatmul.mubr.msk.f32.gmra.mrb[128].mxu0 %vm223_vm1, %v13653_v59  ;;  %v13662_v40 = vadd.f32 %v1157_v24, %v13389_v17  ;;  %v13674_v15 = vld [vmem:[#allocation2 + $0x128] sm:$0xff]  ;;  %16313 = vst [vmem:[#allocation34_spill] sm:$0xff] %v13676_v10 }
 0x188   : > { %16309 = vst [vmem:[#allocation28_spill] sm:$0xff] %v13657_v26  ;;  %11335 = vmatprep.mubr.msk.f32.mxu0 %vm223_vm1, %v13655_v63 }
 0x189   : > { %16310 = vst [vmem:[#allocation29_spill] sm:$0xff] %v13662_v40 }
 0x18b   : > { %11336 = vmatmul.mubr.msk.f32.gmra.mrb[130].mxu0 %vm223_vm1, %v13666_v33 }
 0x18c   : > { %11338 = vmatprep.mubr.msk.f32.mxu0 %vm223_vm1, %v13668_v50 }
 0x18d   : > { %v10955_v62 = vpop.f32.mrb[60].mxu1 }
 0x18e   : > { %v13678_v17 = vpop.f32.mrb[60].mxu0  ;;  %v13681_v24 = vadd.f32 %v10955_v62, %v13408_v35  ;;  %v1176_v26 = vpop.f32.mrb[61].mxu1  ;;  %v13700_v35 = vld [vmem:[#allocation2 + $0x148] sm:$0xff] }
 0x18f   : > { %16314 = vst [vmem:[#allocation10_spill] sm:$0xff] %v13678_v17  ;;  %v2703_v40 = vpop.f32.mrb[61].mxu0  ;;  %11339 = vmatmul.mubr.msk.f32.gmra.mrb[30].mxu0 %vm223_vm1, %v13674_v15  ;;  %16320 = vst [vmem:[#allocation21_spill] sm:$0xff] %v13700_v35  ;;  %v13721_v17 = vld [vmem:[#allocation2 + $0x168] sm:$0xff] }
 0x190   : > { %16315 = vst [vmem:[#allocation11_spill] sm:$0xff] %v13681_v24  ;;  %11341 = vmatprep.mubr.msk.f32.mxu0 %vm223_vm1, %v13676_v10  ;;  %v13702_v40 = vld [vmem:[#allocation2 + $0x150] sm:$0xff]  ;;  %16325 = vst [vmem:[#allocation45_spill] sm:$0xff] %v13721_v17 }
 0x191   : > { %v10958_v50 = vpop.f32.mrb[62].mxu1  ;;  %16321 = vst [vmem:[#allocation22_spill] sm:$0xff] %v13702_v40 }
 0x192   : > { %v11180_v21 = vpop.f32.mrb[62].mxu0  ;;  %v1185_v33 = vpop.f32.mrb[63].mxu1  ;;  %v13710_v50 = vld [vmem:[#allocation2 + $0x160] sm:$0xff] }
 0x193   : > { %v13691_v63 = vpop.f32.mrb[63].mxu0  ;;  %11342 = vmatmul.mubr.msk.f32.gmra.mrb[132].mxu0 %vm223_vm1, %v13687_v28  ;;  %v13696_v26 = vadd.f32 %v1185_v33, %v13421_v44  ;;  %v13708_v21 = vld [vmem:[#allocation2 + $0x158] sm:$0xff]  ;;  %16322 = vst [vmem:[#allocation23_spill] sm:$0xff] %v13710_v50 }
 0x194   : > { %16318 = vst [vmem:[#allocation14_spill] sm:$0xff] %v13691_v63  ;;  %11344 = vmatprep.mubr.msk.f32.mxu0 %vm223_vm1, %v13689_v7 }
 0x195   : > { %16319 = vst [vmem:[#allocation17_spill] sm:$0xff] %v13696_v26 }
 0x197   : > { %11345 = vmatmul.mubr.msk.f32.gmra.mrb[134].mxu0 %vm223_vm1, %v13700_v35 }
 0x198   : > { %11347 = vmatprep.mubr.msk.f32.mxu0 %vm223_vm1, %v13702_v40  ;;  %v13723_v40 = vld [vmem:[#allocation2 + $0x170] sm:$0xff] }
 0x199   : > { %v10964_v62 = vpop.f32.mrb[64].mxu1  ;;  %16326 = vst [vmem:[#allocation46_spill] sm:$0xff] %v13723_v40 }
 0x19a   : > { %v13712_v44 = vpop.f32.mrb[64].mxu0  ;;  %v13715_v33 = vadd.f32 %v10964_v62, %v13440_v32  ;;  %v1204_v63 = vpop.f32.mrb[65].mxu1 }
 0x19b   : > { %16323 = vst [vmem:[#allocation24_spill] sm:$0xff] %v13712_v44  ;;  %v2731_v26 = vpop.f32.mrb[65].mxu0  ;;  %11348 = vmatmul.mubr.msk.f32.gmra.mrb[36].mxu0 %vm223_vm1, %v13708_v21  ;;  %v13734_v63 = vld [vmem:[#allocation2 + $0x178] sm:$0xff] }
 0x19c   : > { %16324 = vst [vmem:[#allocation27_spill] sm:$0xff] %v13715_v33  ;;  %11350 = vmatprep.mubr.msk.f32.mxu0 %vm223_vm1, %v13710_v50  ;;  %16329 = vst [vmem:[#allocation49_spill] sm:$0xff] %v13734_v63  ;;  %v13736_v26 = vld [vmem:[#allocation2 + $0x180] sm:$0xff]  ;;  %v13755_v44 = vld [vmem:[#allocation2 + $0x198] sm:$0xff] }
 0x19d   : > { %v10967_v24 = vpop.f32.mrb[66].mxu1  ;;  %16330 = vst [vmem:[#allocation50_spill] sm:$0xff] %v13736_v26  ;;  %16334 = vst [vmem:[#allocation54_spill] sm:$0xff] %v13755_v44  ;;  %v13758_v33 = vld [vmem:[#allocation2 + $0x1a0] sm:$0xff] }
 0x19e   : > { %v11189_v35 = vpop.f32.mrb[66].mxu0  ;;  %v1213_v7 = vpop.f32.mrb[67].mxu1  ;;  %v13742_v24 = vld [vmem:[#allocation2 + $0x188] sm:$0xff]  ;;  %16335 = vst [vmem:[#allocation55_spill] sm:$0xff] %v13758_v33 }
 0x19f   : > { %v13725_v28 = vpop.f32.mrb[67].mxu0  ;;  %11351 = vmatmul.mubr.msk.f32.gmra.mrb[136].mxu0 %vm223_vm1, %v13721_v17  ;;  %v13730_v32 = vadd.f32 %v1213_v7, %v13453_v43  ;;  %v13744_v35 = vld [vmem:[#allocation2 + $0x190] sm:$0xff] }
 0x1a0   : > { %16327 = vst [vmem:[#allocation47_spill] sm:$0xff] %v13725_v28  ;;  %11353 = vmatprep.mubr.msk.f32.mxu0 %vm223_vm1, %v13723_v40  ;;  %16331 = vst [vmem:[#allocation51_spill] sm:$0xff] %v13744_v35 }
 0x1a1   : > { %16328 = vst [vmem:[#allocation48_spill] sm:$0xff] %v13730_v32 }
 0x1a3   : > { %11354 = vmatmul.mubr.msk.f32.gmra.mrb[138].mxu0 %vm223_vm1, %v13734_v63  ;;  %v3907_v63 = vrot.slane %v13499_v6, 1  ;;  %v3911_v6 = vrot.slane %v13518_v49, 1 }
 0x1a4   : > { %11356 = vmatprep.mubr.msk.f32.mxu0 %vm223_vm1, %v13736_v26  ;;  %v3906_v26 = vrot.slane %v13493_v0, 1  ;;  %v13771_v0 = vld [vmem:[#allocation2 + $0x1a8] sm:$0xff] }
 0x1a5   : > { %v10973_v62 = vpop.f32.mrb[68].mxu1  ;;  %16338 = vst [vmem:[#allocation58_spill] sm:$0xff] %v13771_v0 }
 0x1a6   : > { %v13746_v7 = vpop.f32.mrb[68].mxu0  ;;  %v13749_v43 = vadd.f32 %v10973_v62, %v13471_v3  ;;  %v1232_v28 = vpop.f32.mrb[69].mxu1 }
 0x1a7   : > { %16332 = vst [vmem:[#allocation52_spill] sm:$0xff] %v13746_v7  ;;  %v2759_v32 = vpop.f32.mrb[69].mxu0  ;;  %11357 = vmatmul.mubr.msk.f32.gmra.mrb[42].mxu0 %vm223_vm1, %v13742_v24 }
 0x1a8   : > { %16333 = vst [vmem:[#allocation53_spill] sm:$0xff] %v13749_v43  ;;  %11359 = vmatprep.mubr.msk.f32.mxu0 %vm223_vm1, %v13744_v35  ;;  %v3909_v32 = vrot.slane %v13501_v4, 1 }
 0x1a9   : > { %v10976_v7 = vpop.f32.mrb[70].mxu1 }
 0x1aa   : > { %v11198_v40 = vpop.f32.mrb[70].mxu0  ;;  %v1241_v3 = vpop.f32.mrb[71].mxu1  ;;  %v3913_v7 = vrot.slane %v13520_v1, 1  ;;  %v3917_v1 = vrot.slane %v13534_v30, 1 }
 0x1ab   : > { %v13761_v62 = vpop.f32.mrb[71].mxu0  ;;  %11360 = vmatmul.mubr.msk.f32.gmra.mrb[140].mxu0 %vm223_vm1, %v13755_v44  ;;  %v13766_v28 = vadd.f32 %v1241_v3, %v13481_v55  ;;  %v3908_v40 = vsel %vm430_vm3, %v3906_v26, %v3907_v63  ;;  %v3910_v55 = vsel %vm430_vm3, %v3907_v63, %v3909_v32  ;;  %v3915_v3 = vrot.slane %v13532_v54, 1 }
 0x1ac   : > { %16336 = vst [vmem:[#allocation56_spill] sm:$0xff] %v13761_v62  ;;  %11362 = vmatprep.mubr.msk.f32.mxu0 %vm223_vm1, %v13758_v33  ;;  %v3912_v62 = vsel %vm430_vm3, %v3909_v32, %v3911_v6  ;;  %v3914_v63 = vsel %vm430_vm3, %v3911_v6, %v3913_v7  ;;  %v3919_v32 = vrot.slane %v13540_v25, 1 }
 0x1ad   : > { %16337 = vst [vmem:[#allocation57_spill] sm:$0xff] %v13766_v28  ;;  %v3918_v6 = vsel %vm430_vm3, %v3915_v3, %v3917_v1 }
 0x1af   : > { %11363 = vmatmul.mubr.msk.f32.gmra.mrb[142].mxu0 %vm223_vm1, %v13771_v0 }
 0x1b0   : > { %11367 = vmatprep.mubr.msk.f32.mxu0 %vm223_vm1, %v3908_v40  ;;  %v3916_v40 = vsel %vm430_vm3, %v3913_v7, %v3915_v3  ;;  %v3920_v7 = vsel %vm430_vm3, %v3917_v1, %v3919_v32 }
 0x1b1   : > { %v10982_v4 = vpop.f32.mrb[72].mxu1 }
 0x1b2   : > { %v13782_v28 = vpop.f32.mrb[72].mxu0  ;;  %v13785_v49 = vadd.f32 %v10982_v4, %v13503_v23  ;;  %v1260_v26 = vpop.f32.mrb[73].mxu1 }
 0x1b3   : > { %16339 = vst [vmem:[#allocation59_spill] sm:$0xff] %v13782_v28  ;;  %v2787_v43 = vpop.f32.mrb[73].mxu0  ;;  %11368 = vmatmul.mubr.msk.f32.vlgmr.msra.gmra.mrb[0].mxu0 %vm223_vm1, %v3910_v55 }
 0x1b4   : > { %11440 = vmatpush3.msk.msra.mxu0 %vm624_vm0, %v13510_v27  ;;  %11370 = vmatprep.mubr.msk.f32.mxu0 %vm223_vm1, %v3912_v62  ;;  %v3921_v27 = vrot.slane %v13542_v57, 1  ;;  %v3923_v62 = vrot.slane %v13552_v47, 1  ;;  %vm9355_vm0 = vcmask 64512  }
 0x1b5   : > { %v10985_v28 = vpop.f32.mrb[74].mxu1 }
 0x1b6   : > { %v11207_v4 = vpop.f32.mrb[74].mxu0  ;;  %v1269_v23 = vpop.f32.mrb[75].mxu1  ;;  %v3925_v28 = vrot.slane %v13554_v19, 1  ;;  %v3922_v55 = vsel %vm430_vm3, %v3919_v32, %v3921_v27 }
 0x1b7   : > { %v13795_v26 = vpop.f32.mrb[75].mxu0  ;;  %11371 = vmatmul.mubr.msk.f32.gmra.mrb[144].mxu0 %vm223_vm1, %v3914_v63  ;;  %v13799_v43 = vadd.f32 %v1269_v23, %v13524_v18  ;;  %v3927_v18 = vrot.slane %v13564_v8, 1  ;;  %v3924_v63 = vsel %vm430_vm3, %v3921_v27, %v3923_v62 }
 0x1b8   : > { %16340 = vst [vmem:[#allocation60_spill] sm:$0xff] %v13795_v26  ;;  %11373 = vmatprep.mubr.msk.f32.mxu0 %vm223_vm1, %v3916_v40  ;;  %v3926_v32 = vsel %vm430_vm3, %v3923_v62, %v3925_v28 }
 0x1b9   : > { %v3928_v27 = vsel %vm430_vm3, %v3925_v28, %v3927_v18 }
 0x1bb   : > { %11374 = vmatmul.mubr.msk.f32.gmra.mrb[146].mxu0 %vm223_vm1, %v3918_v6  ;;  %v3929_v6 = vrot.slane %v13566_v46, 1 }
 0x1bc   : > { %11376 = vmatprep.mubr.msk.f32.mxu0 %vm223_vm1, %v3920_v7  ;;  %v3931_v7 = vrot.slane %v13572_v45, 1 }
 0x1bd   : > { %v10991_v4 = vpop.f32.mrb[76].mxu1  ;;  %v3930_v62 = vsel %vm430_vm3, %v3927_v18, %v3929_v6 }
 0x1be   : > { %v13812_v40 = vpop.f32.mrb[76].mxu0  ;;  %v13815_v3 = vadd.f32 %v10991_v4, %v13544_v58  ;;  %v1288_v23 = vpop.f32.mrb[77].mxu1  ;;  %v3937_v4 = vrot.slane %v13587_v36, 1 }
 0x1bf   : > { %16341 = vst [vmem:[#allocation61_spill] sm:$0xff] %v13812_v40  ;;  %v2815_v1 = vpop.f32.mrb[77].mxu0  ;;  %11377 = vmatmul.mubr.msk.f32.gmra.mrb[6].mxu0 %vm223_vm1, %v3922_v55  ;;  %v3933_v55 = vrot.slane %v13574_v22, 1 }
 0x1c0   : > { %11379 = vmatprep.mubr.msk.f32.mxu0 %vm223_vm1, %v3924_v63  ;;  %v3935_v63 = vrot.slane %v13585_v12, 1 }
 0x1c1   : > { %v10994_v8 = vpop.f32.mrb[78].mxu1 }
 0x1c2   : > { %v11216_v19 = vpop.f32.mrb[78].mxu0  ;;  %v1297_v40 = vpop.f32.mrb[79].mxu1  ;;  %v3936_v18 = vsel %vm430_vm3, %v3933_v55, %v3935_v63 }
 0x1c3   : > { %v13823_v26 = vpop.f32.mrb[79].mxu0  ;;  %11380 = vmatmul.mubr.msk.f32.gmra.mrb[148].mxu0 %vm223_vm1, %v3926_v32  ;;  %v13827_v58 = vadd.f32 %v1297_v40, %v13556_v14  ;;  %v3932_v19 = vsel %vm430_vm3, %v3929_v6, %v3931_v7  ;;  %v3934_v14 = vsel %vm430_vm3, %v3931_v7, %v3933_v55  ;;  %v3939_v40 = vrot.slane %v13598_v38, 1 }
 0x1c4   : > { %11382 = vmatprep.mubr.msk.f32.mxu0 %vm223_vm1, %v3928_v27  ;;  %v3938_v7 = vsel %vm430_vm3, %v3935_v63, %v3937_v4 }
 0x1c5   : > { %v13833_v8 = vpop.f32.mrb[0].mxu1  ;;  %v3940_v55 = vsel %vm430_vm3, %v3937_v4, %v3939_v40 }
 0x1c6   : > { %16342 = vst [vmem:[#allocation62_spill] sm:$0xff] %v13833_v8  ;;  %v13836_v28 = vpop.f32.mrb[1].mxu1 }
 0x1c7   : > { %16343 = vst [vmem:[#allocation63_spill] sm:$0xff] %v13836_v28  ;;  %11383 = vmatmul.mubr.msk.f32.gmra.mrb[150].mxu0 %vm223_vm1, %v3930_v62  ;;  %v3941_v62 = vrot.slane %v13600_v41, 1 }
 0x1c8   : > { %11385 = vmatprep.mubr.msk.f32.mxu0 %vm223_vm1, %v3932_v19  ;;  %v3943_v19 = vrot.slane %v13606_v5, 1 }
 0x1c9   : > { %v11002_v23 = vpop.f32.mrb[80].mxu1  ;;  %v3942_v63 = vsel %vm430_vm3, %v3939_v40, %v3941_v62 }
 0x1ca   : > { %v1795_v1 = vadd.f32 %v11002_v23, %v13579_v11  ;;  %v11224_v32 = vpop.f32.mrb[80].mxu0  ;;  %v1580_v27 = vpop.f32.mrb[81].mxu1 }
 0x1cb   : > { %v3138_v6 = vpop.f32.mrb[81].mxu0  ;;  %11386 = vmatmul.mubr.msk.f32.gmra.mrb[12].mxu0 %vm223_vm1, %v3934_v14 }
 0x1cc   : > { %v2314_v28 = vadd.f32 %v13315_v48, %v1795_v1  ;;  %11388 = vmatprep.mubr.msk.f32.mxu0 %vm223_vm1, %v3936_v18  ;;  %v3945_v48 = vrot.slane %v13608_v37, 1 }
 0x1cd   : > { %v11005_v8 = vpop.f32.mrb[82].mxu1 }
 0x1ce   : > { %v2834_v11 = vadd.f32 %v13576_v56, %v2314_v28  ;;  %v1589_v23 = vpop.f32.mrb[83].mxu1  ;;  %v11227_v27 = vpop.f32.mrb[82].mxu0  ;;  %v3947_v8 = vrot.slane %v13619_v42, 1  ;;  %v3944_v28 = vsel %vm430_vm3, %v3941_v62, %v3943_v19  ;;  %v3946_v40 = vsel %vm430_vm3, %v3943_v19, %v3945_v48 }
 0x1cf   : > { %v1796_v6 = vadd.f32 %v1589_v23, %v13594_v53  ;;  %v3147_v14 = vpop.f32.mrb[83].mxu0  ;;  %11389 = vmatmul.mubr.msk.f32.gmra.mrb[152].mxu0 %vm223_vm1, %v3938_v7  ;;  %v3951_v7 = vrot.slane %v13632_v51, 1 }
 0x1d0   : > { %v13856_v1 = vadd.f32 %v11224_v32, %v2834_v11  ;;  %11391 = vmatprep.mubr.msk.f32.mxu0 %vm223_vm1, %v3940_v55  ;;  %v3949_v32 = vrot.slane %v13621_v31, 1  ;;  %v3948_v11 = vsel %vm430_vm3, %v3945_v48, %v3947_v8 }
 0x1d1   : > { %v2315_v4 = vadd.f32 %v13327_v61, %v1796_v6  ;;  %v13862_v56 = vpop.f32.mrb[6].mxu1  ;;  %v3953_v6 = vrot.slane %v13634_v60, 1 }
 0x1d2   : > { %16344 = vst [vmem:[#allocation64_spill] sm:$0xff] %v13862_v56  ;;  %v13865_v53 = vpop.f32.mrb[7].mxu1  ;;  %v3950_v19 = vsel %vm430_vm3, %v3947_v8, %v3949_v32  ;;  %v3952_v48 = vsel %vm430_vm3, %v3949_v32, %v3951_v7 }
 0x1d3   : > { %16345 = vst [vmem:[#allocation65_spill] sm:$0xff] %v13865_v53  ;;  %v2835_v18 = vadd.f32 %v13589_v9, %v2315_v4  ;;  %11392 = vmatmul.mubr.msk.f32.gmra.mrb[154].mxu0 %vm223_vm1, %v3942_v63  ;;  %v3954_v8 = vsel %vm430_vm3, %v3951_v7, %v3953_v6 }
 0x1d4   : > { %11394 = vmatprep.mubr.msk.f32.mxu0 %vm223_vm1, %v3944_v28 }
 0x1d5   : > { %v13873_v55 = vadd.f32 %v3147_v14, %v2835_v18  ;;  %v11011_v61 = vpop.f32.mrb[84].mxu1  ;;  %v3955_v14 = vrot.slane %v13640_v16, 1 }
 0x1d6   : > { %v1799_v62 = vadd.f32 %v11011_v61, %v13613_v20  ;;  %v11233_v23 = vpop.f32.mrb[84].mxu0  ;;  %v1608_v27 = vpop.f32.mrb[85].mxu1 }
 0x1d7   : > { %v3166_v9 = vpop.f32.mrb[85].mxu0  ;;  %11395 = vmatmul.mubr.msk.f32.gmra.mrb[18].mxu0 %vm223_vm1, %v3946_v40  ;;  %v3956_v27 = vsel %vm430_vm3, %v3953_v6, %v3955_v14  ;;  %v16350_v6 = vld [vmem:[#allocation43_spill] sm:$0xff] }
 0x1d8   : > { %v2318_v63 = vadd.f32 %v13347_v13, %v1799_v62  ;;  %11397 = vmatprep.mubr.msk.f32.mxu0 %vm223_vm1, %v3948_v11  ;;  %v3957_v13 = vrot.slane %v13642_v29, 1  ;;  %v3959_v11 = vrot.slane %v13653_v59, 1 }
 0x1d9   : > { %v11014_v4 = vpop.f32.mrb[86].mxu1 }
 0x1da   : > { %v2838_v20 = vadd.f32 %v13610_v2, %v2318_v63  ;;  %v1617_v28 = vpop.f32.mrb[87].mxu1  ;;  %v11236_v18 = vpop.f32.mrb[86].mxu0  ;;  %v3958_v7 = vsel %vm430_vm3, %v3955_v14, %v3957_v13 }
 0x1db   : > { %v1800_v61 = vadd.f32 %v1617_v28, %v13628_v34  ;;  %v3175_v40 = vpop.f32.mrb[87].mxu0  ;;  %11398 = vmatmul.mubr.msk.f32.gmra.mrb[156].mxu0 %vm223_vm1, %v3950_v19  ;;  %v16349_v19 = vld [vmem:[#allocation32_spill] sm:$0xff] }
 0x1dc   : > { %v13888_v62 = vadd.f32 %v11233_v23, %v2838_v20  ;;  %11400 = vmatprep.mubr.msk.f32.mxu0 %vm223_vm1, %v3952_v48  ;;  %v16348_v23 = vld [vmem:[#allocation44_spill] sm:$0xff]  ;;  %v3963_v4 = vrot.slane %v16349_v19, 1  ;;  %v3960_v20 = vsel %vm430_vm3, %v3957_v13, %v3959_v11 }
 0x1dd   : > { %v2319_v32 = vadd.f32 %v13359_v39, %v1800_v61  ;;  %v13894_v2 = vpop.f32.mrb[12].mxu1  ;;  %v3961_v63 = vrot.slane %v16348_v23, 1 }
 0x1de   : > { %16346 = vst [vmem:[#allocation66_spill] sm:$0xff] %v13894_v2  ;;  %v13897_v34 = vpop.f32.mrb[13].mxu1  ;;  %v16353_v2 = vld [vmem:[#allocation26_spill] sm:$0xff] }
 0x1df   : > { %16347 = vst [vmem:[#allocation67_spill] sm:$0xff] %v13897_v34  ;;  %v2839_v9 = vadd.f32 %v13623_v52, %v2319_v32  ;;  %11401 = vmatmul.mubr.msk.f32.gmra.mrb[158].mxu0 %vm223_vm1, %v3954_v8  ;;  %v16351_v8 = vld [vmem:[#allocation33_spill] sm:$0xff]  ;;  %v16352_v34 = vld [vmem:[#allocation7_spill] sm:$0xff]  ;;  %v3962_v14 = vsel %vm430_vm3, %v3959_v11, %v3961_v63  ;;  %v3964_v13 = vsel %vm430_vm3, %v3961_v63, %v3963_v4 }
 0x1e0   : > { %11403 = vmatprep.mubr.msk.f32.mxu0 %vm223_vm1, %v3956_v27  ;;  %v3965_v32 = vrot.slane %v16351_v8, 1  ;;  %v16356_v63 = vld [vmem:[#allocation15_spill] sm:$0xff] }
 0x1e1   : > { %v13905_v48 = vadd.f32 %v3175_v40, %v2839_v9  ;;  %v11020_v39 = vpop.f32.mrb[88].mxu1  ;;  %v3967_v40 = vrot.slane %v13674_v15, 1 }
 0x1e2   : > { %v1803_v28 = vadd.f32 %v11020_v39, %v16350_v6  ;;  %v11242_v18 = vpop.f32.mrb[88].mxu0  ;;  %v1636_v61 = vpop.f32.mrb[89].mxu1  ;;  %v3966_v11 = vsel %vm430_vm3, %v3963_v4, %v3965_v32 }
 0x1e3   : > { %v3194_v52 = vpop.f32.mrb[89].mxu0  ;;  %11404 = vmatmul.mubr.msk.f32.gmra.mrb[24].mxu0 %vm223_vm1, %v3958_v7 }
 0x1e4   : > { %v2322_v27 = vadd.f32 %v16352_v34, %v1803_v28  ;;  %11406 = vmatprep.mubr.msk.f32.mxu0 %vm223_vm1, %v3960_v20  ;;  %v16354_v52 = vld [vmem:[#allocation29_spill] sm:$0xff]  ;;  %v3969_v34 = vrot.slane %v13676_v10, 1  ;;  %v16355_v20 = vld [vmem:[#allocation12_spill] sm:$0xff] }
 0x1e5   : > { %v11023_v9 = vpop.f32.mrb[90].mxu1 }
 0x1e6   : > { %v2842_v39 = vadd.f32 %v16353_v2, %v2322_v27  ;;  %v1645_v6 = vpop.f32.mrb[91].mxu1  ;;  %v11245_v61 = vpop.f32.mrb[90].mxu0  ;;  %v3971_v9 = vrot.slane %v16355_v20, 1  ;;  %v3968_v27 = vsel %vm430_vm3, %v3965_v32, %v3967_v40  ;;  %v3970_v4 = vsel %vm430_vm3, %v3967_v40, %v3969_v34  ;;  %v16363_v32 = vld [vmem:[#allocation11_spill] sm:$0xff] }
 0x1e7   : > { %v1804_v53 = vadd.f32 %v1645_v6, %v16354_v52  ;;  %v3203_v7 = vpop.f32.mrb[91].mxu0  ;;  %11407 = vmatmul.mubr.msk.f32.gmra.mrb[160].mxu0 %vm223_vm1, %v3962_v14  ;;  %v16359_v61 = vld [vmem:[#allocation28_spill] sm:$0xff] }
 0x1e8   : > { %v13920_v28 = vadd.f32 %v11242_v18, %v2842_v39  ;;  %11409 = vmatprep.mubr.msk.f32.mxu0 %vm223_vm1, %v3964_v13  ;;  %v16360_v18 = vld [vmem:[#allocation13_spill] sm:$0xff] }
 0x1e9   : > { %v2323_v56 = vadd.f32 %v16356_v63, %v1804_v53  ;;  %v13926_v2 = vpop.f32.mrb[18].mxu1  ;;  %v3973_v39 = vrot.slane %v16360_v18, 1  ;;  %v16361_v13 = vld [vmem:[#allocation21_spill] sm:$0xff]  ;;  %v3972_v63 = vsel %vm430_vm3, %v3969_v34, %v3971_v9  ;;  %v16365_v18 = vld [vmem:[#allocation8_spill] sm:$0xff] }
 0x1ea   : > { %16357 = vst [vmem:[#allocation44_spill] sm:$0xff] %v13926_v2  ;;  %v13929_v6 = vpop.f32.mrb[19].mxu1  ;;  %v3975_v52 = vrot.slane %v16361_v13, 1  ;;  %v16366_v13 = vld [vmem:[#allocation10_spill] sm:$0xff] }
 0x1eb   : > { %16358 = vst [vmem:[#allocation32_spill] sm:$0xff] %v13929_v6  ;;  %v2843_v14 = vadd.f32 %v16359_v61, %v2323_v56  ;;  %11410 = vmatmul.mubr.msk.f32.gmra.mrb[162].mxu0 %vm223_vm1, %v3966_v11  ;;  %v16364_v11 = vld [vmem:[#allocation22_spill] sm:$0xff]  ;;  %v3974_v40 = vsel %vm430_vm3, %v3971_v9, %v3973_v39 }
 0x1ec   : > { %11412 = vmatprep.mubr.msk.f32.mxu0 %vm223_vm1, %v3968_v27  ;;  %v3977_v61 = vrot.slane %v16364_v11, 1  ;;  %v3976_v34 = vsel %vm430_vm3, %v3973_v39, %v3975_v52  ;;  %v16368_v39 = vld [vmem:[#allocation16_spill] sm:$0xff] }
 0x1ed   : > { %v13937_v20 = vadd.f32 %v3203_v7, %v2843_v14  ;;  %v11029_v53 = vpop.f32.mrb[92].mxu1  ;;  %v3979_v7 = vrot.slane %v13708_v21, 1 }
 0x1ee   : > { %v1807_v2 = vadd.f32 %v11029_v53, %v16363_v32  ;;  %v11251_v6 = vpop.f32.mrb[92].mxu0  ;;  %v1664_v10 = vpop.f32.mrb[93].mxu1  ;;  %v3978_v9 = vsel %vm430_vm3, %v3975_v52, %v3977_v61 }
 0x1ef   : > { %16362 = vst [vmem:[#allocation43_spill] sm:$0xff] %v13937_v20  ;;  %v3222_v56 = vpop.f32.mrb[93].mxu0  ;;  %11413 = vmatmul.mubr.msk.f32.gmra.mrb[30].mxu0 %vm223_vm1, %v3970_v4 }
 0x1f0   : > { %v2326_v27 = vadd.f32 %v16365_v18, %v1807_v2  ;;  %11415 = vmatprep.mubr.msk.f32.mxu0 %vm223_vm1, %v3972_v63  ;;  %v16367_v56 = vld [vmem:[#allocation17_spill] sm:$0xff]  ;;  %v3981_v2 = vrot.slane %v13710_v50, 1  ;;  %v3983_v63 = vrot.slane %v13721_v17, 1 }
 0x1f1   : > { %v11032_v14 = vpop.f32.mrb[94].mxu1 }
 0x1f2   : > { %v2846_v53 = vadd.f32 %v16366_v13, %v2326_v27  ;;  %v1673_v32 = vpop.f32.mrb[95].mxu1  ;;  %v11254_v10 = vpop.f32.mrb[94].mxu0  ;;  %v3980_v27 = vsel %vm430_vm3, %v3977_v61, %v3979_v7  ;;  %v3982_v52 = vsel %vm430_vm3, %v3979_v7, %v3981_v2  ;;  %v16375_v61 = vld [vmem:[#allocation27_spill] sm:$0xff] }
 0x1f3   : > { %v1808_v20 = vadd.f32 %v1673_v32, %v16367_v56  ;;  %v3231_v4 = vpop.f32.mrb[95].mxu0  ;;  %11416 = vmatmul.mubr.msk.f32.gmra.mrb[164].mxu0 %vm223_vm1, %v3974_v40  ;;  %v16371_v10 = vld [vmem:[#allocation14_spill] sm:$0xff] }
 0x1f4   : > { %v13952_v18 = vadd.f32 %v11251_v6, %v2846_v53  ;;  %11418 = vmatprep.mubr.msk.f32.mxu0 %vm223_vm1, %v3976_v34  ;;  %v16372_v6 = vld [vmem:[#allocation46_spill] sm:$0xff]  ;;  %v16373_v34 = vld [vmem:[#allocation49_spill] sm:$0xff] }
 0x1f5   : > { %v2327_v14 = vadd.f32 %v16368_v39, %v1808_v20  ;;  %v13958_v13 = vpop.f32.mrb[24].mxu1  ;;  %v3985_v53 = vrot.slane %v16372_v6, 1  ;;  %v3987_v56 = vrot.slane %v16373_v34, 1  ;;  %v3984_v39 = vsel %vm430_vm3, %v3981_v2, %v3983_v63  ;;  %v16377_v6 = vld [vmem:[#allocation9_spill] sm:$0xff]  ;;  %v16378_v34 = vld [vmem:[#allocation24_spill] sm:$0xff] }
 0x1f6   : > { %16369 = vst [vmem:[#allocation33_spill] sm:$0xff] %v13958_v13  ;;  %v13961_v32 = vpop.f32.mrb[25].mxu1 }
 0x1f7   : > { %16370 = vst [vmem:[#allocation7_spill] sm:$0xff] %v13961_v32  ;;  %v2847_v40 = vadd.f32 %v16371_v10, %v2327_v14  ;;  %11419 = vmatmul.mubr.msk.f32.gmra.mrb[166].mxu0 %vm223_vm1, %v3978_v9  ;;  %v16376_v9 = vld [vmem:[#allocation50_spill] sm:$0xff]  ;;  %v3986_v7 = vsel %vm430_vm3, %v3983_v63, %v3985_v53  ;;  %v3988_v2 = vsel %vm430_vm3, %v3985_v53, %v3987_v56  ;;  %v16380_v53 = vld [vmem:[#allocation19_spill] sm:$0xff] }
 0x1f8   : > { %11421 = vmatprep.mubr.msk.f32.mxu0 %vm223_vm1, %v3980_v27  ;;  %v3989_v10 = vrot.slane %v16376_v9, 1 }
 0x1f9   : > { %v13969_v17 = vadd.f32 %v3231_v4, %v2847_v40  ;;  %v11038_v20 = vpop.f32.mrb[96].mxu1  ;;  %v3991_v4 = vrot.slane %v13742_v24, 1 }
 0x1fa   : > { %v1811_v13 = vadd.f32 %v11038_v20, %v16375_v61  ;;  %v11260_v32 = vpop.f32.mrb[96].mxu0  ;;  %v1692_v50 = vpop.f32.mrb[97].mxu1  ;;  %v3990_v63 = vsel %vm430_vm3, %v3987_v56, %v3989_v10 }
 0x1fb   : > { %16374 = vst [vmem:[#allocation26_spill] sm:$0xff] %v13969_v17  ;;  %v3250_v14 = vpop.f32.mrb[97].mxu0  ;;  %11422 = vmatmul.mubr.msk.f32.gmra.mrb[36].mxu0 %vm223_vm1, %v3982_v52 }
 0x1fc   : > { %v2330_v27 = vadd.f32 %v16377_v6, %v1811_v13  ;;  %11424 = vmatprep.mubr.msk.f32.mxu0 %vm223_vm1, %v3984_v39  ;;  %v16379_v14 = vld [vmem:[#allocation48_spill] sm:$0xff]  ;;  %v3993_v13 = vrot.slane %v13744_v35, 1  ;;  %v3995_v39 = vrot.slane %v13755_v44, 1  ;;  %v16389_v44 = vld [vmem:[#allocation35_spill] sm:$0xff] }
 0x1fd   : > { %v11041_v40 = vpop.f32.mrb[98].mxu1 }
 0x1fe   : > { %v2850_v20 = vadd.f32 %v16378_v34, %v2330_v27  ;;  %v1701_v61 = vpop.f32.mrb[99].mxu1  ;;  %v11263_v50 = vpop.f32.mrb[98].mxu0  ;;  %v3992_v27 = vsel %vm430_vm3, %v3989_v10, %v3991_v4  ;;  %v3994_v56 = vsel %vm430_vm3, %v3991_v4, %v3993_v13  ;;  %v14004_v10 = vld [vmem:[#allocation2 + $0x1b0] sm:$0xff] }
 0x1ff   : > { %v1812_v17 = vadd.f32 %v1701_v61, %v16379_v14  ;;  %v3259_v52 = vpop.f32.mrb[99].mxu0  ;;  %11425 = vmatmul.mubr.msk.f32.gmra.mrb[168].mxu0 %vm223_vm1, %v3986_v7  ;;  %v16383_v50 = vld [vmem:[#allocation47_spill] sm:$0xff]  ;;  %v3996_v14 = vsel %vm430_vm3, %v3993_v13, %v3995_v39  ;;  %16385 = vst [vmem:[#allocation11_spill] sm:$0xff] %v14004_v10 }
 0x200   : > { %v13984_v6 = vadd.f32 %v11260_v32, %v2850_v20  ;;  %11427 = vmatprep.mubr.msk.f32.mxu0 %vm223_vm1, %v3988_v2  ;;  %v3997_v32 = vrot.slane %v13758_v33, 1  ;;  %v3999_v2 = vrot.slane %v13771_v0, 1 }
 0x201   : > { %v2331_v40 = vadd.f32 %v16380_v53, %v1812_v17  ;;  %v13990_v34 = vpop.f32.mrb[30].mxu1  ;;  %v16386_v53 = vld [vmem:[#allocation53_spill] sm:$0xff] }
 0x202   : > { %16381 = vst [vmem:[#allocation29_spill] sm:$0xff] %v13990_v34  ;;  %v13993_v61 = vpop.f32.mrb[31].mxu1  ;;  %v16387_v34 = vld [vmem:[#allocation20_spill] sm:$0xff]  ;;  %v3998_v4 = vsel %vm430_vm3, %v3995_v39, %v3997_v32  ;;  %v4000_v33 = vsel %vm430_vm3, %v3997_v32, %v3999_v2  ;;  %v16393_v32 = vld [vmem:[#allocation18_spill] sm:$0xff] }
 0x203   : > { %16382 = vst [vmem:[#allocation15_spill] sm:$0xff] %v13993_v61  ;;  %v2851_v7 = vadd.f32 %v16383_v50, %v2331_v40  ;;  %11428 = vmatmul.mubr.msk.f32.gmra.mrb[170].mxu0 %vm223_vm1, %v3990_v63 }
 0x204   : > { %11430 = vmatprep.mubr.msk.f32.mxu0 %vm223_vm1, %v3992_v27 }
 0x205   : > { %v14001_v20 = vadd.f32 %v3259_v52, %v2851_v7  ;;  %v11047_v17 = vpop.f32.mrb[100].mxu1  ;;  %v4001_v52 = vrot.slane %v14004_v10, 1  ;;  %v16388_v7 = vld [vmem:[#allocation31_spill] sm:$0xff] }
 0x206   : > { %v1815_v61 = vadd.f32 %v11047_v17, %v16386_v53  ;;  %v11269_v40 = vpop.f32.mrb[100].mxu0  ;;  %v1720_v50 = vpop.f32.mrb[101].mxu1  ;;  %v4425_v0 = vrot.slane %v16388_v7, 2  ;;  %v4426_v17 = vrot.slane %v16389_v44, 2  ;;  %v16390_v53 = vld [vmem:[#allocation52_spill] sm:$0xff]  ;;  %v16394_v44 = vld [vmem:[#allocation30_spill] sm:$0xff] }
 0x207   : > { %16384 = vst [vmem:[#allocation28_spill] sm:$0xff] %v14001_v20  ;;  %v3278_v63 = vpop.f32.mrb[101].mxu0  ;;  %11431 = vmatmul.mubr.msk.f32.gmra.mrb[42].mxu0 %vm223_vm1, %v3994_v56  ;;  %v16391_v56 = vld [vmem:[#allocation57_spill] sm:$0xff]  ;;  %v4002_v7 = vsel %vm430_vm3, %v3999_v2, %v4001_v52  ;;  %v4434_v2 = vrot.slane %v13532_v54, 2 }
 0x208   : > { %v2334_v27 = vadd.f32 %v16387_v34, %v1815_v61  ;;  %11433 = vmatprep.mubr.msk.f32.mxu0 %vm223_vm1, %v3996_v14  ;;  %v16392_v61 = vld [vmem:[#allocation36_spill] sm:$0xff] }
 0x209   : > { %v11050_v13 = vpop.f32.mrb[102].mxu1  ;;  %v4428_v39 = vrot.slane %v16392_v61, 2 }
 0x20a   : > { %v2854_v50 = vadd.f32 %v16390_v53, %v2334_v27  ;;  %v1729_v63 = vpop.f32.mrb[103].mxu1  ;;  %v11272_v20 = vpop.f32.mrb[102].mxu0  ;;  %v4430_v13 = vrot.slane %v16393_v32, 2 }
 0x20b   : > { %v1816_v35 = vadd.f32 %v1729_v63, %v16391_v56  ;;  %v3287_v34 = vpop.f32.mrb[103].mxu0  ;;  %11434 = vmatmul.mubr.msk.f32.gmra.mrb[172].mxu0 %vm223_vm1, %v3998_v4  ;;  %v4427_v20 = vsel %vm1307_vm4, %v4425_v0, %v4426_v17  ;;  %v16395_v63 = vld [vmem:[#allocation56_spill] sm:$0xff] }
 0x20c   : > { %v14019_v14 = vadd.f32 %v11269_v40, %v2854_v50  ;;  %11436 = vmatprep.mubr.msk.f32.mxu0 %vm223_vm1, %v4000_v33  ;;  %v16396_v40 = vld [vmem:[#allocation38_spill] sm:$0xff]  ;;  %v4429_v33 = vsel %vm1307_vm4, %v4426_v17, %v4428_v39  ;;  %v4431_v56 = vsel %vm1307_vm4, %v4428_v39, %v4430_v13  ;;  %v4438_v17 = vrot.slane %v13540_v25, 2 }
 0x20d   : > { %v2335_v10 = vadd.f32 %v16394_v44, %v1816_v35  ;;  %v14025_v27 = vpop.f32.mrb[36].mxu1  ;;  %v4432_v50 = vrot.slane %v16396_v40, 2  ;;  %v16397_v44 = vld [vmem:[#allocation37_spill] sm:$0xff] }
 0x20e   : > { %v14028_v53 = vpop.f32.mrb[37].mxu1 }
 0x20f   : > { %v2855_v4 = vadd.f32 %v16395_v63, %v2335_v10  ;;  %11437 = vmatmul.mubr.msk.f32.gmra.mrb[174].mxu0 %vm223_vm1, %v4002_v7  ;;  %v4436_v7 = vrot.slane %v13534_v30, 2  ;;  %v4433_v54 = vsel %vm1307_vm4, %v4430_v13, %v4432_v50  ;;  %v4435_v39 = vsel %vm1307_vm4, %v4432_v50, %v4434_v2  ;;  %v16398_v63 = vld [vmem:[#allocation59_spill] sm:$0xff] }
 0x210   : > { %11441 = vmatprep.mubr.msk.f32.mxu0 %vm223_vm1, %v4427_v20  ;;  %v4440_v30 = vrot.slane %v13542_v57, 2  ;;  %v4442_v13 = vrot.slane %v13552_v47, 2  ;;  %v16399_v50 = vld [vmem:[#allocation39_spill] sm:$0xff]  ;;  %v16403_v57 = vld [vmem:[#allocation41_spill] sm:$0xff] }
 0x211   : > { %v14036_v52 = vadd.f32 %v3287_v34, %v2855_v4  ;;  %v11056_v35 = vpop.f32.mrb[104].mxu1  ;;  %v4437_v25 = vsel %vm1307_vm4, %v4434_v2, %v4436_v7 }
 0x212   : > { %v1819_v0 = vadd.f32 %v11056_v35, %v13785_v49  ;;  %v11278_v61 = vpop.f32.mrb[104].mxu0  ;;  %v1748_v32 = vpop.f32.mrb[105].mxu1  ;;  %v4441_v2 = vsel %vm1307_vm4, %v4438_v17, %v4440_v30 }
 0x213   : > { %v3306_v10 = vpop.f32.mrb[105].mxu0  ;;  %11442 = vmatmul.mubr.msk.f32.vlgmr.msra.gmra.mrb[0].mxu0 %vm223_vm1, %v4429_v33 }
 0x214   : > { %v2338_v20 = vadd.f32 %v16397_v44, %v1819_v0  ;;  %11444 = vmatprep.mubr.msk.f32.mxu0 %vm223_vm1, %v4431_v56  ;;  %v4439_v10 = vsel %vm1307_vm4, %v4436_v7, %v4438_v17  ;;  %v16402_v44 = vld [vmem:[#allocation60_spill] sm:$0xff] }
 0x215   : > { %v11059_v34 = vpop.f32.mrb[106].mxu1 }
 0x216   : > { %v2858_v49 = vadd.f32 %v16398_v63, %v2338_v20  ;;  %v1757_v4 = vpop.f32.mrb[107].mxu1  ;;  %v11281_v40 = vpop.f32.mrb[106].mxu0  ;;  %v4443_v63 = vsel %vm1307_vm4, %v4440_v30, %v4442_v13 }
 0x217   : > { %v1820_v35 = vadd.f32 %v1757_v4, %v13799_v43  ;;  %v3315_v33 = vpop.f32.mrb[107].mxu0  ;;  %11445 = vmatmul.mubr.msk.f32.gmra.mrb[176].mxu0 %vm223_vm1, %v4433_v54  ;;  %v16404_v54 = vld [vmem:[#allocation42_spill] sm:$0xff] }
 0x218   : > { %v14051_v0 = vadd.f32 %v11278_v61, %v2858_v49  ;;  %11447 = vmatprep.mubr.msk.f32.mxu0 %vm223_vm1, %v4435_v39  ;;  %v4444_v61 = vrot.slane %v16403_v57, 2  ;;  %v4446_v47 = vrot.slane %v16404_v54, 2 }
 0x219   : > { %v2339_v56 = vadd.f32 %v16399_v50, %v1820_v35  ;;  %v14057_v32 = vpop.f32.mrb[42].mxu1  ;;  %v4448_v35 = vrot.slane %v13566_v46, 2  ;;  %v4452_v46 = vrot.slane %v13574_v22, 2 }
 0x21a   : > { %16400 = vst [vmem:[#allocation22_spill] sm:$0xff] %v14057_v32  ;;  %v14060_v43 = vpop.f32.mrb[43].mxu1  ;;  %v4445_v17 = vsel %vm1307_vm4, %v4442_v13, %v4444_v61  ;;  %v4447_v30 = vsel %vm1307_vm4, %v4444_v61, %v4446_v47  ;;  %v4454_v13 = vrot.slane %v13585_v12, 2  ;;  %v16407_v61 = vld [vmem:[#allocation25_spill] sm:$0xff] }
 0x21b   : > { %16401 = vst [vmem:[#allocation8_spill] sm:$0xff] %v14060_v43  ;;  %v2859_v20 = vadd.f32 %v16402_v44, %v2339_v56  ;;  %11448 = vmatmul.mubr.msk.f32.gmra.mrb[178].mxu0 %vm223_vm1, %v4437_v25  ;;  %v16405_v25 = vld [vmem:[#allocation40_spill] sm:$0xff] }
 0x21c   : > { %11450 = vmatprep.mubr.msk.f32.mxu0 %vm223_vm1, %v4439_v10  ;;  %v16406_v10 = vld [vmem:[#allocation61_spill] sm:$0xff]  ;;  %v4455_v12 = vsel %vm1307_vm4, %v4452_v46, %v4454_v13 }
 0x21d   : > { %v14068_v34 = vadd.f32 %v3315_v33, %v2859_v20  ;;  %v11065_v39 = vpop.f32.mrb[108].mxu1  ;;  %v4450_v33 = vrot.slane %v13572_v45, 2  ;;  %v4449_v45 = vsel %vm1307_vm4, %v4446_v47, %v4448_v35 }
 0x21e   : > { %v1823_v7 = vadd.f32 %v11065_v39, %v13815_v3  ;;  %v11287_v49 = vpop.f32.mrb[108].mxu0  ;;  %v1776_v4 = vpop.f32.mrb[109].mxu1 }
 0x21f   : > { %v3334_v40 = vpop.f32.mrb[109].mxu0  ;;  %11451 = vmatmul.mubr.msk.f32.gmra.mrb[6].mxu0 %vm223_vm1, %v4441_v2  ;;  %v4453_v22 = vsel %vm1307_vm4, %v4450_v33, %v4452_v46 }
 0x220   : > { %v2342_v50 = vadd.f32 %v16405_v25, %v1823_v7  ;;  %11453 = vmatprep.mubr.msk.f32.mxu0 %vm223_vm1, %v4443_v63  ;;  %v4451_v63 = vsel %vm1307_vm4, %v4448_v35, %v4450_v33  ;;  %v4462_v25 = vrot.slane %v13606_v5, 2  ;;  %v4468_v5 = vrot.slane %v13621_v31, 2 }
 0x221   : > { %v11068_v56 = vpop.f32.mrb[110].mxu1 }
 0x222   : > { %v2862_v3 = vadd.f32 %v16406_v10, %v2342_v50  ;;  %v1785_v44 = vpop.f32.mrb[111].mxu1  ;;  %v11290_v20 = vpop.f32.mrb[110].mxu0  ;;  %v4466_v56 = vrot.slane %v13619_v42, 2  ;;  %v4472_v42 = vrot.slane %v13634_v60, 2 }
 0x223   : > { %v1824_v57 = vadd.f32 %v1785_v44, %v13827_v58  ;;  %v3343_v2 = vpop.f32.mrb[111].mxu0  ;;  %11454 = vmatmul.mubr.msk.f32.gmra.mrb[180].mxu0 %vm223_vm1, %v4445_v17  ;;  %v4456_v58 = vrot.slane %v13587_v36, 2 }
 0x224   : > { %v14083_v54 = vadd.f32 %v11287_v49, %v2862_v3  ;;  %11456 = vmatprep.mubr.msk.f32.mxu0 %vm223_vm1, %v4447_v30  ;;  %v4458_v49 = vrot.slane %v13598_v38, 2  ;;  %v4469_v31 = vsel %vm1307_vm4, %v4466_v56, %v4468_v5 }
 0x225   : > { %v2343_v39 = vadd.f32 %v16407_v61, %v1824_v57  ;;  %v4457_v36 = vsel %vm1307_vm4, %v4454_v13, %v4456_v58  ;;  %v4474_v57 = vrot.slane %v13640_v16, 2  ;;  %v4478_v13 = vrot.slane %v13653_v59, 2 }
 0x226   : > { %v4459_v38 = vsel %vm1307_vm4, %v4456_v58, %v4458_v49  ;;  %v4480_v16 = vrot.slane %v16348_v23, 2  ;;  %v4484_v59 = vrot.slane %v16351_v8, 2 }
 0x227   : > { %v2863_v7 = vadd.f32 %v13823_v26, %v2343_v39  ;;  %11457 = vmatmul.mubr.msk.f32.gmra.mrb[182].mxu0 %vm223_vm1, %v4449_v45  ;;  %v4460_v26 = vrot.slane %v13600_v41, 2  ;;  %v4475_v61 = vsel %vm1307_vm4, %v4472_v42, %v4474_v57 }
 0x228   : > { %11459 = vmatprep.mubr.msk.f32.mxu0 %vm223_vm1, %v4451_v63  ;;  %v4481_v23 = vsel %vm1307_vm4, %v4478_v13, %v4480_v16 }
 0x229   : > { %v14096_v4 = vadd.f32 %v3343_v2, %v2863_v7  ;;  %v4461_v41 = vsel %vm1307_vm4, %v4458_v49, %v4460_v26  ;;  %v4463_v30 = vsel %vm1307_vm4, %v4460_v26, %v4462_v25 }
 0x22a   : > { %v11298_v47 = vpop.f32.mrb[112].mxu0 }
 0x22b   : > { %v14100_v40 = vadd.f32 %v11298_v47, %v13856_v1  ;;  %v3658_v35 = vpop.f32.mrb[113].mxu0  ;;  %11460 = vmatmul.mubr.msk.f32.gmra.mrb[12].mxu0 %vm223_vm1, %v4453_v22  ;;  %v4464_v1 = vrot.slane %v13608_v37, 2  ;;  %v4470_v37 = vrot.slane %v13632_v51, 2  ;;  %v4486_v22 = vrot.slane %v13674_v15, 2  ;;  %v16408_v47 = vld [vmem:[#allocation34_spill] sm:$0xff]  ;;  %v16411_v15 = vld [vmem:[#allocation13_spill] sm:$0xff] }
 0x22c   : > { %11462 = vmatprep.mubr.msk.f32.mxu0 %vm223_vm1, %v4455_v12  ;;  %v16409_v35 = vld [vmem:[#allocation43_spill] sm:$0xff] }
 0x22d   : > { %v4465_v10 = vsel %vm1307_vm4, %v4462_v25, %v4464_v1  ;;  %v4471_v2 = vsel %vm1307_vm4, %v4468_v5, %v4470_v37  ;;  %v4473_v60 = vsel %vm1307_vm4, %v4470_v37, %v4472_v42  ;;  %v4496_v37 = vrot.slane %v16364_v11, 2 }
 0x22e   : > { %v11301_v50 = vpop.f32.mrb[114].mxu0 }
 0x22f   : > { %v3667_v17 = vpop.f32.mrb[115].mxu0  ;;  %11463 = vmatmul.mubr.msk.f32.gmra.mrb[184].mxu0 %vm223_vm1, %v4457_v36  ;;  %v16410_v36 = vld [vmem:[#allocation12_spill] sm:$0xff]  ;;  %v4492_v50 = vrot.slane %v16411_v15, 2 }
 0x230   : > { %v14111_v33 = vadd.f32 %v3667_v17, %v13873_v55  ;;  %11465 = vmatprep.mubr.msk.f32.mxu0 %vm223_vm1, %v4459_v38  ;;  %v4467_v55 = vsel %vm1307_vm4, %v4464_v1, %v4466_v56  ;;  %v4490_v25 = vrot.slane %v16410_v36, 2  ;;  %v4487_v38 = vsel %vm1307_vm4, %v4484_v59, %v4486_v22  ;;  %v16412_v1 = vld [vmem:[#allocation21_spill] sm:$0xff] }
 0x233   : > { %11466 = vmatmul.mubr.msk.f32.gmra.mrb[186].mxu0 %vm223_vm1, %v4461_v41  ;;  %v4494_v41 = vrot.slane %v16412_v1, 2 }
 0x234   : > { %11468 = vmatprep.mubr.msk.f32.mxu0 %vm223_vm1, %v4463_v30 }
 0x235   : > { %v4497_v11 = vsel %vm1307_vm4, %v4494_v41, %v4496_v37 }
 0x236   : > { %v11307_v3 = vpop.f32.mrb[116].mxu0 }
 0x237   : > { %v14124_v44 = vadd.f32 %v11307_v3, %v13888_v62  ;;  %v3686_v20 = vpop.f32.mrb[117].mxu0  ;;  %11469 = vmatmul.mubr.msk.f32.gmra.mrb[18].mxu0 %vm223_vm1, %v4465_v10  ;;  %v4476_v62 = vrot.slane %v13642_v29, 2  ;;  %v4482_v29 = vrot.slane %v16349_v19, 2  ;;  %v4498_v3 = vrot.slane %v13708_v21, 2  ;;  %v16416_v21 = vld [vmem:[#allocation46_spill] sm:$0xff] }
 0x238   : > { %11471 = vmatprep.mubr.msk.f32.mxu0 %vm223_vm1, %v4467_v55  ;;  %v4493_v55 = vsel %vm1307_vm4, %v4490_v25, %v4492_v50  ;;  %v4495_v20 = vsel %vm1307_vm4, %v4492_v50, %v4494_v41  ;;  %v16422_v50 = vld [vmem:[#allocation58_spill] sm:$0xff] }
 0x239   : > { %v4477_v39 = vsel %vm1307_vm4, %v4474_v57, %v4476_v62  ;;  %v4483_v49 = vsel %vm1307_vm4, %v4480_v16, %v4482_v29  ;;  %v4485_v8 = vsel %vm1307_vm4, %v4482_v29, %v4484_v59  ;;  %v16413_v57 = vld [vmem:[#allocation23_spill] sm:$0xff]  ;;  %v16417_v16 = vld [vmem:[#allocation49_spill] sm:$0xff]  ;;  %v4508_v59 = vrot.slane %v16376_v9, 2 }
 0x23a   : > { %v11310_v51 = vpop.f32.mrb[118].mxu0 }
 0x23b   : > { %v3695_v46 = vpop.f32.mrb[119].mxu0  ;;  %11472 = vmatmul.mubr.msk.f32.gmra.mrb[188].mxu0 %vm223_vm1, %v4469_v31 }
 0x23c   : > { %v14135_v45 = vadd.f32 %v3695_v46, %v13905_v48  ;;  %11474 = vmatprep.mubr.msk.f32.mxu0 %vm223_vm1, %v4471_v2  ;;  %v4479_v48 = vsel %vm1307_vm4, %v4476_v62, %v4478_v13  ;;  %v16414_v2 = vld [vmem:[#allocation26_spill] sm:$0xff]  ;;  %v16415_v46 = vld [vmem:[#allocation45_spill] sm:$0xff]  ;;  %v4504_v13 = vrot.slane %v16416_v21, 2 }
 0x23d   : > { %v4502_v62 = vrot.slane %v16415_v46, 2 }
 0x23f   : > { %11475 = vmatmul.mubr.msk.f32.gmra.mrb[190].mxu0 %vm223_vm1, %v4473_v60  ;;  %v4499_v60 = vsel %vm1307_vm4, %v4496_v37, %v4498_v3  ;;  %v16423_v37 = vld [vmem:[#allocation11_spill] sm:$0xff] }
 0x240   : > { %11477 = vmatprep.mubr.msk.f32.mxu0 %vm223_vm1, %v4475_v61 }
 0x242   : > { %v11316_v63 = vpop.f32.mrb[120].mxu0 }
 0x243   : > { %v14148_v7 = vadd.f32 %v11316_v63, %v13920_v28  ;;  %v3714_v58 = vpop.f32.mrb[121].mxu0  ;;  %11478 = vmatmul.mubr.msk.f32.gmra.mrb[24].mxu0 %vm223_vm1, %v4477_v39  ;;  %v4488_v28 = vrot.slane %v16408_v47, 2  ;;  %v4506_v39 = vrot.slane %v16417_v16, 2  ;;  %v16418_v47 = vld [vmem:[#allocation51_spill] sm:$0xff] }
 0x244   : > { %11480 = vmatprep.mubr.msk.f32.mxu0 %vm223_vm1, %v4479_v48 }
 0x245   : > { %v4489_v17 = vsel %vm1307_vm4, %v4486_v22, %v4488_v28  ;;  %v4491_v56 = vsel %vm1307_vm4, %v4488_v28, %v4490_v25  ;;  %v4510_v22 = vrot.slane %v13742_v24, 2  ;;  %v16419_v28 = vld [vmem:[#allocation28_spill] sm:$0xff]  ;;  %v4509_v9 = vsel %vm1307_vm4, %v4506_v39, %v4508_v59  ;;  %v16421_v24 = vld [vmem:[#allocation55_spill] sm:$0xff] }
 0x246   : > { %v11319_v19 = vpop.f32.mrb[122].mxu0 }
 0x247   : > { %v3723_v12 = vpop.f32.mrb[123].mxu0  ;;  %11481 = vmatmul.mubr.msk.f32.gmra.mrb[192].mxu0 %vm223_vm1, %v4481_v23  ;;  %v4505_v23 = vsel %vm1307_vm4, %v4502_v62, %v4504_v13  ;;  %v4511_v25 = vsel %vm1307_vm4, %v4508_v59, %v4510_v22 }
 0x248   : > { %v14159_v26 = vadd.f32 %v3723_v12, %v16409_v35  ;;  %11483 = vmatprep.mubr.msk.f32.mxu0 %vm223_vm1, %v4483_v49  ;;  %v4507_v49 = vsel %vm1307_vm4, %v4504_v13, %v4506_v39 }
 0x24b   : > { %11484 = vmatmul.mubr.msk.f32.gmra.mrb[194].mxu0 %vm223_vm1, %v4485_v8  ;;  %v16420_v8 = vld [vmem:[#allocation54_spill] sm:$0xff] }
 0x24c   : > { %11486 = vmatprep.mubr.msk.f32.mxu0 %vm223_vm1, %v4487_v38  ;;  %v4514_v36 = vrot.slane %v16420_v8, 2  ;;  %v4516_v38 = vrot.slane %v16421_v24, 2 }
 0x24e   : > { %v11325_v30 = vpop.f32.mrb[124].mxu0 }
 0x24f   : > { %v14172_v5 = vadd.f32 %v11325_v30, %v13952_v18  ;;  %v3742_v10 = vpop.f32.mrb[125].mxu0  ;;  %11487 = vmatmul.mubr.msk.f32.gmra.mrb[30].mxu0 %vm223_vm1, %v4489_v17  ;;  %v4500_v18 = vrot.slane %v16413_v57, 2  ;;  %v4518_v17 = vrot.slane %v16422_v50, 2 }
 0x250   : > { %11489 = vmatprep.mubr.msk.f32.mxu0 %vm223_vm1, %v4491_v56  ;;  %v4517_v10 = vsel %vm1307_vm4, %v4514_v36, %v4516_v38 }
 0x251   : > { %v4501_v61 = vsel %vm1307_vm4, %v4498_v3, %v4500_v18  ;;  %v4503_v29 = vsel %vm1307_vm4, %v4500_v18, %v4502_v62  ;;  %v4519_v3 = vsel %vm1307_vm4, %v4516_v38, %v4518_v17 }
 0x252   : > { %v11328_v42 = vpop.f32.mrb[126].mxu0 }
 0x253   : > { %v3751_v31 = vpop.f32.mrb[127].mxu0  ;;  %11490 = vmatmul.mubr.msk.f32.gmra.mrb[196].mxu0 %vm223_vm1, %v4493_v55  ;;  %v4520_v55 = vrot.slane %v16423_v37, 2 }
 0x254   : > { %v14183_v51 = vadd.f32 %v3751_v31, %v16414_v2  ;;  %11492 = vmatprep.mubr.msk.f32.mxu0 %vm223_vm1, %v4495_v20 }
 0x257   : > { %11493 = vmatmul.mubr.msk.f32.gmra.mrb[198].mxu0 %vm223_vm1, %v4497_v11 }
 0x258   : > { %11495 = vmatprep.mubr.msk.f32.mxu0 %vm223_vm1, %v4499_v60  ;;  %v16424_v60 = vmov 0.0  }
 0x259   : > { %6807 = vst.msk [vmem:[#allocation3] sm:$0xff] %vm6614_vm5, %v16424_v60  ;;  %6808 = vst.msk [vmem:[#allocation3 + $0x8] sm:$0xff] %vm6614_vm5, %v16424_v60 }
 0x25a   : > { %v11334_v48 = vpop.f32.mrb[128].mxu0  ;;  %6810 = vst.msk [vmem:[#allocation3 + $0x90] sm:$0xff] %vm6614_vm5, %v16424_v60  ;;  %6811 = vst.msk [vmem:[#allocation3 + $0x98] sm:$0xff] %vm6614_vm5, %v16424_v60 }
 0x25b   : > { %v14196_v63 = vadd.f32 %v11334_v48, %v13984_v6  ;;  %v3770_v58 = vpop.f32.mrb[129].mxu0  ;;  %11496 = vmatmul.mubr.msk.f32.gmra.mrb[36].mxu0 %vm223_vm1, %v4501_v61  ;;  %v4512_v6 = vrot.slane %v16418_v47, 2  ;;  %6814 = vst.msk [vmem:[#allocation3 + $0x10] sm:$0x1] %vm6813_vm14, %v16424_v60  ;;  %6815 = vst.msk [vmem:[#allocation3 + $0x20] sm:$0x1] %vm6813_vm14, %v16424_v60 }
 0x25c   : > { %11498 = vmatprep.mubr.msk.f32.mxu0 %vm223_vm1, %v4503_v29  ;;  %6816 = vst.msk [vmem:[#allocation3 + $0x30] sm:$0x1] %vm6813_vm14, %v16424_v60  ;;  %6817 = vst.msk [vmem:[#allocation3 + $0x40] sm:$0x1] %vm6813_vm14, %v16424_v60 }
 0x25d   : > { %v4513_v15 = vsel %vm1307_vm4, %v4510_v22, %v4512_v6  ;;  %v4515_v1 = vsel %vm1307_vm4, %v4512_v6, %v4514_v36  ;;  %6818 = vst.msk [vmem:[#allocation3 + $0x50] sm:$0x1] %vm6813_vm14, %v16424_v60  ;;  %6819 = vst.msk [vmem:[#allocation3 + $0x60] sm:$0x1] %vm6813_vm14, %v16424_v60 }
 0x25e   : > { %v11337_v19 = vpop.f32.mrb[130].mxu0  ;;  %6820 = vst.msk [vmem:[#allocation3 + $0x70] sm:$0x1] %vm6813_vm14, %v16424_v60  ;;  %6821 = vst.msk [vmem:[#allocation3 + $0x80] sm:$0x1] %vm6813_vm14, %v16424_v60 }
 0x25f   : > { %v3779_v12 = vpop.f32.mrb[131].mxu0  ;;  %11499 = vmatmul.mubr.msk.f32.gmra.mrb[200].mxu0 %vm223_vm1, %v4505_v23  ;;  %6822 = vst.msk [vmem:[#allocation3 + $0x19] sm:$0x1] %vm6813_vm14, %v16424_v60  ;;  %6823 = vst.msk [vmem:[#allocation3 + $0x29] sm:$0x1] %vm6813_vm14, %v16424_v60 }
 0x260   : > { %v14207_v35 = vadd.f32 %v3779_v12, %v16419_v28  ;;  %11501 = vmatprep.mubr.msk.f32.mxu0 %vm223_vm1, %v4507_v49  ;;  %v9974_v49 = vld [vmem:[%s16096_s3 + $0x40] sm:$0xff]  ;;  %6824 = vst.msk [vmem:[#allocation3 + $0x39] sm:$0x1] %vm6813_vm14, %v16424_v60  ;;  %6825 = vst.msk [vmem:[#allocation3 + $0x49] sm:$0x1] %vm6813_vm14, %v16424_v60 }
 0x261   : > { %6826 = vst.msk [vmem:[#allocation3 + $0x59] sm:$0x1] %vm6813_vm14, %v16424_v60  ;;  %6827 = vst.msk [vmem:[#allocation3 + $0x69] sm:$0x1] %vm6813_vm14, %v16424_v60 }
 0x262   : > { %6828 = vst.msk [vmem:[#allocation3 + $0x79] sm:$0x1] %vm6813_vm14, %v16424_v60  ;;  %6829 = vst.msk [vmem:[#allocation3 + $0x89] sm:$0x1] %vm6813_vm14, %v16424_v60 }
 0x263   : > { %11502 = vmatmul.mubr.msk.f32.gmra.mrb[202].mxu0 %vm223_vm1, %v4509_v9 }
 0x264   : > { %11504 = vmatprep.mubr.msk.f32.mxu0 %vm223_vm1, %v4511_v25 }
 0x266   : > { %v11343_v41 = vpop.f32.mrb[132].mxu0 }
 0x267   : > { %v14220_v56 = vadd.f32 %v11343_v41, %v14019_v14  ;;  %v3798_v30 = vpop.f32.mrb[133].mxu0  ;;  %11505 = vmatmul.mubr.msk.f32.gmra.mrb[42].mxu0 %vm223_vm1, %v4513_v15  ;;  %v4521_v14 = vsel %vm1307_vm4, %v4518_v17, %v4520_v55 }
 0x268   : > { %11507 = vmatprep.mubr.msk.f32.mxu0 %vm223_vm1, %v4515_v1 }
 0x26a   : > { %v11346_v20 = vpop.f32.mrb[134].mxu0 }
 0x26b   : > { %v3807_v42 = vpop.f32.mrb[135].mxu0  ;;  %11508 = vmatmul.mubr.msk.f32.gmra.mrb[204].mxu0 %vm223_vm1, %v4517_v10 }
 0x26c   : > { %v3894_v31 = vadd.f32 %v3807_v42, %v14036_v52  ;;  %11510 = vmatprep.mubr.msk.f32.mxu0 %vm223_vm1, %v4519_v3 }
 0x26f   : > { %11511 = vmatmul.mubr.msk.f32.gmra.mrb[206].mxu0 %vm223_vm1, %v4521_v14  ;;  %vm9436_vm1 = vcmask 60416  }
 0x272   : > { %v11352_v57 = vpop.f32.mrb[136].mxu0 }
 0x273   : > { %v3897_v18 = vadd.f32 %v11352_v57, %v14051_v0  ;;  %v3826_v2 = vpop.f32.mrb[137].mxu0 }
 0x276   : > { %v11355_v11 = vpop.f32.mrb[138].mxu0 }
 0x277   : > { %v3835_v46 = vpop.f32.mrb[139].mxu0 }
 0x278   : > { %v3898_v62 = vadd.f32 %v3835_v46, %v14068_v34 }
 0x27e   : > { %v11361_v52 = vpop.f32.mrb[140].mxu0 }
 0x27f   : > { %v3901_v0 = vadd.f32 %v11361_v52, %v14083_v54  ;;  %v3854_v21 = vpop.f32.mrb[141].mxu0 }
 0x280   : > { %v5049_v21 = vlaneseq }
 0x282   : > { %v11364_v13 = vpop.f32.mrb[142].mxu0 }
 0x283   : > { %v3863_v61 = vpop.f32.mrb[143].mxu0 }
 0x284   : > { %v3902_v34 = vadd.f32 %v3863_v61, %v14096_v4  ;;  %v9975_v4 = vld [vmem:[%s16096_s3 + $0x48] sm:$0xff] }
 0x28a   : > { %v11372_v16 = vpop.f32.mrb[144].mxu0 }
 0x28b   : > { %v14245_v39 = vadd.f32 %v11372_v16, %v14100_v40  ;;  %v4178_v29 = vpop.f32.mrb[145].mxu0  ;;  %v11873_v40 = vpack.c.bf16 %v9975_v4, %v9974_v49  ;;  %v16429_v49 = vld [vmem:[#allocation63_spill] sm:$0xff] }
 0x28c   : > { %v5050_v29 = vshrl.u32 %v5049_v21, 7 }
 0x28d   : > { %11874 = vmatprep.subr.bf16.mxu1 %v11873_v40 }
 0x28e   : > { %v11375_v48 = vpop.f32.mrb[146].mxu0  ;;  %11876 = vmatpush3.bf16.msra.mxu1 %v11873_v40 }
 0x28f   : > { %v4187_v58 = vpop.f32.mrb[147].mxu0 }
 0x290   : > { %v14248_v59 = vadd.f32 %v4187_v58, %v14111_v33  ;;  %v14302_v58 = vld [vmem:[%s16095_s2] ss:$0 sm:$0xff] }
 0x296   : > { %v11381_v23 = vpop.f32.mrb[148].mxu0 }
 0x297   : > { %v14251_v22 = vadd.f32 %v11381_v23, %v14124_v44  ;;  %v4206_v54 = vpop.f32.mrb[149].mxu0 }
 0x29a   : > { %v11384_v19 = vpop.f32.mrb[150].mxu0 }
 0x29b   : > { %v4215_v12 = vpop.f32.mrb[151].mxu0 }
 0x29c   : > { %v14260_v33 = vadd.f32 %v4215_v12, %v14135_v45 }
 0x2a2   : > { %v11390_v47 = vpop.f32.mrb[152].mxu0 }
 0x2a3   : > { %v14263_v44 = vadd.f32 %v11390_v47, %v14148_v7  ;;  %v4234_v6 = vpop.f32.mrb[153].mxu0 }
 0x2a6   : > { %v11393_v28 = vpop.f32.mrb[154].mxu0 }
 0x2a7   : > { %v4243_v9 = vpop.f32.mrb[155].mxu0 }
 0x2a8   : > { %v14266_v8 = vadd.f32 %v4243_v9, %v14159_v26 }
 0x2ae   : > { %v11399_v36 = vpop.f32.mrb[156].mxu0 }
 0x2af   : > { %v14269_v25 = vadd.f32 %v11399_v36, %v14172_v5  ;;  %v4262_v24 = vpop.f32.mrb[157].mxu0 }
 0x2b2   : > { %v11402_v38 = vpop.f32.mrb[158].mxu0 }
 0x2b3   : > { %v4271_v15 = vpop.f32.mrb[159].mxu0 }
 0x2b4   : > { %v14272_v45 = vadd.f32 %v4271_v15, %v14183_v51 }
 0x2ba   : > { %v11408_v50 = vpop.f32.mrb[160].mxu0 }
 0x2bb   : > { %v14275_v7 = vadd.f32 %v11408_v50, %v14196_v63  ;;  %v4290_v17 = vpop.f32.mrb[161].mxu0 }
 0x2be   : > { %v11411_v1 = vpop.f32.mrb[162].mxu0 }
 0x2bf   : > { %v4299_v41 = vpop.f32.mrb[163].mxu0 }
 0x2c0   : > { %v14278_v26 = vadd.f32 %v4299_v41, %v14207_v35  ;;  %v9976_v35 = vld [vmem:[%s16096_s3 + $0x50] sm:$0xff] }
 0x2c6   : > { %v11417_v30 = vpop.f32.mrb[164].mxu0 }
 0x2c7   : > { %v14281_v5 = vadd.f32 %v11417_v30, %v14220_v56  ;;  %v4318_v10 = vpop.f32.mrb[165].mxu0  ;;  %v9977_v56 = vld [vmem:[%s16096_s3 + $0x58] sm:$0xff] }
 0x2c8   : > { %v11877_v2 = vpack.c.bf16 %v9977_v56, %v9976_v35 }
 0x2ca   : > { %v11420_v37 = vpop.f32.mrb[166].mxu0  ;;  %11878 = vmatprep.subr.bf16.mxu1 %v11877_v2 }
 0x2cb   : > { %v4327_v55 = vpop.f32.mrb[167].mxu0  ;;  %11880 = vmatpush3.bf16.msra.mxu1 %v11877_v2 }
 0x2cc   : > { %v14283_v3 = vadd.f32 %v4327_v55, %v3894_v31 }
 0x2d2   : > { %v11426_v51 = vpop.f32.mrb[168].mxu0 }
 0x2d3   : > { %v14285_v20 = vadd.f32 %v11426_v51, %v3897_v18  ;;  %v4346_v63 = vpop.f32.mrb[169].mxu0  ;;  %v12264_v18 = vmov 1983009808  }
 0x2d4   : > { %v5047_v52 = vunpack.c.l.s4 %v12264_v18 }
 0x2d6   : > { %v11429_v42 = vpop.f32.mrb[170].mxu0  ;;  %v5048_v16 = vunpack.c.0.s8 %v5047_v52 }
 0x2d7   : > { %v4355_v14 = vpop.f32.mrb[171].mxu0 }
 0x2d8   : > { %v14287_v57 = vadd.f32 %v4355_v14, %v3898_v62  ;;  %v14307_v19 = vsub.s32 %v5048_v16, %v5050_v29 }
 0x2da   : > { %16425 = vst [vmem:[#allocation10_spill] sm:$0xff] %v14287_v57 }
 0x2de   : > { %v11435_v11 = vpop.f32.mrb[172].mxu0 }
 0x2df   : > { %v14295_v31 = vadd.f32 %v11435_v11, %v3901_v0  ;;  %v4374_v46 = vpop.f32.mrb[173].mxu0  ;;  %v16428_v0 = vld [vmem:[#allocation62_spill] sm:$0xff] }
 0x2e1   : > { %16426 = vst [vmem:[#allocation17_spill] sm:$0xff] %v14295_v31 }
 0x2e2   : > { %v11438_v62 = vpop.f32.mrb[174].mxu0 }
 0x2e3   : > { %v4383_v13 = vpop.f32.mrb[175].mxu0 }
 0x2e4   : > { %v14297_v61 = vadd.f32 %v4383_v13, %v3902_v34 }
 0x2e6   : > { %16427 = vst [vmem:[#allocation16_spill] sm:$0xff] %v14297_v61  ;;  %v11443_v48 = vpop.f32.mrb[0].mxu0 }
 0x2e7   : > { %v12017_v23 = vadd.f32 %v11443_v48, %v16428_v0  ;;  %v4687_v54 = vpop.f32.mrb[1].mxu0 }
 0x2e8   : > { %v12018_v4 = vadd.f32 %v4687_v54, %v16429_v49 }
 0x2e9   : > { %v4950_v40 = vadd.f32 %v12017_v23, %v14302_v58 }
 0x2ea   : > { %v4949_v34 = vadd.f32 %v12018_v4, %v14302_v58  ;;  %v11446_v12 = vpop.f32.mrb[176].mxu0 }
 0x2eb   : > { %v4982_v47 = vmax.f32 %v4950_v40, 0.0  ;;  %v4912_v6 = vadd.f32 %v11446_v12, %v14245_v39  ;;  %v4697_v28 = vpop.f32.mrb[177].mxu0 }
 0x2ec   : > { %v4981_v9 = vmax.f32 %v4949_v34, 0.0 }
 0x2ed   : > { %v5062_v36 = vcombine.high %v4982_v47, %v4982_v47  ;;  %v5069_v24 = vrot.slane %v4982_v47, %v14307_v19  ;;  %v4951_v38 = vadd.f32 %v14302_v58, %v4912_v6 }
 0x2ee   : > { %v5045_v15 = vcombine.high %v4981_v9, %v4981_v9  ;;  %v5052_v50 = vrot.slane %v4981_v9, %v14307_v19  ;;  %v11449_v17 = vpop.f32.mrb[178].mxu0 }
 0x2ef   : > { %v5076_v1 = vrot.slane %v5062_v36, %v14307_v19  ;;  %v5077_v41 = vcombine.high %v5069_v24, %v5069_v24  ;;  %v5746_v30 = vsel %vm5717_vm6, %v5069_v24, -inf  ;;  %v14316_v10 = vmax.f32 %v4951_v38, 0.0  ;;  %v14318_v39 = vpop.f32.mrb[179].mxu0 }
 0x2f0   : > { %v5747_v37 = vrot.slane %v5746_v30, 4  ;;  %v5059_v55 = vrot.slane %v5045_v15, %v14307_v19  ;;  %v5060_v51 = vcombine.high %v5052_v50, %v5052_v50  ;;  %v5718_v63 = vsel %vm5717_vm6, %v5052_v50, -inf }
 0x2f1   : > { %v5078_v42 = vcombine.high %v5076_v1, %v5076_v1  ;;  %v5753_v14 = vsel %vm5717_vm6, %v5077_v41, -inf  ;;  %v5760_v35 = vsel %vm5717_vm6, %v5076_v1, -inf  ;;  %v5719_v56 = vrot.slane %v5718_v63, 4 }
 0x2f2   : > { %v5748_v2 = vmax.f32 %v5746_v30, %v5747_v37  ;;  %v5754_v11 = vrot.slane %v5753_v14, 4  ;;  %v5761_v46 = vrot.slane %v5760_v35, 4  ;;  %v5061_v18 = vcombine.high %v5059_v55, %v5059_v55  ;;  %v14324_v52 = vpop.f32.mrb[6].mxu0 }
 0x2f3   : > { %v5767_v21 = vsel %vm5717_vm6, %v5078_v42, -inf  ;;  %v5720_v62 = vmax.f32 %v5718_v63, %v5719_v56  ;;  %v5725_v13 = vsel %vm5717_vm6, %v5060_v51, -inf  ;;  %v5732_v16 = vsel %vm5717_vm6, %v5059_v55, -inf  ;;  %v14329_v29 = vpop.f32.mrb[7].mxu0 }
 0x2f4   : > { %v5749_v48 = vrot.slane %v5748_v2, 2  ;;  %v5755_v0 = vmax.f32 %v5753_v14, %v5754_v11  ;;  %v5762_v23 = vmax.f32 %v5760_v35, %v5761_v46  ;;  %v5768_v54 = vrot.slane %v5767_v21, 4 }
 0x2f5   : > { %v5721_v49 = vrot.slane %v5720_v62, 2  ;;  %v5726_v4 = vrot.slane %v5725_v13, 4  ;;  %v5733_v40 = vrot.slane %v5732_v16, 4  ;;  %v5739_v34 = vsel %vm5717_vm6, %v5061_v18, -inf }
 0x2f6   : > { %v5750_v12 = vmax.f32 %v5748_v2, %v5749_v48  ;;  %v5756_v47 = vrot.slane %v5755_v0, 2  ;;  %v5763_v6 = vrot.slane %v5762_v23, 2  ;;  %v5769_v28 = vmax.f32 %v5767_v21, %v5768_v54  ;;  %v14332_v9 = vpop.f32.mrb[180].mxu0 }
 0x2f7   : > { %v5722_v36 = vmax.f32 %v5720_v62, %v5721_v49  ;;  %v5727_v24 = vmax.f32 %v5725_v13, %v5726_v4  ;;  %v5734_v38 = vmax.f32 %v5732_v16, %v5733_v40  ;;  %v5740_v15 = vrot.slane %v5739_v34, 4  ;;  %v4725_v50 = vpop.f32.mrb[181].mxu0 }
 0x2f8   : > { %v5751_v17 = vrot.slane %v5750_v12, 1  ;;  %v5757_v1 = vmax.f32 %v5755_v0, %v5756_v47  ;;  %v5764_v41 = vmax.f32 %v5762_v23, %v5763_v6  ;;  %v5770_v30 = vrot.slane %v5769_v28, 2 }
 0x2f9   : > { %v5723_v37 = vrot.slane %v5722_v36, 1  ;;  %v5728_v55 = vrot.slane %v5727_v24, 2  ;;  %v5735_v51 = vrot.slane %v5734_v38, 2  ;;  %v5741_v63 = vmax.f32 %v5739_v34, %v5740_v15 }
 0x2fa   : > { %v5752_v42 = vmax.f32 %v5750_v12, %v5751_v17  ;;  %v5758_v14 = vrot.slane %v5757_v1, 1  ;;  %v5765_v35 = vrot.slane %v5764_v41, 1  ;;  %v5771_v56 = vmax.f32 %v5769_v28, %v5770_v30  ;;  %v11458_v2 = vpop.f32.mrb[182].mxu0 }
 0x2fb   : > { %v5724_v11 = vmax.f32 %v5722_v36, %v5723_v37  ;;  %v5729_v46 = vmax.f32 %v5727_v24, %v5728_v55  ;;  %v5736_v18 = vmax.f32 %v5734_v38, %v5735_v51  ;;  %v5742_v21 = vrot.slane %v5741_v63, 2  ;;  %v14334_v62 = vpop.f32.mrb[183].mxu0 }
 0x2fc   : > { %v5759_v13 = vmax.f32 %v5757_v1, %v5758_v14  ;;  %v5766_v16 = vmax.f32 %v5764_v41, %v5765_v35  ;;  %v5772_v48 = vrot.slane %v5771_v56, 1  ;;  %v14337_v0 = vsel %vm6614_vm5, %v5752_v42, -inf  ;;  %v16430_v41 = vld [vmem:[#allocation64_spill] sm:$0xff] }
 0x2fd   : > { %v5730_v23 = vrot.slane %v5729_v46, 1  ;;  %v5737_v54 = vrot.slane %v5736_v18, 1  ;;  %v5743_v49 = vmax.f32 %v5741_v63, %v5742_v21  ;;  %v14340_v4 = vsel %vm6614_vm5, %v5724_v11, -inf }
 0x2fe   : > { %v5773_v40 = vmax.f32 %v5771_v56, %v5772_v48  ;;  %v14343_v34 = vsel %vm6614_vm5, %v5759_v13, -inf  ;;  %v14346_v12 = vsel %vm6614_vm5, %v5766_v16, -inf  ;;  %v5079_v47 = vcombine.high %v14316_v10, %v14316_v10  ;;  %v14350_v6 = vpop.f32.mrb[12].mxu0 }
 0x2ff   : > { %v5731_v28 = vmax.f32 %v5729_v46, %v5730_v23  ;;  %v5738_v36 = vmax.f32 %v5736_v18, %v5737_v54  ;;  %v5744_v24 = vrot.slane %v5743_v49, 1  ;;  %v5086_v38 = vrot.slane %v14316_v10, %v14307_v19  ;;  %v14354_v15 = vpop.f32.mrb[13].mxu0  ;;  %v16431_v54 = vld [vmem:[#allocation65_spill] sm:$0xff] }
 0x300   : > { %v14357_v50 = vsel %vm6614_vm5, %v5773_v40, -inf  ;;  %v5093_v17 = vrot.slane %v5079_v47, %v14307_v19  ;;  %v4913_v1 = vadd.f32 %v14318_v39, %v14248_v59  ;;  %v12019_v30 = vadd.f32 %v14324_v52, %v16430_v41 }
 0x301   : > { %v5745_v37 = vmax.f32 %v5743_v49, %v5744_v24  ;;  %v14365_v55 = vsel %vm6614_vm5, %v5731_v28, -inf  ;;  %v14368_v51 = vsel %vm6614_vm5, %v5738_v36, -inf  ;;  %v5094_v10 = vcombine.high %v5086_v38, %v5086_v38 }
 0x302   : > { %v5095_v63 = vcombine.high %v5093_v17, %v5093_v17  ;;  %v5774_v42 = vsel %vm5717_vm6, %v5086_v38, -inf  ;;  %v5788_v14 = vsel %vm5717_vm6, %v5093_v17, -inf  ;;  %v4952_v35 = vadd.f32 %v14302_v58, %v4913_v1  ;;  %v14373_v56 = vpop.f32.mrb[184].mxu0 }
 0x303   : > { %v14376_v59 = vsel %vm6614_vm5, %v5745_v37, -inf  ;;  %v5775_v39 = vrot.slane %v5774_v42, 4  ;;  %v5781_v52 = vsel %vm5717_vm6, %v5094_v10, -inf  ;;  %v5789_v2 = vrot.slane %v5788_v14, 4  ;;  %v4753_v11 = vpop.f32.mrb[185].mxu0 }
 0x304   : > { %v5782_v46 = vrot.slane %v5781_v52, 4  ;;  %v5795_v18 = vsel %vm5717_vm6, %v5095_v63, -inf  ;;  %v4984_v21 = vmax.f32 %v4952_v35, 0.0  ;;  %v4954_v13 = vadd.f32 %v12019_v30, %v14302_v58 }
 0x305   : > { %v5776_v16 = vmax.f32 %v5774_v42, %v5775_v39  ;;  %v5790_v48 = vmax.f32 %v5788_v14, %v5789_v2  ;;  %v5796_v23 = vrot.slane %v5795_v18, 4  ;;  %v12020_v49 = vadd.f32 %v14329_v29, %v16431_v54 }
 0x306   : > { %v5783_v40 = vmax.f32 %v5781_v52, %v5782_v46  ;;  %v5096_v47 = vcombine.high %v4984_v21, %v4984_v21  ;;  %v5103_v28 = vrot.slane %v4984_v21, %v14307_v19  ;;  %v14384_v36 = vmax.f32 %v4954_v13, 0.0  ;;  %v11467_v24 = vpop.f32.mrb[186].mxu0 }
 0x307   : > { %v5777_v38 = vrot.slane %v5776_v16, 2  ;;  %v5791_v17 = vrot.slane %v5790_v48, 2  ;;  %v5797_v1 = vmax.f32 %v5795_v18, %v5796_v23  ;;  %v14387_v41 = vadd.f32 %v12020_v49, %v14302_v58  ;;  %v14389_v30 = vpop.f32.mrb[187].mxu0 }
 0x308   : > { %v5784_v37 = vrot.slane %v5783_v40, 2  ;;  %v5110_v10 = vrot.slane %v5096_v47, %v14307_v19  ;;  %v5111_v29 = vcombine.high %v5103_v28, %v5103_v28  ;;  %v5802_v63 = vsel %vm5717_vm6, %v5103_v28, -inf }
 0x309   : > { %v5778_v42 = vmax.f32 %v5776_v16, %v5777_v38  ;;  %v5792_v14 = vmax.f32 %v5790_v48, %v5791_v17  ;;  %v5798_v35 = vrot.slane %v5797_v1, 2  ;;  %v5803_v39 = vrot.slane %v5802_v63, 4 }
 0x30a   : > { %v5785_v52 = vmax.f32 %v5783_v40, %v5784_v37  ;;  %v5112_v2 = vcombine.high %v5110_v10, %v5110_v10  ;;  %v5809_v11 = vsel %vm5717_vm6, %v5111_v29, -inf  ;;  %v5816_v46 = vsel %vm5717_vm6, %v5110_v10, -inf  ;;  %v14395_v18 = vpop.f32.mrb[18].mxu0 }
 0x30b   : > { %v5779_v21 = vrot.slane %v5778_v42, 1  ;;  %v5793_v13 = vrot.slane %v5792_v14, 1  ;;  %v5799_v23 = vmax.f32 %v5797_v1, %v5798_v35  ;;  %v5804_v54 = vmax.f32 %v5802_v63, %v5803_v39  ;;  %v14397_v49 = vpop.f32.mrb[19].mxu0 }
 0x30c   : > { %v5786_v16 = vrot.slane %v5785_v52, 1  ;;  %v5810_v48 = vrot.slane %v5809_v11, 4  ;;  %v5817_v47 = vrot.slane %v5816_v46, 4  ;;  %v5823_v28 = vsel %vm5717_vm6, %v5112_v2, -inf }
 0x30d   : > { %v5780_v40 = vmax.f32 %v5778_v42, %v5779_v21  ;;  %v5794_v24 = vmax.f32 %v5792_v14, %v5793_v13  ;;  %v5800_v38 = vrot.slane %v5799_v23, 1  ;;  %v5805_v17 = vrot.slane %v5804_v54, 2 }
 0x30e   : > { %v5787_v37 = vmax.f32 %v5785_v52, %v5786_v16  ;;  %v5811_v10 = vmax.f32 %v5809_v11, %v5810_v48  ;;  %v5818_v29 = vmax.f32 %v5816_v46, %v5817_v47  ;;  %v5824_v61 = vrot.slane %v5823_v28, 4  ;;  %v14400_v31 = vpop.f32.mrb[188].mxu0 }
 0x30f   : > { %v5801_v1 = vmax.f32 %v5799_v23, %v5800_v38  ;;  %v6616_v63 = vsel %vm6614_vm5, %v5780_v40, -inf  ;;  %v6622_v35 = vsel %vm6614_vm5, %v5794_v24, -inf  ;;  %v5806_v39 = vmax.f32 %v5804_v54, %v5805_v17  ;;  %v4781_v43 = vpop.f32.mrb[189].mxu0 }
 0x310   : > { %v6617_v2 = vmax.f32 %v14340_v4, %v6616_v63  ;;  %v6619_v42 = vsel %vm6614_vm5, %v5787_v37, -inf  ;;  %v6623_v14 = vmax.f32 %v14368_v51, %v6622_v35  ;;  %v5812_v21 = vrot.slane %v5811_v10, 2 }
 0x311   : > { %v6620_v52 = vmax.f32 %v14365_v55, %v6619_v42  ;;  %v6625_v11 = vsel %vm6614_vm5, %v5801_v1, -inf  ;;  %v5807_v46 = vrot.slane %v5806_v39, 1  ;;  %v5819_v13 = vrot.slane %v5818_v29, 2 }
 0x312   : > { %v6626_v23 = vmax.f32 %v14376_v59, %v6625_v11  ;;  %v5813_v16 = vmax.f32 %v5811_v10, %v5812_v21  ;;  %v5825_v54 = vmax.f32 %v5823_v28, %v5824_v61  ;;  %v5130_v43 = vcombine.high %v14384_v36, %v14384_v36  ;;  %v11476_v4 = vpop.f32.mrb[190].mxu0 }
 0x313   : > { %v6895_v48 = vsel %vm6894_vm7, %v6620_v52, %v6617_v2  ;;  %v5808_v51 = vmax.f32 %v5806_v39, %v5807_v46  ;;  %v5820_v47 = vmax.f32 %v5818_v29, %v5819_v13  ;;  %v5137_v55 = vrot.slane %v14384_v36, %v14307_v19  ;;  %v14415_v40 = vpop.f32.mrb[191].mxu0 }
 0x314   : > { %v6897_v24 = vsel %vm6896_vm8, %v6623_v14, %v6895_v48  ;;  %v5814_v38 = vrot.slane %v5813_v16, 1  ;;  %v5826_v17 = vrot.slane %v5825_v54, 2  ;;  %v5144_v61 = vrot.slane %v5130_v43, %v14307_v19 }
 0x315   : > { %v5821_v59 = vrot.slane %v5820_v47, 1  ;;  %v6628_v28 = vsel %vm6614_vm5, %v5808_v51, -inf  ;;  %v6899_v37 = vsel %vm6898_vm9, %v6626_v23, %v6897_v24  ;;  %v5145_v10 = vcombine.high %v5137_v55, %v5137_v55 }
 0x316   : > { %v5815_v1 = vmax.f32 %v5813_v16, %v5814_v38  ;;  %v5827_v29 = vmax.f32 %v5825_v54, %v5826_v17  ;;  %v6629_v63 = vmax.f32 %v14337_v0, %v6628_v28  ;;  %v5146_v36 = vcombine.high %v5144_v61, %v5144_v61  ;;  %v14422_v35 = vpop.f32.mrb[24].mxu0 }
 0x317   : > { %v5822_v39 = vmax.f32 %v5820_v47, %v5821_v59  ;;  %v5858_v2 = vsel %vm5717_vm6, %v5137_v55, -inf  ;;  %v5865_v42 = vsel %vm5717_vm6, %v5145_v10, -inf  ;;  %v5872_v14 = vsel %vm5717_vm6, %v5144_v61, -inf  ;;  %v14427_v21 = vpop.f32.mrb[25].mxu0 }
 0x318   : > { %v5828_v52 = vrot.slane %v5827_v29, 1  ;;  %v6631_v11 = vsel %vm6614_vm5, %v5815_v1, -inf  ;;  %v6901_v46 = vsel %vm6900_vm10, %v6629_v63, %v6899_v37  ;;  %v5859_v13 = vrot.slane %v5858_v2, 4 }
 0x319   : > { %v6632_v0 = vmax.f32 %v14343_v34, %v6631_v11  ;;  %v6634_v23 = vsel %vm6614_vm5, %v5822_v39, -inf  ;;  %v5866_v16 = vrot.slane %v5865_v42, 4  ;;  %v5873_v54 = vrot.slane %v5872_v14, 4 }
 0x31a   : > { %v5829_v43 = vmax.f32 %v5827_v29, %v5828_v52  ;;  %v6635_v4 = vmax.f32 %v14346_v12, %v6634_v23  ;;  %v5860_v48 = vmax.f32 %v5858_v2, %v5859_v13  ;;  %v5879_v51 = vsel %vm5717_vm6, %v5146_v36, -inf }
 0x31b   : > { %v6903_v47 = vsel %vm6902_vm11, %v6632_v0, %v6901_v46  ;;  %v5867_v55 = vmax.f32 %v5865_v42, %v5866_v16  ;;  %v5874_v24 = vmax.f32 %v5872_v14, %v5873_v54  ;;  %v5880_v38 = vrot.slane %v5879_v51, 4 }
 0x31c   : > { %v6637_v17 = vsel %vm6614_vm5, %v5829_v43, -inf  ;;  %v6905_v61 = vsel %vm6904_vm12, %v6635_v4, %v6903_v47  ;;  %v5861_v34 = vrot.slane %v5860_v48, 2  ;;  %v4985_v59 = vmax.f32 %v14387_v41, 0.0 }
 0x31d   : > { %v6638_v28 = vmax.f32 %v14357_v50, %v6637_v17  ;;  %v5868_v37 = vrot.slane %v5867_v55, 2  ;;  %v5875_v10 = vrot.slane %v5874_v24, 2  ;;  %v5881_v12 = vmax.f32 %v5879_v51, %v5880_v38 }
 0x31e   : > { %v5862_v1 = vmax.f32 %v5860_v48, %v5861_v34  ;;  %v5113_v29 = vcombine.high %v4985_v59, %v4985_v59  ;;  %v5120_v63 = vrot.slane %v4985_v59, %v14307_v19  ;;  %v4916_v36 = vadd.f32 %v14332_v9, %v14251_v22 }
 0x31f   : > { %v6907_v39 = vsel %vm6906_vm13, %v6638_v28, %v6905_v61  ;;  %v5869_v2 = vmax.f32 %v5867_v55, %v5868_v37  ;;  %v5876_v42 = vmax.f32 %v5874_v24, %v5875_v10  ;;  %v5882_v14 = vrot.slane %v5881_v12, 2 }
 0x320   : > { %6965 = vst.msk [vmem:[#allocation3 + $0x11] sm:$0xff] %vm6614_vm5, %v6907_v39  ;;  %v5863_v41 = vrot.slane %v5862_v1, 1  ;;  %v5127_v50 = vrot.slane %v5113_v29, %v14307_v19  ;;  %v5128_v52 = vcombine.high %v5120_v63, %v5120_v63  ;;  %v5830_v11 = vsel %vm5717_vm6, %v5120_v63, -inf  ;;  %v16432_v39 = vld [vmem:[#allocation66_spill] sm:$0xff] }
 0x321   : > { %v5870_v46 = vrot.slane %v5869_v2, 1  ;;  %v5877_v13 = vrot.slane %v5876_v42, 1  ;;  %v5883_v0 = vmax.f32 %v5881_v12, %v5882_v14  ;;  %v5831_v23 = vrot.slane %v5830_v11, 4 }
 0x322   : > { %v5864_v16 = vmax.f32 %v5862_v1, %v5863_v41  ;;  %v5129_v54 = vcombine.high %v5127_v50, %v5127_v50  ;;  %v5837_v22 = vsel %vm5717_vm6, %v5128_v52, -inf  ;;  %v5844_v9 = vsel %vm5717_vm6, %v5127_v50, -inf }
 0x323   : > { %v5871_v43 = vmax.f32 %v5869_v2, %v5870_v46  ;;  %v5878_v4 = vmax.f32 %v5876_v42, %v5877_v13  ;;  %v5884_v48 = vrot.slane %v5883_v0, 1  ;;  %v5832_v51 = vmax.f32 %v5830_v11, %v5831_v23 }
 0x324   : > { %v14450_v47 = vsel %vm6614_vm5, %v5864_v16, -inf  ;;  %v5838_v55 = vrot.slane %v5837_v22, 4  ;;  %v5845_v24 = vrot.slane %v5844_v9, 4  ;;  %v5851_v38 = vsel %vm5717_vm6, %v5129_v54, -inf }
 0x325   : > { %v5885_v17 = vmax.f32 %v5883_v0, %v5884_v48  ;;  %v14454_v61 = vsel %vm6614_vm5, %v5871_v43, -inf  ;;  %v14457_v34 = vsel %vm6614_vm5, %v5878_v4, -inf  ;;  %v5833_v59 = vrot.slane %v5832_v51, 2 }
 0x326   : > { %v5839_v28 = vmax.f32 %v5837_v22, %v5838_v55  ;;  %v5846_v37 = vmax.f32 %v5844_v9, %v5845_v24  ;;  %v5852_v10 = vrot.slane %v5851_v38, 4  ;;  %v4955_v12 = vadd.f32 %v14302_v58, %v4916_v36  ;;  %v16433_v36 = vld [vmem:[#allocation67_spill] sm:$0xff] }
 0x327   : > { %v14461_v1 = vsel %vm6614_vm5, %v5885_v17, -inf  ;;  %v5834_v29 = vmax.f32 %v5832_v51, %v5833_v59  ;;  %v4917_v63 = vadd.f32 %v14334_v62, %v14260_v33  ;;  %v12021_v2 = vadd.f32 %v14350_v6, %v16432_v39 }
 0x328   : > { %v5840_v42 = vrot.slane %v5839_v28, 2  ;;  %v5847_v14 = vrot.slane %v5846_v37, 2  ;;  %v5853_v41 = vmax.f32 %v5851_v38, %v5852_v10  ;;  %v4987_v50 = vmax.f32 %v4955_v12, 0.0 }
 0x329   : > { %v5835_v52 = vrot.slane %v5834_v29, 1  ;;  %v4956_v11 = vadd.f32 %v14302_v58, %v4917_v63  ;;  %v4958_v46 = vadd.f32 %v12021_v2, %v14302_v58  ;;  %v14471_v13 = vadd.f32 %v14354_v15, %v16433_v36 }
 0x32a   : > { %v5841_v0 = vmax.f32 %v5839_v28, %v5840_v42  ;;  %v5848_v23 = vmax.f32 %v5846_v37, %v5847_v14  ;;  %v5854_v16 = vrot.slane %v5853_v41, 2  ;;  %v5147_v33 = vcombine.high %v4987_v50, %v4987_v50 }
 0x32b   : > { %v5836_v62 = vmax.f32 %v5834_v29, %v5835_v52  ;;  %v5154_v6 = vrot.slane %v4987_v50, %v14307_v19  ;;  %v4988_v54 = vmax.f32 %v4956_v11, 0.0  ;;  %v14474_v22 = vmax.f32 %v4958_v46, 0.0 }
 0x32c   : > { %v5842_v9 = vrot.slane %v5841_v0, 1  ;;  %v5849_v43 = vrot.slane %v5848_v23, 1  ;;  %v5855_v4 = vmax.f32 %v5853_v41, %v5854_v16  ;;  %v5161_v48 = vrot.slane %v5147_v33, %v14307_v19 }
 0x32d   : > { %v14478_v51 = vsel %vm6614_vm5, %v5836_v62, -inf  ;;  %v5162_v15 = vcombine.high %v5154_v6, %v5154_v6  ;;  %v5886_v55 = vsel %vm5717_vm6, %v5154_v6, -inf  ;;  %v5164_v24 = vcombine.high %v4988_v54, %v4988_v54 }
 0x32e   : > { %v5843_v38 = vmax.f32 %v5841_v0, %v5842_v9  ;;  %v5850_v17 = vmax.f32 %v5848_v23, %v5849_v43  ;;  %v5856_v59 = vrot.slane %v5855_v4, 1  ;;  %v5163_v28 = vcombine.high %v5161_v48, %v5161_v48 }
 0x32f   : > { %v5887_v37 = vrot.slane %v5886_v55, 4  ;;  %v5893_v10 = vsel %vm5717_vm6, %v5162_v15, -inf  ;;  %v5900_v12 = vsel %vm5717_vm6, %v5161_v48, -inf  ;;  %v5171_v29 = vrot.slane %v4988_v54, %v14307_v19 }
 0x330   : > { %v5857_v63 = vmax.f32 %v5855_v4, %v5856_v59  ;;  %v14485_v39 = vsel %vm6614_vm5, %v5843_v38, -inf  ;;  %v14488_v2 = vsel %vm6614_vm5, %v5850_v17, -inf  ;;  %v5894_v42 = vrot.slane %v5893_v10, 4 }
 0x331   : > { %v5888_v14 = vmax.f32 %v5886_v55, %v5887_v37  ;;  %v5901_v41 = vrot.slane %v5900_v12, 4  ;;  %v5907_v50 = vsel %vm5717_vm6, %v5163_v28, -inf  ;;  %v5178_v52 = vrot.slane %v5164_v24, %v14307_v19  ;;  %v14498_v24 = vpop.f32.mrb[192].mxu0 }
 0x332   : > { %v14493_v11 = vsel %vm6614_vm5, %v5857_v63, -inf  ;;  %v5895_v46 = vmax.f32 %v5893_v10, %v5894_v42  ;;  %v5908_v36 = vrot.slane %v5907_v50, 4  ;;  %v5179_v0 = vcombine.high %v5171_v29, %v5171_v29  ;;  %v4809_v37 = vpop.f32.mrb[193].mxu0 }
 0x333   : > { %v5889_v23 = vrot.slane %v5888_v14, 2  ;;  %v5902_v16 = vmax.f32 %v5900_v12, %v5901_v41  ;;  %v5180_v33 = vcombine.high %v5178_v52, %v5178_v52  ;;  %v5914_v62 = vsel %vm5717_vm6, %v5171_v29, -inf  ;;  %v11485_v42 = vpop.f32.mrb[194].mxu0 }
 0x334   : > { %v5896_v6 = vrot.slane %v5895_v46, 2  ;;  %v5909_v54 = vmax.f32 %v5907_v50, %v5908_v36  ;;  %v5915_v9 = vrot.slane %v5914_v62, 4  ;;  %v5921_v43 = vsel %vm5717_vm6, %v5179_v0, -inf }
 0x335   : > { %v5890_v4 = vmax.f32 %v5888_v14, %v5889_v23  ;;  %v5903_v48 = vrot.slane %v5902_v16, 2  ;;  %v5922_v15 = vrot.slane %v5921_v43, 4  ;;  %v5928_v55 = vsel %vm5717_vm6, %v5178_v52, -inf }
 0x336   : > { %v5897_v38 = vmax.f32 %v5895_v46, %v5896_v6  ;;  %v5910_v17 = vrot.slane %v5909_v54, 2  ;;  %v5916_v59 = vmax.f32 %v5914_v62, %v5915_v9  ;;  %v5929_v28 = vrot.slane %v5928_v55, 4  ;;  %v14501_v9 = vpop.f32.mrb[195].mxu0 }
 0x337   : > { %v5891_v10 = vrot.slane %v5890_v4, 1  ;;  %v5904_v12 = vmax.f32 %v5902_v16, %v5903_v48  ;;  %v5923_v29 = vmax.f32 %v5921_v43, %v5922_v15  ;;  %v5935_v63 = vsel %vm5717_vm6, %v5180_v33, -inf }
 0x338   : > { %v5898_v41 = vrot.slane %v5897_v38, 1  ;;  %v5911_v50 = vmax.f32 %v5909_v54, %v5910_v17  ;;  %v5917_v14 = vrot.slane %v5916_v59, 2  ;;  %v5930_v36 = vmax.f32 %v5928_v55, %v5929_v28  ;;  %v14508_v28 = vpop.f32.mrb[30].mxu0 }
 0x339   : > { %v5892_v0 = vmax.f32 %v5890_v4, %v5891_v10  ;;  %v5905_v23 = vrot.slane %v5904_v12, 1  ;;  %v5924_v52 = vrot.slane %v5923_v29, 2  ;;  %v5936_v32 = vrot.slane %v5935_v63, 4 }
 0x33a   : > { %v5899_v57 = vmax.f32 %v5897_v38, %v5898_v41  ;;  %v5912_v46 = vrot.slane %v5911_v50, 1  ;;  %v5918_v6 = vmax.f32 %v5916_v59, %v5917_v14  ;;  %v5931_v62 = vrot.slane %v5930_v36, 2 }
 0x33b   : > { %v5906_v37 = vmax.f32 %v5904_v12, %v5905_v23  ;;  %v6640_v16 = vsel %vm6614_vm5, %v5892_v0, -inf  ;;  %v5925_v43 = vmax.f32 %v5923_v29, %v5924_v52  ;;  %v5937_v33 = vmax.f32 %v5935_v63, %v5936_v32 }
 0x33c   : > { %v5913_v48 = vmax.f32 %v5911_v50, %v5912_v46  ;;  %v6641_v54 = vmax.f32 %v14478_v51, %v6640_v16  ;;  %v6643_v15 = vsel %vm6614_vm5, %v5899_v57, -inf  ;;  %v5919_v4 = vrot.slane %v5918_v6, 1 }
 0x33d   : > { %v6644_v55 = vmax.f32 %v14485_v39, %v6643_v15  ;;  %v6646_v38 = vsel %vm6614_vm5, %v5906_v37, -inf  ;;  %v5926_v17 = vrot.slane %v5925_v43, 1  ;;  %v5932_v59 = vmax.f32 %v5930_v36, %v5931_v62  ;;  %v14525_v62 = vpop.f32.mrb[31].mxu0 }
 0x33e   : > { %v6647_v10 = vmax.f32 %v14488_v2, %v6646_v38  ;;  %v6649_v12 = vsel %vm6614_vm5, %v5913_v48, -inf  ;;  %v5920_v29 = vmax.f32 %v5918_v6, %v5919_v4  ;;  %v5938_v32 = vrot.slane %v5937_v33, 2 }
 0x33f   : > { %v6650_v63 = vmax.f32 %v14493_v11, %v6649_v12  ;;  %v6908_v51 = vsel %vm6894_vm7, %v6644_v55, %v6641_v54  ;;  %v5927_v57 = vmax.f32 %v5925_v43, %v5926_v17  ;;  %v5933_v42 = vrot.slane %v5932_v59, 1 }
 0x340   : > { %v6909_v39 = vsel %vm6896_vm8, %v6647_v10, %v6908_v51  ;;  %v5939_v41 = vmax.f32 %v5937_v33, %v5938_v32  ;;  %v6652_v50 = vsel %vm6614_vm5, %v5920_v29, -inf  ;;  %v5198_v14 = vcombine.high %v14474_v22, %v14474_v22 }
 0x341   : > { %v5934_v36 = vmax.f32 %v5932_v59, %v5933_v42  ;;  %v6653_v2 = vmax.f32 %v14450_v47, %v6652_v50  ;;  %v6655_v0 = vsel %vm6614_vm5, %v5927_v57, -inf  ;;  %v6910_v23 = vsel %vm6898_vm9, %v6650_v63, %v6909_v39 }
 0x342   : > { %v5940_v11 = vrot.slane %v5939_v41, 1  ;;  %v6656_v52 = vmax.f32 %v14454_v61, %v6655_v0  ;;  %v5205_v46 = vrot.slane %v14474_v22, %v14307_v19  ;;  %v5212_v6 = vrot.slane %v5198_v14, %v14307_v19 }
 0x343   : > { %v6658_v37 = vsel %vm6614_vm5, %v5934_v36, -inf  ;;  %v6911_v16 = vsel %vm6900_vm10, %v6653_v2, %v6910_v23  ;;  %v4957_v47 = vadd.f32 %v14471_v13, %v14302_v58  ;;  %v4920_v43 = vadd.f32 %v14373_v56, %v14263_v44 }
 0x344   : > { %v5941_v33 = vmax.f32 %v5939_v41, %v5940_v11  ;;  %v6659_v61 = vmax.f32 %v14457_v34, %v6658_v37  ;;  %v6912_v48 = vsel %vm6902_vm11, %v6656_v52, %v6911_v16  ;;  %v5213_v22 = vcombine.high %v5205_v46, %v5205_v46 }
 0x345   : > { %v5214_v54 = vcombine.high %v5212_v6, %v5212_v6  ;;  %v5970_v15 = vsel %vm5717_vm6, %v5205_v46, -inf  ;;  %v5984_v4 = vsel %vm5717_vm6, %v5212_v6, -inf  ;;  %v4989_v55 = vmax.f32 %v4957_v47, 0.0 }
 0x346   : > { %v6661_v38 = vsel %vm6614_vm5, %v5941_v33, -inf  ;;  %v6913_v17 = vsel %vm6904_vm12, %v6659_v61, %v6912_v48  ;;  %v5971_v13 = vrot.slane %v5970_v15, 4  ;;  %v5977_v59 = vsel %vm5717_vm6, %v5213_v22, -inf }
 0x347   : > { %v6662_v44 = vmax.f32 %v14461_v1, %v6661_v38  ;;  %v5978_v56 = vrot.slane %v5977_v59, 4  ;;  %v5985_v34 = vrot.slane %v5984_v4, 4  ;;  %v5991_v10 = vsel %vm5717_vm6, %v5214_v54, -inf }
 0x348   : > { %v5972_v12 = vmax.f32 %v5970_v15, %v5971_v13  ;;  %v5992_v29 = vrot.slane %v5991_v10, 4  ;;  %v5181_v32 = vcombine.high %v4989_v55, %v4989_v55  ;;  %v5188_v63 = vrot.slane %v4989_v55, %v14307_v19 }
 0x349   : > { %v6914_v51 = vsel %vm6906_vm13, %v6662_v44, %v6913_v17  ;;  %v5979_v57 = vmax.f32 %v5977_v59, %v5978_v56  ;;  %v5986_v42 = vmax.f32 %v5984_v4, %v5985_v34  ;;  %v4959_v39 = vadd.f32 %v14302_v58, %v4920_v43 }
 0x34a   : > { %6966 = vst.msk [vmem:[#allocation3 + $0x21] sm:$0xff] %vm6614_vm5, %v6914_v51  ;;  %v5973_v41 = vrot.slane %v5972_v12, 2  ;;  %v5993_v50 = vmax.f32 %v5991_v10, %v5992_v29  ;;  %v5195_v1 = vrot.slane %v5181_v32, %v14307_v19  ;;  %v5196_v14 = vcombine.high %v5188_v63, %v5188_v63 }
 0x34b   : > { %v5980_v36 = vrot.slane %v5979_v57, 2  ;;  %v5987_v2 = vrot.slane %v5986_v42, 2  ;;  %v5942_v0 = vsel %vm5717_vm6, %v5188_v63, -inf  ;;  %v4991_v23 = vmax.f32 %v4959_v39, 0.0 }
 0x34c   : > { %v5974_v11 = vmax.f32 %v5972_v12, %v5973_v41  ;;  %v5994_v52 = vrot.slane %v5993_v50, 2  ;;  %v5197_v46 = vcombine.high %v5195_v1, %v5195_v1  ;;  %v5943_v6 = vrot.slane %v5942_v0, 4 }
 0x34d   : > { %v5981_v37 = vmax.f32 %v5979_v57, %v5980_v36  ;;  %v5988_v16 = vmax.f32 %v5986_v42, %v5987_v2  ;;  %v5949_v47 = vsel %vm5717_vm6, %v5196_v14, -inf  ;;  %v5956_v43 = vsel %vm5717_vm6, %v5195_v1, -inf }
 0x34e   : > { %v5975_v33 = vrot.slane %v5974_v11, 1  ;;  %v5995_v61 = vmax.f32 %v5993_v50, %v5994_v52  ;;  %v5944_v48 = vmax.f32 %v5942_v0, %v5943_v6  ;;  %v5950_v22 = vrot.slane %v5949_v47, 4 }
 0x34f   : > { %v5982_v54 = vrot.slane %v5981_v37, 1  ;;  %v5989_v15 = vrot.slane %v5988_v16, 1  ;;  %v5957_v4 = vrot.slane %v5956_v43, 4  ;;  %v5963_v55 = vsel %vm5717_vm6, %v5197_v46, -inf }
 0x350   : > { %v5976_v38 = vmax.f32 %v5974_v11, %v5975_v33  ;;  %v5996_v17 = vrot.slane %v5995_v61, 1  ;;  %v5945_v13 = vrot.slane %v5944_v48, 2  ;;  %v5951_v59 = vmax.f32 %v5949_v47, %v5950_v22 }
 0x351   : > { %v5983_v44 = vmax.f32 %v5981_v37, %v5982_v54  ;;  %v5990_v56 = vmax.f32 %v5988_v16, %v5989_v15  ;;  %v5958_v34 = vmax.f32 %v5956_v43, %v5957_v4  ;;  %v5964_v10 = vrot.slane %v5963_v55, 4  ;;  %v16434_v37 = vld [vmem:[#allocation44_spill] sm:$0xff] }
 0x352   : > { %v5997_v12 = vmax.f32 %v5995_v61, %v5996_v17  ;;  %v14552_v29 = vsel %vm6614_vm5, %v5976_v38, -inf  ;;  %v5946_v32 = vmax.f32 %v5944_v48, %v5945_v13  ;;  %v5952_v63 = vrot.slane %v5951_v59, 2 }
 0x353   : > { %v14555_v51 = vsel %vm6614_vm5, %v5983_v44, -inf  ;;  %v14558_v57 = vsel %vm6614_vm5, %v5990_v56, -inf  ;;  %v5959_v42 = vrot.slane %v5958_v34, 2  ;;  %v5965_v39 = vmax.f32 %v5963_v55, %v5964_v10 }
 0x354   : > { %v14561_v41 = vsel %vm6614_vm5, %v5997_v12, -inf  ;;  %v5947_v50 = vrot.slane %v5946_v32, 1  ;;  %v5953_v1 = vmax.f32 %v5951_v59, %v5952_v63  ;;  %v5215_v14 = vcombine.high %v4991_v23, %v4991_v23 }
 0x355   : > { %v5960_v36 = vmax.f32 %v5958_v34, %v5959_v42  ;;  %v5966_v2 = vrot.slane %v5965_v39, 2  ;;  %v5222_v0 = vrot.slane %v4991_v23, %v14307_v19  ;;  %v4921_v11 = vadd.f32 %v14389_v30, %v14266_v8 }
 0x356   : > { %v5948_v52 = vmax.f32 %v5946_v32, %v5947_v50  ;;  %v5954_v46 = vrot.slane %v5953_v1, 1  ;;  %v5229_v6 = vrot.slane %v5215_v14, %v14307_v19  ;;  %v12023_v16 = vadd.f32 %v14395_v18, %v16434_v37  ;;  %v16435_v50 = vld [vmem:[#allocation32_spill] sm:$0xff]  ;;  %v14593_v37 = vpop.f32.mrb[196].mxu0 }
 0x357   : > { %v5961_v47 = vrot.slane %v5960_v36, 1  ;;  %v5967_v43 = vmax.f32 %v5965_v39, %v5966_v2  ;;  %v5230_v33 = vcombine.high %v5222_v0, %v5222_v0  ;;  %v5998_v61 = vsel %vm5717_vm6, %v5222_v0, -inf }
 0x358   : > { %v5955_v48 = vmax.f32 %v5953_v1, %v5954_v46  ;;  %v14571_v22 = vsel %vm6614_vm5, %v5948_v52, -inf  ;;  %v5231_v23 = vcombine.high %v5229_v6, %v5229_v6  ;;  %v5999_v54 = vrot.slane %v5998_v61, 4 }
 0x359   : > { %v5962_v15 = vmax.f32 %v5960_v36, %v5961_v47  ;;  %v5968_v8 = vrot.slane %v5967_v43, 1  ;;  %v6005_v30 = vsel %vm5717_vm6, %v5230_v33, -inf  ;;  %v6012_v4 = vsel %vm5717_vm6, %v5229_v6, -inf }
 0x35a   : > { %v14576_v55 = vsel %vm6614_vm5, %v5955_v48, -inf  ;;  %v6000_v18 = vmax.f32 %v5998_v61, %v5999_v54  ;;  %v6006_v38 = vrot.slane %v6005_v30, 4  ;;  %v6013_v17 = vrot.slane %v6012_v4, 4  ;;  %v4837_v61 = vpop.f32.mrb[197].mxu0 }
 0x35b   : > { %v5969_v13 = vmax.f32 %v5967_v43, %v5968_v8  ;;  %v14579_v59 = vsel %vm6614_vm5, %v5962_v15, -inf  ;;  %v6019_v44 = vsel %vm5717_vm6, %v5231_v23, -inf  ;;  %v4960_v56 = vadd.f32 %v14302_v58, %v4921_v11  ;;  %v11494_v15 = vpop.f32.mrb[198].mxu0 }
 0x35c   : > { %v6001_v34 = vrot.slane %v6000_v18, 2  ;;  %v6007_v10 = vmax.f32 %v6005_v30, %v6006_v38  ;;  %v6014_v12 = vmax.f32 %v6012_v4, %v6013_v17  ;;  %v6020_v32 = vrot.slane %v6019_v44, 4 }
 0x35d   : > { %v14584_v63 = vsel %vm6614_vm5, %v5969_v13, -inf  ;;  %v4992_v42 = vmax.f32 %v4960_v56, 0.0  ;;  %v4962_v39 = vadd.f32 %v12023_v16, %v14302_v58  ;;  %v12024_v1 = vadd.f32 %v14397_v49, %v16435_v50 }
 0x35e   : > { %v6002_v14 = vmax.f32 %v6000_v18, %v6001_v34  ;;  %v6008_v36 = vrot.slane %v6007_v10, 2  ;;  %v6015_v2 = vrot.slane %v6014_v12, 2  ;;  %v6021_v0 = vmax.f32 %v6019_v44, %v6020_v32 }
 0x35f   : > { %v5232_v52 = vcombine.high %v4992_v42, %v4992_v42  ;;  %v5239_v11 = vrot.slane %v4992_v42, %v14307_v19  ;;  %v4994_v46 = vmax.f32 %v4962_v39, 0.0  ;;  %v14591_v6 = vadd.f32 %v12024_v1, %v14302_v58 }
 0x360   : > { %v6003_v47 = vrot.slane %v6002_v14, 1  ;;  %v6009_v43 = vmax.f32 %v6007_v10, %v6008_v36  ;;  %v6016_v33 = vmax.f32 %v6014_v12, %v6015_v2  ;;  %v6022_v16 = vrot.slane %v6021_v0, 2  ;;  %v14600_v12 = vpop.f32.mrb[199].mxu0 }
 0x361   : > { %v5246_v49 = vrot.slane %v5232_v52, %v14307_v19  ;;  %v5247_v48 = vcombine.high %v5239_v11, %v5239_v11  ;;  %v6026_v23 = vsel %vm5717_vm6, %v5239_v11, -inf  ;;  %v5266_v54 = vcombine.high %v4994_v46, %v4994_v46 }
 0x362   : > { %v6004_v8 = vmax.f32 %v6002_v14, %v6003_v47  ;;  %v6010_v30 = vrot.slane %v6009_v43, 1  ;;  %v6017_v4 = vrot.slane %v6016_v33, 1  ;;  %v6023_v18 = vmax.f32 %v6021_v0, %v6022_v16 }
 0x363   : > { %v5248_v58 = vcombine.high %v5246_v49, %v5246_v49  ;;  %v6027_v38 = vrot.slane %v6026_v23, 4  ;;  %v6033_v17 = vsel %vm5717_vm6, %v5247_v48, -inf  ;;  %v6040_v13 = vsel %vm5717_vm6, %v5246_v49, -inf }
 0x364   : > { %v6011_v44 = vmax.f32 %v6009_v43, %v6010_v30  ;;  %v6018_v56 = vmax.f32 %v6016_v33, %v6017_v4  ;;  %v6024_v34 = vrot.slane %v6023_v18, 1  ;;  %v6664_v10 = vsel %vm6614_vm5, %v6004_v8, -inf  ;;  %v14608_v43 = vpop.f32.mrb[36].mxu0 }
 0x365   : > { %v6665_v32 = vmax.f32 %v14571_v22, %v6664_v10  ;;  %v6028_v42 = vmax.f32 %v6026_v23, %v6027_v38  ;;  %v6034_v39 = vrot.slane %v6033_v17, 4  ;;  %v6041_v50 = vrot.slane %v6040_v13, 4 }
 0x366   : > { %v6025_v1 = vmax.f32 %v6023_v18, %v6024_v34  ;;  %v6667_v14 = vsel %vm6614_vm5, %v6011_v44, -inf  ;;  %v6670_v36 = vsel %vm6614_vm5, %v6018_v56, -inf  ;;  %v6047_v2 = vsel %vm5717_vm6, %v5248_v58, -inf }
 0x367   : > { %v6668_v0 = vmax.f32 %v14576_v55, %v6667_v14  ;;  %v6671_v52 = vmax.f32 %v14579_v59, %v6670_v36  ;;  %v6029_v11 = vrot.slane %v6028_v42, 2  ;;  %v6035_v47 = vmax.f32 %v6033_v17, %v6034_v39 }
 0x368   : > { %v6673_v22 = vsel %vm6614_vm5, %v6025_v1, -inf  ;;  %v6042_v33 = vmax.f32 %v6040_v13, %v6041_v50  ;;  %v6048_v16 = vrot.slane %v6047_v2, 4  ;;  %v5273_v61 = vrot.slane %v4994_v46, %v14307_v19 }
 0x369   : > { %v6674_v49 = vmax.f32 %v14584_v63, %v6673_v22  ;;  %v6915_v48 = vsel %vm6894_vm7, %v6668_v0, %v6665_v32  ;;  %v6030_v23 = vmax.f32 %v6028_v42, %v6029_v11  ;;  %v6036_v15 = vrot.slane %v6035_v47, 2 }
 0x36a   : > { %v6916_v55 = vsel %vm6896_vm8, %v6671_v52, %v6915_v48  ;;  %v6043_v8 = vrot.slane %v6042_v33, 2  ;;  %v6049_v59 = vmax.f32 %v6047_v2, %v6048_v16  ;;  %v5280_v30 = vrot.slane %v5266_v54, %v14307_v19 }
 0x36b   : > { %v6031_v4 = vrot.slane %v6030_v23, 1  ;;  %v6037_v18 = vmax.f32 %v6035_v47, %v6036_v15  ;;  %v6917_v58 = vsel %vm6898_vm9, %v6674_v49, %v6916_v55  ;;  %v5281_v38 = vcombine.high %v5273_v61, %v5273_v61  ;;  %v14622_v47 = vpop.f32.mrb[37].mxu0 }
 0x36c   : > { %v6044_v17 = vmax.f32 %v6042_v33, %v6043_v8  ;;  %v6050_v13 = vrot.slane %v6049_v59, 2  ;;  %v5282_v46 = vcombine.high %v5280_v30, %v5280_v30  ;;  %v6082_v63 = vsel %vm5717_vm6, %v5273_v61, -inf }
 0x36d   : > { %v6032_v44 = vmax.f32 %v6030_v23, %v6031_v4  ;;  %v6038_v56 = vrot.slane %v6037_v18, 1  ;;  %v6083_v34 = vrot.slane %v6082_v63, 4  ;;  %v6089_v10 = vsel %vm5717_vm6, %v5281_v38, -inf }
 0x36e   : > { %v6045_v32 = vrot.slane %v6044_v17, 1  ;;  %v6051_v42 = vmax.f32 %v6049_v59, %v6050_v13  ;;  %v6090_v39 = vrot.slane %v6089_v10, 4  ;;  %v6096_v54 = vsel %vm5717_vm6, %v5280_v30, -inf }
 0x36f   : > { %v6039_v50 = vmax.f32 %v6037_v18, %v6038_v56  ;;  %v6676_v1 = vsel %vm6614_vm5, %v6032_v44, -inf  ;;  %v6084_v14 = vmax.f32 %v6082_v63, %v6083_v34  ;;  %v6097_v36 = vrot.slane %v6096_v54, 4 }
 0x370   : > { %v6046_v2 = vmax.f32 %v6044_v17, %v6045_v32  ;;  %v6052_v0 = vrot.slane %v6051_v42, 1  ;;  %v6677_v52 = vmax.f32 %v14552_v29, %v6676_v1  ;;  %v6091_v11 = vmax.f32 %v6089_v10, %v6090_v39 }
 0x371   : > { %v6679_v22 = vsel %vm6614_vm5, %v6039_v50, -inf  ;;  %v6085_v33 = vrot.slane %v6084_v14, 2  ;;  %v6098_v16 = vmax.f32 %v6096_v54, %v6097_v36  ;;  %v6103_v61 = vsel %vm5717_vm6, %v5282_v46, -inf }
 0x372   : > { %v6053_v49 = vmax.f32 %v6051_v42, %v6052_v0  ;;  %v6680_v48 = vmax.f32 %v14555_v51, %v6679_v22  ;;  %v6682_v23 = vsel %vm6614_vm5, %v6046_v2, -inf  ;;  %v6918_v15 = vsel %vm6900_vm10, %v6677_v52, %v6917_v58 }
 0x373   : > { %v6683_v55 = vmax.f32 %v14558_v57, %v6682_v23  ;;  %v6086_v8 = vmax.f32 %v6084_v14, %v6085_v33  ;;  %v6092_v29 = vrot.slane %v6091_v11, 2  ;;  %v6099_v59 = vrot.slane %v6098_v16, 2  ;;  %v14648_v14 = vld [vmem:[%s16095_s2] ss:$0 sm:$0xff] }
 0x374   : > { %v6685_v30 = vsel %vm6614_vm5, %v6053_v49, -inf  ;;  %v6919_v4 = vsel %vm6902_vm11, %v6680_v48, %v6918_v15  ;;  %v6104_v18 = vrot.slane %v6103_v61, 4  ;;  %v4993_v38 = vmax.f32 %v14591_v6, 0.0 }
 0x375   : > { %v6686_v17 = vmax.f32 %v14561_v41, %v6685_v30  ;;  %v6920_v51 = vsel %vm6904_vm12, %v6683_v55, %v6919_v4  ;;  %v6087_v13 = vrot.slane %v6086_v8, 1  ;;  %v6093_v46 = vmax.f32 %v6091_v11, %v6092_v29 }
 0x376   : > { %v6100_v63 = vmax.f32 %v6098_v16, %v6099_v59  ;;  %v6105_v58 = vmax.f32 %v6103_v61, %v6104_v18  ;;  %v5249_v44 = vcombine.high %v4993_v38, %v4993_v38  ;;  %v5256_v57 = vrot.slane %v4993_v38, %v14307_v19 }
 0x377   : > { %v6921_v56 = vsel %vm6906_vm13, %v6686_v17, %v6920_v51  ;;  %v6088_v34 = vmax.f32 %v6086_v8, %v6087_v13  ;;  %v6094_v10 = vrot.slane %v6093_v46, 1  ;;  %v4924_v32 = vadd.f32 %v14400_v31, %v14269_v25 }
 0x378   : > { %6967 = vst.msk [vmem:[#allocation3 + $0x31] sm:$0xff] %vm6614_vm5, %v6921_v56  ;;  %v6101_v6 = vrot.slane %v6100_v63, 1  ;;  %v6106_v41 = vrot.slane %v6105_v58, 2  ;;  %v5263_v42 = vrot.slane %v5249_v44, %v14307_v19  ;;  %v5264_v39 = vcombine.high %v5256_v57, %v5256_v57 }
 0x379   : > { %v6095_v54 = vmax.f32 %v6093_v46, %v6094_v10  ;;  %v14642_v50 = vsel %vm6614_vm5, %v6088_v34, -inf  ;;  %v6054_v1 = vsel %vm5717_vm6, %v5256_v57, -inf  ;;  %v4963_v25 = vadd.f32 %v14648_v14, %v4924_v32 }
 0x37a   : > { %v6102_v31 = vmax.f32 %v6100_v63, %v6101_v6  ;;  %v6107_v36 = vmax.f32 %v6105_v58, %v6106_v41  ;;  %v5265_v2 = vcombine.high %v5263_v42, %v5263_v42  ;;  %v6055_v0 = vrot.slane %v6054_v1, 4 }
 0x37b   : > { %v14652_v52 = vsel %vm6614_vm5, %v6095_v54, -inf  ;;  %v6061_v11 = vsel %vm5717_vm6, %v5264_v39, -inf  ;;  %v6068_v22 = vsel %vm5717_vm6, %v5263_v42, -inf  ;;  %v4995_v33 = vmax.f32 %v4963_v25, 0.0 }
 0x37c   : > { %v6108_v16 = vrot.slane %v6107_v36, 1  ;;  %v14657_v61 = vsel %vm6614_vm5, %v6102_v31, -inf  ;;  %v6056_v49 = vmax.f32 %v6054_v1, %v6055_v0  ;;  %v6062_v48 = vrot.slane %v6061_v11, 4 }
 0x37d   : > { %v6069_v23 = vrot.slane %v6068_v22, 4  ;;  %v6075_v15 = vsel %vm5717_vm6, %v5265_v2, -inf  ;;  %v5283_v55 = vcombine.high %v4995_v33, %v4995_v33  ;;  %v5290_v8 = vrot.slane %v4995_v33, %v14307_v19 }
 0x37e   : > { %v6109_v29 = vmax.f32 %v6107_v36, %v6108_v16  ;;  %v6057_v59 = vrot.slane %v6056_v49, 2  ;;  %v6063_v30 = vmax.f32 %v6061_v11, %v6062_v48  ;;  %v6076_v4 = vrot.slane %v6075_v15, 4  ;;  %v9978_v16 = vld [vmem:[%s16096_s3 + $0x60] sm:$0xff] }
 0x37f   : > { %v6070_v18 = vmax.f32 %v6068_v22, %v6069_v23  ;;  %v5297_v38 = vrot.slane %v5283_v55, %v14307_v19  ;;  %v5298_v17 = vcombine.high %v5290_v8, %v5290_v8  ;;  %v6110_v51 = vsel %vm5717_vm6, %v5290_v8, -inf }
 0x380   : > { %v14664_v13 = vsel %vm6614_vm5, %v6109_v29, -inf  ;;  %v6058_v46 = vmax.f32 %v6056_v49, %v6057_v59  ;;  %v6064_v63 = vrot.slane %v6063_v30, 2  ;;  %v6077_v58 = vmax.f32 %v6075_v15, %v6076_v4  ;;  %v9979_v49 = vld [vmem:[%s16096_s3 + $0x68] sm:$0xff]  ;;  %v9980_v4 = vld [vmem:[%s16096_s3 + $0x70] sm:$0xff] }
 0x381   : > { %v6071_v44 = vrot.slane %v6070_v18, 2  ;;  %v5299_v57 = vcombine.high %v5297_v38, %v5297_v38  ;;  %v6111_v56 = vrot.slane %v6110_v51, 4  ;;  %v6117_v34 = vsel %vm5717_vm6, %v5298_v17, -inf }
 0x382   : > { %v6059_v10 = vrot.slane %v6058_v46, 1  ;;  %v6065_v32 = vmax.f32 %v6063_v30, %v6064_v63  ;;  %v6078_v6 = vrot.slane %v6077_v58, 2  ;;  %v6118_v41 = vrot.slane %v6117_v34, 4 }
 0x383   : > { %v6072_v42 = vmax.f32 %v6070_v18, %v6071_v44  ;;  %v6112_v39 = vmax.f32 %v6110_v51, %v6111_v56  ;;  %v6124_v54 = vsel %vm5717_vm6, %v5297_v38, -inf  ;;  %v6131_v1 = vsel %vm5717_vm6, %v5299_v57, -inf  ;;  %v9981_v18 = vld [vmem:[%s16096_s3 + $0x78] sm:$0xff]  ;;  %v14684_v56 = vld [vmem:[#allocation3] sm:$0xff] }
 0x384   : > { %v6060_v25 = vmax.f32 %v6058_v46, %v6059_v10  ;;  %v6066_v31 = vrot.slane %v6065_v32, 1  ;;  %v6079_v36 = vmax.f32 %v6077_v58, %v6078_v6  ;;  %v6119_v2 = vmax.f32 %v6117_v34, %v6118_v41 }
 0x385   : > { %v6073_v0 = vrot.slane %v6072_v42, 1  ;;  %v6113_v11 = vrot.slane %v6112_v39, 2  ;;  %v6125_v22 = vrot.slane %v6124_v54, 4  ;;  %v6132_v33 = vrot.slane %v6131_v1, 4 }
 0x386   : > { %v6067_v48 = vmax.f32 %v6065_v32, %v6066_v31  ;;  %v6080_v23 = vrot.slane %v6079_v36, 1  ;;  %v6687_v15 = vsel %vm6614_vm5, %v6060_v25, -inf  ;;  %v6120_v55 = vrot.slane %v6119_v2, 2 }
 0x387   : > { %v6074_v8 = vmax.f32 %v6072_v42, %v6073_v0  ;;  %v6114_v29 = vmax.f32 %v6112_v39, %v6113_v11  ;;  %v6126_v59 = vmax.f32 %v6124_v54, %v6125_v22  ;;  %v6133_v30 = vmax.f32 %v6131_v1, %v6132_v33  ;;  %v16436_v54 = vld [vmem:[#allocation33_spill] sm:$0xff]  ;;  %v14695_v11 = vpop.f32.mrb[200].mxu0 }
 0x388   : > { %v6081_v38 = vmax.f32 %v6079_v36, %v6080_v23  ;;  %v6690_v17 = vsel %vm6614_vm5, %v6067_v48, -inf  ;;  %v6121_v51 = vmax.f32 %v6119_v2, %v6120_v55  ;;  %v11881_v46 = vpack.c.bf16 %v9979_v49, %v9978_v16  ;;  %v16437_v36 = vld [vmem:[#allocation7_spill] sm:$0xff]  ;;  %v14699_v16 = vld [vmem:[#allocation3 + $0x8] sm:$0xff] }
 0x389   : > { %v6693_v63 = vsel %vm6614_vm5, %v6074_v8, -inf  ;;  %v6115_v58 = vrot.slane %v6114_v29, 1  ;;  %v6127_v44 = vrot.slane %v6126_v59, 2  ;;  %v6134_v57 = vrot.slane %v6133_v30, 2 }
 0x38a   : > { %v6696_v34 = vsel %vm6614_vm5, %v6081_v38, -inf  ;;  %v6122_v10 = vrot.slane %v6121_v51, 1  ;;  %11882 = vmatprep.subr.bf16.mxu1 %v11881_v46  ;;  %v4925_v32 = vadd.f32 %v14415_v40, %v14272_v45  ;;  %v11885_v6 = vpack.c.bf16 %v9981_v18, %v9980_v4 }
 0x38b   : > { %v6116_v41 = vmax.f32 %v6114_v29, %v6115_v58  ;;  %v6128_v42 = vmax.f32 %v6126_v59, %v6127_v44  ;;  %v6135_v39 = vmax.f32 %v6133_v30, %v6134_v57  ;;  %11884 = vmatpush3.bf16.msra.mxu1 %v11881_v46  ;;  %v12025_v1 = vadd.f32 %v14422_v35, %v16436_v54  ;;  %v4865_v35 = vpop.f32.mrb[201].mxu0 }
 0x38c   : > { %v6123_v25 = vmax.f32 %v6121_v51, %v6122_v10  ;;  %v4964_v31 = vadd.f32 %v14648_v14, %v4925_v32  ;;  %11886 = vmatprep.subr.bf16.mxu1 %v11885_v6  ;;  %v12026_v2 = vadd.f32 %v14427_v21, %v16437_v36  ;;  %v7024_v0 = vrot.slane %v14684_v56, 1  ;;  %v11503_v21 = vpop.f32.mrb[202].mxu0 }
 0x38d   : > { %v6129_v45 = vrot.slane %v6128_v42, 1  ;;  %v6136_v40 = vrot.slane %v6135_v39, 1  ;;  %v6688_v22 = vsel %vm6614_vm5, %v6116_v41, -inf  ;;  %v4966_v33 = vadd.f32 %v14648_v14, %v12025_v1  ;;  %v14710_v57 = vpop.f32.mrb[203].mxu0 }
 0x38e   : > { %v6689_v49 = vmax.f32 %v6687_v15, %v6688_v22  ;;  %v6691_v48 = vsel %vm6614_vm5, %v6123_v25, -inf  ;;  %v4996_v23 = vmax.f32 %v4964_v31, 0.0  ;;  %v4965_v55 = vadd.f32 %v14648_v14, %v12026_v2 }
 0x38f   : > { %v6130_v8 = vmax.f32 %v6128_v42, %v6129_v45  ;;  %v6137_v29 = vmax.f32 %v6135_v39, %v6136_v40  ;;  %v6692_v59 = vmax.f32 %v6690_v17, %v6691_v48  ;;  %11888 = vmatpush3.bf16.msra.mxu1 %v11885_v6  ;;  %v4998_v30 = vmax.f32 %v4966_v33, 0.0 }
 0x390   : > { %v5300_v4 = vcombine.high %v4996_v23, %v4996_v23  ;;  %v5307_v18 = vrot.slane %v4996_v23, %v14307_v19  ;;  %v14704_v38 = vmax.f32 %v4965_v55, 0.0  ;;  %v7025_v51 = vrot.slane %v14699_v16, 1 }
 0x391   : > { %v6694_v15 = vsel %vm6614_vm5, %v6130_v8, -inf  ;;  %v6697_v46 = vsel %vm6614_vm5, %v6137_v29, -inf  ;;  %v6922_v58 = vsel %vm6894_vm7, %v6692_v59, %v6689_v49  ;;  %v5334_v44 = vcombine.high %v4998_v30, %v4998_v30 }
 0x392   : > { %v6695_v10 = vmax.f32 %v6693_v63, %v6694_v15  ;;  %v6698_v17 = vmax.f32 %v6696_v34, %v6697_v46  ;;  %v5314_v32 = vrot.slane %v5300_v4, %v14307_v19  ;;  %v5315_v6 = vcombine.high %v5307_v18, %v5307_v18  ;;  %v14720_v63 = vpop.f32.mrb[42].mxu0 }
 0x393   : > { %v6138_v41 = vsel %vm5717_vm6, %v5307_v18, -inf  ;;  %v5341_v42 = vrot.slane %v4998_v30, %v14307_v19  ;;  %v5348_v39 = vrot.slane %v5334_v44, %v14307_v19  ;;  %v5317_v54 = vcombine.high %v14704_v38, %v14704_v38 }
 0x394   : > { %v6923_v1 = vsel %vm6896_vm8, %v6695_v10, %v6922_v58  ;;  %v5316_v25 = vcombine.high %v5314_v32, %v5314_v32  ;;  %v6139_v31 = vrot.slane %v6138_v41, 4  ;;  %v6145_v36 = vsel %vm5717_vm6, %v5315_v6, -inf }
 0x395   : > { %v6146_v34 = vrot.slane %v6145_v36, 4  ;;  %v6152_v2 = vsel %vm5717_vm6, %v5314_v32, -inf  ;;  %v6924_v45 = vsel %vm6898_vm9, %v6698_v17, %v6923_v1  ;;  %v5349_v40 = vcombine.high %v5341_v42, %v5341_v42 }
 0x396   : > { %v6140_v22 = vmax.f32 %v6138_v41, %v6139_v31  ;;  %v6153_v33 = vrot.slane %v6152_v2, 4  ;;  %v6159_v35 = vsel %vm5717_vm6, %v5316_v25, -inf  ;;  %v5350_v49 = vcombine.high %v5348_v39, %v5348_v39 }
 0x397   : > { %v6147_v48 = vmax.f32 %v6145_v36, %v6146_v34  ;;  %v6160_v23 = vrot.slane %v6159_v35, 4  ;;  %v6194_v55 = vsel %vm5717_vm6, %v5341_v42, -inf  ;;  %v6201_v21 = vsel %vm5717_vm6, %v5349_v40, -inf }
 0x398   : > { %v6141_v8 = vrot.slane %v6140_v22, 2  ;;  %v6154_v29 = vmax.f32 %v6152_v2, %v6153_v33  ;;  %v6195_v59 = vrot.slane %v6194_v55, 4  ;;  %v6202_v30 = vrot.slane %v6201_v21, 4 }
 0x399   : > { %v6148_v4 = vrot.slane %v6147_v48, 2  ;;  %v6161_v18 = vmax.f32 %v6159_v35, %v6160_v23  ;;  %v6208_v15 = vsel %vm5717_vm6, %v5348_v39, -inf  ;;  %v6215_v46 = vsel %vm5717_vm6, %v5350_v49, -inf  ;;  %v14729_v35 = vpop.f32.mrb[43].mxu0 }
 0x39a   : > { %v6142_v58 = vmax.f32 %v6140_v22, %v6141_v8  ;;  %v6155_v44 = vrot.slane %v6154_v29, 2  ;;  %v6196_v10 = vmax.f32 %v6194_v55, %v6195_v59  ;;  %v6203_v17 = vmax.f32 %v6201_v21, %v6202_v30 }
 0x39b   : > { %v6149_v32 = vmax.f32 %v6147_v48, %v6148_v4  ;;  %v6162_v6 = vrot.slane %v6161_v18, 2  ;;  %v6209_v41 = vrot.slane %v6208_v15, 4  ;;  %v6216_v42 = vrot.slane %v6215_v46, 4 }
 0x39c   : > { %v6143_v1 = vrot.slane %v6142_v58, 1  ;;  %v6156_v25 = vmax.f32 %v6154_v29, %v6155_v44  ;;  %v6197_v31 = vrot.slane %v6196_v10, 2  ;;  %v6204_v36 = vrot.slane %v6203_v17, 2 }
 0x39d   : > { %v6150_v34 = vrot.slane %v6149_v32, 1  ;;  %v6163_v2 = vmax.f32 %v6161_v18, %v6162_v6  ;;  %v6210_v40 = vmax.f32 %v6208_v15, %v6209_v41  ;;  %v6217_v33 = vmax.f32 %v6215_v46, %v6216_v42 }
 0x39e   : > { %v6144_v39 = vmax.f32 %v6142_v58, %v6143_v1  ;;  %v6157_v49 = vrot.slane %v6156_v25, 1  ;;  %v6198_v22 = vmax.f32 %v6196_v10, %v6197_v31  ;;  %v6205_v23 = vmax.f32 %v6203_v17, %v6204_v36 }
 0x39f   : > { %v6151_v55 = vmax.f32 %v6149_v32, %v6150_v34  ;;  %v6164_v21 = vrot.slane %v6163_v2, 1  ;;  %v6211_v48 = vrot.slane %v6210_v40, 2  ;;  %v6218_v8 = vrot.slane %v6217_v33, 2 }
 0x3a0   : > { %v6158_v59 = vmax.f32 %v6156_v25, %v6157_v49  ;;  %v6700_v30 = vsel %vm6614_vm5, %v6144_v39, -inf  ;;  %v6199_v29 = vrot.slane %v6198_v22, 1  ;;  %v6206_v4 = vrot.slane %v6205_v23, 1 }
 0x3a1   : > { %v6165_v44 = vmax.f32 %v6163_v2, %v6164_v21  ;;  %v6701_v18 = vmax.f32 %v14642_v50, %v6700_v30  ;;  %v6703_v15 = vsel %vm6614_vm5, %v6151_v55, -inf  ;;  %v6212_v46 = vmax.f32 %v6210_v40, %v6211_v48 }
 0x3a2   : > { %v6704_v58 = vmax.f32 %v14652_v52, %v6703_v15  ;;  %v6706_v10 = vsel %vm6614_vm5, %v6158_v59, -inf  ;;  %v6200_v17 = vmax.f32 %v6198_v22, %v6199_v29  ;;  %v6207_v32 = vmax.f32 %v6205_v23, %v6206_v4  ;;  %v14808_v4 = vpop.f32.mrb[204].mxu0 }
 0x3a3   : > { %v6707_v6 = vmax.f32 %v14657_v61, %v6706_v10  ;;  %v6709_v41 = vsel %vm6614_vm5, %v6165_v44, -inf  ;;  %v6925_v42 = vsel %vm6900_vm10, %v6701_v18, %v6924_v45  ;;  %v6213_v1 = vrot.slane %v6212_v46, 1 }
 0x3a4   : > { %v6710_v25 = vmax.f32 %v14664_v13, %v6709_v41  ;;  %v6926_v50 = vsel %vm6902_vm11, %v6704_v58, %v6925_v42  ;;  %v6219_v31 = vmax.f32 %v6217_v33, %v6218_v8  ;;  %v14742_v36 = vsel %vm6614_vm5, %v6200_v17, -inf  ;;  %v16438_v58 = vld [vmem:[#allocation29_spill] sm:$0xff] }
 0x3a5   : > { %v6927_v52 = vsel %vm6904_vm12, %v6707_v6, %v6926_v50  ;;  %v6214_v34 = vmax.f32 %v6212_v46, %v6213_v1  ;;  %v14746_v2 = vsel %vm6614_vm5, %v6207_v32, -inf  ;;  %v5324_v61 = vrot.slane %v14704_v38, %v14307_v19  ;;  %v4893_v46 = vpop.f32.mrb[205].mxu0 }
 0x3a6   : > { %v6928_v45 = vsel %vm6906_vm13, %v6710_v25, %v6927_v52  ;;  %v6220_v40 = vrot.slane %v6219_v31, 1  ;;  %v5331_v13 = vrot.slane %v5317_v54, %v14307_v19  ;;  %v7026_v33 = vsel %vm430_vm3, %v7024_v0, %v7025_v51  ;;  %v11512_v17 = vpop.f32.mrb[206].mxu0 }
 0x3a7   : > { %6968 = vst.msk [vmem:[#allocation3 + $0x41] sm:$0xff] %vm6614_vm5, %v6928_v45  ;;  %v14762_v39 = vsel %vm6614_vm5, %v6214_v34, -inf  ;;  %v5332_v49 = vcombine.high %v5324_v61, %v5324_v61  ;;  %v6166_v22 = vsel %vm5717_vm6, %v5324_v61, -inf  ;;  %11529 = vmatprep.mubr.msk.f32.mxu1 %vm6614_vm5, %v7026_v33  ;;  %v4928_v21 = vadd.f32 %v14498_v24, %v14275_v7  ;;  %v6975_v61 = vld [vmem:[#allocation3 + $0x10] sm:$0xff]  ;;  %v14818_v45 = vld [vmem:[#allocation3 + $0x18] sm:$0xff] }
 0x3a8   : > { %v6221_v23 = vmax.f32 %v6219_v31, %v6220_v40  ;;  %v5333_v38 = vcombine.high %v5331_v13, %v5331_v13  ;;  %v6167_v54 = vrot.slane %v6166_v22, 4  ;;  %v6180_v55 = vsel %vm5717_vm6, %v5331_v13, -inf }
 0x3a9   : > { %v6173_v56 = vsel %vm5717_vm6, %v5332_v49, -inf  ;;  %v6181_v0 = vrot.slane %v6180_v55, 4  ;;  %v4929_v48 = vadd.f32 %v14501_v9, %v14278_v26  ;;  %v4967_v18 = vadd.f32 %v14648_v14, %v4928_v21  ;;  %v16439_v9 = vld [vmem:[#allocation15_spill] sm:$0xff] }
 0x3aa   : > { %v14805_v8 = vsel %vm6614_vm5, %v6221_v23, -inf  ;;  %v6168_v59 = vmax.f32 %v6166_v22, %v6167_v54  ;;  %v6174_v30 = vrot.slane %v6173_v56, 4  ;;  %v6187_v29 = vsel %vm5717_vm6, %v5333_v38, -inf }
 0x3ab   : > { %v6182_v44 = vmax.f32 %v6180_v55, %v6181_v0  ;;  %v6188_v60 = vrot.slane %v6187_v29, 4  ;;  %v4968_v15 = vadd.f32 %v14648_v14, %v4929_v48  ;;  %v12027_v26 = vadd.f32 %v14508_v28, %v16438_v58 }
 0x3ac   : > { %v6169_v7 = vrot.slane %v6168_v59, 2  ;;  %v6175_v24 = vmax.f32 %v6173_v56, %v6174_v30  ;;  %v12028_v10 = vadd.f32 %v14525_v62, %v16439_v9  ;;  %v4999_v41 = vmax.f32 %v4967_v18, 0.0 }
 0x3ad   : > { %v6183_v32 = vrot.slane %v6182_v44, 2  ;;  %v6189_v6 = vmax.f32 %v6187_v29, %v6188_v60  ;;  %v5000_v42 = vmax.f32 %v4968_v15, 0.0  ;;  %v4970_v50 = vadd.f32 %v14648_v14, %v12027_v26 }
 0x3ae   : > { %v6170_v1 = vmax.f32 %v6168_v59, %v6169_v7  ;;  %v6176_v25 = vrot.slane %v6175_v24, 2  ;;  %v4969_v31 = vadd.f32 %v14648_v14, %v12028_v10  ;;  %v5351_v28 = vcombine.high %v4999_v41, %v4999_v41  ;;  %v14842_v10 = vpop.f32.mrb[207].mxu0 }
 0x3af   : > { %v6184_v52 = vmax.f32 %v6182_v44, %v6183_v32  ;;  %v6190_v34 = vrot.slane %v6189_v6, 2  ;;  %v5358_v40 = vrot.slane %v4999_v41, %v14307_v19  ;;  %v7027_v33 = vrot.slane %v6975_v61, 1 }
 0x3b0   : > { %v6171_v62 = vrot.slane %v6170_v1, 1  ;;  %v6177_v13 = vmax.f32 %v6175_v24, %v6176_v25  ;;  %v7029_v49 = vrot.slane %v14818_v45, 1  ;;  %v5365_v38 = vrot.slane %v5351_v28, %v14307_v19 }
 0x3b1   : > { %v6185_v22 = vrot.slane %v6184_v52, 1  ;;  %v6191_v23 = vmax.f32 %v6189_v6, %v6190_v34  ;;  %v5366_v54 = vcombine.high %v5358_v40, %v5358_v40  ;;  %v7028_v0 = vsel %vm430_vm3, %v7025_v51, %v7027_v33 }
 0x3b2   : > { %v6172_v55 = vmax.f32 %v6170_v1, %v6171_v62  ;;  %v6178_v56 = vrot.slane %v6177_v13, 1  ;;  %v7030_v21 = vsel %vm430_vm3, %v7027_v33, %v7029_v49  ;;  %11530 = vmatmul.mubr.msk.f32.vlgmr.msra.gmra.mrb[112].mxu1 %vm6614_vm5, %v7028_v0  ;;  %v5367_v30 = vcombine.high %v5365_v38, %v5365_v38 }
 0x3b3   : > { %v6186_v48 = vmax.f32 %v6184_v52, %v6185_v22  ;;  %v6192_v59 = vrot.slane %v6191_v23, 1  ;;  %v6222_v29 = vsel %vm5717_vm6, %v5358_v40, -inf  ;;  %11532 = vmatprep.mubr.msk.f32.mxu1 %vm6614_vm5, %v7030_v21  ;;  %v6229_v51 = vsel %vm5717_vm6, %v5366_v54, -inf }
 0x3b4   : > { %v6179_v44 = vmax.f32 %v6177_v13, %v6178_v56  ;;  %v14832_v60 = vsel %vm6614_vm5, %v6172_v55, -inf  ;;  %v6223_v16 = vrot.slane %v6222_v29, 4  ;;  %v6230_v46 = vrot.slane %v6229_v51, 4 }
 0x3b5   : > { %v6193_v18 = vmax.f32 %v6191_v23, %v6192_v59  ;;  %v14837_v15 = vsel %vm6614_vm5, %v6186_v48, -inf  ;;  %v6236_v7 = vsel %vm5717_vm6, %v5365_v38, -inf  ;;  %v6243_v9 = vsel %vm5717_vm6, %v5367_v30, -inf }
 0x3b6   : > { %v6714_v24 = vsel %vm6614_vm5, %v6179_v44, -inf  ;;  %v6224_v58 = vmax.f32 %v6222_v29, %v6223_v16  ;;  %v6237_v26 = vrot.slane %v6236_v7, 4  ;;  %v6231_v32 = vmax.f32 %v6229_v51, %v6230_v46 }
 0x3b7   : > { %v14845_v17 = vsel %vm6614_vm5, %v6193_v18, -inf  ;;  %v6244_v6 = vrot.slane %v6243_v9, 4  ;;  %v5368_v41 = vcombine.high %v5000_v42, %v5000_v42  ;;  %v5375_v52 = vrot.slane %v5000_v42, %v14307_v19 }
 0x3b8   : > { %v6225_v1 = vrot.slane %v6224_v58, 2  ;;  %v6238_v25 = vmax.f32 %v6236_v7, %v6237_v26  ;;  %v5002_v34 = vmax.f32 %v4970_v50, 0.0  ;;  %v6232_v61 = vrot.slane %v6231_v32, 2 }
 0x3b9   : > { %v6245_v28 = vmax.f32 %v6243_v9, %v6244_v6  ;;  %v5382_v40 = vrot.slane %v5368_v41, %v14307_v19  ;;  %v14849_v62 = vmax.f32 %v4969_v31, 0.0  ;;  %v5383_v22 = vcombine.high %v5375_v52, %v5375_v52 }
 0x3ba   : > { %v6226_v13 = vmax.f32 %v6224_v58, %v6225_v1  ;;  %v6239_v33 = vrot.slane %v6238_v25, 2  ;;  %v6250_v23 = vsel %vm5717_vm6, %v5375_v52, -inf  ;;  %v6233_v38 = vmax.f32 %v6231_v32, %v6232_v61 }
 0x3bb   : > { %v6246_v54 = vrot.slane %v6245_v28, 2  ;;  %v5384_v55 = vcombine.high %v5382_v40, %v5382_v40  ;;  %v6251_v56 = vrot.slane %v6250_v23, 4  ;;  %v6257_v42 = vsel %vm5717_vm6, %v5383_v22, -inf }
 0x3bc   : > { %v6227_v0 = vrot.slane %v6226_v13, 1  ;;  %v6240_v21 = vmax.f32 %v6238_v25, %v6239_v33  ;;  %v6264_v50 = vsel %vm5717_vm6, %v5382_v40, -inf  ;;  %v6234_v48 = vrot.slane %v6233_v38, 1 }
 0x3bd   : > { %v6247_v59 = vmax.f32 %v6245_v28, %v6246_v54  ;;  %v6252_v30 = vmax.f32 %v6250_v23, %v6251_v56  ;;  %v6258_v31 = vrot.slane %v6257_v42, 4  ;;  %v6265_v16 = vrot.slane %v6264_v50, 4 }
 0x3be   : > { %v6228_v29 = vmax.f32 %v6226_v13, %v6227_v0  ;;  %v6241_v44 = vrot.slane %v6240_v21, 1  ;;  %v6271_v51 = vsel %vm5717_vm6, %v5384_v55, -inf  ;;  %v6235_v18 = vmax.f32 %v6233_v38, %v6234_v48 }
 0x3bf   : > { %v6248_v46 = vrot.slane %v6247_v59, 1  ;;  %v6253_v7 = vrot.slane %v6252_v30, 2  ;;  %v6259_v58 = vmax.f32 %v6257_v42, %v6258_v31  ;;  %v6266_v32 = vmax.f32 %v6264_v50, %v6265_v16 }
 0x3c0   : > { %v6242_v26 = vmax.f32 %v6240_v21, %v6241_v44  ;;  %v6712_v9 = vsel %vm6614_vm5, %v6228_v29, -inf  ;;  %v6272_v6 = vrot.slane %v6271_v51, 4  ;;  %v6715_v25 = vsel %vm6614_vm5, %v6235_v18, -inf }
 0x3c1   : > { %v6249_v41 = vmax.f32 %v6247_v59, %v6248_v46  ;;  %v6713_v1 = vmax.f32 %v14832_v60, %v6712_v9  ;;  %v6254_v52 = vmax.f32 %v6252_v30, %v6253_v7  ;;  %v6716_v61 = vmax.f32 %v6714_v24, %v6715_v25 }
 0x3c2   : > { %v6718_v28 = vsel %vm6614_vm5, %v6242_v26, -inf  ;;  %v6260_v40 = vrot.slane %v6259_v58, 2  ;;  %v6267_v13 = vrot.slane %v6266_v32, 2  ;;  %v6273_v38 = vmax.f32 %v6271_v51, %v6272_v6 }
 0x3c3   : > { %v6719_v33 = vmax.f32 %v14837_v15, %v6718_v28  ;;  %v6721_v22 = vsel %vm6614_vm5, %v6249_v41, -inf  ;;  %v6255_v23 = vrot.slane %v6254_v52, 1  ;;  %v6929_v55 = vsel %vm6894_vm7, %v6716_v61, %v6713_v1 }
 0x3c4   : > { %v6722_v54 = vmax.f32 %v14845_v17, %v6721_v22  ;;  %v6261_v56 = vmax.f32 %v6259_v58, %v6260_v40  ;;  %v6268_v60 = vmax.f32 %v6266_v32, %v6267_v13  ;;  %v6274_v24 = vrot.slane %v6273_v38, 2 }
 0x3c5   : > { %v6930_v0 = vsel %vm6896_vm8, %v6719_v33, %v6929_v55  ;;  %v6256_v21 = vmax.f32 %v6254_v52, %v6255_v23  ;;  %v5402_v42 = vcombine.high %v5002_v34, %v5002_v34  ;;  %v5409_v15 = vrot.slane %v5002_v34, %v14307_v19 }
 0x3c6   : > { %v6262_v50 = vrot.slane %v6261_v56, 1  ;;  %v6269_v48 = vrot.slane %v6268_v60, 1  ;;  %v6931_v59 = vsel %vm6898_vm9, %v6722_v54, %v6930_v0  ;;  %v6275_v30 = vmax.f32 %v6273_v38, %v6274_v24 }
 0x3c7   : > { %v6724_v31 = vsel %vm6614_vm5, %v6256_v21, -inf  ;;  %v5416_v17 = vrot.slane %v5402_v42, %v14307_v19  ;;  %v5385_v29 = vcombine.high %v14849_v62, %v14849_v62  ;;  %v5417_v18 = vcombine.high %v5409_v15, %v5409_v15 }
 0x3c8   : > { %v6263_v44 = vmax.f32 %v6261_v56, %v6262_v50  ;;  %v6270_v16 = vmax.f32 %v6268_v60, %v6269_v48  ;;  %v6725_v51 = vmax.f32 %v14742_v36, %v6724_v31  ;;  %v6276_v46 = vrot.slane %v6275_v30, 1 }
 0x3c9   : > { %v5418_v7 = vcombine.high %v5416_v17, %v5416_v17  ;;  %v6306_v58 = vsel %vm5717_vm6, %v5409_v15, -inf  ;;  %v6320_v26 = vsel %vm5717_vm6, %v5416_v17, -inf  ;;  %v6313_v36 = vsel %vm5717_vm6, %v5417_v18, -inf }
 0x3ca   : > { %v6727_v34 = vsel %vm6614_vm5, %v6263_v44, -inf  ;;  %v6730_v9 = vsel %vm6614_vm5, %v6270_v16, -inf  ;;  %v6932_v32 = vsel %vm6900_vm10, %v6725_v51, %v6931_v59  ;;  %v6307_v6 = vrot.slane %v6306_v58, 4 }
 0x3cb   : > { %v6277_v41 = vmax.f32 %v6275_v30, %v6276_v46  ;;  %v6728_v1 = vmax.f32 %v14746_v2, %v6727_v34  ;;  %v6731_v25 = vmax.f32 %v14762_v39, %v6730_v9  ;;  %v6314_v61 = vrot.slane %v6313_v36, 4 }
 0x3cc   : > { %v6308_v52 = vmax.f32 %v6306_v58, %v6307_v6  ;;  %v6321_v28 = vrot.slane %v6320_v26, 4  ;;  %v6327_v40 = vsel %vm5717_vm6, %v5418_v7, -inf  ;;  %v5392_v23 = vrot.slane %v14849_v62, %v14307_v19  ;;  %v6977_v6 = vld [vmem:[#allocation3 + $0x20] sm:$0xff] }
 0x3cd   : > { %v6733_v13 = vsel %vm6614_vm5, %v6277_v41, -inf  ;;  %v6933_v33 = vsel %vm6902_vm11, %v6728_v1, %v6932_v32  ;;  %v6328_v22 = vrot.slane %v6327_v40, 4  ;;  %v6315_v54 = vmax.f32 %v6313_v36, %v6314_v61 }
 0x3ce   : > { %v6734_v38 = vmax.f32 %v14805_v8, %v6733_v13  ;;  %v6934_v2 = vsel %vm6904_vm12, %v6731_v25, %v6933_v33  ;;  %v6309_v39 = vrot.slane %v6308_v52, 2  ;;  %v6322_v55 = vmax.f32 %v6320_v26, %v6321_v28  ;;  %v14896_v13 = vld [vmem:[#allocation3 + $0x28] sm:$0xff] }
 0x3cf   : > { %v6329_v56 = vmax.f32 %v6327_v40, %v6328_v22  ;;  %v5399_v60 = vrot.slane %v5385_v29, %v14307_v19  ;;  %v5400_v0 = vcombine.high %v5392_v23, %v5392_v23  ;;  %v6316_v42 = vrot.slane %v6315_v54, 2 }
 0x3d0   : > { %v6935_v21 = vsel %vm6906_vm13, %v6734_v38, %v6934_v2  ;;  %v6310_v24 = vmax.f32 %v6308_v52, %v6309_v39  ;;  %v6278_v50 = vsel %vm5717_vm6, %v5392_v23, -inf  ;;  %v6323_v62 = vrot.slane %v6322_v55, 2 }
 0x3d1   : > { %6969 = vst.msk [vmem:[#allocation3 + $0x51] sm:$0xff] %vm6614_vm5, %v6935_v21  ;;  %v6330_v48 = vrot.slane %v6329_v56, 2  ;;  %v5401_v8 = vcombine.high %v5399_v60, %v5399_v60  ;;  %v6279_v59 = vrot.slane %v6278_v50, 4  ;;  %v6317_v30 = vmax.f32 %v6315_v54, %v6316_v42 }
 0x3d2   : > { %v6311_v15 = vrot.slane %v6310_v24, 1  ;;  %v6285_v31 = vsel %vm5717_vm6, %v5400_v0, -inf  ;;  %v6292_v17 = vsel %vm5717_vm6, %v5399_v60, -inf  ;;  %v6324_v29 = vmax.f32 %v6322_v55, %v6323_v62 }
 0x3d3   : > { %v6331_v44 = vmax.f32 %v6329_v56, %v6330_v48  ;;  %v6280_v16 = vmax.f32 %v6278_v50, %v6279_v59  ;;  %v6286_v51 = vrot.slane %v6285_v31, 4  ;;  %v6318_v46 = vrot.slane %v6317_v30, 1  ;;  %v6979_v59 = vld [vmem:[#allocation3 + $0x30] sm:$0xff] }
 0x3d4   : > { %v6312_v18 = vmax.f32 %v6310_v24, %v6311_v15  ;;  %v6293_v7 = vrot.slane %v6292_v17, 4  ;;  %v6299_v58 = vsel %vm5717_vm6, %v5401_v8, -inf  ;;  %v6325_v26 = vrot.slane %v6324_v29, 1 }
 0x3d5   : > { %v6332_v34 = vrot.slane %v6331_v44, 1  ;;  %v6281_v9 = vrot.slane %v6280_v16, 2  ;;  %v6287_v32 = vmax.f32 %v6285_v31, %v6286_v51  ;;  %v6319_v41 = vmax.f32 %v6317_v30, %v6318_v46 }
 0x3d6   : > { %v14894_v1 = vsel %vm6614_vm5, %v6312_v18, -inf  ;;  %v6294_v25 = vmax.f32 %v6292_v17, %v6293_v7  ;;  %v6300_v36 = vrot.slane %v6299_v58, 4  ;;  %v6326_v52 = vmax.f32 %v6324_v29, %v6325_v26 }
 0x3d7   : > { %v6333_v61 = vmax.f32 %v6331_v44, %v6332_v34  ;;  %v6282_v28 = vmax.f32 %v6280_v16, %v6281_v9  ;;  %v6288_v40 = vrot.slane %v6287_v32, 2  ;;  %v14899_v33 = vsel %vm6614_vm5, %v6319_v41, -inf }
 0x3d8   : > { %v6295_v22 = vrot.slane %v6294_v25, 2  ;;  %v6301_v23 = vmax.f32 %v6299_v58, %v6300_v36  ;;  %v7031_v38 = vrot.slane %v6977_v6, 1  ;;  %v14902_v2 = vsel %vm6614_vm5, %v6326_v52, -inf }
 0x3d9   : > { %v14905_v39 = vsel %vm6614_vm5, %v6333_v61, -inf  ;;  %v6283_v54 = vrot.slane %v6282_v28, 1  ;;  %v6289_v55 = vmax.f32 %v6287_v32, %v6288_v40  ;;  %v7033_v21 = vrot.slane %v14896_v13, 1 }
 0x3da   : > { %v6296_v56 = vmax.f32 %v6294_v25, %v6295_v22  ;;  %v6302_v60 = vrot.slane %v6301_v23, 2  ;;  %v7032_v0 = vsel %vm430_vm3, %v7029_v49, %v7031_v38  ;;  %v4932_v50 = vadd.f32 %v14593_v37, %v14281_v5 }
 0x3db   : > { %v6284_v24 = vmax.f32 %v6282_v28, %v6283_v54  ;;  %v6290_v42 = vrot.slane %v6289_v55, 1  ;;  %11533 = vmatmul.mubr.msk.f32.gmra.mrb[114].mxu1 %vm6614_vm5, %v7032_v0  ;;  %v4933_v62 = vadd.f32 %v14600_v12, %v14283_v3  ;;  %v7034_v45 = vsel %vm430_vm3, %v7031_v38, %v7033_v21 }
 0x3dc   : > { %v6297_v48 = vrot.slane %v6296_v56, 1  ;;  %v6303_v8 = vmax.f32 %v6301_v23, %v6302_v60  ;;  %v12029_v49 = vadd.f32 %v14608_v43, %v14025_v27  ;;  %11535 = vmatprep.mubr.msk.f32.mxu1 %vm6614_vm5, %v7034_v45  ;;  %v4971_v5 = vadd.f32 %v14648_v14, %v4932_v50 }
 0x3dd   : > { %v6291_v15 = vmax.f32 %v6289_v55, %v6290_v42  ;;  %v14922_v30 = vsel %vm6614_vm5, %v6284_v24, -inf  ;;  %v4972_v3 = vadd.f32 %v14648_v14, %v4933_v62  ;;  %v12030_v17 = vadd.f32 %v14622_v47, %v14028_v53 }
 0x3de   : > { %v6298_v37 = vmax.f32 %v6296_v56, %v6297_v48  ;;  %v6304_v12 = vrot.slane %v6303_v8, 1  ;;  %v4974_v31 = vadd.f32 %v14648_v14, %v12029_v49  ;;  %v5003_v43 = vmax.f32 %v4971_v5, 0.0 }
 0x3df   : > { %v14931_v27 = vsel %vm6614_vm5, %v6291_v15, -inf  ;;  %v5004_v29 = vmax.f32 %v4972_v3, 0.0  ;;  %v14933_v44 = vrot.slane %v6979_v59, 1  ;;  %v4973_v46 = vadd.f32 %v14648_v14, %v12030_v17 }
 0x3e0   : > { %v6305_v16 = vmax.f32 %v6303_v8, %v6304_v12  ;;  %v14936_v51 = vsel %vm6614_vm5, %v6298_v37, -inf  ;;  %v5006_v18 = vmax.f32 %v4974_v31, 0.0  ;;  %v5419_v7 = vcombine.high %v5003_v43, %v5003_v43 }
 0x3e1   : > { %v5426_v58 = vrot.slane %v5003_v43, %v14307_v19  ;;  %v5436_v26 = vcombine.high %v5004_v29, %v5004_v29  ;;  %v5443_v53 = vrot.slane %v5004_v29, %v14307_v19  ;;  %v14947_v32 = vmax.f32 %v4973_v46, 0.0 }
 0x3e2   : > { %v14942_v47 = vsel %vm6614_vm5, %v6305_v16, -inf  ;;  %v5470_v34 = vcombine.high %v5006_v18, %v5006_v18  ;;  %v14945_v9 = vrot.slane %v5006_v18, %v14307_v19  ;;  %v5433_v6 = vrot.slane %v5419_v7, %v14307_v19 }
 0x3e3   : > { %v5434_v41 = vcombine.high %v5426_v58, %v5426_v58  ;;  %v6334_v14 = vsel %vm5717_vm6, %v5426_v58, -inf  ;;  %v5450_v25 = vrot.slane %v5436_v26, %v14307_v19  ;;  %v5451_v52 = vcombine.high %v5443_v53, %v5443_v53 }
 0x3e4   : > { %v6335_v36 = vrot.slane %v6334_v14, 4  ;;  %v6362_v61 = vsel %vm5717_vm6, %v5443_v53, -inf  ;;  %v14954_v28 = vrot.slane %v5470_v34, %v14307_v19  ;;  %v5435_v40 = vcombine.high %v5433_v6, %v5433_v6 }
 0x3e5   : > { %v6341_v22 = vsel %vm5717_vm6, %v5434_v41, -inf  ;;  %v6348_v23 = vsel %vm5717_vm6, %v5433_v6, -inf  ;;  %v5452_v38 = vcombine.high %v5450_v25, %v5450_v25  ;;  %v6363_v60 = vrot.slane %v6362_v61, 4 }
 0x3e6   : > { %v6336_v54 = vmax.f32 %v6334_v14, %v6335_v36  ;;  %v6342_v55 = vrot.slane %v6341_v22, 4  ;;  %v6349_v56 = vrot.slane %v6348_v23, 4  ;;  %v6355_v0 = vsel %vm5717_vm6, %v5435_v40, -inf }
 0x3e7   : > { %v6369_v24 = vsel %vm5717_vm6, %v5451_v52, -inf  ;;  %v6376_v42 = vsel %vm5717_vm6, %v5450_v25, -inf  ;;  %v6383_v50 = vsel %vm5717_vm6, %v5452_v38, -inf  ;;  %v6356_v45 = vrot.slane %v6355_v0, 4 }
 0x3e8   : > { %v6337_v62 = vrot.slane %v6336_v54, 2  ;;  %v6343_v48 = vmax.f32 %v6341_v22, %v6342_v55  ;;  %v6350_v8 = vmax.f32 %v6348_v23, %v6349_v56  ;;  %v6364_v49 = vmax.f32 %v6362_v61, %v6363_v60 }
 0x3e9   : > { %v6370_v59 = vrot.slane %v6369_v24, 4  ;;  %v6377_v15 = vrot.slane %v6376_v42, 4  ;;  %v6384_v5 = vrot.slane %v6383_v50, 4  ;;  %v6357_v31 = vmax.f32 %v6355_v0, %v6356_v45 }
 0x3ea   : > { %v6338_v3 = vmax.f32 %v6336_v54, %v6337_v62  ;;  %v6344_v37 = vrot.slane %v6343_v48, 2  ;;  %v6351_v12 = vrot.slane %v6350_v8, 2  ;;  %v6365_v17 = vrot.slane %v6364_v49, 2 }
 0x3eb   : > { %v6371_v43 = vmax.f32 %v6369_v24, %v6370_v59  ;;  %v6378_v29 = vmax.f32 %v6376_v42, %v6377_v15  ;;  %v6385_v16 = vmax.f32 %v6383_v50, %v6384_v5  ;;  %v6358_v58 = vrot.slane %v6357_v31, 2 }
 0x3ec   : > { %v6339_v18 = vrot.slane %v6338_v3, 1  ;;  %v6345_v46 = vmax.f32 %v6343_v48, %v6344_v37  ;;  %v6352_v7 = vmax.f32 %v6350_v8, %v6351_v12  ;;  %v6366_v26 = vmax.f32 %v6364_v49, %v6365_v17 }
 0x3ed   : > { %v6372_v53 = vrot.slane %v6371_v43, 2  ;;  %v6379_v34 = vrot.slane %v6378_v29, 2  ;;  %v6386_v6 = vrot.slane %v6385_v16, 2  ;;  %v6359_v36 = vmax.f32 %v6357_v31, %v6358_v58 }
 0x3ee   : > { %v6340_v41 = vmax.f32 %v6338_v3, %v6339_v18  ;;  %v6346_v14 = vrot.slane %v6345_v46, 1  ;;  %v6353_v25 = vrot.slane %v6352_v7, 1  ;;  %v6367_v52 = vrot.slane %v6366_v26, 1 }
 0x3ef   : > { %v6373_v61 = vmax.f32 %v6371_v43, %v6372_v53  ;;  %v6380_v40 = vmax.f32 %v6378_v29, %v6379_v34  ;;  %v6387_v22 = vmax.f32 %v6385_v16, %v6386_v6  ;;  %v6360_v54 = vrot.slane %v6359_v36, 1 }
 0x3f0   : > { %v6347_v23 = vmax.f32 %v6345_v46, %v6346_v14  ;;  %v6354_v38 = vmax.f32 %v6352_v7, %v6353_v25  ;;  %v6736_v55 = vsel %vm6614_vm5, %v6340_v41, -inf  ;;  %v6368_v60 = vmax.f32 %v6366_v26, %v6367_v52 }
 0x3f1   : > { %v6737_v56 = vmax.f32 %v14922_v30, %v6736_v55  ;;  %v6374_v0 = vrot.slane %v6373_v61, 1  ;;  %v6381_v24 = vrot.slane %v6380_v40, 1  ;;  %v6361_v42 = vmax.f32 %v6359_v36, %v6360_v54 }
 0x3f2   : > { %v6739_v50 = vsel %vm6614_vm5, %v6347_v23, -inf  ;;  %v6742_v62 = vsel %vm6614_vm5, %v6354_v38, -inf  ;;  %v6388_v48 = vrot.slane %v6387_v22, 1  ;;  %v6748_v30 = vsel %vm6614_vm5, %v6368_v60, -inf }
 0x3f3   : > { %v6740_v8 = vmax.f32 %v14931_v27, %v6739_v50  ;;  %v6743_v45 = vmax.f32 %v14936_v51, %v6742_v62  ;;  %v6375_v49 = vmax.f32 %v6373_v61, %v6374_v0  ;;  %v6382_v59 = vmax.f32 %v6380_v40, %v6381_v24 }
 0x3f4   : > { %v6745_v15 = vsel %vm6614_vm5, %v6361_v42, -inf  ;;  %v6389_v5 = vmax.f32 %v6387_v22, %v6388_v48  ;;  %v5485_v3 = vcombine.high %v14945_v9, %v14945_v9  ;;  %v6749_v31 = vmax.f32 %v14894_v1, %v6748_v30 }
 0x3f5   : > { %v6746_v37 = vmax.f32 %v14942_v47, %v6745_v15  ;;  %v6936_v12 = vsel %vm6894_vm7, %v6740_v8, %v6737_v56  ;;  %v6751_v27 = vsel %vm6614_vm5, %v6375_v49, -inf  ;;  %v6754_v43 = vsel %vm6614_vm5, %v6382_v59, -inf }
 0x3f6   : > { %v6937_v51 = vsel %vm6896_vm8, %v6743_v45, %v6936_v12  ;;  %v6752_v17 = vmax.f32 %v14899_v33, %v6751_v27  ;;  %v6757_v29 = vsel %vm6614_vm5, %v6389_v5, -inf  ;;  %v6755_v16 = vmax.f32 %v14902_v2, %v6754_v43 }
 0x3f7   : > { %v6758_v18 = vmax.f32 %v14905_v39, %v6757_v29  ;;  %v6938_v47 = vsel %vm6898_vm9, %v6746_v37, %v6937_v51  ;;  %v5486_v46 = vcombine.high %v14954_v28, %v14954_v28  ;;  %v6418_v7 = vsel %vm5717_vm6, %v14945_v9, -inf }
 0x3f8   : > { %v6939_v1 = vsel %vm6900_vm10, %v6749_v31, %v6938_v47  ;;  %v6425_v33 = vsel %vm5717_vm6, %v5485_v3, -inf  ;;  %v6432_v58 = vsel %vm5717_vm6, %v14954_v28, -inf  ;;  %v6419_v2 = vrot.slane %v6418_v7, 4 }
 0x3f9   : > { %v6940_v26 = vsel %vm6902_vm11, %v6752_v17, %v6939_v1  ;;  %v6426_v53 = vrot.slane %v6425_v33, 4  ;;  %v6433_v39 = vrot.slane %v6432_v58, 4  ;;  %v6439_v6 = vsel %vm5717_vm6, %v5486_v46, -inf  ;;  %v15005_v46 = vld [vmem:[#allocation3 + $0x38] sm:$0xff] }
 0x3fa   : > { %v6941_v34 = vsel %vm6904_vm12, %v6755_v16, %v6940_v26  ;;  %v5453_v41 = vcombine.high %v14947_v32, %v14947_v32  ;;  %v5460_v9 = vrot.slane %v14947_v32, %v14307_v19  ;;  %v6420_v25 = vmax.f32 %v6418_v7, %v6419_v2 }
 0x3fb   : > { %v6942_v14 = vsel %vm6906_vm13, %v6758_v18, %v6941_v34  ;;  %v6427_v36 = vmax.f32 %v6425_v33, %v6426_v53  ;;  %v6434_v28 = vmax.f32 %v6432_v58, %v6433_v39  ;;  %v6440_v52 = vrot.slane %v6439_v6, 4 }
 0x3fc   : > { %6970 = vst.msk [vmem:[#allocation3 + $0x61] sm:$0xff] %vm6614_vm5, %v6942_v14  ;;  %v5467_v61 = vrot.slane %v5453_v41, %v14307_v19  ;;  %v5468_v40 = vcombine.high %v5460_v9, %v5460_v9  ;;  %v6390_v22 = vsel %vm5717_vm6, %v5460_v9, -inf  ;;  %v6421_v23 = vrot.slane %v6420_v25, 2 }
 0x3fd   : > { %v6428_v38 = vrot.slane %v6427_v36, 2  ;;  %v6435_v54 = vrot.slane %v6434_v28, 2  ;;  %v6391_v55 = vrot.slane %v6390_v22, 4  ;;  %v6441_v56 = vmax.f32 %v6439_v6, %v6440_v52  ;;  %v15027_v52 = vld [vmem:[#allocation3 + $0x40] sm:$0xff] }
 0x3fe   : > { %v5469_v60 = vcombine.high %v5467_v61, %v5467_v61  ;;  %v6397_v32 = vsel %vm5717_vm6, %v5468_v40, -inf  ;;  %v6404_v0 = vsel %vm5717_vm6, %v5467_v61, -inf  ;;  %v6422_v24 = vmax.f32 %v6420_v25, %v6421_v23 }
 0x3ff   : > { %v6429_v42 = vmax.f32 %v6427_v36, %v6428_v38  ;;  %v6436_v50 = vmax.f32 %v6434_v28, %v6435_v54  ;;  %v6392_v62 = vmax.f32 %v6390_v22, %v6391_v55  ;;  %v6442_v48 = vrot.slane %v6441_v56, 2  ;;  %v16441_v54 = vld [vmem:[#allocation22_spill] sm:$0xff] }
 0x400   : > { %v6398_v8 = vrot.slane %v6397_v32, 4  ;;  %v6405_v45 = vrot.slane %v6404_v0, 4  ;;  %v6411_v49 = vsel %vm5717_vm6, %v5469_v60, -inf  ;;  %v6423_v59 = vrot.slane %v6422_v24, 1 }
 0x401   : > { %v6430_v15 = vrot.slane %v6429_v42, 1  ;;  %v6437_v5 = vrot.slane %v6436_v50, 1  ;;  %v6393_v30 = vrot.slane %v6392_v62, 2  ;;  %v6443_v3 = vmax.f32 %v6441_v56, %v6442_v48 }
 0x402   : > { %v6399_v37 = vmax.f32 %v6397_v32, %v6398_v8  ;;  %v6406_v12 = vmax.f32 %v6404_v0, %v6405_v45  ;;  %v6412_v31 = vrot.slane %v6411_v49, 4  ;;  %v6424_v27 = vmax.f32 %v6422_v24, %v6423_v59  ;;  %v16442_v32 = vld [vmem:[#allocation8_spill] sm:$0xff] }
 0x403   : > { %v6431_v51 = vmax.f32 %v6429_v42, %v6430_v15  ;;  %v6438_v17 = vmax.f32 %v6436_v50, %v6437_v5  ;;  %v6394_v43 = vmax.f32 %v6392_v62, %v6393_v30  ;;  %v6444_v29 = vrot.slane %v6443_v3, 1  ;;  %v15054_v42 = vld [vmem:[#allocation3 + $0x48] sm:$0xff] }
 0x404   : > { %v6400_v16 = vrot.slane %v6399_v37, 2  ;;  %v6407_v18 = vrot.slane %v6406_v12, 2  ;;  %v6413_v47 = vmax.f32 %v6411_v49, %v6412_v31  ;;  %v15008_v1 = vsel %vm6614_vm5, %v6424_v27, -inf }
 0x405   : > { %v15011_v7 = vsel %vm6614_vm5, %v6431_v51, -inf  ;;  %v15014_v33 = vsel %vm6614_vm5, %v6438_v17, -inf  ;;  %v6395_v58 = vrot.slane %v6394_v43, 1  ;;  %v6445_v26 = vmax.f32 %v6443_v3, %v6444_v29 }
 0x406   : > { %v6401_v2 = vmax.f32 %v6399_v37, %v6400_v16  ;;  %v6408_v53 = vmax.f32 %v6406_v12, %v6407_v18  ;;  %v6414_v39 = vrot.slane %v6413_v47, 2  ;;  %v7036_v6 = vsel %vm430_vm3, %v7033_v21, %v14933_v44  ;;  %v16440_v21 = vld [vmem:[#allocation10_spill] sm:$0xff] }
 0x407   : > { %v6396_v34 = vmax.f32 %v6394_v43, %v6395_v58  ;;  %v7037_v41 = vrot.slane %v15005_v46, 1  ;;  %v4936_v9 = vadd.f32 %v14695_v11, %v14285_v20  ;;  %v15024_v14 = vsel %vm6614_vm5, %v6445_v26, -inf  ;;  %11536 = vmatmul.mubr.msk.f32.gmra.mrb[116].mxu1 %vm6614_vm5, %v7036_v6  ;;  %v15039_v20 = vld [vmem:[%s16095_s2] ss:$0 sm:$0xff] }
 0x408   : > { %v6402_v25 = vrot.slane %v6401_v2, 1  ;;  %v6409_v36 = vrot.slane %v6408_v53, 1  ;;  %v6415_v28 = vmax.f32 %v6413_v47, %v6414_v39  ;;  %v4937_v40 = vadd.f32 %v14710_v57, %v16440_v21 }
 0x409   : > { %v15030_v61 = vsel %vm6614_vm5, %v6396_v34, -inf  ;;  %v15034_v13 = vsel %vm430_vm3, %v14933_v44, %v7037_v41  ;;  %v4975_v11 = vadd.f32 %v15039_v20, %v4936_v9  ;;  %v12031_v55 = vadd.f32 %v14720_v63, %v16441_v54 }
 0x40a   : > { %v6403_v22 = vmax.f32 %v6401_v2, %v6402_v25  ;;  %v6410_v23 = vmax.f32 %v6408_v53, %v6409_v36  ;;  %v6416_v38 = vrot.slane %v6415_v28, 1  ;;  %11538 = vmatprep.mubr.msk.f32.mxu1 %vm6614_vm5, %v15034_v13  ;;  %v4976_v60 = vadd.f32 %v15039_v20, %v4937_v40 }
 0x40b   : > { %v5007_v56 = vmax.f32 %v4975_v11, 0.0  ;;  %v12032_v0 = vadd.f32 %v14729_v35, %v16442_v32  ;;  %v15052_v24 = vrot.slane %v15027_v52, 1  ;;  %v4978_v63 = vadd.f32 %v15039_v20, %v12031_v55 }
 0x40c   : > { %v6417_v57 = vmax.f32 %v6415_v28, %v6416_v38  ;;  %v15057_v50 = vsel %vm6614_vm5, %v6403_v22, -inf  ;;  %v15060_v62 = vsel %vm6614_vm5, %v6410_v23, -inf  ;;  %v5008_v45 = vmax.f32 %v4976_v60, 0.0 }
 0x40d   : > { %v5487_v48 = vcombine.high %v5007_v56, %v5007_v56  ;;  %v5494_v8 = vrot.slane %v5007_v56, %v14307_v19  ;;  %v15065_v35 = vadd.f32 %v15039_v20, %v12032_v0  ;;  %v15070_v59 = vmax.f32 %v4978_v63, 0.0 }
 0x40e   : > { %v15068_v49 = vsel %vm6614_vm5, %v6417_v57, -inf  ;;  %v15074_v15 = vsel %vm430_vm3, %v7037_v41, %v15052_v24  ;;  %v7041_v5 = vrot.slane %v15054_v42, 1  ;;  %v5504_v12 = vcombine.high %v5008_v45, %v5008_v45 }
 0x40f   : > { %v5501_v30 = vrot.slane %v5487_v48, %v14307_v19  ;;  %v5502_v3 = vcombine.high %v5494_v8, %v5494_v8  ;;  %v6446_v37 = vsel %vm5717_vm6, %v5494_v8, -inf  ;;  %11539 = vmatmul.mubr.msk.f32.gmra.mrb[118].mxu1 %vm6614_vm5, %v15074_v15  ;;  %v5511_v27 = vrot.slane %v5008_v45, %v14307_v19 }
 0x410   : > { %v6447_v31 = vrot.slane %v6446_v37, 4  ;;  %v5538_v51 = vcombine.high %v15070_v59, %v15070_v59  ;;  %v15086_v17 = vrot.slane %v15070_v59, %v14307_v19  ;;  %v5518_v18 = vrot.slane %v5504_v12, %v14307_v19 }
 0x411   : > { %v5503_v43 = vcombine.high %v5501_v30, %v5501_v30  ;;  %v6453_v29 = vsel %vm5717_vm6, %v5502_v3, -inf  ;;  %v6460_v16 = vsel %vm5717_vm6, %v5501_v30, -inf  ;;  %v5519_v2 = vcombine.high %v5511_v27, %v5511_v27 }
 0x412   : > { %v6448_v47 = vmax.f32 %v6446_v37, %v6447_v31  ;;  %v6454_v58 = vrot.slane %v6453_v29, 4  ;;  %v6461_v26 = vrot.slane %v6460_v16, 4  ;;  %v5520_v39 = vcombine.high %v5518_v18, %v5518_v18 }
 0x413   : > { %v6467_v53 = vsel %vm5717_vm6, %v5503_v43, -inf  ;;  %v6474_v34 = vsel %vm5717_vm6, %v5511_v27, -inf  ;;  %v6488_v6 = vsel %vm5717_vm6, %v5518_v18, -inf  ;;  %v6481_v11 = vsel %vm5717_vm6, %v5519_v2, -inf }
 0x414   : > { %v6449_v41 = vrot.slane %v6448_v47, 2  ;;  %v6455_v9 = vmax.f32 %v6453_v29, %v6454_v58  ;;  %v6462_v25 = vmax.f32 %v6460_v16, %v6461_v26  ;;  %v6468_v36 = vrot.slane %v6467_v53, 4 }
 0x415   : > { %v6475_v28 = vrot.slane %v6474_v34, 4  ;;  %v6489_v21 = vrot.slane %v6488_v6, 4  ;;  %v6495_v40 = vsel %vm5717_vm6, %v5520_v39, -inf  ;;  %v6482_v56 = vrot.slane %v6481_v11, 4 }
 0x416   : > { %v6450_v22 = vmax.f32 %v6448_v47, %v6449_v41  ;;  %v6456_v23 = vrot.slane %v6455_v9, 2  ;;  %v6463_v38 = vrot.slane %v6462_v25, 2  ;;  %v6469_v54 = vmax.f32 %v6467_v53, %v6468_v36 }
 0x417   : > { %v6476_v55 = vmax.f32 %v6474_v34, %v6475_v28  ;;  %v6490_v60 = vmax.f32 %v6488_v6, %v6489_v21  ;;  %v6496_v32 = vrot.slane %v6495_v40, 4  ;;  %v6483_v45 = vmax.f32 %v6481_v11, %v6482_v56 }
 0x418   : > { %v6451_v0 = vrot.slane %v6450_v22, 1  ;;  %v6457_v57 = vmax.f32 %v6455_v9, %v6456_v23  ;;  %v6464_v63 = vmax.f32 %v6462_v25, %v6463_v38  ;;  %v6470_v48 = vrot.slane %v6469_v54, 2 }
 0x419   : > { %v6477_v8 = vrot.slane %v6476_v55, 2  ;;  %v6491_v30 = vrot.slane %v6490_v60, 2  ;;  %v6497_v3 = vmax.f32 %v6495_v40, %v6496_v32  ;;  %v6484_v29 = vrot.slane %v6483_v45, 2 }
 0x41a   : > { %v6452_v37 = vmax.f32 %v6450_v22, %v6451_v0  ;;  %v6458_v12 = vrot.slane %v6457_v57, 1  ;;  %v6465_v31 = vrot.slane %v6464_v63, 1  ;;  %v6471_v27 = vmax.f32 %v6469_v54, %v6470_v48 }
 0x41b   : > { %v6478_v43 = vmax.f32 %v6476_v55, %v6477_v8  ;;  %v6492_v16 = vmax.f32 %v6490_v60, %v6491_v30  ;;  %v6498_v18 = vrot.slane %v6497_v3, 2  ;;  %v6485_v34 = vmax.f32 %v6483_v45, %v6484_v29 }
 0x41c   : > { %v6459_v47 = vmax.f32 %v6457_v57, %v6458_v12  ;;  %v6466_v58 = vmax.f32 %v6464_v63, %v6465_v31  ;;  %v6472_v26 = vrot.slane %v6471_v27, 1  ;;  %v6760_v2 = vsel %vm6614_vm5, %v6452_v37, -inf }
 0x41d   : > { %v6761_v53 = vmax.f32 %v15030_v61, %v6760_v2  ;;  %v6479_v39 = vrot.slane %v6478_v43, 1  ;;  %v6493_v6 = vrot.slane %v6492_v16, 1  ;;  %v6499_v36 = vmax.f32 %v6497_v3, %v6498_v18  ;;  %v16443_v2 = vld [vmem:[#allocation17_spill] sm:$0xff] }
 0x41e   : > { %v6473_v41 = vmax.f32 %v6471_v27, %v6472_v26  ;;  %v6763_v9 = vsel %vm6614_vm5, %v6459_v47, -inf  ;;  %v6766_v25 = vsel %vm6614_vm5, %v6466_v58, -inf  ;;  %v6486_v40 = vrot.slane %v6485_v34, 1 }
 0x41f   : > { %v6764_v28 = vmax.f32 %v15057_v50, %v6763_v9  ;;  %v6767_v11 = vmax.f32 %v15060_v62, %v6766_v25  ;;  %v6480_v21 = vmax.f32 %v6478_v43, %v6479_v39  ;;  %v6494_v23 = vmax.f32 %v6492_v16, %v6493_v6 }
 0x420   : > { %v6769_v22 = vsel %vm6614_vm5, %v6473_v41, -inf  ;;  %v6500_v38 = vrot.slane %v6499_v36, 1  ;;  %v5552_v61 = vrot.slane %v5538_v51, %v14307_v19  ;;  %v6487_v56 = vmax.f32 %v6485_v34, %v6486_v40  ;;  %v16444_v41 = vld [vmem:[#allocation16_spill] sm:$0xff] }
 0x421   : > { %v6770_v54 = vmax.f32 %v15068_v49, %v6769_v22  ;;  %v6943_v55 = vsel %vm6894_vm7, %v6764_v28, %v6761_v53  ;;  %v6772_v50 = vsel %vm6614_vm5, %v6480_v21, -inf  ;;  %v6778_v0 = vsel %vm6614_vm5, %v6494_v23, -inf }
 0x422   : > { %v6944_v62 = vsel %vm6896_vm8, %v6767_v11, %v6943_v55  ;;  %v6501_v60 = vmax.f32 %v6499_v36, %v6500_v38  ;;  %v6773_v32 = vmax.f32 %v15008_v1, %v6772_v50  ;;  %v6775_v57 = vsel %vm6614_vm5, %v6487_v56, -inf }
 0x423   : > { %v6779_v63 = vmax.f32 %v15014_v33, %v6778_v0  ;;  %v6945_v59 = vsel %vm6898_vm9, %v6770_v54, %v6944_v62  ;;  %v5553_v49 = vcombine.high %v15086_v17, %v15086_v17  ;;  %v6776_v51 = vmax.f32 %v15011_v7, %v6775_v57 }
 0x424   : > { %v6781_v48 = vsel %vm6614_vm5, %v6501_v60, -inf  ;;  %v6946_v8 = vsel %vm6900_vm10, %v6773_v32, %v6945_v59  ;;  %v5554_v45 = vcombine.high %v5552_v61, %v5552_v61  ;;  %v6530_v30 = vsel %vm5717_vm6, %v15086_v17, -inf }
 0x425   : > { %v6782_v1 = vmax.f32 %v15024_v14, %v6781_v48  ;;  %v6537_v3 = vsel %vm5717_vm6, %v5553_v49, -inf  ;;  %v6544_v33 = vsel %vm5717_vm6, %v5552_v61, -inf  ;;  %v6947_v37 = vsel %vm6902_vm11, %v6776_v51, %v6946_v8 }
 0x426   : > { %v6531_v12 = vrot.slane %v6530_v30, 4  ;;  %v6538_v31 = vrot.slane %v6537_v3, 4  ;;  %v6545_v27 = vrot.slane %v6544_v33, 4  ;;  %v6948_v7 = vsel %vm6904_vm12, %v6779_v63, %v6947_v37 }
 0x427   : > { %v6551_v43 = vsel %vm5717_vm6, %v5554_v45, -inf  ;;  %v5009_v29 = vmax.f32 %v15065_v35, 0.0  ;;  %v15134_v14 = vsel %vm430_vm3, %v15052_v24, %v7041_v5  ;;  %v6949_v17 = vsel %vm6906_vm13, %v6782_v1, %v6948_v7  ;;  %v15150_v1 = vld [vmem:[#allocation3 + $0x50] sm:$0xff] }
 0x428   : > { %v6532_v16 = vmax.f32 %v6530_v30, %v6531_v12  ;;  %v6539_v18 = vmax.f32 %v6537_v3, %v6538_v31  ;;  %v6546_v47 = vmax.f32 %v6544_v33, %v6545_v27  ;;  %11541 = vmatprep.mubr.msk.f32.mxu1 %vm6614_vm5, %v15134_v14  ;;  %6971 = vst.msk [vmem:[#allocation3 + $0x71] sm:$0xff] %vm6614_vm5, %v6949_v17  ;;  %v6552_v58 = vrot.slane %v6551_v43, 4 }
 0x429   : > { %v5521_v26 = vcombine.high %v5009_v29, %v5009_v29  ;;  %v5528_v35 = vrot.slane %v5009_v29, %v14307_v19  ;;  %v4940_v53 = vadd.f32 %v14808_v4, %v16443_v2  ;;  %v4941_v9 = vadd.f32 %v14842_v10, %v16444_v41 }
 0x42a   : > { %v6533_v39 = vrot.slane %v6532_v16, 2  ;;  %v6540_v34 = vrot.slane %v6539_v18, 2  ;;  %v6547_v6 = vrot.slane %v6546_v47, 2  ;;  %v6553_v25 = vmax.f32 %v6551_v43, %v6552_v58 }
 0x42b   : > { %v5535_v36 = vrot.slane %v5521_v26, %v14307_v19  ;;  %v5536_v28 = vcombine.high %v5528_v35, %v5528_v35  ;;  %v6502_v11 = vsel %vm5717_vm6, %v5528_v35, -inf  ;;  %v4979_v29 = vadd.f32 %v15039_v20, %v4940_v53 }
 0x42c   : > { %v6534_v21 = vmax.f32 %v6532_v16, %v6533_v39  ;;  %v6541_v40 = vmax.f32 %v6539_v18, %v6540_v34  ;;  %v6548_v22 = vmax.f32 %v6546_v47, %v6547_v6  ;;  %v6503_v23 = vrot.slane %v6502_v11, 4  ;;  %v15164_v18 = vld [vmem:[#allocation3 + $0x58] sm:$0xff] }
 0x42d   : > { %v6554_v38 = vrot.slane %v6553_v25, 2  ;;  %v5537_v61 = vcombine.high %v5535_v36, %v5535_v36  ;;  %v6509_v4 = vsel %vm5717_vm6, %v5536_v28, -inf  ;;  %v6516_v54 = vsel %vm5717_vm6, %v5535_v36, -inf }
 0x42e   : > { %v6535_v55 = vrot.slane %v6534_v21, 1  ;;  %v6542_v56 = vrot.slane %v6541_v40, 1  ;;  %v6549_v50 = vrot.slane %v6548_v22, 1  ;;  %v6504_v10 = vmax.f32 %v6502_v11, %v6503_v23 }
 0x42f   : > { %v6555_v62 = vmax.f32 %v6553_v25, %v6554_v38  ;;  %v6510_v60 = vrot.slane %v6509_v4, 4  ;;  %v6517_v32 = vrot.slane %v6516_v54, 4  ;;  %v6523_v0 = vsel %vm5717_vm6, %v5537_v61, -inf }
 0x430   : > { %v6536_v57 = vmax.f32 %v6534_v21, %v6535_v55  ;;  %v6543_v63 = vmax.f32 %v6541_v40, %v6542_v56  ;;  %v6550_v59 = vmax.f32 %v6548_v22, %v6549_v50  ;;  %v6505_v49 = vrot.slane %v6504_v10, 2 }
 0x431   : > { %v6556_v51 = vrot.slane %v6555_v62, 1  ;;  %v6511_v48 = vmax.f32 %v6509_v4, %v6510_v60  ;;  %v6518_v8 = vmax.f32 %v6516_v54, %v6517_v32  ;;  %v6524_v45 = vrot.slane %v6523_v0, 4 }
 0x432   : > { %v15153_v30 = vsel %vm6614_vm5, %v6536_v57, -inf  ;;  %v15156_v3 = vsel %vm6614_vm5, %v6543_v63, -inf  ;;  %v15159_v33 = vsel %vm6614_vm5, %v6550_v59, -inf  ;;  %v6506_v37 = vmax.f32 %v6504_v10, %v6505_v49 }
 0x433   : > { %v6557_v12 = vmax.f32 %v6555_v62, %v6556_v51  ;;  %v6512_v31 = vrot.slane %v6511_v48, 2  ;;  %v6519_v27 = vrot.slane %v6518_v8, 2  ;;  %v6525_v7 = vmax.f32 %v6523_v0, %v6524_v45 }
 0x434   : > { %v6507_v43 = vrot.slane %v6506_v37, 1  ;;  %v4980_v17 = vadd.f32 %v15039_v20, %v4941_v9  ;;  %v7043_v16 = vrot.slane %v15150_v1, 1  ;;  %v5011_v39 = vmax.f32 %v4979_v29, 0.0 }
 0x435   : > { %v15167_v47 = vsel %vm6614_vm5, %v6557_v12, -inf  ;;  %v6513_v58 = vmax.f32 %v6511_v48, %v6512_v31  ;;  %v6520_v26 = vmax.f32 %v6518_v8, %v6519_v27  ;;  %v6526_v35 = vrot.slane %v6525_v7, 2 }
 0x436   : > { %v6508_v2 = vmax.f32 %v6506_v37, %v6507_v43  ;;  %v5012_v34 = vmax.f32 %v4980_v17, 0.0  ;;  %v15174_v53 = vsel %vm430_vm3, %v7041_v5, %v7043_v16  ;;  %v7045_v9 = vrot.slane %v15164_v18, 1 }
 0x437   : > { %v6514_v20 = vrot.slane %v6513_v58, 1  ;;  %v6521_v6 = vrot.slane %v6520_v26, 1  ;;  %v6527_v41 = vmax.f32 %v6525_v7, %v6526_v35  ;;  %11542 = vmatmul.mubr.msk.f32.gmra.mrb[120].mxu1 %vm6614_vm5, %v15174_v53  ;;  %v5555_v36 = vcombine.high %v5011_v39, %v5011_v39 }
 0x438   : > { %v15180_v25 = vsel %vm6614_vm5, %v6508_v2, -inf  ;;  %v5562_v28 = vrot.slane %v5011_v39, %v14307_v19  ;;  %v5572_v11 = vcombine.high %v5012_v34, %v5012_v34  ;;  %v5579_v5 = vrot.slane %v5012_v34, %v14307_v19 }
 0x439   : > { %v6515_v21 = vmax.f32 %v6513_v58, %v6514_v20  ;;  %v6522_v40 = vmax.f32 %v6520_v26, %v6521_v6  ;;  %v6528_v22 = vrot.slane %v6527_v41, 1  ;;  %v5569_v23 = vrot.slane %v5555_v36, %v14307_v19 }
 0x43a   : > { %v5570_v38 = vcombine.high %v5562_v28, %v5562_v28  ;;  %v6558_v61 = vsel %vm5717_vm6, %v5562_v28, -inf  ;;  %v5586_v4 = vrot.slane %v5572_v11, %v14307_v19  ;;  %v5587_v32 = vcombine.high %v5579_v5, %v5579_v5 }
 0x43b   : > { %v6529_v54 = vmax.f32 %v6527_v41, %v6528_v22  ;;  %v15188_v55 = vsel %vm6614_vm5, %v6515_v21, -inf  ;;  %v15191_v56 = vsel %vm6614_vm5, %v6522_v40, -inf  ;;  %v6559_v50 = vrot.slane %v6558_v61, 4 }
 0x43c   : > { %v5571_v10 = vcombine.high %v5569_v23, %v5569_v23  ;;  %v6565_v62 = vsel %vm5717_vm6, %v5570_v38, -inf  ;;  %v6572_v60 = vsel %vm5717_vm6, %v5569_v23, -inf  ;;  %v5588_v51 = vcombine.high %v5586_v4, %v5586_v4 }
 0x43d   : > { %v15196_v0 = vsel %vm6614_vm5, %v6529_v54, -inf  ;;  %v6560_v57 = vmax.f32 %v6558_v61, %v6559_v50  ;;  %v6566_v63 = vrot.slane %v6565_v62, 4  ;;  %v6573_v59 = vrot.slane %v6572_v60, 4 }
 0x43e   : > { %v6579_v49 = vsel %vm5717_vm6, %v5571_v10, -inf  ;;  %v6586_v48 = vsel %vm5717_vm6, %v5579_v5, -inf  ;;  %v6593_v8 = vsel %vm5717_vm6, %v5587_v32, -inf  ;;  %v6600_v43 = vsel %vm5717_vm6, %v5586_v4, -inf }
 0x43f   : > { %v6561_v45 = vrot.slane %v6560_v57, 2  ;;  %v6567_v37 = vmax.f32 %v6565_v62, %v6566_v63  ;;  %v6574_v12 = vmax.f32 %v6572_v60, %v6573_v59  ;;  %v6580_v31 = vrot.slane %v6579_v49, 4 }
 0x440   : > { %v6587_v27 = vrot.slane %v6586_v48, 4  ;;  %v6594_v7 = vrot.slane %v6593_v8, 4  ;;  %v6607_v29 = vsel %vm5717_vm6, %v5588_v51, -inf  ;;  %v6601_v34 = vrot.slane %v6600_v43, 4 }
 0x441   : > { %v6562_v17 = vmax.f32 %v6560_v57, %v6561_v45  ;;  %v6568_v58 = vrot.slane %v6567_v37, 2  ;;  %v6575_v26 = vrot.slane %v6574_v12, 2  ;;  %v6581_v35 = vmax.f32 %v6579_v49, %v6580_v31 }
 0x442   : > { %v6588_v2 = vmax.f32 %v6586_v48, %v6587_v27  ;;  %v6595_v39 = vmax.f32 %v6593_v8, %v6594_v7  ;;  %v6608_v20 = vrot.slane %v6607_v29, 4  ;;  %v6602_v40 = vmax.f32 %v6600_v43, %v6601_v34 }
 0x443   : > { %v6563_v6 = vrot.slane %v6562_v17, 1  ;;  %v6569_v41 = vmax.f32 %v6567_v37, %v6568_v58  ;;  %v6576_v36 = vmax.f32 %v6574_v12, %v6575_v26  ;;  %v6582_v28 = vrot.slane %v6581_v35, 2  ;;  %v6990_v58 = vld [vmem:[%s16096_s3] sm:$0xff] }
 0x444   : > { %v6589_v11 = vrot.slane %v6588_v2, 2  ;;  %v6596_v21 = vrot.slane %v6595_v39, 2  ;;  %v6609_v22 = vmax.f32 %v6607_v29, %v6608_v20  ;;  %v6603_v50 = vrot.slane %v6602_v40, 2 }
 0x445   : > { %v6564_v5 = vmax.f32 %v6562_v17, %v6563_v6  ;;  %v6570_v23 = vrot.slane %v6569_v41, 1  ;;  %v6577_v38 = vrot.slane %v6576_v36, 1  ;;  %v6583_v61 = vmax.f32 %v6581_v35, %v6582_v28 }
 0x446   : > { %v6590_v4 = vmax.f32 %v6588_v2, %v6589_v11  ;;  %v6597_v54 = vmax.f32 %v6595_v39, %v6596_v21  ;;  %v6610_v10 = vrot.slane %v6609_v22, 2  ;;  %v6604_v51 = vmax.f32 %v6602_v40, %v6603_v50  ;;  %v6992_v21 = vld [vmem:[%s16096_s3 + $0x10] sm:$0xff]  ;;  %v6993_v40 = vld [vmem:[%s16096_s3 + $0x18] sm:$0xff] }
 0x447   : > { %v6571_v62 = vmax.f32 %v6569_v41, %v6570_v23  ;;  %v6578_v60 = vmax.f32 %v6576_v36, %v6577_v38  ;;  %v6584_v32 = vrot.slane %v6583_v61, 1  ;;  %v6784_v57 = vsel %vm6614_vm5, %v6564_v5, -inf  ;;  %v6994_v38 = vld [vmem:[%s16096_s3 + $0x20] sm:$0xff] }
 0x448   : > { %v6785_v63 = vmax.f32 %v15180_v25, %v6784_v57  ;;  %v6591_v59 = vrot.slane %v6590_v4, 1  ;;  %v6598_v49 = vrot.slane %v6597_v54, 1  ;;  %v6611_v37 = vmax.f32 %v6609_v22, %v6610_v10  ;;  %v15244_v22 = vld [vmem:[#allocation3 + $0x70] sm:$0xff] }
 0x449   : > { %v6585_v48 = vmax.f32 %v6583_v61, %v6584_v32  ;;  %v6787_v8 = vsel %vm6614_vm5, %v6571_v62, -inf  ;;  %v6790_v45 = vsel %vm6614_vm5, %v6578_v60, -inf  ;;  %v6605_v29 = vrot.slane %v6604_v51, 1  ;;  %v6995_v61 = vld [vmem:[%s16096_s3 + $0x28] sm:$0xff] }
 0x44a   : > { %v6788_v12 = vmax.f32 %v15188_v55, %v6787_v8  ;;  %v6791_v31 = vmax.f32 %v15191_v56, %v6790_v45  ;;  %v6592_v27 = vmax.f32 %v6590_v4, %v6591_v59  ;;  %v6599_v7 = vmax.f32 %v6597_v54, %v6598_v49  ;;  %v6991_v55 = vld [vmem:[%s16096_s3 + $0x8] sm:$0xff]  ;;  %v15256_v4 = vld [vmem:[#allocation3 + $0x78] sm:$0xff]  ;;  %v6996_v49 = vld [vmem:[%s16096_s3 + $0x30] sm:$0xff] }
 0x44b   : > { %v6793_v43 = vsel %vm6614_vm5, %v6585_v48, -inf  ;;  %v6612_v17 = vrot.slane %v6611_v37, 1  ;;  %v15215_v25 = vsel %vm430_vm3, %v7043_v16, %v7045_v9  ;;  %v15223_v56 = vld [vmem:[#allocation3 + $0x60] sm:$0xff]  ;;  %v15231_v16 = vld [vmem:[#allocation3 + $0x68] sm:$0xff]  ;;  %v6606_v20 = vmax.f32 %v6604_v51, %v6605_v29  ;;  %v6997_v51 = vld [vmem:[%s16096_s3 + $0x38] sm:$0xff] }
 0x44c   : > { %v6794_v26 = vmax.f32 %v15196_v0, %v6793_v43  ;;  %v6950_v35 = vsel %vm6894_vm7, %v6788_v12, %v6785_v63  ;;  %v6796_v2 = vsel %vm6614_vm5, %v6592_v27, -inf  ;;  %v6799_v39 = vsel %vm6614_vm5, %v6599_v7, -inf  ;;  %11544 = vmatprep.mubr.msk.f32.mxu1 %vm6614_vm5, %v15215_v25  ;;  %v10014_v45 = vld [vmem:[%s16096_s3 + $0x80] sm:$0xff]  ;;  %v10016_v43 = vld [vmem:[%s16096_s3 + $0x90] sm:$0xff]  ;;  %v10017_v29 = vld [vmem:[%s16096_s3 + $0x98] sm:$0xff] }
 0x44d   : > { %v6951_v34 = vsel %vm6896_vm8, %v6791_v31, %v6950_v35  ;;  %v6613_v6 = vmax.f32 %v6611_v37, %v6612_v17  ;;  %v6797_v41 = vmax.f32 %v15153_v30, %v6796_v2  ;;  %v6800_v36 = vmax.f32 %v15156_v3, %v6799_v39  ;;  %v10015_v37 = vld [vmem:[%s16096_s3 + $0x88] sm:$0xff]  ;;  %v12191_v35 = vld [vmem:[#allocation3 + $0x8] sm:$0xff]  ;;  %v12192_v2 = vld [vmem:[#allocation3 + $0x10] sm:$0xff] }
 0x44e   : > { %v6952_v0 = vsel %vm6898_vm9, %v6794_v26, %v6951_v34  ;;  %v11889_v28 = vpack.c.bf16 %v6991_v55, %v6990_v58  ;;  %v7047_v11 = vrot.slane %v15223_v56, 1  ;;  %v6802_v5 = vsel %vm6614_vm5, %v6606_v20, -inf  ;;  %v12190_v17 = vld [vmem:[#allocation3] sm:$0xff]  ;;  %v10018_v55 = vld [vmem:[%s16096_s3 + $0xa0] sm:$0xff]  ;;  %v10020_v34 = vld [vmem:[%s16096_s3 + $0xb0] sm:$0xff] }
 0x44f   : > { %v6805_v30 = vsel %vm6614_vm5, %v6613_v6, -inf  ;;  %v6953_v3 = vsel %vm6900_vm10, %v6797_v41, %v6952_v0  ;;  %v7049_v23 = vrot.slane %v15231_v16, 1  ;;  %v6803_v54 = vmax.f32 %v15159_v33, %v6802_v5  ;;  %v10019_v26 = vld [vmem:[%s16096_s3 + $0xa8] sm:$0xff]  ;;  %v10021_v20 = vld [vmem:[%s16096_s3 + $0xb8] sm:$0xff]  ;;  %v12193_v6 = vld [vmem:[#allocation3 + $0x18] sm:$0xff] }
 0x450   : > { %v6806_v50 = vmax.f32 %v15167_v47, %v6805_v30  ;;  %v6954_v10 = vsel %vm6902_vm11, %v6800_v36, %v6953_v3  ;;  %11890 = vmatprep.subr.bf16.mxu1 %v11889_v28  ;;  %v15264_v62 = vsel %vm430_vm3, %v7045_v9, %v7047_v11  ;;  %v11893_v32 = vpack.c.bf16 %v6993_v40, %v6992_v21  ;;  %v12194_v41 = vld [vmem:[#allocation3 + $0x20] sm:$0xff]  ;;  %v10038_v0 = vld [vmem:[%s16096_s3 + $0xc0] sm:$0xff]  ;;  %v15340_v21 = vld [vmem:[#allocation3 + $0x30] sm:$0xff] }
 0x451   : > { %11892 = vmatpush3.bf16.msra.mxu1 %v11889_v28  ;;  %v15267_v60 = vsel %vm430_vm3, %v7047_v11, %v7049_v23  ;;  %v7051_v57 = vrot.slane %v15244_v22, 1  ;;  %v6955_v63 = vsel %vm6904_vm12, %v6803_v54, %v6954_v10  ;;  %v11897_v33 = vpack.c.bf16 %v6995_v61, %v6994_v38  ;;  %v10039_v28 = vld [vmem:[%s16096_s3 + $0xc8] sm:$0xff]  ;;  %v12195_v11 = vld [vmem:[#allocation3 + $0x28] sm:$0xff]  ;;  %v10041_v61 = vld [vmem:[%s16096_s3 + $0xd8] sm:$0xff] }
 0x452   : > { %11545 = vmatmul.mubr.msk.f32.gmra.mrb[122].mxu1 %vm6614_vm5, %v15264_v62  ;;  %v7053_v47 = vrot.slane %v15256_v4, 1  ;;  %v6956_v59 = vsel %vm6906_vm13, %v6806_v50, %v6955_v63  ;;  %11894 = vmatprep.subr.bf16.mxu1 %v11893_v32  ;;  %v11901_v8 = vpack.c.bf16 %v6997_v51, %v6996_v49  ;;  %v11905_v12 = vpack.c.bf16 %v10015_v37, %v10014_v45  ;;  %v10040_v38 = vld [vmem:[%s16096_s3 + $0xd0] sm:$0xff]  ;;  %v10043_v63 = vld [vmem:[%s16096_s3 + $0xe8] sm:$0xff]  ;;  %v10045_v45 = vld [vmem:[%s16096_s3 + $0xf8] sm:$0xff] }
 0x453   : > { %11547 = vmatprep.mubr.msk.f32.mxu1 %vm6614_vm5, %v15267_v60  ;;  %v15278_v9 = vsel %vm430_vm3, %v7049_v23, %v7051_v57  ;;  %6972 = vst.msk [vmem:[#allocation3 + $0x81] sm:$0xff] %vm6614_vm5, %v6956_v59  ;;  %v11909_v58 = vpack.c.bf16 %v10017_v29, %v10016_v43  ;;  %v11913_v39 = vpack.c.bf16 %v10019_v26, %v10018_v55  ;;  %v7404_v5 = vrot.slane %v12190_v17, 2  ;;  %v10062_v26 = vld [vmem:[%s16096_s3 + $0x100] sm:$0xff] }
 0x454   : > { %v15288_v48 = vsel %vm430_vm3, %v7051_v57, %v7053_v47  ;;  %v11917_v36 = vpack.c.bf16 %v10021_v20, %v10020_v34  ;;  %v11921_v40 = vpack.c.bf16 %v10039_v28, %v10038_v0  ;;  %v7405_v30 = vrot.slane %v12191_v35, 2  ;;  %v10042_v57 = vld [vmem:[%s16096_s3 + $0xe0] sm:$0xff] }
 0x455   : > { %11896 = vmatpush3.bf16.msra.mxu1 %v11893_v32  ;;  %v7407_v23 = vrot.slane %v12192_v2, 2  ;;  %v7409_v54 = vrot.slane %v12193_v6, 2  ;;  %v11925_v50 = vpack.c.bf16 %v10041_v61, %v10040_v38  ;;  %v7411_v32 = vrot.slane %v12194_v41, 2 }
 0x456   : > { %11898 = vmatprep.subr.bf16.mxu1 %v11897_v33  ;;  %11548 = vmatmul.mubr.msk.f32.gmra.mrb[124].mxu1 %vm6614_vm5, %v15278_v9  ;;  %v7406_v3 = vsel %vm1307_vm4, %v7404_v5, %v7405_v30  ;;  %v11929_v59 = vpack.c.bf16 %v10043_v63, %v10042_v57  ;;  %v15382_v51 = vrot.slane %v15340_v21, 2  ;;  %v7417_v43 = vrot.slane %v15005_v46, 2  ;;  %v15477_v57 = vld [vmem:[#allocation3 + $0x10] sm:$0xff] }
 0x457   : > { %11550 = vmatprep.mubr.msk.f32.mxu1 %vm6614_vm5, %v15288_v48  ;;  %v7408_v10 = vsel %vm1307_vm4, %v7405_v30, %v7407_v23  ;;  %v7412_v49 = vsel %vm1307_vm4, %v7409_v54, %v7411_v32  ;;  %v15399_v55 = vrot.slane %v15027_v52, 2  ;;  %v7427_v28 = vrot.slane %v15223_v56, 2 }
 0x458   : > { %v7431_v30 = vrot.slane %v15244_v22, 2 }
 0x459   : > { %11900 = vmatpush3.bf16.msra.mxu1 %v11897_v33  ;;  %v7410_v33 = vsel %vm1307_vm4, %v7407_v23, %v7409_v54  ;;  %v15417_v20 = vsel %vm1307_vm4, %v7417_v43, %v15399_v55  ;;  %v7433_v23 = vrot.slane %v15256_v4, 2 }
 0x45a   : > { %11902 = vmatprep.subr.bf16.mxu1 %v11901_v8  ;;  %v15300_v31 = vld [vmem:[#allocation3 + $0x80] sm:$0xff] }
 0x45b   : > { %v7055_v27 = vrot.slane %v15300_v31, 1  ;;  %v7435_v61 = vrot.slane %v15300_v31, 2  ;;  %v15460_v54 = vsel %vm1307_vm4, %v7431_v30, %v7433_v23 }
 0x45d   : > { %11904 = vmatpush3.bf16.msra.mxu1 %v11901_v8  ;;  %v15306_v7 = vsel %vm430_vm3, %v7053_v47, %v7055_v27  ;;  %v7413_v47 = vrot.slane %v12195_v11, 2  ;;  %v10044_v8 = vld [vmem:[%s16096_s3 + $0xf0] sm:$0xff] }
 0x45e   : > { %11906 = vmatprep.subr.bf16.mxu1 %v11905_v12  ;;  %11551 = vmatmul.mubr.msk.f32.gmra.mrb[126].mxu1 %vm6614_vm5, %v15306_v7 }
 0x45f   : > { %11569 = vmatprep.mubr.msk.f32.mxu1 %vm6614_vm5, %v12190_v17  ;;  %v11933_v17 = vpack.c.bf16 %v10045_v45, %v10044_v8  ;;  %v15495_v45 = vld [vmem:[#allocation3 + $0x28] sm:$0xff] }
 0x462   : > { %11570 = vmatmul.mubr.msk.f32.vlgmr.msra.gmra.mrb[128].mxu1 %vm6614_vm5, %v12191_v35  ;;  %v10063_v35 = vld [vmem:[%s16096_s3 + $0x108] sm:$0xff] }
 0x463   : > { %11908 = vmatpush3.bf16.msra.mxu1 %v11905_v12  ;;  %11572 = vmatprep.mubr.msk.f32.mxu1 %vm6614_vm5, %v12192_v2  ;;  %v7414_v12 = vsel %vm1307_vm4, %v7411_v32, %v7413_v47  ;;  %v15410_v2 = vsel %vm1307_vm4, %v15382_v51, %v7417_v43  ;;  %v11937_v34 = vpack.c.bf16 %v10063_v35, %v10062_v26  ;;  %v10065_v32 = vld [vmem:[%s16096_s3 + $0x118] sm:$0xff] }
 0x464   : > { %11910 = vmatprep.subr.bf16.mxu1 %v11909_v58 }
 0x466   : > { %11573 = vmatmul.mubr.msk.f32.gmra.mrb[130].mxu1 %vm6614_vm5, %v12193_v6  ;;  %v7423_v6 = vrot.slane %v15150_v1, 2 }
 0x467   : > { %11575 = vmatprep.mubr.msk.f32.mxu1 %vm6614_vm5, %v12194_v41  ;;  %11912 = vmatpush3.bf16.msra.mxu1 %v11909_v58  ;;  %v7416_v58 = vsel %vm1307_vm4, %v7413_v47, %v15382_v51  ;;  %v10066_v47 = vld [vmem:[%s16096_s3 + $0x120] sm:$0xff] }
 0x468   : > { %11914 = vmatprep.subr.bf16.mxu1 %v11913_v39 }
 0x46a   : > { %11576 = vmatmul.mubr.msk.f32.gmra.mrb[132].mxu1 %vm6614_vm5, %v12195_v11 }
 0x46b   : > { %11578 = vmatprep.mubr.msk.f32.mxu1 %vm6614_vm5, %v15340_v21  ;;  %11916 = vmatpush3.bf16.msra.mxu1 %v11913_v39  ;;  %v7421_v39 = vrot.slane %v15054_v42, 2 }
 0x46c   : > { %11918 = vmatprep.subr.bf16.mxu1 %v11917_v36 }
 0x46d   : > { %v15424_v41 = vsel %vm1307_vm4, %v15399_v55, %v7421_v39  ;;  %v15430_v0 = vsel %vm1307_vm4, %v7421_v39, %v7423_v6  ;;  %v15538_v39 = vld [vmem:[#allocation3 + $0x88] sm:$0xff] }
 0x46e   : > { %11579 = vmatmul.mubr.msk.f32.gmra.mrb[134].mxu1 %vm6614_vm5, %v15005_v46 }
 0x46f   : > { %11581 = vmatprep.mubr.msk.f32.mxu1 %vm6614_vm5, %v15027_v52  ;;  %11920 = vmatpush3.bf16.msra.mxu1 %v11917_v36  ;;  %v7425_v36 = vrot.slane %v15164_v18, 2 }
 0x470   : > { %11922 = vmatprep.subr.bf16.mxu1 %v11921_v40 }
 0x471   : > { %v15436_v11 = vsel %vm1307_vm4, %v7423_v6, %v7425_v36  ;;  %v15442_v5 = vsel %vm1307_vm4, %v7425_v36, %v7427_v28  ;;  %v10089_v6 = vld [vmem:[%s16096_s3 + $0x158] sm:$0xff]  ;;  %v15547_v36 = vrot.slane %v15495_v45, 1 }
 0x472   : > { %11582 = vmatmul.mubr.msk.f32.gmra.mrb[136].mxu1 %vm6614_vm5, %v15054_v42 }
 0x473   : > { %11584 = vmatprep.mubr.msk.f32.mxu1 %vm6614_vm5, %v15150_v1 }
 0x476   : > { %11585 = vmatmul.mubr.msk.f32.gmra.mrb[138].mxu1 %vm6614_vm5, %v15164_v18 }
 0x477   : > { %11587 = vmatprep.mubr.msk.f32.mxu1 %vm6614_vm5, %v15223_v56 }
 0x47a   : > { %11588 = vmatmul.mubr.msk.f32.gmra.mrb[140].mxu1 %vm6614_vm5, %v15231_v16 }
 0x47b   : > { %11590 = vmatprep.mubr.msk.f32.mxu1 %vm6614_vm5, %v15244_v22 }
 0x47e   : > { %11591 = vmatmul.mubr.msk.f32.gmra.mrb[142].mxu1 %vm6614_vm5, %v15256_v4 }
 0x47f   : > { %11609 = vmatprep.mubr.msk.f32.mxu1 %vm6614_vm5, %v7406_v3 }
 0x482   : > { %11610 = vmatmul.mubr.msk.f32.vlgmr.msra.gmra.mrb[144].mxu1 %vm6614_vm5, %v7408_v10  ;;  %v10064_v10 = vld [vmem:[%s16096_s3 + $0x110] sm:$0xff] }
 0x483   : > { %11924 = vmatpush3.bf16.msra.mxu1 %v11921_v40  ;;  %11612 = vmatprep.mubr.msk.f32.mxu1 %vm6614_vm5, %v7410_v33  ;;  %v7429_v40 = vrot.slane %v15231_v16, 2  ;;  %v11941_v63 = vpack.c.bf16 %v10065_v32, %v10064_v10  ;;  %v15481_v33 = vld [vmem:[#allocation3 + $0x18] sm:$0xff]  ;;  %v10091_v10 = vld [vmem:[%s16096_s3 + $0x168] sm:$0xff] }
 0x484   : > { %11926 = vmatprep.subr.bf16.mxu1 %v11925_v50 }
 0x485   : > { %v11531_v37 = vpop.f32.mrb[112].mxu1  ;;  %v15448_v3 = vsel %vm1307_vm4, %v7427_v28, %v7429_v40  ;;  %v15454_v38 = vsel %vm1307_vm4, %v7429_v40, %v7431_v30 }
 0x486   : > { %11613 = vmatmul.mubr.msk.f32.gmra.mrb[146].mxu1 %vm6614_vm5, %v7412_v49  ;;  %v15393_v29 = vpop.f32.mrb[113].mxu1  ;;  %v15491_v49 = vld [vmem:[#allocation3 + $0x20] sm:$0xff]  ;;  %v10068_v37 = vld [vmem:[%s16096_s3 + $0x130] sm:$0xff] }
 0x487   : > { %11615 = vmatprep.mubr.msk.f32.mxu1 %vm6614_vm5, %v7414_v12  ;;  %11928 = vmatpush3.bf16.msra.mxu1 %v11925_v50  ;;  %v15467_v50 = vsel %vm1307_vm4, %v7433_v23, %v7435_v61  ;;  %v10069_v12 = vld [vmem:[%s16096_s3 + $0x138] sm:$0xff]  ;;  %v10090_v23 = vld [vmem:[%s16096_s3 + $0x160] sm:$0xff] }
 0x488   : > { %11930 = vmatprep.subr.bf16.mxu1 %v11929_v59  ;;  %v11949_v43 = vpack.c.bf16 %v10069_v12, %v10068_v37  ;;  %v10111_v12 = vld [vmem:[%s16096_s3 + $0x188] sm:$0xff] }
 0x48a   : > { %11616 = vmatmul.mubr.msk.f32.gmra.mrb[148].mxu1 %vm6614_vm5, %v7416_v58  ;;  %v10087_v58 = vld [vmem:[%s16096_s3 + $0x148] sm:$0xff] }
 0x48b   : > { %11618 = vmatprep.mubr.msk.f32.mxu1 %vm6614_vm5, %v15410_v2  ;;  %11932 = vmatpush3.bf16.msra.mxu1 %v11929_v59  ;;  %v10067_v59 = vld [vmem:[%s16096_s3 + $0x128] sm:$0xff] }
 0x48c   : > { %11934 = vmatprep.subr.bf16.mxu1 %v11933_v17  ;;  %v11945_v8 = vpack.c.bf16 %v10067_v59, %v10066_v47  ;;  %v7851_v47 = vsel %vm430_vm3, %v15547_v36, %v14933_v44  ;;  %v10092_v59 = vld [vmem:[%s16096_s3 + $0x170] sm:$0xff]  ;;  %v10110_v44 = vld [vmem:[%s16096_s3 + $0x180] sm:$0xff] }
 0x48e   : > { %11619 = vmatmul.mubr.msk.f32.gmra.mrb[150].mxu1 %vm6614_vm5, %v15417_v20 }
 0x48f   : > { %11621 = vmatprep.mubr.msk.f32.mxu1 %vm6614_vm5, %v15424_v41  ;;  %11936 = vmatpush3.bf16.msra.mxu1 %v11933_v17  ;;  %v10086_v17 = vld [vmem:[%s16096_s3 + $0x140] sm:$0xff] }
 0x490   : > { %11938 = vmatprep.subr.bf16.mxu1 %v11937_v34 }
 0x492   : > { %11622 = vmatmul.mubr.msk.f32.gmra.mrb[152].mxu1 %vm6614_vm5, %v15430_v0 }
 0x493   : > { %11624 = vmatprep.mubr.msk.f32.mxu1 %vm6614_vm5, %v15436_v11 }
 0x496   : > { %11625 = vmatmul.mubr.msk.f32.gmra.mrb[154].mxu1 %vm6614_vm5, %v15442_v5 }
 0x497   : > { %11627 = vmatprep.mubr.msk.f32.mxu1 %vm6614_vm5, %v15448_v3 }
 0x49a   : > { %11628 = vmatmul.mubr.msk.f32.gmra.mrb[156].mxu1 %vm6614_vm5, %v15454_v38 }
 0x49b   : > { %11630 = vmatprep.mubr.msk.f32.mxu1 %vm6614_vm5, %v15460_v54 }
 0x49e   : > { %11631 = vmatmul.mubr.msk.f32.gmra.mrb[158].mxu1 %vm6614_vm5, %v15467_v50 }
 0x49f   : > { %11649 = vmatprep.mubr.msk.f32.mxu1 %vm6614_vm5, %v15477_v57 }
 0x4a2   : > { %11650 = vmatmul.mubr.msk.f32.vlgmr.msra.gmra.mrb[160].mxu1 %vm6614_vm5, %v15481_v33 }
 0x4a3   : > { %11940 = vmatpush3.bf16.msra.mxu1 %v11937_v34  ;;  %11652 = vmatprep.mubr.msk.f32.mxu1 %vm6614_vm5, %v15491_v49  ;;  %v10088_v34 = vld [vmem:[%s16096_s3 + $0x150] sm:$0xff] }
 0x4a4   : > { %11942 = vmatprep.subr.bf16.mxu1 %v11941_v63  ;;  %v11957_v40 = vpack.c.bf16 %v10089_v6, %v10088_v34  ;;  %v15631_v34 = vrot.slane %v15495_v45, 2 }
 0x4a6   : > { %11653 = vmatmul.mubr.msk.f32.gmra.mrb[162].mxu1 %vm6614_vm5, %v15495_v45 }
 0x4a7   : > { %11655 = vmatprep.mubr.msk.f32.mxu1 %vm6614_vm5, %v15340_v21  ;;  %11944 = vmatpush3.bf16.msra.mxu1 %v11941_v63  ;;  %v11953_v21 = vpack.c.bf16 %v10087_v58, %v10086_v17  ;;  %v11961_v63 = vpack.c.bf16 %v10091_v10, %v10090_v23  ;;  %v8062_v58 = vrot.slane %v15477_v57, 2  ;;  %v10115_v23 = vld [vmem:[%s16096_s3 + $0x1a8] sm:$0xff] }
 0x4a8   : > { %11946 = vmatprep.subr.bf16.mxu1 %v11945_v8 }
 0x4aa   : > { %11656 = vmatmul.mubr.msk.f32.gmra.mrb[164].mxu1 %vm6614_vm5, %v15005_v46  ;;  %v7843_v46 = vrot.slane %v15477_v57, 1 }
 0x4ab   : > { %11658 = vmatprep.mubr.msk.f32.mxu1 %vm6614_vm5, %v15027_v52  ;;  %11948 = vmatpush3.bf16.msra.mxu1 %v11945_v8  ;;  %v7844_v52 = vrot.slane %v15481_v33, 1  ;;  %v10093_v8 = vld [vmem:[%s16096_s3 + $0x178] sm:$0xff] }
 0x4ac   : > { %11950 = vmatprep.subr.bf16.mxu1 %v11949_v43  ;;  %v11965_v37 = vpack.c.bf16 %v10093_v8, %v10092_v59  ;;  %v8070_v8 = vsel %vm1307_vm4, %v15631_v34, %v15382_v51  ;;  %v10134_v51 = vld [vmem:[%s16096_s3 + $0x1c0] sm:$0xff] }
 0x4ad   : > { %v7845_v28 = vsel %vm430_vm3, %v7843_v46, %v7844_v52 }
 0x4ae   : > { %v11534_v26 = vpop.f32.mrb[114].mxu1  ;;  %11659 = vmatmul.mubr.msk.f32.gmra.mrb[166].mxu1 %vm6614_vm5, %v15054_v42  ;;  %v7846_v42 = vrot.slane %v15491_v49, 1 }
 0x4af   : > { %v15519_v35 = vpop.f32.mrb[115].mxu1  ;;  %11661 = vmatprep.mubr.msk.f32.mxu1 %vm6614_vm5, %v15150_v1  ;;  %11952 = vmatpush3.bf16.msra.mxu1 %v11949_v43  ;;  %v15600_v43 = vld [vmem:[#allocation3 + $0x90] sm:$0xff]  ;;  %v8063_v26 = vrot.slane %v15481_v33, 2 }
 0x4b0   : > { %11954 = vmatprep.subr.bf16.mxu1 %v11953_v21  ;;  %v7847_v30 = vsel %vm430_vm3, %v7844_v52, %v7846_v42  ;;  %v15563_v32 = vsel %vm430_vm3, %v7846_v42, %v15547_v36  ;;  %v7874_v17 = vrot.slane %v15600_v43, 1  ;;  %v8065_v42 = vrot.slane %v15491_v49, 2  ;;  %v10113_v33 = vld [vmem:[%s16096_s3 + $0x198] sm:$0xff] }
 0x4b1   : > { %v8064_v6 = vsel %vm1307_vm4, %v8062_v58, %v8063_v26 }
 0x4b2   : > { %11662 = vmatmul.mubr.msk.f32.gmra.mrb[168].mxu1 %vm6614_vm5, %v15164_v18 }
 0x4b3   : > { %11664 = vmatprep.mubr.msk.f32.mxu1 %vm6614_vm5, %v15223_v56 }
 0x4b6   : > { %11665 = vmatmul.mubr.msk.f32.gmra.mrb[170].mxu1 %vm6614_vm5, %v15231_v16 }
 0x4b7   : > { %11667 = vmatprep.mubr.msk.f32.mxu1 %vm6614_vm5, %v15244_v22 }
 0x4ba   : > { %11668 = vmatmul.mubr.msk.f32.gmra.mrb[172].mxu1 %vm6614_vm5, %v15256_v4 }
 0x4bb   : > { %11670 = vmatprep.mubr.msk.f32.mxu1 %vm6614_vm5, %v15300_v31 }
 0x4be   : > { %11671 = vmatmul.mubr.msk.f32.gmra.mrb[174].mxu1 %vm6614_vm5, %v15538_v39 }
 0x4bf   : > { %11689 = vmatprep.mubr.msk.f32.mxu1 %vm6614_vm5, %v7845_v28 }
 0x4c2   : > { %11690 = vmatmul.mubr.msk.f32.vlgmr.msra.gmra.mrb[176].mxu1 %vm6614_vm5, %v7847_v30  ;;  %v10114_v30 = vld [vmem:[%s16096_s3 + $0x1a0] sm:$0xff] }
 0x4c3   : > { %11956 = vmatpush3.bf16.msra.mxu1 %v11953_v21  ;;  %11692 = vmatprep.mubr.msk.f32.mxu1 %vm6614_vm5, %v15563_v32  ;;  %v11977_v59 = vpack.c.bf16 %v10115_v23, %v10114_v30  ;;  %v10141_v30 = vld [vmem:[%s16096_s3 + $0x1f8] sm:$0xff] }
 0x4c4   : > { %11958 = vmatprep.subr.bf16.mxu1 %v11957_v40 }
 0x4c6   : > { %11693 = vmatmul.mubr.msk.f32.gmra.mrb[178].mxu1 %vm6614_vm5, %v7851_v47 }
 0x4c7   : > { %11695 = vmatprep.mubr.msk.f32.mxu1 %vm6614_vm5, %v15034_v13  ;;  %11960 = vmatpush3.bf16.msra.mxu1 %v11957_v40  ;;  %v11969_v13 = vpack.c.bf16 %v10111_v12, %v10110_v44  ;;  %v8066_v40 = vsel %vm1307_vm4, %v8063_v26, %v8065_v42  ;;  %v10117_v44 = vld [vmem:[%s16096_s3 + $0x1b8] sm:$0xff] }
 0x4c8   : > { %11962 = vmatprep.subr.bf16.mxu1 %v11961_v63 }
 0x4ca   : > { %11696 = vmatmul.mubr.msk.f32.gmra.mrb[180].mxu1 %vm6614_vm5, %v15074_v15  ;;  %v7872_v15 = vrot.slane %v15538_v39, 1 }
 0x4cb   : > { %11698 = vmatprep.mubr.msk.f32.mxu1 %vm6614_vm5, %v15134_v14  ;;  %11964 = vmatpush3.bf16.msra.mxu1 %v11961_v63  ;;  %v15647_v63 = vsel %vm1307_vm4, %v8065_v42, %v15631_v34  ;;  %v10137_v42 = vld [vmem:[%s16096_s3 + $0x1d8] sm:$0xff] }
 0x4cc   : > { %11966 = vmatprep.subr.bf16.mxu1 %v11965_v37  ;;  %v15611_v21 = vsel %vm430_vm3, %v7055_v27, %v7872_v15  ;;  %v15622_v57 = vsel %vm430_vm3, %v7872_v15, %v7874_v17  ;;  %v10112_v27 = vld [vmem:[%s16096_s3 + $0x190] sm:$0xff]  ;;  %v8093_v15 = vrot.slane %v15600_v43, 2 }
 0x4cd   : > { %v11973_v28 = vpack.c.bf16 %v10113_v33, %v10112_v27  ;;  %v10138_v27 = vld [vmem:[%s16096_s3 + $0x1e0] sm:$0xff]  ;;  %v10139_v33 = vld [vmem:[%s16096_s3 + $0x1e8] sm:$0xff] }
 0x4ce   : > { %11699 = vmatmul.mubr.msk.f32.gmra.mrb[182].mxu1 %vm6614_vm5, %v15174_v53 }
 0x4cf   : > { %11701 = vmatprep.mubr.msk.f32.mxu1 %vm6614_vm5, %v15215_v25  ;;  %11968 = vmatpush3.bf16.msra.mxu1 %v11965_v37  ;;  %v10116_v37 = vld [vmem:[%s16096_s3 + $0x1b0] sm:$0xff] }
 0x4d0   : > { %11970 = vmatprep.subr.bf16.mxu1 %v11969_v13  ;;  %v11981_v12 = vpack.c.bf16 %v10117_v44, %v10116_v37  ;;  %v12198_v37 = vld [vmem:[#allocation3 + $0x48] sm:$0xff] }
 0x4d2   : > { %11702 = vmatmul.mubr.msk.f32.gmra.mrb[184].mxu1 %vm6614_vm5, %v15264_v62 }
 0x4d3   : > { %11704 = vmatprep.mubr.msk.f32.mxu1 %vm6614_vm5, %v15267_v60 }
 0x4d6   : > { %11705 = vmatmul.mubr.msk.f32.gmra.mrb[186].mxu1 %vm6614_vm5, %v15278_v9 }
 0x4d7   : > { %11707 = vmatprep.mubr.msk.f32.mxu1 %vm6614_vm5, %v15288_v48 }
 0x4da   : > { %11708 = vmatmul.mubr.msk.f32.gmra.mrb[188].mxu1 %vm6614_vm5, %v15306_v7  ;;  %v11537_v46 = vpop.f32.mrb[116].mxu1 }
 0x4db   : > { %11710 = vmatprep.mubr.msk.f32.mxu1 %vm6614_vm5, %v15611_v21  ;;  %v15616_v52 = vpop.f32.mrb[117].mxu1  ;;  %v10136_v46 = vld [vmem:[%s16096_s3 + $0x1d0] sm:$0xff] }
 0x4de   : > { %11711 = vmatmul.mubr.msk.f32.gmra.mrb[190].mxu1 %vm6614_vm5, %v15622_v57 }
 0x4df   : > { %11729 = vmatprep.mubr.msk.f32.mxu1 %vm6614_vm5, %v8064_v6  ;;  %v15721_v6 = vld [vmem:[#allocation3 + $0x30] sm:$0xff] }
 0x4e2   : > { %v11540_v10 = vpop.f32.mrb[118].mxu1  ;;  %11730 = vmatmul.mubr.msk.f32.vlgmr.msra.gmra.mrb[192].mxu1 %vm6614_vm5, %v8066_v40  ;;  %v10140_v40 = vld [vmem:[%s16096_s3 + $0x1f0] sm:$0xff] }
 0x4e3   : > { %v15649_v47 = vpop.f32.mrb[119].mxu1  ;;  %11972 = vmatpush3.bf16.msra.mxu1 %v11969_v13  ;;  %11732 = vmatprep.mubr.msk.f32.mxu1 %vm6614_vm5, %v15647_v63  ;;  %v10135_v13 = vld [vmem:[%s16096_s3 + $0x1c8] sm:$0xff]  ;;  %v11997_v23 = vpack.c.bf16 %v10141_v30, %v10140_v40 }
 0x4e4   : > { %11974 = vmatprep.subr.bf16.mxu1 %v11973_v28 }
 0x4e6   : > { %11733 = vmatmul.mubr.msk.f32.gmra.mrb[194].mxu1 %vm6614_vm5, %v8070_v8  ;;  %v10159_v8 = vld [vmem:[%s16096_s3 + $0x208] sm:$0xff] }
 0x4e7   : > { %11735 = vmatprep.mubr.msk.f32.mxu1 %vm6614_vm5, %v15410_v2  ;;  %11976 = vmatpush3.bf16.msra.mxu1 %v11973_v28  ;;  %v11985_v2 = vpack.c.bf16 %v10135_v13, %v10134_v51  ;;  %v15725_v28 = vld [vmem:[#allocation3 + $0x38] sm:$0xff]  ;;  %v10163_v51 = vld [vmem:[%s16096_s3 + $0x228] sm:$0xff] }
 0x4e8   : > { %11978 = vmatprep.subr.bf16.mxu1 %v11977_v59 }
 0x4ea   : > { %11736 = vmatmul.mubr.msk.f32.gmra.mrb[196].mxu1 %vm6614_vm5, %v15417_v20  ;;  %v8091_v20 = vrot.slane %v15538_v39, 2 }
 0x4eb   : > { %11738 = vmatprep.mubr.msk.f32.mxu1 %vm6614_vm5, %v15424_v41  ;;  %11980 = vmatpush3.bf16.msra.mxu1 %v11977_v59  ;;  %v10158_v59 = vld [vmem:[%s16096_s3 + $0x200] sm:$0xff] }
 0x4ec   : > { %11982 = vmatprep.subr.bf16.mxu1 %v11981_v12  ;;  %v15694_v58 = vsel %vm1307_vm4, %v7435_v61, %v8091_v20  ;;  %v15701_v26 = vsel %vm1307_vm4, %v8091_v20, %v8093_v15  ;;  %v11989_v61 = vpack.c.bf16 %v10137_v42, %v10136_v46  ;;  %v10164_v46 = vld [vmem:[%s16096_s3 + $0x230] sm:$0xff]  ;;  %v10165_v42 = vld [vmem:[%s16096_s3 + $0x238] sm:$0xff] }
 0x4ee   : > { %11739 = vmatmul.mubr.msk.f32.gmra.mrb[198].mxu1 %vm6614_vm5, %v15430_v0 }
 0x4ef   : > { %11741 = vmatprep.mubr.msk.f32.mxu1 %vm6614_vm5, %v15436_v11  ;;  %11984 = vmatpush3.bf16.msra.mxu1 %v11981_v12  ;;  %v12001_v12 = vpack.c.bf16 %v10159_v8, %v10158_v59 }
 0x4f0   : > { %11986 = vmatprep.subr.bf16.mxu1 %v11985_v2 }
 0x4f2   : > { %11742 = vmatmul.mubr.msk.f32.gmra.mrb[200].mxu1 %vm6614_vm5, %v15442_v5 }
 0x4f3   : > { %11744 = vmatprep.mubr.msk.f32.mxu1 %vm6614_vm5, %v15448_v3 }
 0x4f6   : > { %11745 = vmatmul.mubr.msk.f32.gmra.mrb[202].mxu1 %vm6614_vm5, %v15454_v38 }
 0x4f7   : > { %11747 = vmatprep.mubr.msk.f32.mxu1 %vm6614_vm5, %v15460_v54 }
 0x4fa   : > { %11748 = vmatmul.mubr.msk.f32.gmra.mrb[204].mxu1 %vm6614_vm5, %v15467_v50 }
 0x4fb   : > { %11750 = vmatprep.mubr.msk.f32.mxu1 %vm6614_vm5, %v15694_v58 }
 0x4fe   : > { %11751 = vmatmul.mubr.msk.f32.gmra.mrb[206].mxu1 %vm6614_vm5, %v15701_v26 }
 0x4ff   : > { %11769 = vmatprep.mubr.msk.f32.mxu1 %vm6614_vm5, %v15491_v49  ;;  %v11993_v49 = vpack.c.bf16 %v10139_v33, %v10138_v27  ;;  %v12013_v27 = vpack.c.bf16 %v10165_v42, %v10164_v46 }
 0x502   : > { %11770 = vmatmul.mubr.msk.f32.vlgmr.msra.gmra.mrb[208].mxu1 %vm6614_vm5, %v15495_v45  ;;  %v12197_v45 = vld [vmem:[#allocation3 + $0x40] sm:$0xff] }
 0x503   : > { %11988 = vmatpush3.bf16.msra.mxu1 %v11985_v2  ;;  %11772 = vmatprep.mubr.msk.f32.mxu1 %vm6614_vm5, %v15721_v6 }
 0x504   : > { %11990 = vmatprep.subr.bf16.mxu1 %v11989_v61 }
 0x506   : > { %11773 = vmatmul.mubr.msk.f32.gmra.mrb[210].mxu1 %vm6614_vm5, %v15725_v28 }
 0x507   : > { %11775 = vmatprep.mubr.msk.f32.mxu1 %vm6614_vm5, %v12197_v45  ;;  %11992 = vmatpush3.bf16.msra.mxu1 %v11989_v61 }
 0x508   : > { %11994 = vmatprep.subr.bf16.mxu1 %v11993_v49 }
 0x50a   : > { %v11543_v10 = vpop.f32.mrb[120].mxu1  ;;  %11776 = vmatmul.mubr.msk.f32.gmra.mrb[212].mxu1 %vm6614_vm5, %v12198_v37 }
 0x50b   : > { %v15743_v44 = vpop.f32.mrb[121].mxu1  ;;  %11778 = vmatprep.mubr.msk.f32.mxu1 %vm6614_vm5, %v15150_v1  ;;  %11996 = vmatpush3.bf16.msra.mxu1 %v11993_v49  ;;  %v15763_v1 = vld [vmem:[#allocation3 + $0x98] sm:$0xff] }
 0x50c   : > { %11998 = vmatprep.subr.bf16.mxu1 %v11997_v23 }
 0x50e   : > { %11779 = vmatmul.mubr.msk.f32.gmra.mrb[214].mxu1 %vm6614_vm5, %v15164_v18  ;;  %v8505_v18 = vrot.slane %v15721_v6, 1 }
 0x50f   : > { %11781 = vmatprep.mubr.msk.f32.mxu1 %vm6614_vm5, %v15223_v56  ;;  %12000 = vmatpush3.bf16.msra.mxu1 %v11997_v23  ;;  %v10160_v56 = vld [vmem:[%s16096_s3 + $0x210] sm:$0xff]  ;;  %v8726_v23 = vrot.slane %v15725_v28, 2 }
 0x510   : > { %12002 = vmatprep.subr.bf16.mxu1 %v12001_v12 }
 0x512   : > { %11782 = vmatmul.mubr.msk.f32.gmra.mrb[216].mxu1 %vm6614_vm5, %v15231_v16  ;;  %v10161_v16 = vld [vmem:[%s16096_s3 + $0x218] sm:$0xff] }
 0x513   : > { %11784 = vmatprep.mubr.msk.f32.mxu1 %vm6614_vm5, %v15244_v22  ;;  %v8507_v22 = vrot.slane %v15725_v28, 1 }
 0x515   : > { %v8508_v13 = vsel %vm430_vm3, %v8505_v18, %v8507_v22 }
 0x516   : > { %11785 = vmatmul.mubr.msk.f32.gmra.mrb[218].mxu1 %vm6614_vm5, %v15256_v4  ;;  %v12005_v4 = vpack.c.bf16 %v10161_v16, %v10160_v56 }
 0x517   : > { %11787 = vmatprep.mubr.msk.f32.mxu1 %vm6614_vm5, %v15300_v31  ;;  %v8506_v31 = vsel %vm430_vm3, %v15547_v36, %v8505_v18  ;;  %v8510_v36 = vsel %vm430_vm3, %v8507_v22, %v15052_v24 }
 0x51a   : > { %11788 = vmatmul.mubr.msk.f32.gmra.mrb[220].mxu1 %vm6614_vm5, %v15538_v39  ;;  %v10162_v39 = vld [vmem:[%s16096_s3 + $0x220] sm:$0xff] }
 0x51b   : > { %11790 = vmatprep.mubr.msk.f32.mxu1 %vm6614_vm5, %v15600_v43  ;;  %v12009_v2 = vpack.c.bf16 %v10163_v51, %v10162_v39 }
 0x51e   : > { %11791 = vmatmul.mubr.msk.f32.gmra.mrb[222].mxu1 %vm6614_vm5, %v15763_v1 }
 0x51f   : > { %11809 = vmatprep.mubr.msk.f32.mxu1 %vm6614_vm5, %v15563_v32 }
 0x522   : > { %11810 = vmatmul.mubr.msk.f32.vlgmr.msra.gmra.mrb[224].mxu1 %vm6614_vm5, %v8506_v31 }
 0x523   : > { %12004 = vmatpush3.bf16.msra.mxu1 %v12001_v12  ;;  %11812 = vmatprep.mubr.msk.f32.mxu1 %vm6614_vm5, %v8508_v13 }
 0x524   : > { %12006 = vmatprep.subr.bf16.mxu1 %v12005_v4 }
 0x525   : > { %v11546_v32 = vpop.f32.mrb[122].mxu1 }
 0x526   : > { %v7200_v20 = vpop.f32.mrb[123].mxu1  ;;  %11813 = vmatmul.mubr.msk.f32.gmra.mrb[226].mxu1 %vm6614_vm5, %v8510_v36 }
 0x527   : > { %11815 = vmatprep.mubr.msk.f32.mxu1 %vm6614_vm5, %v15134_v14  ;;  %12008 = vmatpush3.bf16.msra.mxu1 %v12005_v4 }
 0x528   : > { %12010 = vmatprep.subr.bf16.mxu1 %v12009_v2 }
 0x529   : > { %v11549_v61 = vpop.f32.mrb[124].mxu1 }
 0x52a   : > { %v7209_v33 = vpop.f32.mrb[125].mxu1  ;;  %11816 = vmatmul.mubr.msk.f32.gmra.mrb[228].mxu1 %vm6614_vm5, %v15174_v53  ;;  %v8531_v53 = vrot.slane %v15763_v1, 1 }
 0x52b   : > { %11818 = vmatprep.mubr.msk.f32.mxu1 %vm6614_vm5, %v15215_v25  ;;  %12012 = vmatpush3.bf16.msra.mxu1 %v12009_v2  ;;  %v15812_v25 = vld [vmem:[#allocation3 + $0xa0] sm:$0xff] }
 0x52c   : > { %12014 = vmatprep.subr.bf16.mxu1 %v12013_v27 }
 0x52e   : > { %11819 = vmatmul.mubr.msk.f32.gmra.mrb[230].mxu1 %vm6614_vm5, %v15264_v62 }
 0x52f   : > { %11821 = vmatprep.mubr.msk.f32.mxu1 %vm6614_vm5, %v15267_v60  ;;  %12016 = vmatpush3.bf16.msra.mxu1 %v12013_v27  ;;  %v8533_v60 = vrot.slane %v15812_v25, 1 }
 0x531   : > { %v11552_v24 = vpop.f32.mrb[126].mxu1 }
 0x532   : > { %v7218_v14 = vpop.f32.mrb[127].mxu1  ;;  %11822 = vmatmul.mubr.msk.f32.gmra.mrb[232].mxu1 %vm6614_vm5, %v15278_v9  ;;  %v8532_v9 = vsel %vm430_vm3, %v7874_v17, %v8531_v53 }
 0x533   : > { %11824 = vmatprep.mubr.msk.f32.mxu1 %vm6614_vm5, %v15288_v48 }
 0x535   : > { %v11571_v49 = vpop.f32.mrb[128].mxu1 }
 0x536   : > { %v7324_v40 = vpop.f32.mrb[129].mxu1  ;;  %11825 = vmatmul.mubr.msk.f32.gmra.mrb[234].mxu1 %vm6614_vm5, %v15306_v7  ;;  %v8534_v7 = vsel %vm430_vm3, %v8531_v53, %v8533_v60 }
 0x537   : > { %v7325_v62 = vadd.f32 %v7324_v40, %v15393_v29  ;;  %11827 = vmatprep.mubr.msk.f32.mxu1 %vm6614_vm5, %v15611_v21  ;;  %v8724_v29 = vrot.slane %v15721_v6, 2 }
 0x539   : > { %v11574_v48 = vpop.f32.mrb[130].mxu1  ;;  %v8727_v6 = vsel %vm1307_vm4, %v8724_v29, %v8726_v23 }
 0x53a   : > { %v7333_v30 = vpop.f32.mrb[131].mxu1  ;;  %11828 = vmatmul.mubr.msk.f32.gmra.mrb[236].mxu1 %vm6614_vm5, %v15622_v57 }
 0x53b   : > { %v7334_v45 = vadd.f32 %v7333_v30, %v15519_v35  ;;  %11830 = vmatprep.mubr.msk.f32.mxu1 %vm6614_vm5, %v8532_v9  ;;  %v8725_v35 = vsel %vm1307_vm4, %v15631_v34, %v8724_v29 }
 0x53d   : > { %v11577_v21 = vpop.f32.mrb[132].mxu1 }
 0x53e   : > { %v7342_v10 = vpop.f32.mrb[133].mxu1  ;;  %11831 = vmatmul.mubr.msk.f32.gmra.mrb[238].mxu1 %vm6614_vm5, %v8534_v7 }
 0x53f   : > { %v7343_v17 = vadd.f32 %v7342_v10, %v15616_v52  ;;  %11849 = vmatprep.mubr.msk.f32.mxu1 %vm6614_vm5, %v15647_v63  ;;  %v8729_v52 = vsel %vm1307_vm4, %v8726_v23, %v15399_v55 }
 0x541   : > { %v11580_v57 = vpop.f32.mrb[134].mxu1 }
 0x542   : > { %v7351_v59 = vpop.f32.mrb[135].mxu1  ;;  %11850 = vmatmul.mubr.msk.f32.vlgmr.msra.gmra.mrb[240].mxu1 %vm6614_vm5, %v8725_v35 }
 0x543   : > { %v7352_v8 = vadd.f32 %v7351_v59, %v15649_v47  ;;  %11852 = vmatprep.mubr.msk.f32.mxu1 %vm6614_vm5, %v8727_v6 }
 0x545   : > { %v11583_v28 = vpop.f32.mrb[136].mxu1 }
 0x546   : > { %v7360_v37 = vpop.f32.mrb[137].mxu1  ;;  %11853 = vmatmul.mubr.msk.f32.gmra.mrb[242].mxu1 %vm6614_vm5, %v8729_v52 }
 0x547   : > { %v7361_v63 = vadd.f32 %v7360_v37, %v15743_v44  ;;  %11855 = vmatprep.mubr.msk.f32.mxu1 %vm6614_vm5, %v15424_v41 }
 0x549   : > { %v11586_v34 = vpop.f32.mrb[138].mxu1 }
 0x54a   : > { %v7369_v12 = vpop.f32.mrb[139].mxu1  ;;  %11856 = vmatmul.mubr.msk.f32.gmra.mrb[244].mxu1 %vm6614_vm5, %v15430_v0  ;;  %v8750_v0 = vrot.slane %v15763_v1, 2 }
 0x54b   : > { %v7370_v47 = vadd.f32 %v7369_v12, %v7200_v20  ;;  %11858 = vmatprep.mubr.msk.f32.mxu1 %vm6614_vm5, %v15436_v11 }
 0x54d   : > { %v11589_v18 = vpop.f32.mrb[140].mxu1 }
 0x54e   : > { %v7378_v56 = vpop.f32.mrb[141].mxu1  ;;  %11859 = vmatmul.mubr.msk.f32.gmra.mrb[246].mxu1 %vm6614_vm5, %v15442_v5 }
 0x54f   : > { %v7379_v55 = vadd.f32 %v7378_v56, %v7209_v33  ;;  %11861 = vmatprep.mubr.msk.f32.mxu1 %vm6614_vm5, %v15448_v3  ;;  %v8752_v3 = vrot.slane %v15812_v25, 2 }
 0x551   : > { %v11592_v44 = vpop.f32.mrb[142].mxu1 }
 0x552   : > { %v7387_v41 = vpop.f32.mrb[143].mxu1  ;;  %11862 = vmatmul.mubr.msk.f32.gmra.mrb[248].mxu1 %vm6614_vm5, %v15454_v38  ;;  %v8751_v38 = vsel %vm1307_vm4, %v8093_v15, %v8750_v0 }
 0x553   : > { %v7388_v16 = vadd.f32 %v7387_v41, %v7218_v14  ;;  %11864 = vmatprep.mubr.msk.f32.mxu1 %vm6614_vm5, %v15460_v54 }
 0x555   : > { %v11611_v11 = vpop.f32.mrb[144].mxu1 }
 0x556   : > { %v7535_v22 = vpop.f32.mrb[145].mxu1  ;;  %11865 = vmatmul.mubr.msk.f32.gmra.mrb[250].mxu1 %vm6614_vm5, %v15467_v50  ;;  %v8753_v50 = vsel %vm1307_vm4, %v8750_v0, %v8752_v3 }
 0x557   : > { %v7606_v5 = vadd.f32 %v7535_v22, %v7325_v62  ;;  %11867 = vmatprep.mubr.msk.f32.mxu1 %vm6614_vm5, %v15694_v58 }
 0x559   : > { %v11614_v4 = vpop.f32.mrb[146].mxu1 }
 0x55a   : > { %v7544_v31 = vpop.f32.mrb[147].mxu1  ;;  %11868 = vmatmul.mubr.msk.f32.gmra.mrb[252].mxu1 %vm6614_vm5, %v15701_v26 }
 0x55b   : > { %v7607_v54 = vadd.f32 %v7544_v31, %v7334_v45  ;;  %11870 = vmatprep.mubr.msk.f32.mxu1 %vm6614_vm5, %v8751_v38 }
 0x55d   : > { %v11617_v1 = vpop.f32.mrb[148].mxu1 }
 0x55e   : > { %v7553_v39 = vpop.f32.mrb[149].mxu1  ;;  %11871 = vmatmul.mubr.msk.f32.gmra.mrb[254].mxu1 %vm6614_vm5, %v8753_v50 }
 0x55f   : > { %v7608_v58 = vadd.f32 %v7553_v39, %v7343_v17 }
 0x561   : > { %v11620_v51 = vpop.f32.mrb[150].mxu1 }
 0x562   : > { %v7562_v13 = vpop.f32.mrb[151].mxu1 }
 0x563   : > { %v7609_v43 = vadd.f32 %v7562_v13, %v7352_v8 }
 0x565   : > { %v11623_v32 = vpop.f32.mrb[152].mxu1 }
 0x566   : > { %v7571_v15 = vpop.f32.mrb[153].mxu1 }
 0x567   : > { %v7610_v2 = vadd.f32 %v7571_v15, %v7361_v63 }
 0x569   : > { %v11626_v20 = vpop.f32.mrb[154].mxu1 }
 0x56a   : > { %v7580_v36 = vpop.f32.mrb[155].mxu1 }
 0x56b   : > { %v7611_v46 = vadd.f32 %v7580_v36, %v7370_v47 }
 0x56d   : > { %v11629_v26 = vpop.f32.mrb[156].mxu1 }
 0x56e   : > { %v7589_v42 = vpop.f32.mrb[157].mxu1 }
 0x56f   : > { %v7612_v61 = vadd.f32 %v7589_v42, %v7379_v55 }
 0x571   : > { %v11632_v27 = vpop.f32.mrb[158].mxu1 }
 0x572   : > { %v7598_v33 = vpop.f32.mrb[159].mxu1 }
 0x573   : > { %v7613_v24 = vadd.f32 %v7598_v33, %v7388_v16 }
 0x575   : > { %v11651_v14 = vpop.f32.mrb[160].mxu1 }
 0x576   : > { %v7754_v53 = vpop.f32.mrb[161].mxu1 }
 0x577   : > { %v7825_v25 = vadd.f32 %v7754_v53, %v7606_v5 }
 0x579   : > { %v11654_v49 = vpop.f32.mrb[162].mxu1 }
 0x57a   : > { %v7763_v40 = vpop.f32.mrb[163].mxu1 }
 0x57b   : > { %v7826_v62 = vadd.f32 %v7763_v40, %v7607_v54 }
 0x57d   : > { %v11657_v60 = vpop.f32.mrb[164].mxu1 }
 0x57e   : > { %v7772_v9 = vpop.f32.mrb[165].mxu1 }
 0x57f   : > { %v7827_v48 = vadd.f32 %v7772_v9, %v7608_v58 }
 0x581   : > { %v11660_v30 = vpop.f32.mrb[166].mxu1 }
 0x582   : > { %v7781_v45 = vpop.f32.mrb[167].mxu1 }
 0x583   : > { %v7828_v7 = vadd.f32 %v7781_v45, %v7609_v43 }
 0x585   : > { %v11663_v29 = vpop.f32.mrb[168].mxu1 }
 0x586   : > { %v7790_v21 = vpop.f32.mrb[169].mxu1 }
 0x587   : > { %v7829_v23 = vadd.f32 %v7790_v21, %v7610_v2 }
 0x589   : > { %v11666_v10 = vpop.f32.mrb[170].mxu1 }
 0x58a   : > { %v7799_v17 = vpop.f32.mrb[171].mxu1 }
 0x58b   : > { %v7830_v57 = vadd.f32 %v7799_v17, %v7611_v46 }
 0x58d   : > { %v11669_v35 = vpop.f32.mrb[172].mxu1 }
 0x58e   : > { %v7808_v59 = vpop.f32.mrb[173].mxu1 }
 0x58f   : > { %v7831_v6 = vadd.f32 %v7808_v59, %v7612_v61 }
 0x591   : > { %v11672_v8 = vpop.f32.mrb[174].mxu1 }
 0x592   : > { %v7817_v28 = vpop.f32.mrb[175].mxu1 }
 0x593   : > { %v7832_v52 = vadd.f32 %v7817_v28, %v7613_v24 }
 0x595   : > { %v11691_v37 = vpop.f32.mrb[176].mxu1 }
 0x596   : > { %v7974_v63 = vpop.f32.mrb[177].mxu1 }
 0x597   : > { %v8045_v34 = vadd.f32 %v7974_v63, %v7825_v25 }
 0x599   : > { %v11694_v12 = vpop.f32.mrb[178].mxu1 }
 0x59a   : > { %v7983_v47 = vpop.f32.mrb[179].mxu1 }
 0x59b   : > { %v8046_v18 = vadd.f32 %v7983_v47, %v7826_v62 }
 0x59d   : > { %v11697_v56 = vpop.f32.mrb[180].mxu1 }
 0x59e   : > { %v7992_v55 = vpop.f32.mrb[181].mxu1 }
 0x59f   : > { %v8047_v44 = vadd.f32 %v7992_v55, %v7827_v48 }
 0x5a1   : > { %v11700_v41 = vpop.f32.mrb[182].mxu1 }
 0x5a2   : > { %v8001_v16 = vpop.f32.mrb[183].mxu1 }
 0x5a3   : > { %v8048_v0 = vadd.f32 %v8001_v16, %v7828_v7 }
 0x5a5   : > { %v11703_v11 = vpop.f32.mrb[184].mxu1 }
 0x5a6   : > { %v8010_v22 = vpop.f32.mrb[185].mxu1 }
 0x5a7   : > { %v8049_v5 = vadd.f32 %v8010_v22, %v7829_v23 }
 0x5a9   : > { %v11706_v3 = vpop.f32.mrb[186].mxu1 }
 0x5aa   : > { %v8019_v38 = vpop.f32.mrb[187].mxu1 }
 0x5ab   : > { %v8050_v4 = vadd.f32 %v8019_v38, %v7830_v57 }
 0x5ad   : > { %v11709_v31 = vpop.f32.mrb[188].mxu1 }
 0x5ae   : > { %v8028_v54 = vpop.f32.mrb[189].mxu1 }
 0x5af   : > { %v8051_v50 = vadd.f32 %v8028_v54, %v7831_v6 }
 0x5b1   : > { %v11712_v1 = vpop.f32.mrb[190].mxu1 }
 0x5b2   : > { %v8037_v39 = vpop.f32.mrb[191].mxu1 }
 0x5b3   : > { %v8052_v58 = vadd.f32 %v8037_v39, %v7832_v52 }
 0x5b5   : > { %v11731_v51 = vpop.f32.mrb[192].mxu1 }
 0x5b6   : > { %v8193_v13 = vpop.f32.mrb[193].mxu1 }
 0x5b7   : > { %v8264_v43 = vadd.f32 %v8193_v13, %v8045_v34 }
 0x5b9   : > { %v11734_v32 = vpop.f32.mrb[194].mxu1 }
 0x5ba   : > { %v8202_v15 = vpop.f32.mrb[195].mxu1 }
 0x5bb   : > { %v8265_v2 = vadd.f32 %v8202_v15, %v8046_v18 }
 0x5bd   : > { %v11737_v20 = vpop.f32.mrb[196].mxu1 }
 0x5be   : > { %v8211_v36 = vpop.f32.mrb[197].mxu1 }
 0x5bf   : > { %v8266_v46 = vadd.f32 %v8211_v36, %v8047_v44 }
 0x5c1   : > { %v11740_v26 = vpop.f32.mrb[198].mxu1 }
 0x5c2   : > { %v8220_v42 = vpop.f32.mrb[199].mxu1 }
 0x5c3   : > { %v8267_v61 = vadd.f32 %v8220_v42, %v8048_v0 }
 0x5c5   : > { %v11743_v27 = vpop.f32.mrb[200].mxu1 }
 0x5c6   : > { %v8229_v33 = vpop.f32.mrb[201].mxu1 }
 0x5c7   : > { %v8268_v24 = vadd.f32 %v8229_v33, %v8049_v5 }
 0x5c9   : > { %v11746_v14 = vpop.f32.mrb[202].mxu1 }
 0x5ca   : > { %v8238_v53 = vpop.f32.mrb[203].mxu1 }
 0x5cb   : > { %v8269_v25 = vadd.f32 %v8238_v53, %v8050_v4 }
 0x5cd   : > { %v11749_v49 = vpop.f32.mrb[204].mxu1 }
 0x5ce   : > { %v8247_v40 = vpop.f32.mrb[205].mxu1 }
 0x5cf   : > { %v8270_v62 = vadd.f32 %v8247_v40, %v8051_v50 }
 0x5d1   : > { %v11752_v60 = vpop.f32.mrb[206].mxu1 }
 0x5d2   : > { %v8256_v9 = vpop.f32.mrb[207].mxu1 }
 0x5d3   : > { %v8271_v48 = vadd.f32 %v8256_v9, %v8052_v58 }
 0x5d5   : > { %v11771_v30 = vpop.f32.mrb[208].mxu1 }
 0x5d6   : > { %v8413_v45 = vpop.f32.mrb[209].mxu1 }
 0x5d7   : > { %v8484_v7 = vadd.f32 %v8413_v45, %v8264_v43 }
 0x5d9   : > { %v11774_v29 = vpop.f32.mrb[210].mxu1 }
 0x5da   : > { %v8422_v21 = vpop.f32.mrb[211].mxu1 }
 0x5db   : > { %v8485_v23 = vadd.f32 %v8422_v21, %v8265_v2 }
 0x5dd   : > { %v11777_v10 = vpop.f32.mrb[212].mxu1 }
 0x5de   : > { %v8431_v17 = vpop.f32.mrb[213].mxu1 }
 0x5df   : > { %v8486_v57 = vadd.f32 %v8431_v17, %v8266_v46 }
 0x5e1   : > { %v11780_v35 = vpop.f32.mrb[214].mxu1 }
 0x5e2   : > { %v8440_v59 = vpop.f32.mrb[215].mxu1 }
 0x5e3   : > { %v8487_v6 = vadd.f32 %v8440_v59, %v8267_v61  ;;  %v15883_v61 = vld [vmem:[%s16097_s4] ss:$0 sm:$0xff] }
 0x5e5   : > { %v11783_v8 = vpop.f32.mrb[216].mxu1 }
 0x5e6   : > { %v8449_v28 = vpop.f32.mrb[217].mxu1 }
 0x5e7   : > { %v8488_v52 = vadd.f32 %v8449_v28, %v8268_v24 }
 0x5e9   : > { %v11786_v37 = vpop.f32.mrb[218].mxu1 }
 0x5ea   : > { %v8458_v63 = vpop.f32.mrb[219].mxu1 }
 0x5eb   : > { %v8489_v34 = vadd.f32 %v8458_v63, %v8269_v25 }
 0x5ed   : > { %v11789_v12 = vpop.f32.mrb[220].mxu1 }
 0x5ee   : > { %v8467_v47 = vpop.f32.mrb[221].mxu1 }
 0x5ef   : > { %v8490_v18 = vadd.f32 %v8467_v47, %v8270_v62 }
 0x5f1   : > { %v11792_v56 = vpop.f32.mrb[222].mxu1 }
 0x5f2   : > { %v8476_v55 = vpop.f32.mrb[223].mxu1 }
 0x5f3   : > { %v8491_v44 = vadd.f32 %v8476_v55, %v8271_v48 }
 0x5f5   : > { %v11811_v41 = vpop.f32.mrb[224].mxu1 }
 0x5f6   : > { %v8633_v16 = vpop.f32.mrb[225].mxu1 }
 0x5f7   : > { %v8704_v0 = vadd.f32 %v8633_v16, %v8484_v7 }
 0x5f9   : > { %v11814_v11 = vpop.f32.mrb[226].mxu1 }
 0x5fa   : > { %v8642_v22 = vpop.f32.mrb[227].mxu1 }
 0x5fb   : > { %v8705_v5 = vadd.f32 %v8642_v22, %v8485_v23 }
 0x5fd   : > { %v11817_v3 = vpop.f32.mrb[228].mxu1 }
 0x5fe   : > { %v8651_v38 = vpop.f32.mrb[229].mxu1 }
 0x5ff   : > { %v8706_v4 = vadd.f32 %v8651_v38, %v8486_v57 }
 0x601   : > { %v11820_v31 = vpop.f32.mrb[230].mxu1 }
 0x602   : > { %v8660_v54 = vpop.f32.mrb[231].mxu1 }
 0x603   : > { %v8707_v50 = vadd.f32 %v8660_v54, %v8487_v6 }
 0x605   : > { %v11823_v1 = vpop.f32.mrb[232].mxu1 }
 0x606   : > { %v8669_v39 = vpop.f32.mrb[233].mxu1 }
 0x607   : > { %v15872_v58 = vadd.f32 %v8669_v39, %v8488_v52 }
 0x609   : > { %v11826_v51 = vpop.f32.mrb[234].mxu1 }
 0x60a   : > { %v8678_v13 = vpop.f32.mrb[235].mxu1 }
 0x60b   : > { %v15874_v43 = vadd.f32 %v8678_v13, %v8489_v34 }
 0x60d   : > { %v11829_v32 = vpop.f32.mrb[236].mxu1 }
 0x60e   : > { %v8687_v15 = vpop.f32.mrb[237].mxu1 }
 0x60f   : > { %v15876_v2 = vadd.f32 %v8687_v15, %v8490_v18 }
 0x611   : > { %v11832_v20 = vpop.f32.mrb[238].mxu1 }
 0x612   : > { %v8696_v36 = vpop.f32.mrb[239].mxu1 }
 0x613   : > { %v15878_v46 = vadd.f32 %v8696_v36, %v8491_v44 }
 0x615   : > { %v11851_v26 = vpop.f32.mrb[240].mxu1 }
 0x616   : > { %v8852_v42 = vpop.f32.mrb[241].mxu1 }
 0x617   : > { %v8923_v27 = vadd.f32 %v8852_v42, %v8704_v0 }
 0x619   : > { %v8938_v33 = vadd.f32 %v15883_v61, %v8923_v27  ;;  %v11854_v24 = vpop.f32.mrb[242].mxu1 }
 0x61a   : > { %v8861_v14 = vpop.f32.mrb[243].mxu1 }
 0x61b   : > { %v8946_v53 = vmax.f32 %v8938_v33, 0.0  ;;  %v8924_v25 = vadd.f32 %v8861_v14, %v8705_v5 }
 0x61d   : > { %v8962_v49 = vcombine.high %v8946_v53, %v8946_v53  ;;  %v8969_v40 = vrot.slane %v8946_v53, %v14307_v19  ;;  %v8939_v62 = vadd.f32 %v15883_v61, %v8924_v25  ;;  %v11857_v60 = vpop.f32.mrb[244].mxu1 }
 0x61e   : > { %v8870_v9 = vpop.f32.mrb[245].mxu1 }
 0x61f   : > { %v8976_v48 = vrot.slane %v8962_v49, %v14307_v19  ;;  %v8977_v30 = vcombine.high %v8969_v40, %v8969_v40  ;;  %v9131_v45 = vsel %vm9130_vm15, %v8969_v40, -inf  ;;  %v8947_v7 = vmax.f32 %v8939_v62, 0.0 }
 0x620   : > { %v9132_v29 = vrot.slane %v9131_v45, 4  ;;  %v8925_v21 = vadd.f32 %v8870_v9, %v8706_v4 }
 0x621   : > { %v8978_v23 = vcombine.high %v8976_v48, %v8976_v48  ;;  %v9138_v10 = vsel %vm9130_vm15, %v8977_v30, -inf  ;;  %v9145_v17 = vsel %vm9130_vm15, %v8976_v48, -inf  ;;  %v8979_v57 = vcombine.high %v8947_v7, %v8947_v7  ;;  %v11860_v35 = vpop.f32.mrb[246].mxu1 }
 0x622   : > { %v9133_v59 = vmax.f32 %v9131_v45, %v9132_v29  ;;  %v9139_v6 = vrot.slane %v9138_v10, 4  ;;  %v9146_v8 = vrot.slane %v9145_v17, 4  ;;  %v8986_v28 = vrot.slane %v8947_v7, %v14307_v19  ;;  %v8879_v52 = vpop.f32.mrb[247].mxu1 }
 0x623   : > { %v9152_v37 = vsel %vm9130_vm15, %v8978_v23, -inf  ;;  %v8993_v63 = vrot.slane %v8979_v57, %v14307_v19  ;;  %v8940_v34 = vadd.f32 %v15883_v61, %v8925_v21  ;;  %v8926_v12 = vadd.f32 %v8879_v52, %v8707_v50 }
 0x624   : > { %v9134_v47 = vrot.slane %v9133_v59, 2  ;;  %v9140_v18 = vmax.f32 %v9138_v10, %v9139_v6  ;;  %v9147_v56 = vmax.f32 %v9145_v17, %v9146_v8  ;;  %v9153_v55 = vrot.slane %v9152_v37, 4 }
 0x625   : > { %v8994_v44 = vcombine.high %v8986_v28, %v8986_v28  ;;  %v8995_v41 = vcombine.high %v8993_v63, %v8993_v63  ;;  %v9159_v16 = vsel %vm9130_vm15, %v8986_v28, -inf  ;;  %v9173_v0 = vsel %vm9130_vm15, %v8993_v63, -inf  ;;  %v11863_v11 = vpop.f32.mrb[248].mxu1 }
 0x626   : > { %v9135_v22 = vmax.f32 %v9133_v59, %v9134_v47  ;;  %v9141_v5 = vrot.slane %v9140_v18, 2  ;;  %v9148_v3 = vrot.slane %v9147_v56, 2  ;;  %v9154_v38 = vmax.f32 %v9152_v37, %v9153_v55  ;;  %v15898_v4 = vpop.f32.mrb[249].mxu1 }
 0x627   : > { %v9160_v31 = vrot.slane %v9159_v16, 4  ;;  %v9166_v54 = vsel %vm9130_vm15, %v8994_v44, -inf  ;;  %v9174_v50 = vrot.slane %v9173_v0, 4  ;;  %v9180_v1 = vsel %vm9130_vm15, %v8995_v41, -inf }
 0x628   : > { %v9136_v39 = vrot.slane %v9135_v22, 1  ;;  %v9142_v51 = vmax.f32 %v9140_v18, %v9141_v5  ;;  %v9149_v13 = vmax.f32 %v9147_v56, %v9148_v3  ;;  %v9155_v32 = vrot.slane %v9154_v38, 2 }
 0x629   : > { %v9161_v15 = vmax.f32 %v9159_v16, %v9160_v31  ;;  %v9167_v20 = vrot.slane %v9166_v54, 4  ;;  %v9175_v36 = vmax.f32 %v9173_v0, %v9174_v50  ;;  %v9181_v26 = vrot.slane %v9180_v1, 4  ;;  %v11866_v42 = vpop.f32.mrb[250].mxu1 }
 0x62a   : > { %v9137_v27 = vmax.f32 %v9135_v22, %v9136_v39  ;;  %v9143_v33 = vrot.slane %v9142_v51, 1  ;;  %v9150_v24 = vrot.slane %v9149_v13, 1  ;;  %v9156_v14 = vmax.f32 %v9154_v38, %v9155_v32  ;;  %v15902_v53 = vpop.f32.mrb[251].mxu1 }
 0x62b   : > { %v9162_v25 = vrot.slane %v9161_v15, 2  ;;  %v9168_v49 = vmax.f32 %v9166_v54, %v9167_v20  ;;  %v9176_v40 = vrot.slane %v9175_v36, 2  ;;  %v9182_v62 = vmax.f32 %v9180_v1, %v9181_v26 }
 0x62c   : > { %v9144_v60 = vmax.f32 %v9142_v51, %v9143_v33  ;;  %v9151_v9 = vmax.f32 %v9149_v13, %v9150_v24  ;;  %v9157_v48 = vrot.slane %v9156_v14, 1  ;;  %v9356_v30 = vsel %vm9355_vm0, %v9137_v27, -inf }
 0x62d   : > { %v9163_v45 = vmax.f32 %v9161_v15, %v9162_v25  ;;  %v9169_v7 = vrot.slane %v9168_v49, 2  ;;  %v9177_v29 = vmax.f32 %v9175_v36, %v9176_v40  ;;  %v9183_v21 = vrot.slane %v9182_v62, 2  ;;  %v11869_v23 = vpop.f32.mrb[252].mxu1 }
 0x62e   : > { %v9158_v10 = vmax.f32 %v9156_v14, %v9157_v48  ;;  %v9359_v17 = vsel %vm9355_vm0, %v9144_v60, -inf  ;;  %v9362_v57 = vsel %vm9355_vm0, %v9151_v9, -inf  ;;  %v8948_v35 = vmax.f32 %v8940_v34, 0.0  ;;  %v15907_v59 = vpop.f32.mrb[253].mxu1 }
 0x62f   : > { %v9164_v6 = vrot.slane %v9163_v45, 1  ;;  %v9170_v8 = vmax.f32 %v9168_v49, %v9169_v7  ;;  %v9178_v28 = vrot.slane %v9177_v29, 1  ;;  %v9184_v52 = vmax.f32 %v9182_v62, %v9183_v21 }
 0x630   : > { %v15910_v37 = vsel %vm9355_vm0, %v9158_v10, -inf  ;;  %v8996_v63 = vcombine.high %v8948_v35, %v8948_v35  ;;  %v9003_v47 = vrot.slane %v8948_v35, %v14307_v19  ;;  %v8941_v18 = vadd.f32 %v15883_v61, %v8926_v12 }
 0x631   : > { %v9165_v56 = vmax.f32 %v9163_v45, %v9164_v6  ;;  %v9171_v55 = vrot.slane %v9170_v8, 1  ;;  %v9179_v44 = vmax.f32 %v9177_v29, %v9178_v28  ;;  %v9185_v41 = vrot.slane %v9184_v52, 1  ;;  %v11872_v16 = vpop.f32.mrb[254].mxu1 }
 0x632   : > { %v9010_v34 = vrot.slane %v8996_v63, %v14307_v19  ;;  %v9011_v0 = vcombine.high %v9003_v47, %v9003_v47  ;;  %v9187_v11 = vsel %vm9130_vm15, %v9003_v47, -inf  ;;  %v8949_v22 = vmax.f32 %v8941_v18, 0.0  ;;  %v15916_v5 = vpop.f32.mrb[255].mxu1 }
 0x633   : > { %v9172_v3 = vmax.f32 %v9170_v8, %v9171_v55  ;;  %v9186_v38 = vmax.f32 %v9184_v52, %v9185_v41  ;;  %v9357_v31 = vsel %vm9355_vm0, %v9165_v56, -inf  ;;  %v9363_v54 = vsel %vm9355_vm0, %v9179_v44, -inf }
 0x634   : > { %v9358_v12 = vmax.f32 %v9356_v30, %v9357_v31  ;;  %v9364_v50 = vmax.f32 %v9362_v57, %v9363_v54  ;;  %v9012_v1 = vcombine.high %v9010_v34, %v9010_v34  ;;  %v9188_v39 = vrot.slane %v9187_v11, 4 }
 0x635   : > { %v9360_v51 = vsel %vm9355_vm0, %v9172_v3, -inf  ;;  %v15922_v13 = vsel %vm9355_vm0, %v9186_v38, -inf  ;;  %v9194_v32 = vsel %vm9130_vm15, %v9011_v0, -inf  ;;  %v9201_v15 = vsel %vm9130_vm15, %v9010_v34, -inf }
 0x636   : > { %v9361_v20 = vmax.f32 %v9359_v17, %v9360_v51  ;;  %v9367_v36 = vmax.f32 %v15910_v37, %v15922_v13  ;;  %v9189_v26 = vmax.f32 %v9187_v11, %v9188_v39  ;;  %v9195_v42 = vrot.slane %v9194_v32, 4 }
 0x637   : > { %v9202_v27 = vrot.slane %v9201_v15, 4  ;;  %v9208_v33 = vsel %vm9130_vm15, %v9012_v1, -inf  ;;  %v9013_v24 = vcombine.high %v8949_v22, %v8949_v22  ;;  %v9020_v14 = vrot.slane %v8949_v22, %v14307_v19 }
 0x638   : > { %v9420_v25 = vsel %vm6894_vm7, %v9361_v20, %v9358_v12  ;;  %v9190_v49 = vrot.slane %v9189_v26, 2  ;;  %v9196_v40 = vmax.f32 %v9194_v32, %v9195_v42  ;;  %v9209_v62 = vrot.slane %v9208_v33, 4 }
 0x639   : > { %v15932_v60 = vsel %vm6896_vm8, %v9364_v50, %v9420_v25  ;;  %v9203_v9 = vmax.f32 %v9201_v15, %v9202_v27  ;;  %v9027_v48 = vrot.slane %v9013_v24, %v14307_v19  ;;  %v9028_v30 = vcombine.high %v9020_v14, %v9020_v14 }
 0x63a   : > { %v9191_v45 = vmax.f32 %v9189_v26, %v9190_v49  ;;  %v9197_v7 = vrot.slane %v9196_v40, 2  ;;  %v9210_v29 = vmax.f32 %v9208_v33, %v9209_v62  ;;  %v9215_v21 = vsel %vm9130_vm15, %v9020_v14, -inf }
 0x63b   : > { %v9204_v23 = vrot.slane %v9203_v9, 2  ;;  %v9029_v10 = vcombine.high %v9027_v48, %v9027_v48  ;;  %v9216_v17 = vrot.slane %v9215_v21, 4  ;;  %v9222_v57 = vsel %vm9130_vm15, %v9028_v30, -inf }
 0x63c   : > { %v9192_v35 = vrot.slane %v9191_v45, 1  ;;  %v9198_v6 = vmax.f32 %v9196_v40, %v9197_v7  ;;  %v9211_v8 = vrot.slane %v9210_v29, 2  ;;  %v9223_v28 = vrot.slane %v9222_v57, 4 }
 0x63d   : > { %v9205_v52 = vmax.f32 %v9203_v9, %v9204_v23  ;;  %v9217_v63 = vmax.f32 %v9215_v21, %v9216_v17  ;;  %v9229_v47 = vsel %vm9130_vm15, %v9027_v48, -inf  ;;  %v9236_v18 = vsel %vm9130_vm15, %v9029_v10, -inf }
 0x63e   : > { %v9193_v56 = vmax.f32 %v9191_v45, %v9192_v35  ;;  %v9199_v55 = vrot.slane %v9198_v6, 1  ;;  %v9212_v44 = vmax.f32 %v9210_v29, %v9211_v8  ;;  %v9224_v41 = vmax.f32 %v9222_v57, %v9223_v28 }
 0x63f   : > { %v9206_v16 = vrot.slane %v9205_v52, 1  ;;  %v9218_v34 = vrot.slane %v9217_v63, 2  ;;  %v9230_v0 = vrot.slane %v9229_v47, 4  ;;  %v9237_v11 = vrot.slane %v9236_v18, 4 }
 0x640   : > { %v9200_v22 = vmax.f32 %v9198_v6, %v9199_v55  ;;  %v9213_v3 = vrot.slane %v9212_v44, 1  ;;  %v9225_v38 = vrot.slane %v9224_v41, 2  ;;  %v9368_v39 = vsel %vm9355_vm0, %v9193_v56, -inf }
 0x641   : > { %v9207_v31 = vmax.f32 %v9205_v52, %v9206_v16  ;;  %v9219_v54 = vmax.f32 %v9217_v63, %v9218_v34  ;;  %v9231_v12 = vmax.f32 %v9229_v47, %v9230_v0  ;;  %v9238_v50 = vmax.f32 %v9236_v18, %v9237_v11 }
 0x642   : > { %v9214_v1 = vmax.f32 %v9212_v44, %v9213_v3  ;;  %v9226_v51 = vmax.f32 %v9224_v41, %v9225_v38  ;;  %v8927_v32 = vadd.f32 %v15898_v4, %v15872_v58  ;;  %v9371_v15 = vsel %vm9355_vm0, %v9200_v22, -inf }
 0x643   : > { %v9220_v20 = vrot.slane %v9219_v54, 1  ;;  %v9232_v26 = vrot.slane %v9231_v12, 2  ;;  %v9239_v42 = vrot.slane %v9238_v50, 2  ;;  %v9374_v27 = vsel %vm9355_vm0, %v9207_v31, -inf }
 0x644   : > { %v9227_v33 = vrot.slane %v9226_v51, 1  ;;  %v8942_v24 = vadd.f32 %v15883_v61, %v8927_v32  ;;  %v8928_v14 = vadd.f32 %v15902_v53, %v15874_v43  ;;  %v8929_v62 = vadd.f32 %v15907_v59, %v15876_v2 }
 0x645   : > { %v9221_v25 = vmax.f32 %v9219_v54, %v9220_v20  ;;  %v9233_v49 = vmax.f32 %v9231_v12, %v9232_v26  ;;  %v9240_v40 = vmax.f32 %v9238_v50, %v9239_v42  ;;  %v15952_v48 = vadd.f32 %v15916_v5, %v15878_v46 }
 0x646   : > { %v9228_v58 = vmax.f32 %v9226_v51, %v9227_v33  ;;  %v8950_v4 = vmax.f32 %v8942_v24, 0.0  ;;  %v8943_v9 = vadd.f32 %v15883_v61, %v8928_v14  ;;  %v15955_v30 = vsel %vm9355_vm0, %v9214_v1, -inf }
 0x647   : > { %v9234_v45 = vrot.slane %v9233_v49, 1  ;;  %v9241_v7 = vrot.slane %v9240_v40, 1  ;;  %v9369_v43 = vsel %vm9355_vm0, %v9221_v25, -inf  ;;  %v8944_v35 = vadd.f32 %v15883_v61, %v8929_v62 }
 0x648   : > { %v9370_v53 = vmax.f32 %v9368_v39, %v9369_v43  ;;  %v9372_v29 = vsel %vm9355_vm0, %v9228_v58, -inf  ;;  %v9030_v21 = vcombine.high %v8950_v4, %v8950_v4  ;;  %v9037_v2 = vrot.slane %v8950_v4, %v14307_v19 }
 0x649   : > { %v9235_v59 = vmax.f32 %v9233_v49, %v9234_v45  ;;  %v9242_v23 = vmax.f32 %v9240_v40, %v9241_v7  ;;  %v9373_v10 = vmax.f32 %v9371_v15, %v9372_v29  ;;  %v8951_v17 = vmax.f32 %v8943_v9, 0.0 }
 0x64a   : > { %v9044_v46 = vrot.slane %v9030_v21, %v14307_v19  ;;  %v9045_v5 = vcombine.high %v9037_v2, %v9037_v2  ;;  %v9243_v57 = vsel %vm9130_vm15, %v9037_v2, -inf  ;;  %v8952_v39 = vmax.f32 %v8944_v35, 0.0 }
 0x64b   : > { %v9375_v6 = vsel %vm9355_vm0, %v9235_v59, -inf  ;;  %v15965_v8 = vsel %vm9355_vm0, %v9242_v23, -inf  ;;  %v9423_v28 = vsel %vm6894_vm7, %v9373_v10, %v9370_v53  ;;  %v9244_v52 = vrot.slane %v9243_v57, 4 }
 0x64c   : > { %v9376_v63 = vmax.f32 %v9374_v27, %v9375_v6  ;;  %v9379_v47 = vmax.f32 %v15955_v30, %v15965_v8  ;;  %v9046_v18 = vcombine.high %v9044_v46, %v9044_v46  ;;  %v9250_v56 = vsel %vm9130_vm15, %v9045_v5, -inf }
 0x64d   : > { %v9245_v55 = vmax.f32 %v9243_v57, %v9244_v52  ;;  %v9251_v44 = vrot.slane %v9250_v56, 4  ;;  %v9257_v41 = vsel %vm9130_vm15, %v9044_v46, -inf  ;;  %v9047_v16 = vcombine.high %v8951_v17, %v8951_v17 }
 0x64e   : > { %v15973_v34 = vsel %vm6896_vm8, %v9376_v63, %v9423_v28  ;;  %v9258_v0 = vrot.slane %v9257_v41, 4  ;;  %v9264_v11 = vsel %vm9130_vm15, %v9046_v18, -inf  ;;  %v9054_v22 = vrot.slane %v8951_v17, %v14307_v19 }
 0x64f   : > { %v9246_v3 = vrot.slane %v9245_v55, 2  ;;  %v9252_v38 = vmax.f32 %v9250_v56, %v9251_v44  ;;  %v9265_v31 = vrot.slane %v9264_v11, 4  ;;  %v9061_v54 = vrot.slane %v9047_v16, %v14307_v19 }
 0x650   : > { %v9259_v12 = vmax.f32 %v9257_v41, %v9258_v0  ;;  %v9062_v50 = vcombine.high %v9054_v22, %v9054_v22  ;;  %v9271_v1 = vsel %vm9130_vm15, %v9054_v22, -inf  ;;  %v9064_v23 = vcombine.high %v8952_v39, %v8952_v39 }
 0x651   : > { %v9247_v51 = vmax.f32 %v9245_v55, %v9246_v3  ;;  %v9253_v32 = vrot.slane %v9252_v38, 2  ;;  %v9266_v15 = vmax.f32 %v9264_v11, %v9265_v31  ;;  %v9063_v20 = vcombine.high %v9061_v54, %v9061_v54 }
 0x652   : > { %v9260_v26 = vrot.slane %v9259_v12, 2  ;;  %v9272_v42 = vrot.slane %v9271_v1, 4  ;;  %v9278_v27 = vsel %vm9130_vm15, %v9062_v50, -inf  ;;  %v9285_v33 = vsel %vm9130_vm15, %v9061_v54, -inf }
 0x653   : > { %v9248_v24 = vrot.slane %v9247_v51, 1  ;;  %v9254_v14 = vmax.f32 %v9252_v38, %v9253_v32  ;;  %v9267_v25 = vrot.slane %v9266_v15, 2  ;;  %v9279_v49 = vrot.slane %v9278_v27, 4 }
 0x654   : > { %v9261_v40 = vmax.f32 %v9259_v12, %v9260_v26  ;;  %v9273_v62 = vmax.f32 %v9271_v1, %v9272_v42  ;;  %v9286_v58 = vrot.slane %v9285_v33, 4  ;;  %v9292_v4 = vsel %vm9130_vm15, %v9063_v20, -inf }
 0x655   : > { %v9255_v9 = vrot.slane %v9254_v14, 1  ;;  %v9268_v45 = vmax.f32 %v9266_v15, %v9267_v25  ;;  %v9280_v7 = vmax.f32 %v9278_v27, %v9279_v49  ;;  %v9249_v43 = vmax.f32 %v9247_v51, %v9248_v24 }
 0x656   : > { %v9274_v53 = vrot.slane %v9273_v62, 2  ;;  %v9287_v29 = vmax.f32 %v9285_v33, %v9286_v58  ;;  %v9293_v21 = vrot.slane %v9292_v4, 4  ;;  %v9262_v2 = vrot.slane %v9261_v40, 1 }
 0x657   : > { %v9281_v59 = vrot.slane %v9280_v7, 2  ;;  %v9269_v10 = vrot.slane %v9268_v45, 1  ;;  %v9256_v57 = vmax.f32 %v9254_v14, %v9255_v9  ;;  %v9071_v6 = vrot.slane %v8952_v39, %v14307_v19 }
 0x658   : > { %v9275_v17 = vmax.f32 %v9273_v62, %v9274_v53  ;;  %v9288_v46 = vrot.slane %v9287_v29, 2  ;;  %v9294_v5 = vmax.f32 %v9292_v4, %v9293_v21  ;;  %v9380_v28 = vsel %vm9355_vm0, %v9249_v43, -inf }
 0x659   : > { %v9282_v35 = vmax.f32 %v9280_v7, %v9281_v59  ;;  %v9263_v56 = vmax.f32 %v9261_v40, %v9262_v2  ;;  %v9078_v44 = vrot.slane %v9064_v23, %v14307_v19  ;;  %v9079_v41 = vcombine.high %v9071_v6, %v9071_v6 }
 0x65a   : > { %v9276_v52 = vrot.slane %v9275_v17, 1  ;;  %v9289_v63 = vmax.f32 %v9287_v29, %v9288_v46  ;;  %v9295_v18 = vrot.slane %v9294_v5, 2  ;;  %v9270_v16 = vmax.f32 %v9268_v45, %v9269_v10 }
 0x65b   : > { %v9283_v55 = vrot.slane %v9282_v35, 1  ;;  %v9383_v3 = vsel %vm9355_vm0, %v9256_v57, -inf  ;;  %v9080_v31 = vcombine.high %v9078_v44, %v9078_v44  ;;  %v9299_v54 = vsel %vm9130_vm15, %v9071_v6, -inf }
 0x65c   : > { %v9277_v0 = vmax.f32 %v9275_v17, %v9276_v52  ;;  %v9290_v11 = vrot.slane %v9289_v63, 1  ;;  %v9296_v22 = vmax.f32 %v9294_v5, %v9295_v18  ;;  %v9306_v39 = vsel %vm9130_vm15, %v9079_v41, -inf }
 0x65d   : > { %v9284_v38 = vmax.f32 %v9282_v35, %v9283_v55  ;;  %v9386_v51 = vsel %vm9355_vm0, %v9263_v56, -inf  ;;  %v9313_v20 = vsel %vm9130_vm15, %v9078_v44, -inf  ;;  %v9300_v33 = vrot.slane %v9299_v54, 4 }
 0x65e   : > { %v9291_v12 = vmax.f32 %v9289_v63, %v9290_v11  ;;  %v9297_v50 = vrot.slane %v9296_v22, 1  ;;  %v9381_v1 = vsel %vm9355_vm0, %v9277_v0, -inf  ;;  %v9307_v14 = vrot.slane %v9306_v39, 4 }
 0x65f   : > { %v9382_v32 = vmax.f32 %v9380_v28, %v9381_v1  ;;  %v9384_v15 = vsel %vm9355_vm0, %v9284_v38, -inf  ;;  %v9320_v25 = vsel %vm9130_vm15, %v9080_v31, -inf  ;;  %v9389_v49 = vsel %vm9355_vm0, %v9270_v16, -inf }
 0x660   : > { %v9298_v26 = vmax.f32 %v9296_v22, %v9297_v50  ;;  %v9385_v42 = vmax.f32 %v9383_v3, %v9384_v15  ;;  %v9387_v27 = vsel %vm9355_vm0, %v9291_v12, -inf  ;;  %v9314_v58 = vrot.slane %v9313_v20, 4 }
 0x661   : > { %v9388_v24 = vmax.f32 %v9386_v51, %v9387_v27  ;;  %v9321_v45 = vrot.slane %v9320_v25, 4  ;;  %v9301_v7 = vmax.f32 %v9299_v54, %v9300_v33  ;;  %v8945_v43 = vadd.f32 %v15883_v61, %v15952_v48 }
 0x662   : > { %v9390_v40 = vsel %vm9355_vm0, %v9298_v26, -inf  ;;  %v9426_v62 = vsel %vm6894_vm7, %v9385_v42, %v9382_v32  ;;  %v9422_v53 = vsel %vm6898_vm9, %v9367_v36, %v15932_v60  ;;  %v9308_v29 = vmax.f32 %v9306_v39, %v9307_v14 }
 0x663   : > { %v9391_v4 = vmax.f32 %v9389_v49, %v9390_v40  ;;  %v9427_v9 = vsel %vm6896_vm8, %v9388_v24, %v9426_v62  ;;  %v9425_v21 = vsel %vm6898_vm9, %v9379_v47, %v15973_v34  ;;  %9437 = vst.msk [vmem:[%s16014_s6] sm:$0xf] %vm9436_vm1, %v9422_v53  ;;  %v9315_v61 = vmax.f32 %v9313_v20, %v9314_v58 }
 0x664   : > { %v8953_v37 = vmax.f32 %v8945_v43, 0.0  ;;  %9438 = vst.msk [vmem:[%s16014_s6 + $0x4] sm:$0xf] %vm9436_vm1, %v9425_v21  ;;  %v9322_v13 = vmax.f32 %v9320_v25, %v9321_v45  ;;  %v9302_v36 = vrot.slane %v9301_v7, 2  ;;  %v9309_v30 = vrot.slane %v9308_v29, 2 }
 0x665   : > { %v9428_v2 = vsel %vm6898_vm9, %v9391_v4, %v9427_v9  ;;  %v9316_v8 = vrot.slane %v9315_v61, 2 }
 0x666   : > { %9439 = vst.msk [vmem:[%s16014_s6 + $0x8] sm:$0xf] %vm9436_vm1, %v9428_v2  ;;  %v9081_v60 = vcombine.high %v8953_v37, %v8953_v37  ;;  %v9088_v48 = vrot.slane %v8953_v37, %v14307_v19  ;;  %v9323_v59 = vrot.slane %v9322_v13, 2  ;;  %v9303_v10 = vmax.f32 %v9301_v7, %v9302_v36 }
 0x667   : > { %v9310_v57 = vmax.f32 %v9308_v29, %v9309_v30  ;;  %v9317_v28 = vmax.f32 %v9315_v61, %v9316_v8 }
 0x668   : > { %v9095_v47 = vrot.slane %v9081_v60, %v14307_v19  ;;  %v9096_v34 = vcombine.high %v9088_v48, %v9088_v48  ;;  %v9327_v23 = vsel %vm9130_vm15, %v9088_v48, -inf  ;;  %v9324_v56 = vmax.f32 %v9322_v13, %v9323_v59 }
 0x669   : > { %v9328_v46 = vrot.slane %v9327_v23, 4  ;;  %v9304_v44 = vrot.slane %v9303_v10, 1  ;;  %v9311_v0 = vrot.slane %v9310_v57, 1  ;;  %v9318_v3 = vrot.slane %v9317_v28, 1 }
 0x66a   : > { %v9097_v17 = vcombine.high %v9095_v47, %v9095_v47  ;;  %v9334_v5 = vsel %vm9130_vm15, %v9096_v34, -inf  ;;  %v9341_v6 = vsel %vm9130_vm15, %v9095_v47, -inf  ;;  %v9325_v54 = vrot.slane %v9324_v56, 1 }
 0x66b   : > { %v9335_v35 = vrot.slane %v9334_v5, 4  ;;  %v9329_v52 = vmax.f32 %v9327_v23, %v9328_v46  ;;  %v9342_v63 = vrot.slane %v9341_v6, 4  ;;  %v9305_v1 = vmax.f32 %v9303_v10, %v9304_v44 }
 0x66c   : > { %v9348_v18 = vsel %vm9130_vm15, %v9097_v17, -inf  ;;  %v9312_v32 = vmax.f32 %v9310_v57, %v9311_v0  ;;  %v9319_v26 = vmax.f32 %v9317_v28, %v9318_v3  ;;  %v9326_v33 = vmax.f32 %v9324_v56, %v9325_v54 }
 0x66d   : > { %v9336_v19 = vmax.f32 %v9334_v5, %v9335_v35  ;;  %v9349_v55 = vrot.slane %v9348_v18, 4  ;;  %v9330_v41 = vrot.slane %v9329_v52, 2  ;;  %v9343_v16 = vmax.f32 %v9341_v6, %v9342_v63 }
 0x66e   : > { %v9392_v25 = vsel %vm9355_vm0, %v9305_v1, -inf  ;;  %v9395_v62 = vsel %vm9355_vm0, %v9312_v32, -inf  ;;  %v9398_v45 = vsel %vm9355_vm0, %v9319_v26, -inf  ;;  %v9401_v53 = vsel %vm9355_vm0, %v9326_v33, -inf }
 0x66f   : > { %v9337_v11 = vrot.slane %v9336_v19, 2  ;;  %v9350_v22 = vmax.f32 %v9348_v18, %v9349_v55  ;;  %v9331_v38 = vmax.f32 %v9329_v52, %v9330_v41  ;;  %v9344_v31 = vrot.slane %v9343_v16, 2 }
 0x671   : > { %v9338_v12 = vmax.f32 %v9336_v19, %v9337_v11  ;;  %v9351_v50 = vrot.slane %v9350_v22, 2  ;;  %v9332_v39 = vrot.slane %v9331_v38, 1  ;;  %v9345_v51 = vmax.f32 %v9343_v16, %v9344_v31 }
 0x673   : > { %v9339_v15 = vrot.slane %v9338_v12, 1  ;;  %v9352_v20 = vmax.f32 %v9350_v22, %v9351_v50  ;;  %v9333_v42 = vmax.f32 %v9331_v38, %v9332_v39  ;;  %v9346_v27 = vrot.slane %v9345_v51, 1 }
 0x675   : > { %v9340_v24 = vmax.f32 %v9338_v12, %v9339_v15  ;;  %v9353_v14 = vrot.slane %v9352_v20, 1  ;;  %v9347_v49 = vmax.f32 %v9345_v51, %v9346_v27  ;;  %v9393_v40 = vsel %vm9355_vm0, %v9333_v42, -inf }
 0x676   : > { %v9394_v4 = vmax.f32 %v9392_v25, %v9393_v40 }
 0x677   : > { %v9354_v58 = vmax.f32 %v9352_v20, %v9353_v14  ;;  %v9396_v9 = vsel %vm9355_vm0, %v9340_v24, -inf  ;;  %v9399_v43 = vsel %vm9355_vm0, %v9347_v49, -inf }
 0x678   : > { %v9397_v7 = vmax.f32 %v9395_v62, %v9396_v9  ;;  %v9400_v29 = vmax.f32 %v9398_v45, %v9399_v43 }
 0x679   : > { %v9402_v21 = vsel %vm9355_vm0, %v9354_v58, -inf }
 0x67a   : > { %v9403_v2 = vmax.f32 %v9401_v53, %v9402_v21  ;;  %v9429_v61 = vsel %vm6894_vm7, %v9397_v7, %v9394_v4 }
 0x67b   : > { %v9430_v37 = vsel %vm6896_vm8, %v9400_v29, %v9429_v61 }
 0x67c   : > { %v9431_v13 = vsel %vm6898_vm9, %v9403_v2, %v9430_v37 }
 0x67d   : > { %9440 = vst.msk [vmem:[%s16014_s6 + $0xc] sm:$0xf] %vm9436_vm1, %v9431_v13 }
 0x67e   : > { %12212 = shalt.err (!%p12209_p3)
}
 0x67f   : > { %s12213_s16 = scalar_lea.hbm %s16042_s11, 256  ;;  %s12217_s25 = scalar_lea.hbm %s16098_s5, 512 }
 0x680   : > { %p12214_p4 = scmp.ne.s32.totalorder %s16042_s11, %s12213_s16  ;;  %p12218_p9 = scmp.lt.u32.totalorder %s16042_s11, %s16098_s5 }
 0x681   : > { %p12219_p10 = scmp.lt.u32.totalorder %s12217_s25, %s12213_s16  ;;  %p12221_p12 = scmp.lt.u32.totalorder %s12213_s16, %s16042_s11 }
 0x682   : > { %p12215_p7 = pnand %p12214_p4, %p12336_p5 }
 0x683   : > { %p12220_p11 = por %p12219_p10, %p12218_p9 }
 0x684   : > { %p12216_p8 = pneg %p12215_p7 }
 0x685   : > { %p12222_p13 = por %p12221_p12, %p12220_p11 }
 0x687   : > { %p12223_p0 = pnand %p12222_p13, %p12216_p8 }
 0x689   : > { %12226 = shalt.err (!%p12223_p0)
}
 0x68a   : > { %s12266_s6 = smov 64   ;;  %s12267_s7 = smov 4  }
 0x68b   : > { %12145 = dma.vmem_to_hbm [thread:$0]  (%p12336_p5), %s16044_s8, 256, %s16042_s11, %s16052_s22, %s12266_s6, %s12266_s6, %s12267_s7  }
 0x68c PF: > { %p12151_p1 = scmp.ge.s32.totalorder %s12261_s21, 2  ;;  %s9470_s9 = sand.u32 1, %s12249_s18  }
 0x68d   : > { %s9471_s10 = scalar_lea.sflag [#allocation5], %s9470_s9 }
 0x68e   : > { %p12148_p2 = pnand %p12151_p1, %p12340_p6 }
 0x690   : > { %12244 = dma.done.wait (!%p12148_p2), %s9471_s10, 256  }
 0x691   : > { %12246 = vsyncadd (!%p12148_p2), %s9471_s10, 4294967040  ;;  %p15_p3 = scmp.ge.s32.totalorder %s12323_s24, 4   ;;  %s16445_s18 = smov %s12253_s19 }
 0x692   : > { %s16446_s19 = smov %s12257_s20  ;;  %s16447_s20 = smov %s12334_s27 }
 0x693   : > { %s16448_s21 = smov %s12323_s24  ;;  %17 = sbr.rel (!%p15_p3) target bundleno = 3 (0x3), region = 97 }
 0x69a   :  { %9476 = vsyncpa [#allocation5], 1 }
 0x69b   :  { %9478 = vsyncpa [#allocation5 + $0x1], 1 }

</bundles_post_ra>
